<compile_context>
chip_gen: v5e
topology: v5e:2x2
jax: 0.10.0
libtpu: 0.0.40
codegen_flags: <defaults>
</compile_context>

<pallas_src>
import math

import jax
import jax.numpy as jnp
from jax.experimental import pallas as pl
from jax.experimental.pallas import tpu as pltpu

D = 42   # input_dim
L = 22   # latent_dim
M = 36   # hidden_dim

LOG_2PI = math.log(2.0 * math.pi)


def _round_up(n, m):
    return (n + m - 1) // m * m


MP = _round_up(M, 8)      # 40: 8-aligned K used for the hidden-layer matmuls
XE = D + L                # 64: packed [x | eps] lane width (exactly 42 + 22)

# ---- static layout of the packed parameter slab (rows x 128 lanes) ----
_WEIGHT_SHAPES = (
    ("we1", D, M), ("we2", M, M), ("we3", M, M), ("we4", M, 2 * L),
    ("wd1", L, M), ("wd2", M, M), ("wd3", M, M), ("wd4", M, D),
)
_BIAS_ORDER = ("be1", "be2", "be3", "be4", "bd1", "bd2", "bd3", "bd4")
_BIAS_COLS = {"be1": M, "be2": M, "be3": M, "be4": 2 * L,
              "bd1": M, "bd2": M, "bd3": M, "bd4": D}

_LAYOUT = {}
_row = 0
for _name, _r, _c in _WEIGHT_SHAPES:
    _LAYOUT[_name] = (_row, _r, _c)
    _row += _round_up(_r, 8)          # every weight block starts 8-aligned;
                                      # rows past fan_in stay zero (exact pad)
_BIAS_ROW0 = _row                     # 8 bias rows at the end (one per layer)
_row += 8
SLAB_ROWS = _round_up(_row, 8)        # 320
SLAB_COLS = 128


def _vae_kernel(xe_ref, slab_ref, out_ref):
    def dense(a, wname, bidx, relu):
        # K = a.shape[1]; weight rows past the true fan_in and lanes past the
        # true fan_out are exact zeros in the slab, so padded K / full-128 N
        # matmuls stay bit-identical (bias pad is zero, relu(0) == 0).
        r0, _, _ = _LAYOUT[wname]
        k = a.shape[1]
        w = slab_ref[r0:r0 + k, 0:SLAB_COLS]
        b = slab_ref[_BIAS_ROW0 + bidx:_BIAS_ROW0 + bidx + 1, 0:SLAB_COLS]
        y = jnp.dot(a, w, preferred_element_type=jnp.float32) + b
        return jnp.maximum(y, 0.0) if relu else y

    # ---- Encoder MLP: D -> M -> M -> M -> 2L (fused mu / log_var head) ----
    h = dense(xe_ref[:, 0:D], "we1", 0, True)     # x read only here
    h = dense(h[:, 0:MP], "we2", 1, True)
    h = dense(h[:, 0:MP], "we3", 2, True)
    he = dense(h[:, 0:MP], "we4", 3, False)       # (TB, 128); cols 0:2L real
    mu_e = he[:, 0:L]
    log_var_e = he[:, L:2 * L]

    # ---- Reparameterization + EARLY KL reduction (before the decoder) ----
    eps = xe_ref[:, D:D + L]                      # eps read only here
    z = mu_e + jnp.exp(0.5 * log_var_e) * eps     # (TB, L)
    # KL = log q(z|x) - log p(z); with z - mu = exp(0.5*lv)*eps the per-element
    # term reduces to 0.5*(z^2 - eps^2 - log_var); log(2*pi) terms cancel.
    kl_sum = 0.5 * jnp.sum(z * z - eps * eps - log_var_e)
    # eps / mu_e / log_var_e are dead from here on -> no spills over decoder.

    # ---- Decoder MLP: L -> M -> M -> M -> D, sigmoid output ----
    hd = dense(z, "wd1", 4, True)
    hd = dense(hd[:, 0:MP], "wd2", 5, True)
    hd = dense(hd[:, 0:MP], "wd3", 6, True)
    mu_d = jax.nn.sigmoid(dense(hd[:, 0:MP], "wd4", 7, False))   # (TB, 128)

    # ---- Reconstruction loss: re-read x (not live across the MLP) ----
    recon_sum = jnp.sum((xe_ref[:, 0:D] - mu_d[:, 0:D]) ** 2)

    # Lane-dense (1,1,128) output row: recon in lane 0, kl in lane 1.
    lane = jax.lax.broadcasted_iota(jnp.int32, (1, 1, SLAB_COLS), 2)
    out_ref[...] = jnp.where(lane == 0, recon_sum,
                             jnp.where(lane == 1, kl_sum, 0.0))


def vae_forward(x, eps, slab, *, tb=None):
    """Returns (reconstruction_loss, kl) as batch-mean scalars (reduction='avg')."""
    B = x.shape[0]
    if tb is None:
        # Default: 2 batch tiles. Negligible extra per-step cost on v5e/v6e,
        # and keeps a second "parallel" tile available for v7x's 2nd TC.
        tb = B // 2 if (B % 2 == 0 and (B // 2) % 8 == 0) else B
    assert B % tb == 0, "batch must be a multiple of the batch tile"
    nt = B // tb

    # Pack [x | eps] into one lane-dense (B, 64) operand -> 1 input DMA/step.
    xe = jnp.concatenate([x, eps], axis=1)

    partial = pl.pallas_call(
        _vae_kernel,
        out_shape=jax.ShapeDtypeStruct((nt, 1, SLAB_COLS), jnp.float32),
        grid_spec=pltpu.PrefetchScalarGridSpec(
            num_scalar_prefetch=0,
            grid=(nt,),
            in_specs=[
                pl.BlockSpec((tb, XE), lambda i: (i, 0)),                 # [x|eps] tile
                pl.BlockSpec((SLAB_ROWS, SLAB_COLS), lambda i: (0, 0)),   # params (resident)
            ],
            out_specs=pl.BlockSpec((1, 1, SLAB_COLS), lambda i: (i, 0, 0)),
        ),
        compiler_params=pltpu.CompilerParams(
            dimension_semantics=("parallel",)),
    )(xe, slab)
    recon = jnp.sum(partial[:, 0, 0]) / B
    kl = jnp.sum(partial[:, 0, 1]) / B
    return recon, kl


def _init_linear(key, fan_in, fan_out):
    """PyTorch-default-style deterministic init: U(-1/sqrt(fan_in), 1/sqrt(fan_in))."""
    kw, kb = jax.random.split(key)
    bound = 1.0 / math.sqrt(fan_in)
    w = jax.random.uniform(kw, (fan_in, fan_out), jnp.float32, -bound, bound)
    b = jax.random.uniform(kb, (fan_out,), jnp.float32, -bound, bound)
    return w, b


def make_params(key):
    keys = jax.random.split(key, 8)
    p = {}
    p["we1"], p["be1"] = _init_linear(keys[0], D, M)
    p["we2"], p["be2"] = _init_linear(keys[1], M, M)
    p["we3"], p["be3"] = _init_linear(keys[2], M, M)
    p["we4"], p["be4"] = _init_linear(keys[3], M, 2 * L)   # fused mu / log_var head
    p["wd1"], p["bd1"] = _init_linear(keys[4], L, M)
    p["wd2"], p["bd2"] = _init_linear(keys[5], M, M)
    p["wd3"], p["bd3"] = _init_linear(keys[6], M, M)
    p["wd4"], p["bd4"] = _init_linear(keys[7], M, D)
    return p


def pack_params(params):
    """Packs all weights/biases into a single zero-padded (SLAB_ROWS, 128) f32 slab."""
    slab = jnp.zeros((SLAB_ROWS, SLAB_COLS), jnp.float32)
    for name, nr, nc in _WEIGHT_SHAPES:
        r0, _, _ = _LAYOUT[name]
        slab = slab.at[r0:r0 + nr, 0:nc].set(params[name])
    for i, bname in enumerate(_BIAS_ORDER):
        nc = _BIAS_COLS[bname]
        slab = slab.at[_BIAS_ROW0 + i, 0:nc].set(params[bname])
    return slab


if __name__ == "__main__":
    key = jax.random.PRNGKey(0)
    k_params, k_x, k_eps = jax.random.split(key, 3)

    B = 1024
    params = make_params(k_params)
    slab = pack_params(params)
    x = jax.random.uniform(k_x, (B, D), jnp.float32)      # continuous inputs in [0,1)
    eps = jax.random.normal(k_eps, (B, L), jnp.float32)   # reparameterization noise

    # TODO(synk): the torch forward calls encode/sample a second time purely for
    # an extra RNG draw; it does not affect the returned values, so it is omitted.

    fwd = jax.jit(lambda x, eps, slab: vae_forward(x, eps, slab))
    recon_loss, kl = fwd(x, eps, slab)
    jax.block_until_ready((recon_loss, kl))

    # Pure-JAX reference using the original (unsimplified) formulation.
    def ref(x, eps):
        p = params
        h = jnp.maximum(x @ p["we1"] + p["be1"], 0.0)
        h = jnp.maximum(h @ p["we2"] + p["be2"], 0.0)
        h = jnp.maximum(h @ p["we3"] + p["be3"], 0.0)
        he = h @ p["we4"] + p["be4"]
        mu_e, lv_e = he[:, :L], he[:, L:]
        z = mu_e + jnp.exp(0.5 * lv_e) * eps
        hd = jnp.maximum(z @ p["wd1"] + p["bd1"], 0.0)
        hd = jnp.maximum(hd @ p["wd2"] + p["bd2"], 0.0)
        hd = jnp.maximum(hd @ p["wd3"] + p["bd3"], 0.0)
        mu_d = jax.nn.sigmoid(hd @ p["wd4"] + p["bd4"])
        rl = jnp.sum((x - mu_d) ** 2, axis=1)
        lq = jnp.sum(-0.5 * LOG_2PI - 0.5 * lv_e
                     - 0.5 * jnp.exp(-lv_e) * (z - mu_e) ** 2, axis=1)
        lp = jnp.sum(-0.5 * LOG_2PI - 0.5 * z ** 2, axis=1)
        return jnp.mean(rl), jnp.mean(lq - lp)

    r_ref, k_ref_val = ref(x, eps)
    assert jnp.allclose(recon_loss, r_ref, rtol=1e-4, atol=1e-4), (recon_loss, r_ref)
    assert jnp.allclose(kl, k_ref_val, rtol=1e-4, atol=1e-4), (kl, k_ref_val)

    print("KERNEL_OK")
</pallas_src>

<mosaic_0001>
module attributes {stable_mosaic.version = 11 : i64} {
  func.func @_vae_kernel(%arg0: i32, %arg1: memref<512x64xf32, #tpu.memory_space<vmem>>, %arg2: memref<320x128xf32, #tpu.memory_space<vmem>>, %arg3: memref<1x1x128xf32, #tpu.memory_space<vmem>>) attributes {dimension_semantics = [#tpu.dimension_semantics<parallel>], iteration_bounds = array<i64: 2>, scalar_prefetch = 0 : i64, scratch_operands = 0 : i64, tpu.core_type = #tpu.core_type<tc>, window_params = [{transform_indices = @transform_0, window_bounds = array<i64: 512, 64>}, {pipeline_mode = #tpu.pipeline_mode<synchronous>, transform_indices = @transform_1, window_bounds = array<i64: 320, 128>}, {transform_indices = @transform_2, window_bounds = array<i64: 1, 1, 128>}]} {
    %c0 = arith.constant 0 : index
    %c0_0 = arith.constant 0 : index
    %0 = vector.load %arg1[%c0, %c0_0] : memref<512x64xf32, #tpu.memory_space<vmem>>, vector<512x42xf32>
    %c0_1 = arith.constant 0 : index
    %c0_2 = arith.constant 0 : index
    %1 = vector.load %arg2[%c0_1, %c0_2] : memref<320x128xf32, #tpu.memory_space<vmem>>, vector<42x128xf32>
    %c312 = arith.constant 312 : index
    %c0_3 = arith.constant 0 : index
    %2 = vector.load %arg2[%c312, %c0_3] : memref<320x128xf32, #tpu.memory_space<vmem>>, vector<1x128xf32>
    %cst = arith.constant dense<0.000000e+00> : vector<512x128xf32>
    %3 = tpu.matmul %0, %1, %cst {dimension_numbers = #tpu.dot_dimension_numbers<[1], [0], [0], [1], [0, 0, 1, 1], [], []>} : vector<512x42xf32>, vector<42x128xf32>, vector<512x128xf32> -> vector<512x128xf32>
    %4 = vector.broadcast %2 : vector<1x128xf32> to vector<512x128xf32>
    %5 = arith.addf %3, %4 : vector<512x128xf32>
    %cst_4 = arith.constant 0.000000e+00 : f32
    %6 = vector.broadcast %cst_4 : f32 to vector<512x128xf32>
    %7 = arith.maximumf %5, %6 : vector<512x128xf32>
    %8 = vector.extract_strided_slice %7 {offsets = [0, 0], sizes = [512, 40], strides = [1, 1]} : vector<512x128xf32> to vector<512x40xf32>
    %c48 = arith.constant 48 : index
    %c0_5 = arith.constant 0 : index
    %9 = vector.load %arg2[%c48, %c0_5] : memref<320x128xf32, #tpu.memory_space<vmem>>, vector<40x128xf32>
    %c313 = arith.constant 313 : index
    %c0_6 = arith.constant 0 : index
    %10 = vector.load %arg2[%c313, %c0_6] : memref<320x128xf32, #tpu.memory_space<vmem>>, vector<1x128xf32>
    %cst_7 = arith.constant dense<0.000000e+00> : vector<512x128xf32>
    %11 = tpu.matmul %8, %9, %cst_7 {dimension_numbers = #tpu.dot_dimension_numbers<[1], [0], [0], [1], [0, 0, 1, 1], [], []>} : vector<512x40xf32>, vector<40x128xf32>, vector<512x128xf32> -> vector<512x128xf32>
    %12 = vector.broadcast %10 : vector<1x128xf32> to vector<512x128xf32>
    %13 = arith.addf %11, %12 : vector<512x128xf32>
    %cst_8 = arith.constant 0.000000e+00 : f32
    %14 = vector.broadcast %cst_8 : f32 to vector<512x128xf32>
    %15 = arith.maximumf %13, %14 : vector<512x128xf32>
    %16 = vector.extract_strided_slice %15 {offsets = [0, 0], sizes = [512, 40], strides = [1, 1]} : vector<512x128xf32> to vector<512x40xf32>
    %c88 = arith.constant 88 : index
    %c0_9 = arith.constant 0 : index
    %17 = vector.load %arg2[%c88, %c0_9] : memref<320x128xf32, #tpu.memory_space<vmem>>, vector<40x128xf32>
    %c314 = arith.constant 314 : index
    %c0_10 = arith.constant 0 : index
    %18 = vector.load %arg2[%c314, %c0_10] : memref<320x128xf32, #tpu.memory_space<vmem>>, vector<1x128xf32>
    %cst_11 = arith.constant dense<0.000000e+00> : vector<512x128xf32>
    %19 = tpu.matmul %16, %17, %cst_11 {dimension_numbers = #tpu.dot_dimension_numbers<[1], [0], [0], [1], [0, 0, 1, 1], [], []>} : vector<512x40xf32>, vector<40x128xf32>, vector<512x128xf32> -> vector<512x128xf32>
    %20 = vector.broadcast %18 : vector<1x128xf32> to vector<512x128xf32>
    %21 = arith.addf %19, %20 : vector<512x128xf32>
    %cst_12 = arith.constant 0.000000e+00 : f32
    %22 = vector.broadcast %cst_12 : f32 to vector<512x128xf32>
    %23 = arith.maximumf %21, %22 : vector<512x128xf32>
    %24 = vector.extract_strided_slice %23 {offsets = [0, 0], sizes = [512, 40], strides = [1, 1]} : vector<512x128xf32> to vector<512x40xf32>
    %c128 = arith.constant 128 : index
    %c0_13 = arith.constant 0 : index
    %25 = vector.load %arg2[%c128, %c0_13] : memref<320x128xf32, #tpu.memory_space<vmem>>, vector<40x128xf32>
    %c315 = arith.constant 315 : index
    %c0_14 = arith.constant 0 : index
    %26 = vector.load %arg2[%c315, %c0_14] : memref<320x128xf32, #tpu.memory_space<vmem>>, vector<1x128xf32>
    %cst_15 = arith.constant dense<0.000000e+00> : vector<512x128xf32>
    %27 = tpu.matmul %24, %25, %cst_15 {dimension_numbers = #tpu.dot_dimension_numbers<[1], [0], [0], [1], [0, 0, 1, 1], [], []>} : vector<512x40xf32>, vector<40x128xf32>, vector<512x128xf32> -> vector<512x128xf32>
    %28 = vector.broadcast %26 : vector<1x128xf32> to vector<512x128xf32>
    %29 = arith.addf %27, %28 : vector<512x128xf32>
    %30 = vector.extract_strided_slice %29 {offsets = [0, 0], sizes = [512, 22], strides = [1, 1]} : vector<512x128xf32> to vector<512x22xf32>
    %31 = vector.extract_strided_slice %29 {offsets = [0, 22], sizes = [512, 22], strides = [1, 1]} : vector<512x128xf32> to vector<512x22xf32>
    %c0_16 = arith.constant 0 : index
    %c42 = arith.constant 42 : index
    %32 = vector.load %arg1[%c0_16, %c42] : memref<512x64xf32, #tpu.memory_space<vmem>>, vector<512x22xf32>
    %cst_17 = arith.constant 5.000000e-01 : f32
    %33 = vector.broadcast %cst_17 : f32 to vector<512x22xf32>
    %34 = arith.mulf %33, %31 : vector<512x22xf32>
    %35 = math.exp %34 : vector<512x22xf32>
    %36 = arith.mulf %35, %32 : vector<512x22xf32>
    %37 = arith.addf %30, %36 : vector<512x22xf32>
    %38 = arith.mulf %37, %37 : vector<512x22xf32>
    %39 = arith.mulf %32, %32 : vector<512x22xf32>
    %40 = arith.subf %38, %39 : vector<512x22xf32>
    %41 = arith.subf %40, %31 : vector<512x22xf32>
    %42 = vector.shape_cast %41 : vector<512x22xf32> to vector<1x512x22xf32>
    %cst_18 = arith.constant dense<0.000000e+00> : vector<1xf32>
    %43 = vector.multi_reduction <add>, %42, %cst_18 [1, 2] : vector<1x512x22xf32> to vector<1xf32>
    %44 = vector.shape_cast %43 : vector<1xf32> to vector<1x1x1xf32>
    %45 = vector.extract %44[0, 0, 0] : f32 from vector<1x1x1xf32>
    %cst_19 = arith.constant 5.000000e-01 : f32
    %46 = arith.mulf %cst_19, %45 : f32
    %c168 = arith.constant 168 : index
    %c0_20 = arith.constant 0 : index
    %47 = vector.load %arg2[%c168, %c0_20] : memref<320x128xf32, #tpu.memory_space<vmem>>, vector<22x128xf32>
    %c316 = arith.constant 316 : index
    %c0_21 = arith.constant 0 : index
    %48 = vector.load %arg2[%c316, %c0_21] : memref<320x128xf32, #tpu.memory_space<vmem>>, vector<1x128xf32>
    %cst_22 = arith.constant dense<0.000000e+00> : vector<512x128xf32>
    %49 = tpu.matmul %37, %47, %cst_22 {dimension_numbers = #tpu.dot_dimension_numbers<[1], [0], [0], [1], [0, 0, 1, 1], [], []>} : vector<512x22xf32>, vector<22x128xf32>, vector<512x128xf32> -> vector<512x128xf32>
    %50 = vector.broadcast %48 : vector<1x128xf32> to vector<512x128xf32>
    %51 = arith.addf %49, %50 : vector<512x128xf32>
    %cst_23 = arith.constant 0.000000e+00 : f32
    %52 = vector.broadcast %cst_23 : f32 to vector<512x128xf32>
    %53 = arith.maximumf %51, %52 : vector<512x128xf32>
    %54 = vector.extract_strided_slice %53 {offsets = [0, 0], sizes = [512, 40], strides = [1, 1]} : vector<512x128xf32> to vector<512x40xf32>
    %c192 = arith.constant 192 : index
    %c0_24 = arith.constant 0 : index
    %55 = vector.load %arg2[%c192, %c0_24] : memref<320x128xf32, #tpu.memory_space<vmem>>, vector<40x128xf32>
    %c317 = arith.constant 317 : index
    %c0_25 = arith.constant 0 : index
    %56 = vector.load %arg2[%c317, %c0_25] : memref<320x128xf32, #tpu.memory_space<vmem>>, vector<1x128xf32>
    %cst_26 = arith.constant dense<0.000000e+00> : vector<512x128xf32>
    %57 = tpu.matmul %54, %55, %cst_26 {dimension_numbers = #tpu.dot_dimension_numbers<[1], [0], [0], [1], [0, 0, 1, 1], [], []>} : vector<512x40xf32>, vector<40x128xf32>, vector<512x128xf32> -> vector<512x128xf32>
    %58 = vector.broadcast %56 : vector<1x128xf32> to vector<512x128xf32>
    %59 = arith.addf %57, %58 : vector<512x128xf32>
    %cst_27 = arith.constant 0.000000e+00 : f32
    %60 = vector.broadcast %cst_27 : f32 to vector<512x128xf32>
    %61 = arith.maximumf %59, %60 : vector<512x128xf32>
    %62 = vector.extract_strided_slice %61 {offsets = [0, 0], sizes = [512, 40], strides = [1, 1]} : vector<512x128xf32> to vector<512x40xf32>
    %c232 = arith.constant 232 : index
    %c0_28 = arith.constant 0 : index
    %63 = vector.load %arg2[%c232, %c0_28] : memref<320x128xf32, #tpu.memory_space<vmem>>, vector<40x128xf32>
    %c318 = arith.constant 318 : index
    %c0_29 = arith.constant 0 : index
    %64 = vector.load %arg2[%c318, %c0_29] : memref<320x128xf32, #tpu.memory_space<vmem>>, vector<1x128xf32>
    %cst_30 = arith.constant dense<0.000000e+00> : vector<512x128xf32>
    %65 = tpu.matmul %62, %63, %cst_30 {dimension_numbers = #tpu.dot_dimension_numbers<[1], [0], [0], [1], [0, 0, 1, 1], [], []>} : vector<512x40xf32>, vector<40x128xf32>, vector<512x128xf32> -> vector<512x128xf32>
    %66 = vector.broadcast %64 : vector<1x128xf32> to vector<512x128xf32>
    %67 = arith.addf %65, %66 : vector<512x128xf32>
    %cst_31 = arith.constant 0.000000e+00 : f32
    %68 = vector.broadcast %cst_31 : f32 to vector<512x128xf32>
    %69 = arith.maximumf %67, %68 : vector<512x128xf32>
    %70 = vector.extract_strided_slice %69 {offsets = [0, 0], sizes = [512, 40], strides = [1, 1]} : vector<512x128xf32> to vector<512x40xf32>
    %c272 = arith.constant 272 : index
    %c0_32 = arith.constant 0 : index
    %71 = vector.load %arg2[%c272, %c0_32] : memref<320x128xf32, #tpu.memory_space<vmem>>, vector<40x128xf32>
    %c319 = arith.constant 319 : index
    %c0_33 = arith.constant 0 : index
    %72 = vector.load %arg2[%c319, %c0_33] : memref<320x128xf32, #tpu.memory_space<vmem>>, vector<1x128xf32>
    %cst_34 = arith.constant dense<0.000000e+00> : vector<512x128xf32>
    %73 = tpu.matmul %70, %71, %cst_34 {dimension_numbers = #tpu.dot_dimension_numbers<[1], [0], [0], [1], [0, 0, 1, 1], [], []>} : vector<512x40xf32>, vector<40x128xf32>, vector<512x128xf32> -> vector<512x128xf32>
    %74 = vector.broadcast %72 : vector<1x128xf32> to vector<512x128xf32>
    %75 = arith.addf %73, %74 : vector<512x128xf32>
    %76 = arith.negf %75 : vector<512x128xf32>
    %77 = math.exp %76 : vector<512x128xf32>
    %cst_35 = arith.constant 1.000000e+00 : f32
    %78 = vector.broadcast %cst_35 : f32 to vector<512x128xf32>
    %79 = arith.addf %78, %77 : vector<512x128xf32>
    %80 = arith.divf %78, %79 : vector<512x128xf32>
    %c0_36 = arith.constant 0 : index
    %c0_37 = arith.constant 0 : index
    %81 = vector.load %arg1[%c0_36, %c0_37] : memref<512x64xf32, #tpu.memory_space<vmem>>, vector<512x42xf32>
    %82 = vector.extract_strided_slice %80 {offsets = [0, 0], sizes = [512, 42], strides = [1, 1]} : vector<512x128xf32> to vector<512x42xf32>
    %83 = arith.subf %81, %82 : vector<512x42xf32>
    %84 = arith.mulf %83, %83 : vector<512x42xf32>
    %85 = vector.shape_cast %84 : vector<512x42xf32> to vector<1x512x42xf32>
    %cst_38 = arith.constant dense<0.000000e+00> : vector<1xf32>
    %86 = vector.multi_reduction <add>, %85, %cst_38 [1, 2] : vector<1x512x42xf32> to vector<1xf32>
    %87 = vector.shape_cast %86 : vector<1xf32> to vector<1x1x1xf32>
    %88 = vector.extract %87[0, 0, 0] : f32 from vector<1x1x1xf32>
    %89 = tpu.iota {dimensions = array<i32: 2>} : vector<1x1x128xi32>
    %c0_i32 = arith.constant 0 : i32
    %90 = vector.broadcast %c0_i32 : i32 to vector<1x1x128xi32>
    %91 = arith.cmpi eq, %89, %90 : vector<1x1x128xi32>
    %c1_i32 = arith.constant 1 : i32
    %92 = vector.broadcast %c1_i32 : i32 to vector<1x1x128xi32>
    %93 = arith.cmpi eq, %89, %92 : vector<1x1x128xi32>
    %cst_39 = arith.constant 0.000000e+00 : f32
    %94 = vector.broadcast %46 : f32 to vector<1x1x128xf32>
    %95 = vector.broadcast %cst_39 : f32 to vector<1x1x128xf32>
    %96 = arith.select %93, %94, %95 : vector<1x1x128xi1>, vector<1x1x128xf32>
    %97 = vector.broadcast %88 : f32 to vector<1x1x128xf32>
    %98 = arith.select %91, %97, %96 : vector<1x1x128xi1>, vector<1x1x128xf32>
    %c0_40 = arith.constant 0 : index
    %c0_41 = arith.constant 0 : index
    %c0_42 = arith.constant 0 : index
    %99 = vector.load %arg3[%c0_40, %c0_41, %c0_42] : memref<1x1x128xf32, #tpu.memory_space<vmem>>, vector<1x1x128xf32>
    tpu.vector_store %arg3[%c0_40, %c0_41, %c0_42], %98 {strides = array<i32>} : memref<1x1x128xf32, #tpu.memory_space<vmem>>, vector<1x1x128xf32>,
    return
  }
  func.func @transform_0(%arg0: i32) -> (i32, i32) {
    %c0_i32 = arith.constant 0 : i32
    %c0_i32_0 = arith.constant 0 : i32
    return %arg0, %c0_i32 : i32, i32
  }
  func.func @transform_1(%arg0: i32) -> (i32, i32) {
    %c0_i32 = arith.constant 0 : i32
    %c0_i32_0 = arith.constant 0 : i32
    %c0_i32_1 = arith.constant 0 : i32
    return %c0_i32, %c0_i32_0 : i32, i32
  }
  func.func @transform_2(%arg0: i32) -> (i32, i32, i32) {
    %c0_i32 = arith.constant 0 : i32
    %c0_i32_0 = arith.constant 0 : i32
    %c0_i32_1 = arith.constant 0 : i32
    return %arg0, %c0_i32, %c0_i32_0 : i32, i32, i32
  }
}

</mosaic_0001>

<bundles_post_ra>
// kernel: _lambda_.1
= control target key start
LH: loop header
LB: loop body
LE: loop exit
PB: predicated region body
PF: predicated region fallthrough
CT: control target
= control target key end

     0   :  { %s8291_s9 = smov 0   ;;  %s13174_s0 = inlined_call_operand.vmem [shape: f32[1024,64], index: 0, kind: input, shape index: {}]   ;;  %s13175_s1 = inlined_call_operand.vmem [shape: f32[320,128], index: 1, kind: input, shape index: {}]   ;;  %s13176_s2 = inlined_call_operand.vmem [shape: f32[2,1,128], index: 2, kind: output, shape index: {}]  }
   0x1 LB: > { %s8297_s10 = sadd.s32 4294967295, %s8271_s9   ;;  %p7077_p0 = scmp.ge.s32.totalorder %s8271_s9, 1  ;;  %s8271_s9 = sphi %s8291_s9, %s12_s9  }
   0x2   : > { %p113_p1 = scmp.lt.s32.totalorder %s8271_s9, 3 }
   0x4   : > { %p114_p2 = pnand %p7077_p0, %p113_p1 }
   0x6   : > { %117 = sbr.rel (%p114_p2) target bundleno = 2484 (0x9b4), region = 28 }
   0xb   : > { %v211_v0 = vld [vmem:[%s13175_s1 + $0x28] sm:$0x3]  ;;  %vm407_vm0 = vcmask 1041408   ;;  %v210_v1 = vld [vmem:[%s13175_s1 + $0x20] sm:$0xff]  ;;  %s7078_s15 = sshll.u32 %s8297_s10, 6  ;;  %v209_v2 = vld [vmem:[%s13175_s1 + $0x18] sm:$0xff] }
   0xc   : > { %7080 = vmatpush.msk.msra.mxu0 %vm407_vm0, %v211_v0  ;;  %p134_p3 = scmp.lt.s32.totalorder %s7078_s15, 127  ;;  %v208_v3 = vld [vmem:[%s13175_s1 + $0x10] sm:$0xff]  ;;  %v207_v4 = vld [vmem:[%s13175_s1 + $0x8] sm:$0xff]  ;;  %v206_v5 = vld [vmem:[%s13175_s1] sm:$0xff]  ;;  %vm214_vm1 = vcmask 343040   ;;  %vm691_vm2 = vcmask 326656  }
   0xd   : > { %v688_v15 = vld [vmem:[%s13175_s1 + $0x50] sm:$0xff]  ;;  %v687_v17 = vld [vmem:[%s13175_s1 + $0x48] sm:$0xff]  ;;  %v686_v20 = vld [vmem:[%s13175_s1 + $0x40] sm:$0xff]  ;;  %s8273_s27 = smov 108   ;;  %s8274_s18 = smov 106   ;;  %vm3908_vm3 = vcmask 1045504  }
   0xe   : > { %422 = vmatpush.msra.mxu0 %v210_v1  ;;  %s13918_s15 = smov (!%p134_p3, %s7078_s15), 127  ;;  %895 = vmatpush.msra.mxu1 %v688_v15  ;;  %v685_v22 = vld [vmem:[%s13175_s1 + $0x38] sm:$0xff]  ;;  %v684_v23 = vld [vmem:[%s13175_s1 + $0x30] sm:$0xff]  ;;  %vm3573_vm4 = vcmask 179200   ;;  %s8275_s6 = smov 86  }
   0xf   : > { %s7079_s20 = sshll.u32 %s13918_s15, 3  ;;  %v8396_v27 = vld [vmem:[%s13175_s1 + $0x138] ss:$0 sm:$0xff]  ;;  %p139_p4 = scmp.lt.s32.totalorder %s8297_s10, 1 }
  0x10   : > { %423 = vmatpush.msra.mxu0 %v209_v2  ;;  %s8320_s25 = scalar_lea.vmem %s13174_s0, %s7079_s20  ;;  %896 = vmatpush.msra.mxu1 %v687_v17 }
  0x11   : > { %v8326_v6 = vld [vmem:[%s8320_s25] sm:$0xff]  ;;  %v8331_v7 = vld [vmem:[%s8320_s25 + $0x8] sm:$0xff]  ;;  %v8336_v8 = vld [vmem:[%s8320_s25 + $0x10] sm:$0xff]  ;;  %s13920_s10 = smov (!%p139_p4, %s8297_s10), 1 }
  0x12   : > { %424 = vmatpush.msra.mxu0 %v208_v3  ;;  %v8341_v9 = vld [vmem:[%s8320_s25 + $0x18] sm:$0xff]  ;;  %v8346_v10 = vld [vmem:[%s8320_s25 + $0x20] sm:$0xff]  ;;  %v8351_v11 = vld [vmem:[%s8320_s25 + $0x28] sm:$0xff]  ;;  %897 = vmatpush.msra.mxu1 %v686_v20  ;;  %s141_s17 = scalar_lea.vmem %s13176_s2, %s13920_s10 }
  0x13   : > { %v8356_v12 = vld [vmem:[%s8320_s25 + $0x30] sm:$0xff]  ;;  %v149_v13 = vld [vmem:[%s8320_s25 + $0x38] sm:$0xff]  ;;  %v150_v14 = vld [vmem:[%s8320_s25 + $0x40] sm:$0xff]  ;;  %2229 = vrot.lane.b32.xlu0 %v8326_v6, %s8273_s27 }
  0x14   : > { %425 = vmatpush.msra.mxu0 %v207_v4  ;;  %v151_v16 = vld [vmem:[%s8320_s25 + $0x48] sm:$0xff]  ;;  %v152_v18 = vld [vmem:[%s8320_s25 + $0x50] sm:$0xff]  ;;  %v153_v19 = vld [vmem:[%s8320_s25 + $0x58] sm:$0xff]  ;;  %898 = vmatpush.msra.mxu1 %v685_v22 }
  0x15   : > { %v154_v21 = vld [vmem:[%s8320_s25 + $0x60] sm:$0xff]  ;;  %v155_v24 = vld [vmem:[%s8320_s25 + $0x68] sm:$0xff]  ;;  %v156_v25 = vld [vmem:[%s8320_s25 + $0x70] sm:$0xff]  ;;  %2233 = vrot.lane.b32.xlu1 %v8336_v8, %s8273_s27 }
  0x16   : > { %426 = vmatpush.msra.mxu0 %v206_v5  ;;  %899 = vmatpush.msra.mxu1 %v684_v23  ;;  %v157_v26 = vld [vmem:[%s8320_s25 + $0x78] sm:$0xff]  ;;  %v158_v29 = vld [vmem:[%s8320_s25 + $0x80] sm:$0xff]  ;;  %v159_v33 = vld [vmem:[%s8320_s25 + $0x88] sm:$0xff] }
  0x17   : > { %7081 = vmatmul.msk.f32.vlgmr.msra.gmra.mxu0 %vm214_vm1, %v8326_v6  ;;  %v160_v37 = vld [vmem:[%s8320_s25 + $0x90] sm:$0xff]  ;;  %v161_v41 = vld [vmem:[%s8320_s25 + $0x98] sm:$0xff]  ;;  %v162_v45 = vld [vmem:[%s8320_s25 + $0xa0] sm:$0xff]  ;;  %2237 = vrot.lane.b32.xlu2 %v8346_v10, %s8273_s27 }
  0x18   : > { %v163_v49 = vld [vmem:[%s8320_s25 + $0xa8] sm:$0xff]  ;;  %v164_v53 = vld [vmem:[%s8320_s25 + $0xb0] sm:$0xff]  ;;  %v165_v57 = vld [vmem:[%s8320_s25 + $0xb8] sm:$0xff] }
  0x19   : > { %v166_v61 = vld [vmem:[%s8320_s25 + $0xc0] sm:$0xff]  ;;  %v167_v1 = vld [vmem:[%s8320_s25 + $0xc8] sm:$0xff]  ;;  %v1161_v4 = vld [vmem:[%s13175_s1 + $0x78] sm:$0xff] }
  0x1a   : > { %1367 = vmatpush.msra.mxu2 %v1161_v4  ;;  %v1160_v5 = vld [vmem:[%s13175_s1 + $0x70] sm:$0xff]  ;;  %v170_v22 = vld [vmem:[%s8320_s25 + $0xe0] sm:$0xff] }
  0x1b   : > { %2231 = vrot.lane.b32.xlu0 %v8331_v7, %s8273_s27 }
  0x1c   : > { %1368 = vmatpush.msra.mxu2 %v1160_v5 }
  0x1d   : > { %2235 = vrot.lane.b32.xlu1 %v8341_v9, %s8273_s27 }
  0x1f   : > { %7082 = vmatmul.msk.f32.gmra.mxu0 %vm214_vm1, %v8331_v7  ;;  %2239 = vrot.lane.b32.xlu2 %v8351_v11, %s8273_s27 }
  0x25   : > { %2241 = vrot.lane.b32.xlu1 %v8356_v12, %s8273_s27 }
  0x27   : > { %7083 = vmatmul.msk.f32.gmra.mxu0 %vm214_vm1, %v8336_v8 }
  0x2f   : > { %7084 = vmatmul.msk.f32.gmra.mxu0 %vm214_vm1, %v8341_v9 }
  0x37   : > { %7085 = vmatmul.msk.f32.gmra.mxu0 %vm214_vm1, %v8346_v10  ;;  %v181_v10 = vld [vmem:[%s8320_s25 + $0x138] sm:$0xff] }
  0x3f   : > { %7086 = vmatmul.msk.f32.gmra.mxu0 %vm214_vm1, %v8351_v11  ;;  %v182_v11 = vld [vmem:[%s8320_s25 + $0x140] sm:$0xff] }
  0x47   : > { %7087 = vmatmul.msk.f32.gmra.mxu0 %vm214_vm1, %v8356_v12  ;;  %v183_v12 = vld [vmem:[%s8320_s25 + $0x148] sm:$0xff] }
  0x4f   : > { %7088 = vmatmul.msk.f32.gmra.mxu0 %vm214_vm1, %v149_v13 }
  0x57   : > { %7089 = vmatmul.msk.f32.gmra.mxu0 %vm214_vm1, %v150_v14  ;;  %v168_v14 = vld [vmem:[%s8320_s25 + $0xd0] sm:$0xff] }
  0x5f   : > { %7090 = vmatmul.msk.f32.gmra.mxu0 %vm214_vm1, %v151_v16 }
  0x67   : > { %7091 = vmatmul.msk.f32.gmra.mxu0 %vm214_vm1, %v152_v18  ;;  %v169_v18 = vld [vmem:[%s8320_s25 + $0xd8] sm:$0xff] }
  0x6f   : > { %7092 = vmatmul.msk.f32.gmra.mxu0 %vm214_vm1, %v153_v19 }
  0x77   : > { %7093 = vmatmul.msk.f32.gmra.mxu0 %vm214_vm1, %v154_v21 }
  0x7f   : > { %7094 = vmatmul.msk.f32.gmra.mxu0 %vm214_vm1, %v155_v24  ;;  %v1159_v24 = vld [vmem:[%s13175_s1 + $0x68] sm:$0xff] }
  0x80   : > { %1369 = vmatpush.msra.mxu2 %v1159_v24 }
  0x87   : > { %7095 = vmatmul.msk.f32.gmra.mxu0 %vm214_vm1, %v156_v25 }
  0x8f   : > { %7096 = vmatmul.msk.f32.gmra.mxu0 %vm214_vm1, %v157_v26  ;;  %v1158_v26 = vld [vmem:[%s13175_s1 + $0x60] sm:$0xff] }
  0x90   : > { %1370 = vmatpush.msra.mxu2 %v1158_v26 }
  0x94   : > { %v428_v28 = vpop.f32.mrf.mxu0 }
  0x95   : > { %v429_v30 = vadd.f32 %v8396_v27, %v428_v28  ;;  %v1157_v28 = vld [vmem:[%s13175_s1 + $0x58] sm:$0xff] }
  0x96   : > { %1371 = vmatpush.msra.mxu2 %v1157_v28 }
  0x97   : > { %v620_v31 = vmax.f32 %v429_v30, 0.0  ;;  %7097 = vmatmul.msk.f32.gmra.mxu0 %vm214_vm1, %v158_v29  ;;  %v171_v30 = vld [vmem:[%s8320_s25 + $0xe8] sm:$0xff] }
  0x99   : > { %7145 = vmatmul.msk.f32.vlgmr.msra.gmra.mxu1 %vm691_vm2, %v620_v31 }
  0x9c   : > { %v431_v32 = vpop.f32.mrf.mxu0 }
  0x9d   : > { %v432_v34 = vadd.f32 %v8396_v27, %v431_v32 }
  0x9f   : > { %v621_v35 = vmax.f32 %v432_v34, 0.0  ;;  %7098 = vmatmul.msk.f32.gmra.mxu0 %vm214_vm1, %v159_v33  ;;  %v172_v34 = vld [vmem:[%s8320_s25 + $0xf0] sm:$0xff] }
  0xa1   : > { %7146 = vmatmul.msk.f32.gmra.mxu1 %vm691_vm2, %v621_v35 }
  0xa4   : > { %v434_v36 = vpop.f32.mrf.mxu0 }
  0xa5   : > { %v435_v38 = vadd.f32 %v8396_v27, %v434_v36 }
  0xa7   : > { %v622_v39 = vmax.f32 %v435_v38, 0.0  ;;  %7099 = vmatmul.msk.f32.gmra.mxu0 %vm214_vm1, %v160_v37  ;;  %v173_v38 = vld [vmem:[%s8320_s25 + $0xf8] sm:$0xff] }
  0xa9   : > { %7147 = vmatmul.msk.f32.gmra.mxu1 %vm691_vm2, %v622_v39 }
  0xac   : > { %v437_v40 = vpop.f32.mrf.mxu0 }
  0xad   : > { %v438_v42 = vadd.f32 %v8396_v27, %v437_v40 }
  0xaf   : > { %v623_v43 = vmax.f32 %v438_v42, 0.0  ;;  %7100 = vmatmul.msk.f32.gmra.mxu0 %vm214_vm1, %v161_v41  ;;  %v8480_v41 = vld [vmem:[%s13175_s1 + $0x139] ss:$0 sm:$0xff] }
  0xb1   : > { %7148 = vmatmul.msk.f32.gmra.mxu1 %vm691_vm2, %v623_v43  ;;  %v174_v43 = vld [vmem:[%s8320_s25 + $0x100] sm:$0xff] }
  0xb4   : > { %v440_v44 = vpop.f32.mrf.mxu0 }
  0xb5   : > { %v441_v46 = vadd.f32 %v8396_v27, %v440_v44 }
  0xb7   : > { %v624_v47 = vmax.f32 %v441_v46, 0.0  ;;  %7101 = vmatmul.msk.f32.gmra.mxu0 %vm214_vm1, %v162_v45 }
  0xb9   : > { %7149 = vmatmul.msk.f32.gmra.mxu1 %vm691_vm2, %v624_v47 }
  0xbc   : > { %v443_v48 = vpop.f32.mrf.mxu0 }
  0xbd   : > { %v444_v50 = vadd.f32 %v8396_v27, %v443_v48 }
  0xbf   : > { %v625_v51 = vmax.f32 %v444_v50, 0.0  ;;  %7102 = vmatmul.msk.f32.gmra.mxu0 %vm214_vm1, %v163_v49  ;;  %v175_v50 = vld [vmem:[%s8320_s25 + $0x108] sm:$0xff] }
  0xc1   : > { %7150 = vmatmul.msk.f32.gmra.mxu1 %vm691_vm2, %v625_v51 }
  0xc4   : > { %v446_v52 = vpop.f32.mrf.mxu0 }
  0xc5   : > { %v447_v54 = vadd.f32 %v8396_v27, %v446_v52 }
  0xc7   : > { %v626_v55 = vmax.f32 %v447_v54, 0.0  ;;  %7103 = vmatmul.msk.f32.gmra.mxu0 %vm214_vm1, %v164_v53 }
  0xc9   : > { %7151 = vmatmul.msk.f32.gmra.mxu1 %vm691_vm2, %v626_v55 }
  0xcc   : > { %v449_v56 = vpop.f32.mrf.mxu0 }
  0xcd   : > { %v450_v58 = vadd.f32 %v8396_v27, %v449_v56 }
  0xcf   : > { %v627_v59 = vmax.f32 %v450_v58, 0.0  ;;  %7104 = vmatmul.msk.f32.gmra.mxu0 %vm214_vm1, %v165_v57  ;;  %v176_v57 = vld [vmem:[%s8320_s25 + $0x110] sm:$0xff] }
  0xd1   : > { %7152 = vmatmul.msk.f32.gmra.mxu1 %vm691_vm2, %v627_v59 }
  0xd4   : > { %v452_v60 = vpop.f32.mrf.mxu0 }
  0xd5   : > { %v453_v62 = vadd.f32 %v8396_v27, %v452_v60 }
  0xd7   : > { %v628_v63 = vmax.f32 %v453_v62, 0.0  ;;  %7105 = vmatmul.msk.f32.gmra.mxu0 %vm214_vm1, %v166_v61 }
  0xd9   : > { %7153 = vmatmul.msk.f32.gmra.mxu1 %vm691_vm2, %v628_v63 }
  0xdc   : > { %v455_v0 = vpop.f32.mrf.mxu0 }
  0xdd   : > { %v456_v2 = vadd.f32 %v8396_v27, %v455_v0  ;;  %v177_v0 = vld [vmem:[%s8320_s25 + $0x118] sm:$0xff] }
  0xdf   : > { %v629_v3 = vmax.f32 %v456_v2, 0.0  ;;  %7106 = vmatmul.msk.f32.gmra.mxu0 %vm214_vm1, %v167_v1 }
  0xe1   : > { %7154 = vmatmul.msk.f32.gmra.mxu1 %vm691_vm2, %v629_v3 }
  0xe4   : > { %v458_v13 = vpop.f32.mrf.mxu0 }
  0xe5   : > { %v459_v15 = vadd.f32 %v8396_v27, %v458_v13 }
  0xe7   : > { %v630_v16 = vmax.f32 %v459_v15, 0.0  ;;  %7107 = vmatmul.msk.f32.gmra.mxu0 %vm214_vm1, %v168_v14  ;;  %v178_v14 = vld [vmem:[%s8320_s25 + $0x120] sm:$0xff] }
  0xe9   : > { %7155 = vmatmul.msk.f32.gmra.mxu1 %vm691_vm2, %v630_v16 }
  0xec   : > { %v461_v17 = vpop.f32.mrf.mxu0 }
  0xed   : > { %v462_v19 = vadd.f32 %v8396_v27, %v461_v17 }
  0xef   : > { %v631_v20 = vmax.f32 %v462_v19, 0.0  ;;  %7108 = vmatmul.msk.f32.gmra.mxu0 %vm214_vm1, %v169_v18 }
  0xf1   : > { %7156 = vmatmul.msk.f32.gmra.mxu1 %vm691_vm2, %v631_v20 }
  0xf4   : > { %v464_v21 = vpop.f32.mrf.mxu0 }
  0xf5   : > { %v465_v23 = vadd.f32 %v8396_v27, %v464_v21  ;;  %v179_v21 = vld [vmem:[%s8320_s25 + $0x128] sm:$0xff] }
  0xf7   : > { %v632_v25 = vmax.f32 %v465_v23, 0.0  ;;  %7109 = vmatmul.msk.f32.gmra.mxu0 %vm214_vm1, %v170_v22 }
  0xf9   : > { %7157 = vmatmul.msk.f32.gmra.mxu1 %vm691_vm2, %v632_v25 }
  0xfc   : > { %v467_v29 = vpop.f32.mrf.mxu0 }
  0xfd   : > { %v468_v31 = vadd.f32 %v8396_v27, %v467_v29  ;;  %v180_v29 = vld [vmem:[%s8320_s25 + $0x130] sm:$0xff] }
  0xff   : > { %v633_v32 = vmax.f32 %v468_v31, 0.0  ;;  %7110 = vmatmul.msk.f32.gmra.mxu0 %vm214_vm1, %v171_v30 }
 0x101   : > { %7158 = vmatmul.msk.f32.gmra.mxu1 %vm691_vm2, %v633_v32 }
 0x104   : > { %v470_v33 = vpop.f32.mrf.mxu0 }
 0x105   : > { %v471_v35 = vadd.f32 %v8396_v27, %v470_v33 }
 0x107   : > { %v634_v36 = vmax.f32 %v471_v35, 0.0  ;;  %7111 = vmatmul.msk.f32.gmra.mxu0 %vm214_vm1, %v172_v34 }
 0x109   : > { %7159 = vmatmul.msk.f32.gmra.mxu1 %vm691_vm2, %v634_v36 }
 0x10c   : > { %v473_v37 = vpop.f32.mrf.mxu0 }
 0x10d   : > { %v474_v39 = vadd.f32 %v8396_v27, %v473_v37 }
 0x10f   : > { %v635_v40 = vmax.f32 %v474_v39, 0.0  ;;  %7112 = vmatmul.msk.f32.gmra.mxu0 %vm214_vm1, %v173_v38 }
 0x111   : > { %7160 = vmatmul.msk.f32.gmra.mxu1 %vm691_vm2, %v635_v40 }
 0x114   : > { %v476_v42 = vpop.f32.mrf.mxu0 }
 0x115   : > { %v477_v44 = vadd.f32 %v8396_v27, %v476_v42 }
 0x116   : > { %v901_v45 = vpop.f32.mrf.mxu1 }
 0x117   : > { %v902_v46 = vadd.f32 %v8480_v41, %v901_v45  ;;  %v636_v47 = vmax.f32 %v477_v44, 0.0  ;;  %7113 = vmatmul.msk.f32.gmra.mxu0 %vm214_vm1, %v174_v43 }
 0x119   : > { %v1093_v48 = vmax.f32 %v902_v46, 0.0  ;;  %7161 = vmatmul.msk.f32.gmra.mxu1 %vm691_vm2, %v636_v47 }
 0x11b   : > { %7209 = vmatmul.msk.f32.vlgmr.msra.gmra.mxu2 %vm691_vm2, %v1093_v48 }
 0x11c   : > { %v479_v49 = vpop.f32.mrf.mxu0 }
 0x11d   : > { %v480_v51 = vadd.f32 %v8396_v27, %v479_v49 }
 0x11e   : > { %v904_v52 = vpop.f32.mrf.mxu1 }
 0x11f   : > { %v905_v53 = vadd.f32 %v8480_v41, %v904_v52  ;;  %v637_v54 = vmax.f32 %v480_v51, 0.0  ;;  %7114 = vmatmul.msk.f32.gmra.mxu0 %vm214_vm1, %v175_v50  ;;  %v184_v51 = vld [vmem:[%s8320_s25 + $0x150] sm:$0xff] }
 0x121   : > { %v1094_v55 = vmax.f32 %v905_v53, 0.0  ;;  %7162 = vmatmul.msk.f32.gmra.mxu1 %vm691_vm2, %v637_v54 }
 0x123   : > { %7210 = vmatmul.msk.f32.gmra.mxu2 %vm691_vm2, %v1094_v55 }
 0x124   : > { %v482_v56 = vpop.f32.mrf.mxu0 }
 0x125   : > { %v483_v58 = vadd.f32 %v8396_v27, %v482_v56 }
 0x126   : > { %v907_v59 = vpop.f32.mrf.mxu1 }
 0x127   : > { %v908_v60 = vadd.f32 %v8480_v41, %v907_v59  ;;  %v638_v61 = vmax.f32 %v483_v58, 0.0  ;;  %7115 = vmatmul.msk.f32.gmra.mxu0 %vm214_vm1, %v176_v57  ;;  %v1633_v57 = vld [vmem:[%s13175_s1 + $0xa0] sm:$0xff]  ;;  %v1632_v58 = vld [vmem:[%s13175_s1 + $0x98] sm:$0xff] }
 0x128   : > { %1839 = vmatpush.msra.mxu3 %v1633_v57 }
 0x129   : > { %v1095_v62 = vmax.f32 %v908_v60, 0.0  ;;  %7163 = vmatmul.msk.f32.gmra.mxu1 %vm691_vm2, %v638_v61  ;;  %v185_v60 = vld [vmem:[%s8320_s25 + $0x158] sm:$0xff] }
 0x12a   : > { %1840 = vmatpush.msra.mxu3 %v1632_v58 }
 0x12b   : > { %7211 = vmatmul.msk.f32.gmra.mxu2 %vm691_vm2, %v1095_v62 }
 0x12c   : > { %v485_v63 = vpop.f32.mrf.mxu0 }
 0x12d   : > { %v486_v1 = vadd.f32 %v8396_v27, %v485_v63 }
 0x12e   : > { %v910_v2 = vpop.f32.mrf.mxu1 }
 0x12f   : > { %v911_v3 = vadd.f32 %v8480_v41, %v910_v2  ;;  %v639_v4 = vmax.f32 %v486_v1, 0.0  ;;  %7116 = vmatmul.msk.f32.gmra.mxu0 %vm214_vm1, %v177_v0 }
 0x131   : > { %v1096_v5 = vmax.f32 %v911_v3, 0.0  ;;  %7164 = vmatmul.msk.f32.gmra.mxu1 %vm691_vm2, %v639_v4  ;;  %v186_v3 = vld [vmem:[%s8320_s25 + $0x160] sm:$0xff] }
 0x133   : > { %7212 = vmatmul.msk.f32.gmra.mxu2 %vm691_vm2, %v1096_v5 }
 0x134   : > { %v488_v13 = vpop.f32.mrf.mxu0 }
 0x135   : > { %v489_v15 = vadd.f32 %v8396_v27, %v488_v13 }
 0x136   : > { %v913_v16 = vpop.f32.mrf.mxu1 }
 0x137   : > { %v914_v17 = vadd.f32 %v8480_v41, %v913_v16  ;;  %v640_v18 = vmax.f32 %v489_v15, 0.0  ;;  %7117 = vmatmul.msk.f32.gmra.mxu0 %vm214_vm1, %v178_v14 }
 0x139   : > { %v1097_v19 = vmax.f32 %v914_v17, 0.0  ;;  %7165 = vmatmul.msk.f32.gmra.mxu1 %vm691_vm2, %v640_v18  ;;  %v187_v17 = vld [vmem:[%s8320_s25 + $0x168] sm:$0xff] }
 0x13b   : > { %7213 = vmatmul.msk.f32.gmra.mxu2 %vm691_vm2, %v1097_v19  ;;  %v1631_v19 = vld [vmem:[%s13175_s1 + $0x90] sm:$0xff] }
 0x13c   : > { %v491_v20 = vpop.f32.mrf.mxu0  ;;  %1841 = vmatpush.msra.mxu3 %v1631_v19 }
 0x13d   : > { %v492_v22 = vadd.f32 %v8396_v27, %v491_v20 }
 0x13e   : > { %v916_v23 = vpop.f32.mrf.mxu1 }
 0x13f   : > { %v917_v24 = vadd.f32 %v8480_v41, %v916_v23  ;;  %v641_v25 = vmax.f32 %v492_v22, 0.0  ;;  %7118 = vmatmul.msk.f32.gmra.mxu0 %vm214_vm1, %v179_v21  ;;  %v1630_v23 = vld [vmem:[%s13175_s1 + $0x88] sm:$0xff] }
 0x140   : > { %1842 = vmatpush.msra.mxu3 %v1630_v23 }
 0x141   : > { %v1098_v26 = vmax.f32 %v917_v24, 0.0  ;;  %7166 = vmatmul.msk.f32.gmra.mxu1 %vm691_vm2, %v641_v25  ;;  %v1629_v25 = vld [vmem:[%s13175_s1 + $0x80] sm:$0xff] }
 0x142   : > { %1843 = vmatpush.msra.mxu3 %v1629_v25 }
 0x143   : > { %7214 = vmatmul.msk.f32.gmra.mxu2 %vm691_vm2, %v1098_v26 }
 0x144   : > { %v494_v28 = vpop.f32.mrf.mxu0 }
 0x145   : > { %v495_v30 = vadd.f32 %v8396_v27, %v494_v28  ;;  %v188_v28 = vld [vmem:[%s8320_s25 + $0x170] sm:$0xff] }
 0x146   : > { %v919_v31 = vpop.f32.mrf.mxu1 }
 0x147   : > { %v920_v32 = vadd.f32 %v8480_v41, %v919_v31  ;;  %v642_v33 = vmax.f32 %v495_v30, 0.0  ;;  %7119 = vmatmul.msk.f32.gmra.mxu0 %vm214_vm1, %v180_v29 }
 0x149   : > { %v1099_v6 = vmax.f32 %v920_v32, 0.0  ;;  %7167 = vmatmul.msk.f32.gmra.mxu1 %vm691_vm2, %v642_v33 }
 0x14b   : > { %7215 = vmatmul.msk.f32.gmra.mxu2 %vm691_vm2, %v1099_v6 }
 0x14c   : > { %v497_v8 = vpop.f32.mrf.mxu0 }
 0x14d   : > { %v498_v34 = vadd.f32 %v8396_v27, %v497_v8  ;;  %v189_v8 = vld [vmem:[%s8320_s25 + $0x178] sm:$0xff] }
 0x14e   : > { %v922_v35 = vpop.f32.mrf.mxu1 }
 0x14f   : > { %v643_v36 = vmax.f32 %v498_v34, 0.0  ;;  %v923_v37 = vadd.f32 %v8480_v41, %v922_v35  ;;  %7120 = vmatmul.msk.f32.gmra.mxu0 %vm214_vm1, %v181_v10 }
 0x151   : > { %v1100_v7 = vmax.f32 %v923_v37, 0.0  ;;  %7168 = vmatmul.msk.f32.gmra.mxu1 %vm691_vm2, %v643_v36 }
 0x153   : > { %7216 = vmatmul.msk.f32.gmra.mxu2 %vm691_vm2, %v1100_v7 }
 0x154   : > { %v500_v9 = vpop.f32.mrf.mxu0 }
 0x155   : > { %v501_v38 = vadd.f32 %v8396_v27, %v500_v9  ;;  %v190_v9 = vld [vmem:[%s8320_s25 + $0x180] sm:$0xff] }
 0x156   : > { %v925_v39 = vpop.f32.mrf.mxu1 }
 0x157   : > { %v644_v40 = vmax.f32 %v501_v38, 0.0  ;;  %v926_v42 = vadd.f32 %v8480_v41, %v925_v39  ;;  %7121 = vmatmul.msk.f32.gmra.mxu0 %vm214_vm1, %v182_v11 }
 0x159   : > { %v1101_v43 = vmax.f32 %v926_v42, 0.0  ;;  %7169 = vmatmul.msk.f32.gmra.mxu1 %vm691_vm2, %v644_v40 }
 0x15b   : > { %7217 = vmatmul.msk.f32.gmra.mxu2 %vm691_vm2, %v1101_v43  ;;  %v8615_v43 = vld [vmem:[%s13175_s1 + $0x13a] ss:$0 sm:$0xff] }
 0x15c   : > { %v503_v44 = vpop.f32.mrf.mxu0 }
 0x15d   : > { %v504_v45 = vadd.f32 %v8396_v27, %v503_v44 }
 0x15e   : > { %v928_v46 = vpop.f32.mrf.mxu1 }
 0x15f   : > { %v645_v47 = vmax.f32 %v504_v45, 0.0  ;;  %v929_v48 = vadd.f32 %v8480_v41, %v928_v46  ;;  %7122 = vmatmul.msk.f32.gmra.mxu0 %vm214_vm1, %v183_v12  ;;  %v191_v12 = vld [vmem:[%s8320_s25 + $0x188] sm:$0xff] }
 0x161   : > { %v1102_v49 = vmax.f32 %v929_v48, 0.0  ;;  %7170 = vmatmul.msk.f32.gmra.mxu1 %vm691_vm2, %v645_v47 }
 0x163   : > { %7218 = vmatmul.msk.f32.gmra.mxu2 %vm691_vm2, %v1102_v49 }
 0x164   : > { %v506_v50 = vpop.f32.mrf.mxu0 }
 0x165   : > { %v507_v52 = vadd.f32 %v8396_v27, %v506_v50 }
 0x166   : > { %v931_v53 = vpop.f32.mrf.mxu1 }
 0x167   : > { %v646_v54 = vmax.f32 %v507_v52, 0.0  ;;  %v932_v55 = vadd.f32 %v8480_v41, %v931_v53  ;;  %7123 = vmatmul.msk.f32.gmra.mxu0 %vm214_vm1, %v184_v51 }
 0x169   : > { %v1103_v56 = vmax.f32 %v932_v55, 0.0  ;;  %7171 = vmatmul.msk.f32.gmra.mxu1 %vm691_vm2, %v646_v54  ;;  %v192_v54 = vld [vmem:[%s8320_s25 + $0x190] sm:$0xff] }
 0x16b   : > { %7219 = vmatmul.msk.f32.gmra.mxu2 %vm691_vm2, %v1103_v56 }
 0x16c   : > { %v509_v59 = vpop.f32.mrf.mxu0 }
 0x16d   : > { %v510_v61 = vadd.f32 %v8396_v27, %v509_v59 }
 0x16e   : > { %v934_v62 = vpop.f32.mrf.mxu1 }
 0x16f   : > { %v647_v63 = vmax.f32 %v510_v61, 0.0  ;;  %v935_v0 = vadd.f32 %v8480_v41, %v934_v62  ;;  %7124 = vmatmul.msk.f32.gmra.mxu0 %vm214_vm1, %v185_v60 }
 0x171   : > { %v1104_v1 = vmax.f32 %v935_v0, 0.0  ;;  %7172 = vmatmul.msk.f32.gmra.mxu1 %vm691_vm2, %v647_v63  ;;  %v193_v0 = vld [vmem:[%s8320_s25 + $0x198] sm:$0xff] }
 0x173   : > { %7220 = vmatmul.msk.f32.gmra.mxu2 %vm691_vm2, %v1104_v1 }
 0x174   : > { %v512_v2 = vpop.f32.mrf.mxu0 }
 0x175   : > { %v513_v4 = vadd.f32 %v8396_v27, %v512_v2 }
 0x176   : > { %v937_v5 = vpop.f32.mrf.mxu1 }
 0x177   : > { %v648_v13 = vmax.f32 %v513_v4, 0.0  ;;  %v938_v14 = vadd.f32 %v8480_v41, %v937_v5  ;;  %7125 = vmatmul.msk.f32.gmra.mxu0 %vm214_vm1, %v186_v3 }
 0x179   : > { %v1105_v15 = vmax.f32 %v938_v14, 0.0  ;;  %7173 = vmatmul.msk.f32.gmra.mxu1 %vm691_vm2, %v648_v13 }
 0x17b   : > { %7221 = vmatmul.msk.f32.gmra.mxu2 %vm691_vm2, %v1105_v15 }
 0x17c   : > { %v515_v16 = vpop.f32.mrf.mxu0 }
 0x17d   : > { %v516_v18 = vadd.f32 %v8396_v27, %v515_v16 }
 0x17e   : > { %v940_v20 = vpop.f32.mrf.mxu1 }
 0x17f   : > { %v649_v21 = vmax.f32 %v516_v18, 0.0  ;;  %v941_v22 = vadd.f32 %v8480_v41, %v940_v20  ;;  %7126 = vmatmul.msk.f32.gmra.mxu0 %vm214_vm1, %v187_v17  ;;  %v194_v17 = vld [vmem:[%s8320_s25 + $0x1a0] sm:$0xff] }
 0x181   : > { %v1106_v24 = vmax.f32 %v941_v22, 0.0  ;;  %7174 = vmatmul.msk.f32.gmra.mxu1 %vm691_vm2, %v649_v21 }
 0x183   : > { %7222 = vmatmul.msk.f32.gmra.mxu2 %vm691_vm2, %v1106_v24 }
 0x184   : > { %v518_v26 = vpop.f32.mrf.mxu0 }
 0x185   : > { %v519_v29 = vadd.f32 %v8396_v27, %v518_v26 }
 0x186   : > { %v943_v30 = vpop.f32.mrf.mxu1 }
 0x187   : > { %v650_v31 = vmax.f32 %v519_v29, 0.0  ;;  %v944_v32 = vadd.f32 %v8480_v41, %v943_v30  ;;  %7127 = vmatmul.msk.f32.gmra.mxu0 %vm214_vm1, %v188_v28  ;;  %v195_v28 = vld [vmem:[%s8320_s25 + $0x1a8] sm:$0xff] }
 0x189   : > { %v1107_v33 = vmax.f32 %v944_v32, 0.0  ;;  %7175 = vmatmul.msk.f32.gmra.mxu1 %vm691_vm2, %v650_v31 }
 0x18b   : > { %7223 = vmatmul.msk.f32.gmra.mxu2 %vm691_vm2, %v1107_v33 }
 0x18c   : > { %v521_v6 = vpop.f32.mrf.mxu0 }
 0x18d   : > { %v522_v10 = vadd.f32 %v8396_v27, %v521_v6 }
 0x18e   : > { %v946_v34 = vpop.f32.mrf.mxu1 }
 0x18f   : > { %v651_v35 = vmax.f32 %v522_v10, 0.0  ;;  %v947_v36 = vadd.f32 %v8480_v41, %v946_v34  ;;  %7128 = vmatmul.msk.f32.gmra.mxu0 %vm214_vm1, %v189_v8 }
 0x191   : > { %v1108_v37 = vmax.f32 %v947_v36, 0.0  ;;  %7176 = vmatmul.msk.f32.gmra.mxu1 %vm691_vm2, %v651_v35  ;;  %v196_v35 = vld [vmem:[%s8320_s25 + $0x1b0] sm:$0xff] }
 0x193   : > { %7224 = vmatmul.msk.f32.gmra.mxu2 %vm691_vm2, %v1108_v37 }
 0x194   : > { %v524_v7 = vpop.f32.mrf.mxu0 }
 0x195   : > { %v525_v11 = vadd.f32 %v8396_v27, %v524_v7 }
 0x196   : > { %v949_v38 = vpop.f32.mrf.mxu1 }
 0x197   : > { %v652_v39 = vmax.f32 %v525_v11, 0.0  ;;  %v950_v40 = vadd.f32 %v8480_v41, %v949_v38  ;;  %7129 = vmatmul.msk.f32.gmra.mxu0 %vm214_vm1, %v190_v9 }
 0x199   : > { %v1109_v42 = vmax.f32 %v950_v40, 0.0  ;;  %7177 = vmatmul.msk.f32.gmra.mxu1 %vm691_vm2, %v652_v39 }
 0x19b   : > { %7225 = vmatmul.msk.f32.gmra.mxu2 %vm691_vm2, %v1109_v42 }
 0x19c   : > { %v527_v44 = vpop.f32.mrf.mxu0 }
 0x19d   : > { %v528_v45 = vadd.f32 %v8396_v27, %v527_v44  ;;  %v197_v44 = vld [vmem:[%s8320_s25 + $0x1b8] sm:$0xff] }
 0x19e   : > { %v1373_v46 = vpop.f32.mrf.mxu2  ;;  %v952_v47 = vpop.f32.mrf.mxu1 }
 0x19f   : > { %v1374_v48 = vadd.f32 %v8615_v43, %v1373_v46  ;;  %v653_v49 = vmax.f32 %v528_v45, 0.0  ;;  %v953_v50 = vadd.f32 %v8480_v41, %v952_v47  ;;  %7130 = vmatmul.msk.f32.gmra.mxu0 %vm214_vm1, %v191_v12 }
 0x1a1   : > { %v1565_v51 = vmax.f32 %v1374_v48, 0.0  ;;  %v1110_v52 = vmax.f32 %v953_v50, 0.0  ;;  %7178 = vmatmul.msk.f32.gmra.mxu1 %vm691_vm2, %v653_v49 }
 0x1a3   : > { %7273 = vmatmul.msk.f32.vlgmr.msra.gmra.mxu3 %vm691_vm2, %v1565_v51  ;;  %7226 = vmatmul.msk.f32.gmra.mxu2 %vm691_vm2, %v1110_v52 }
 0x1a4   : > { %v530_v53 = vpop.f32.mrf.mxu0 }
 0x1a5   : > { %v531_v55 = vadd.f32 %v8396_v27, %v530_v53  ;;  %v198_v53 = vld [vmem:[%s8320_s25 + $0x1c0] sm:$0xff] }
 0x1a6   : > { %v1376_v56 = vpop.f32.mrf.mxu2  ;;  %v955_v57 = vpop.f32.mrf.mxu1 }
 0x1a7   : > { %v1377_v58 = vadd.f32 %v8615_v43, %v1376_v56  ;;  %v654_v59 = vmax.f32 %v531_v55, 0.0  ;;  %v956_v60 = vadd.f32 %v8480_v41, %v955_v57  ;;  %7131 = vmatmul.msk.f32.gmra.mxu0 %vm214_vm1, %v192_v54 }
 0x1a9   : > { %v1566_v61 = vmax.f32 %v1377_v58, 0.0  ;;  %v1111_v62 = vmax.f32 %v956_v60, 0.0  ;;  %7179 = vmatmul.msk.f32.gmra.mxu1 %vm691_vm2, %v654_v59 }
 0x1ab   : > { %7274 = vmatmul.msk.f32.gmra.mxu3 %vm691_vm2, %v1566_v61  ;;  %7227 = vmatmul.msk.f32.gmra.mxu2 %vm691_vm2, %v1111_v62 }
 0x1ac   : > { %v533_v63 = vpop.f32.mrf.mxu0 }
 0x1ad   : > { %v534_v1 = vadd.f32 %v8396_v27, %v533_v63  ;;  %v199_v63 = vld [vmem:[%s8320_s25 + $0x1c8] sm:$0xff] }
 0x1ae   : > { %v1379_v2 = vpop.f32.mrf.mxu2  ;;  %v958_v3 = vpop.f32.mrf.mxu1 }
 0x1af   : > { %v1380_v4 = vadd.f32 %v8615_v43, %v1379_v2  ;;  %v655_v5 = vmax.f32 %v534_v1, 0.0  ;;  %v959_v13 = vadd.f32 %v8480_v41, %v958_v3  ;;  %7132 = vmatmul.msk.f32.gmra.mxu0 %vm214_vm1, %v193_v0 }
 0x1b1   : > { %v1567_v14 = vmax.f32 %v1380_v4, 0.0  ;;  %v1112_v15 = vmax.f32 %v959_v13, 0.0  ;;  %7180 = vmatmul.msk.f32.gmra.mxu1 %vm691_vm2, %v655_v5 }
 0x1b3   : > { %7275 = vmatmul.msk.f32.gmra.mxu3 %vm691_vm2, %v1567_v14  ;;  %7228 = vmatmul.msk.f32.gmra.mxu2 %vm691_vm2, %v1112_v15 }
 0x1b4   : > { %v536_v16 = vpop.f32.mrf.mxu0 }
 0x1b5   : > { %v537_v18 = vadd.f32 %v8396_v27, %v536_v16  ;;  %v200_v16 = vld [vmem:[%s8320_s25 + $0x1d0] sm:$0xff] }
 0x1b6   : > { %v1382_v19 = vpop.f32.mrf.mxu2  ;;  %v961_v20 = vpop.f32.mrf.mxu1 }
 0x1b7   : > { %v1383_v21 = vadd.f32 %v8615_v43, %v1382_v19  ;;  %v656_v22 = vmax.f32 %v537_v18, 0.0  ;;  %v962_v23 = vadd.f32 %v8480_v41, %v961_v20  ;;  %7133 = vmatmul.msk.f32.gmra.mxu0 %vm214_vm1, %v194_v17 }
 0x1b9   : > { %v1568_v24 = vmax.f32 %v1383_v21, 0.0  ;;  %v1113_v25 = vmax.f32 %v962_v23, 0.0  ;;  %7181 = vmatmul.msk.f32.gmra.mxu1 %vm691_vm2, %v656_v22 }
 0x1bb   : > { %7276 = vmatmul.msk.f32.gmra.mxu3 %vm691_vm2, %v1568_v24  ;;  %7229 = vmatmul.msk.f32.gmra.mxu2 %vm691_vm2, %v1113_v25 }
 0x1bc   : > { %v539_v26 = vpop.f32.mrf.mxu0 }
 0x1bd   : > { %v540_v29 = vadd.f32 %v8396_v27, %v539_v26  ;;  %v201_v26 = vld [vmem:[%s8320_s25 + $0x1d8] sm:$0xff] }
 0x1be   : > { %v1385_v30 = vpop.f32.mrf.mxu2  ;;  %v964_v31 = vpop.f32.mrf.mxu1 }
 0x1bf   : > { %v1386_v32 = vadd.f32 %v8615_v43, %v1385_v30  ;;  %v657_v33 = vmax.f32 %v540_v29, 0.0  ;;  %v965_v6 = vadd.f32 %v8480_v41, %v964_v31  ;;  %7134 = vmatmul.msk.f32.gmra.mxu0 %vm214_vm1, %v195_v28 }
 0x1c1   : > { %v1569_v8 = vmax.f32 %v1386_v32, 0.0  ;;  %v1114_v10 = vmax.f32 %v965_v6, 0.0  ;;  %7182 = vmatmul.msk.f32.gmra.mxu1 %vm691_vm2, %v657_v33 }
 0x1c3   : > { %7277 = vmatmul.msk.f32.gmra.mxu3 %vm691_vm2, %v1569_v8  ;;  %7230 = vmatmul.msk.f32.gmra.mxu2 %vm691_vm2, %v1114_v10 }
 0x1c4   : > { %v542_v34 = vpop.f32.mrf.mxu0 }
 0x1c5   : > { %v543_v36 = vadd.f32 %v8396_v27, %v542_v34  ;;  %v202_v34 = vld [vmem:[%s8320_s25 + $0x1e0] sm:$0xff] }
 0x1c6   : > { %v1388_v37 = vpop.f32.mrf.mxu2  ;;  %v967_v7 = vpop.f32.mrf.mxu1 }
 0x1c7   : > { %v1389_v9 = vadd.f32 %v8615_v43, %v1388_v37  ;;  %v658_v11 = vmax.f32 %v543_v36, 0.0  ;;  %v968_v38 = vadd.f32 %v8480_v41, %v967_v7  ;;  %7135 = vmatmul.msk.f32.gmra.mxu0 %vm214_vm1, %v196_v35 }
 0x1c9   : > { %v1570_v39 = vmax.f32 %v1389_v9, 0.0  ;;  %v1115_v40 = vmax.f32 %v968_v38, 0.0  ;;  %7183 = vmatmul.msk.f32.gmra.mxu1 %vm691_vm2, %v658_v11 }
 0x1cb   : > { %7278 = vmatmul.msk.f32.gmra.mxu3 %vm691_vm2, %v1570_v39  ;;  %7231 = vmatmul.msk.f32.gmra.mxu2 %vm691_vm2, %v1115_v40 }
 0x1cc   : > { %v545_v42 = vpop.f32.mrf.mxu0 }
 0x1cd   : > { %v546_v12 = vadd.f32 %v8396_v27, %v545_v42  ;;  %v203_v42 = vld [vmem:[%s8320_s25 + $0x1e8] sm:$0xff] }
 0x1ce   : > { %v1391_v45 = vpop.f32.mrf.mxu2  ;;  %v970_v46 = vpop.f32.mrf.mxu1 }
 0x1cf   : > { %v1392_v47 = vadd.f32 %v8615_v43, %v1391_v45  ;;  %v659_v48 = vmax.f32 %v546_v12, 0.0  ;;  %v971_v49 = vadd.f32 %v8480_v41, %v970_v46  ;;  %7136 = vmatmul.msk.f32.gmra.mxu0 %vm214_vm1, %v197_v44 }
 0x1d1   : > { %v1571_v50 = vmax.f32 %v1392_v47, 0.0  ;;  %v1116_v51 = vmax.f32 %v971_v49, 0.0  ;;  %7184 = vmatmul.msk.f32.gmra.mxu1 %vm691_vm2, %v659_v48 }
 0x1d3   : > { %7279 = vmatmul.msk.f32.gmra.mxu3 %vm691_vm2, %v1571_v50  ;;  %7232 = vmatmul.msk.f32.gmra.mxu2 %vm691_vm2, %v1116_v51 }
 0x1d4   : > { %v548_v52 = vpop.f32.mrf.mxu0 }
 0x1d5   : > { %v549_v54 = vadd.f32 %v8396_v27, %v548_v52  ;;  %v204_v52 = vld [vmem:[%s8320_s25 + $0x1f0] sm:$0xff] }
 0x1d6   : > { %v973_v55 = vpop.f32.mrf.mxu1  ;;  %v1394_v56 = vpop.f32.mrf.mxu2 }
 0x1d7   : > { %v660_v57 = vmax.f32 %v549_v54, 0.0  ;;  %v974_v58 = vadd.f32 %v8480_v41, %v973_v55  ;;  %v1395_v59 = vadd.f32 %v8615_v43, %v1394_v56  ;;  %7137 = vmatmul.msk.f32.gmra.mxu0 %vm214_vm1, %v198_v53 }
 0x1d9   : > { %v1117_v60 = vmax.f32 %v974_v58, 0.0  ;;  %v1572_v61 = vmax.f32 %v1395_v59, 0.0  ;;  %7185 = vmatmul.msk.f32.gmra.mxu1 %vm691_vm2, %v660_v57 }
 0x1db   : > { %7233 = vmatmul.msk.f32.gmra.mxu2 %vm691_vm2, %v1117_v60  ;;  %7280 = vmatmul.msk.f32.gmra.mxu3 %vm691_vm2, %v1572_v61 }
 0x1dc   : > { %v551_v62 = vpop.f32.mrf.mxu0 }
 0x1dd   : > { %v552_v0 = vadd.f32 %v8396_v27, %v551_v62  ;;  %v205_v62 = vld [vmem:[%s8320_s25 + $0x1f8] sm:$0xff] }
 0x1de   : > { %v976_v1 = vpop.f32.mrf.mxu1  ;;  %v1397_v2 = vpop.f32.mrf.mxu2 }
 0x1df   : > { %v661_v3 = vmax.f32 %v552_v0, 0.0  ;;  %v977_v4 = vadd.f32 %v8480_v41, %v976_v1  ;;  %v1398_v5 = vadd.f32 %v8615_v43, %v1397_v2  ;;  %7138 = vmatmul.msk.f32.gmra.mxu0 %vm214_vm1, %v199_v63 }
 0x1e1   : > { %v1118_v13 = vmax.f32 %v977_v4, 0.0  ;;  %v1573_v14 = vmax.f32 %v1398_v5, 0.0  ;;  %7186 = vmatmul.msk.f32.gmra.mxu1 %vm691_vm2, %v661_v3 }
 0x1e3   : > { %7234 = vmatmul.msk.f32.gmra.mxu2 %vm691_vm2, %v1118_v13  ;;  %7281 = vmatmul.msk.f32.gmra.mxu3 %vm691_vm2, %v1573_v14 }
 0x1e4   : > { %v554_v15 = vpop.f32.mrf.mxu0 }
 0x1e5   : > { %v555_v17 = vadd.f32 %v8396_v27, %v554_v15 }
 0x1e6   : > { %v979_v18 = vpop.f32.mrf.mxu1  ;;  %v1400_v19 = vpop.f32.mrf.mxu2 }
 0x1e7   : > { %v662_v20 = vmax.f32 %v555_v17, 0.0  ;;  %v980_v21 = vadd.f32 %v8480_v41, %v979_v18  ;;  %v1401_v22 = vadd.f32 %v8615_v43, %v1400_v19  ;;  %7139 = vmatmul.msk.f32.gmra.mxu0 %vm214_vm1, %v200_v16 }
 0x1e9   : > { %v1119_v23 = vmax.f32 %v980_v21, 0.0  ;;  %v1574_v24 = vmax.f32 %v1401_v22, 0.0  ;;  %7187 = vmatmul.msk.f32.gmra.mxu1 %vm691_vm2, %v662_v20 }
 0x1eb   : > { %7235 = vmatmul.msk.f32.gmra.mxu2 %vm691_vm2, %v1119_v23  ;;  %7282 = vmatmul.msk.f32.gmra.mxu3 %vm691_vm2, %v1574_v24 }
 0x1ec   : > { %v557_v25 = vpop.f32.mrf.mxu0 }
 0x1ed   : > { %v558_v28 = vadd.f32 %v8396_v27, %v557_v25 }
 0x1ee   : > { %v982_v29 = vpop.f32.mrf.mxu1  ;;  %v1403_v30 = vpop.f32.mrf.mxu2 }
 0x1ef   : > { %v663_v31 = vmax.f32 %v558_v28, 0.0  ;;  %v983_v32 = vadd.f32 %v8480_v41, %v982_v29  ;;  %v1404_v33 = vadd.f32 %v8615_v43, %v1403_v30  ;;  %7140 = vmatmul.msk.f32.gmra.mxu0 %vm214_vm1, %v201_v26 }
 0x1f1   : > { %v1120_v6 = vmax.f32 %v983_v32, 0.0  ;;  %v1575_v8 = vmax.f32 %v1404_v33, 0.0  ;;  %7188 = vmatmul.msk.f32.gmra.mxu1 %vm691_vm2, %v663_v31  ;;  %v8756_v33 = vld [vmem:[%s13175_s1 + $0x13b] ss:$0 sm:$0xff] }
 0x1f3   : > { %7236 = vmatmul.msk.f32.gmra.mxu2 %vm691_vm2, %v1120_v6  ;;  %7283 = vmatmul.msk.f32.gmra.mxu3 %vm691_vm2, %v1575_v8 }
 0x1f4   : > { %v560_v10 = vpop.f32.mrf.mxu0 }
 0x1f5   : > { %v561_v35 = vadd.f32 %v8396_v27, %v560_v10 }
 0x1f6   : > { %v985_v36 = vpop.f32.mrf.mxu1  ;;  %v1406_v37 = vpop.f32.mrf.mxu2 }
 0x1f7   : > { %v664_v7 = vmax.f32 %v561_v35, 0.0  ;;  %v986_v9 = vadd.f32 %v8480_v41, %v985_v36  ;;  %v1407_v11 = vadd.f32 %v8615_v43, %v1406_v37  ;;  %7141 = vmatmul.msk.f32.gmra.mxu0 %vm214_vm1, %v202_v34 }
 0x1f9   : > { %v1121_v38 = vmax.f32 %v986_v9, 0.0  ;;  %v1576_v39 = vmax.f32 %v1407_v11, 0.0  ;;  %7189 = vmatmul.msk.f32.gmra.mxu1 %vm691_vm2, %v664_v7 }
 0x1fb   : > { %7237 = vmatmul.msk.f32.gmra.mxu2 %vm691_vm2, %v1121_v38  ;;  %7284 = vmatmul.msk.f32.gmra.mxu3 %vm691_vm2, %v1576_v39 }
 0x1fc   : > { %v563_v40 = vpop.f32.mrf.mxu0 }
 0x1fd   : > { %v564_v44 = vadd.f32 %v8396_v27, %v563_v40 }
 0x1fe   : > { %v988_v12 = vpop.f32.mrf.mxu1  ;;  %v1409_v45 = vpop.f32.mrf.mxu2 }
 0x1ff   : > { %v665_v46 = vmax.f32 %v564_v44, 0.0  ;;  %v989_v47 = vadd.f32 %v8480_v41, %v988_v12  ;;  %v1410_v48 = vadd.f32 %v8615_v43, %v1409_v45  ;;  %7142 = vmatmul.msk.f32.gmra.mxu0 %vm214_vm1, %v203_v42 }
 0x201   : > { %v1122_v49 = vmax.f32 %v989_v47, 0.0  ;;  %v1577_v50 = vmax.f32 %v1410_v48, 0.0  ;;  %7190 = vmatmul.msk.f32.gmra.mxu1 %vm691_vm2, %v665_v46  ;;  %v2230_v47 = vpop.permute.xlu0 %2229 }
 0x203   : > { %7238 = vmatmul.msk.f32.gmra.mxu2 %vm691_vm2, %v1122_v49  ;;  %7285 = vmatmul.msk.f32.gmra.mxu3 %vm691_vm2, %v1577_v50 }
 0x204   : > { %v566_v51 = vpop.f32.mrf.mxu0 }
 0x205   : > { %v567_v53 = vadd.f32 %v8396_v27, %v566_v51 }
 0x206   : > { %v991_v54 = vpop.f32.mrf.mxu1  ;;  %v1412_v55 = vpop.f32.mrf.mxu2 }
 0x207   : > { %v666_v56 = vmax.f32 %v567_v53, 0.0  ;;  %v992_v57 = vadd.f32 %v8480_v41, %v991_v54  ;;  %v1413_v58 = vadd.f32 %v8615_v43, %v1412_v55  ;;  %7143 = vmatmul.msk.f32.gmra.mxu0 %vm214_vm1, %v204_v52 }
 0x209   : > { %v1123_v59 = vmax.f32 %v992_v57, 0.0  ;;  %v1578_v60 = vmax.f32 %v1413_v58, 0.0  ;;  %7191 = vmatmul.msk.f32.gmra.mxu1 %vm691_vm2, %v666_v56 }
 0x20b   : > { %7239 = vmatmul.msk.f32.gmra.mxu2 %vm691_vm2, %v1123_v59  ;;  %7286 = vmatmul.msk.f32.gmra.mxu3 %vm691_vm2, %v1578_v60 }
 0x20c   : > { %v569_v61 = vpop.f32.mrf.mxu0 }
 0x20d   : > { %v570_v63 = vadd.f32 %v8396_v27, %v569_v61 }
 0x20e   : > { %v994_v0 = vpop.f32.mrf.mxu1  ;;  %v1415_v1 = vpop.f32.mrf.mxu2 }
 0x20f   : > { %v667_v2 = vmax.f32 %v570_v63, 0.0  ;;  %v995_v3 = vadd.f32 %v8480_v41, %v994_v0  ;;  %v1416_v4 = vadd.f32 %v8615_v43, %v1415_v1  ;;  %7144 = vmatmul.msk.f32.gmra.mxu0 %vm214_vm1, %v205_v62 }
 0x211   : > { %v1124_v5 = vmax.f32 %v995_v3, 0.0  ;;  %v1579_v13 = vmax.f32 %v1416_v4, 0.0  ;;  %7192 = vmatmul.msk.f32.gmra.mxu1 %vm691_vm2, %v667_v2  ;;  %v2232_v4 = vpop.permute.xlu0 %2231 }
 0x213   : > { %7240 = vmatmul.msk.f32.gmra.mxu2 %vm691_vm2, %v1124_v5  ;;  %7287 = vmatmul.msk.f32.gmra.mxu3 %vm691_vm2, %v1579_v13 }
 0x214   : > { %v572_v14 = vpop.f32.mrf.mxu0 }
 0x215   : > { %v573_v15 = vadd.f32 %v8396_v27, %v572_v14  ;;  %v8747_v27 = vld [vmem:[%s13175_s1 + $0x138] ss:$0 sm:$0xff] }
 0x216   : > { %v997_v16 = vpop.f32.mrf.mxu1  ;;  %v1418_v17 = vpop.f32.mrf.mxu2 }
 0x217   : > { %v668_v18 = vmax.f32 %v573_v15, 0.0  ;;  %v998_v19 = vadd.f32 %v8480_v41, %v997_v16  ;;  %v1419_v20 = vadd.f32 %v8615_v43, %v1418_v17 }
 0x219   : > { %v1125_v21 = vmax.f32 %v998_v19, 0.0  ;;  %v1580_v22 = vmax.f32 %v1419_v20, 0.0  ;;  %7193 = vmatmul.msk.f32.gmra.mxu1 %vm691_vm2, %v668_v18  ;;  %v8068_v20 = vld [vmem:[%s8320_s25 + $0x38] sm:$0xff] }
 0x21b   : > { %7241 = vmatmul.msk.f32.gmra.mxu2 %vm691_vm2, %v1125_v21  ;;  %7288 = vmatmul.msk.f32.gmra.mxu3 %vm691_vm2, %v1580_v22 }
 0x21c   : > { %v575_v23 = vpop.f32.mrf.mxu0 }
 0x21d   : > { %v576_v24 = vadd.f32 %v8747_v27, %v575_v23  ;;  %v2234_v23 = vpop.permute.xlu1 %2233 }
 0x21e   : > { %v1000_v25 = vpop.f32.mrf.mxu1  ;;  %v1421_v26 = vpop.f32.mrf.mxu2 }
 0x21f   : > { %v669_v28 = vmax.f32 %v576_v24, 0.0  ;;  %v1001_v29 = vadd.f32 %v8480_v41, %v1000_v25  ;;  %v1422_v30 = vadd.f32 %v8615_v43, %v1421_v26 }
 0x221   : > { %v1126_v31 = vmax.f32 %v1001_v29, 0.0  ;;  %v1581_v32 = vmax.f32 %v1422_v30, 0.0  ;;  %7194 = vmatmul.msk.f32.gmra.mxu1 %vm691_vm2, %v669_v28 }
 0x223   : > { %7242 = vmatmul.msk.f32.gmra.mxu2 %vm691_vm2, %v1126_v31  ;;  %7289 = vmatmul.msk.f32.gmra.mxu3 %vm691_vm2, %v1581_v32 }
 0x224   : > { %v578_v6 = vpop.f32.mrf.mxu0 }
 0x225   : > { %v579_v8 = vadd.f32 %v8747_v27, %v578_v6 }
 0x226   : > { %v1845_v10 = vpop.f32.mrf.mxu3  ;;  %v1003_v34 = vpop.f32.mrf.mxu1 }
 0x227   : > { %v8762_v35 = vadd.f32 %v8756_v33, %v1845_v10  ;;  %v670_v36 = vmax.f32 %v579_v8, 0.0  ;;  %v1004_v37 = vadd.f32 %v8480_v41, %v1003_v34  ;;  %v1424_v7 = vpop.f32.mrf.mxu2 }
 0x228   : > { %v1425_v9 = vadd.f32 %v8615_v43, %v1424_v7 }
 0x229   : > { %13355 = vst [vmem:[#allocation2_spill] sm:$0xff] %v8762_v35  ;;  %v2037_v11 = vmul.f32 0.5, %v8762_v35  ;;  %v1127_v38 = vmax.f32 %v1004_v37, 0.0  ;;  %7195 = vmatmul.msk.f32.gmra.mxu1 %vm691_vm2, %v670_v36  ;;  %v8069_v36 = vld [vmem:[%s8320_s25 + $0x40] sm:$0xff] }
 0x22a   : > { %v1582_v39 = vmax.f32 %v1425_v9, 0.0 }
 0x22b   : > { %v2101_v40 = vmul.f32 1.442695, %v2037_v11  ;;  %7243 = vmatmul.msk.f32.gmra.mxu2 %vm691_vm2, %v1127_v38  ;;  %v8814_v11 = vld [vmem:[%s13175_s1 + $0x139] ss:$0 sm:$0xff] }
 0x22c   : > { %7290 = vmatmul.msk.f32.gmra.mxu3 %vm691_vm2, %v1582_v39  ;;  %v581_v42 = vpop.f32.mrf.mxu0 }
 0x22d   : > { %7683 = vpow2.f32 %v2101_v40  ;;  %v582_v44 = vadd.f32 %v8747_v27, %v581_v42 }
 0x22e   : > { %v1848_v12 = vpop.f32.mrf.mxu3  ;;  %v1006_v45 = vpop.f32.mrf.mxu1 }
 0x22f   : > { %v8772_v46 = vadd.f32 %v8756_v33, %v1848_v12  ;;  %v671_v48 = vmax.f32 %v582_v44, 0.0  ;;  %v1007_v49 = vadd.f32 %v8480_v41, %v1006_v45  ;;  %v1427_v50 = vpop.f32.mrf.mxu2  ;;  %v2236_v44 = vpop.permute.xlu1 %2235 }
 0x230   : > { %v1428_v51 = vadd.f32 %v8615_v43, %v1427_v50 }
 0x231   : > { %13356 = vst [vmem:[#allocation3_spill] sm:$0xff] %v8772_v46  ;;  %v2038_v52 = vmul.f32 0.5, %v8772_v46  ;;  %v1128_v53 = vmax.f32 %v1007_v49, 0.0  ;;  %7196 = vmatmul.msk.f32.gmra.mxu1 %vm691_vm2, %v671_v48 }
 0x232   : > { %v1583_v54 = vmax.f32 %v1428_v51, 0.0 }
 0x233   : > { %v7684_v55 = vpop.eup %7683  ;;  %v2103_v56 = vmul.f32 1.442695, %v2038_v52  ;;  %7244 = vmatmul.msk.f32.gmra.mxu2 %vm691_vm2, %v1128_v53  ;;  %v8071_v53 = vld [vmem:[%s8320_s25 + $0x48] sm:$0xff] }
 0x234   : > { %v2421_v57 = vmul.f32 %v7684_v55, %v2230_v47  ;;  %7291 = vmatmul.msk.f32.gmra.mxu3 %vm691_vm2, %v1583_v54  ;;  %v584_v58 = vpop.f32.mrf.mxu0 }
 0x235   : > { %7685 = vpow2.f32 %v2103_v56  ;;  %v585_v59 = vadd.f32 %v8747_v27, %v584_v58  ;;  %v2238_v56 = vpop.permute.xlu2 %2237 }
 0x236   : > { %v1851_v60 = vpop.f32.mrf.mxu3  ;;  %2549 = vrot.lane.b32.xlu0 %v2421_v57, %s8274_s18  ;;  %v1009_v61 = vpop.f32.mrf.mxu1 }
 0x237   : > { %v8783_v62 = vadd.f32 %v8756_v33, %v1851_v60  ;;  %v672_v63 = vmax.f32 %v585_v59, 0.0  ;;  %v1010_v0 = vadd.f32 %v8480_v41, %v1009_v61  ;;  %v1430_v1 = vpop.f32.mrf.mxu2 }
 0x238   : > { %v1431_v2 = vadd.f32 %v8615_v43, %v1430_v1 }
 0x239   : > { %13357 = vst [vmem:[#allocation4_spill] sm:$0xff] %v8783_v62  ;;  %v2039_v3 = vmul.f32 0.5, %v8783_v62  ;;  %v1129_v5 = vmax.f32 %v1010_v0, 0.0  ;;  %7197 = vmatmul.msk.f32.gmra.mxu1 %vm691_vm2, %v672_v63 }
 0x23a   : > { %v1584_v13 = vmax.f32 %v1431_v2, 0.0 }
 0x23b   : > { %v7686_v14 = vpop.eup %7685  ;;  %v2105_v15 = vmul.f32 1.442695, %v2039_v3  ;;  %7245 = vmatmul.msk.f32.gmra.mxu2 %vm691_vm2, %v1129_v5 }
 0x23c   : > { %v2422_v16 = vmul.f32 %v7686_v14, %v2232_v4  ;;  %7292 = vmatmul.msk.f32.gmra.mxu3 %vm691_vm2, %v1584_v13  ;;  %v587_v17 = vpop.f32.mrf.mxu0  ;;  %v8072_v14 = vld [vmem:[%s8320_s25 + $0x50] sm:$0xff] }
 0x23d   : > { %7687 = vpow2.f32 %v2105_v15  ;;  %v588_v18 = vadd.f32 %v8747_v27, %v587_v17 }
 0x23e   : > { %v1854_v19 = vpop.f32.mrf.mxu3  ;;  %2551 = vrot.lane.b32.xlu2 %v2422_v16, %s8274_s18  ;;  %2243 = vrot.lane.b32.xlu0 %v8068_v20, %s8273_s27  ;;  %v1012_v21 = vpop.f32.mrf.mxu1 }
 0x23f   : > { %v8796_v22 = vadd.f32 %v8756_v33, %v1854_v19  ;;  %v673_v24 = vmax.f32 %v588_v18, 0.0  ;;  %v1013_v25 = vadd.f32 %v8480_v41, %v1012_v21  ;;  %v1433_v26 = vpop.f32.mrf.mxu2 }
 0x240   : > { %v1434_v28 = vadd.f32 %v8615_v43, %v1433_v26 }
 0x241   : > { %13358 = vst [vmem:[#allocation5_spill] sm:$0xff] %v8796_v22  ;;  %v2040_v29 = vmul.f32 0.5, %v8796_v22  ;;  %v1130_v30 = vmax.f32 %v1013_v25, 0.0  ;;  %7198 = vmatmul.msk.f32.gmra.mxu1 %vm691_vm2, %v673_v24 }
 0x242   : > { %v1585_v31 = vmax.f32 %v1434_v28, 0.0 }
 0x243   : > { %v7688_v32 = vpop.eup %7687  ;;  %v2107_v6 = vmul.f32 1.442695, %v2040_v29  ;;  %7246 = vmatmul.msk.f32.gmra.mxu2 %vm691_vm2, %v1130_v30 }
 0x244   : > { %v2423_v8 = vmul.f32 %v7688_v32, %v2234_v23  ;;  %7293 = vmatmul.msk.f32.gmra.mxu3 %vm691_vm2, %v1585_v31  ;;  %v590_v10 = vpop.f32.mrf.mxu0  ;;  %v2240_v23 = vpop.permute.xlu2 %2239  ;;  %v8073_v32 = vld [vmem:[%s8320_s25 + $0x58] sm:$0xff] }
 0x245   : > { %7689 = vpow2.f32 %v2107_v6  ;;  %v591_v41 = vadd.f32 %v8747_v27, %v590_v10 }
 0x246   : > { %v1857_v34 = vpop.f32.mrf.mxu3  ;;  %2553 = vrot.lane.b32.xlu1 %v2423_v8, %s8274_s18  ;;  %2245 = vrot.lane.b32.xlu2 %v8069_v36, %s8273_s27  ;;  %v1015_v37 = vpop.f32.mrf.mxu1 }
 0x247   : > { %v8809_v7 = vadd.f32 %v8756_v33, %v1857_v34  ;;  %v674_v9 = vmax.f32 %v591_v41, 0.0  ;;  %v1016_v38 = vadd.f32 %v8814_v11, %v1015_v37  ;;  %v1436_v39 = vpop.f32.mrf.mxu2  ;;  %v2242_v37 = vpop.permute.xlu1 %2241 }
 0x248   : > { %v1437_v40 = vadd.f32 %v8615_v43, %v1436_v39 }
 0x249   : > { %13359 = vst [vmem:[#allocation6_spill] sm:$0xff] %v8809_v7  ;;  %v2041_v42 = vmul.f32 0.5, %v8809_v7  ;;  %v1131_v12 = vmax.f32 %v1016_v38, 0.0  ;;  %7199 = vmatmul.msk.f32.gmra.mxu1 %vm691_vm2, %v674_v9 }
 0x24a   : > { %v1586_v45 = vmax.f32 %v1437_v40, 0.0 }
 0x24b   : > { %v7690_v47 = vpop.eup %7689  ;;  %v2109_v48 = vmul.f32 1.442695, %v2041_v42  ;;  %7247 = vmatmul.msk.f32.gmra.mxu2 %vm691_vm2, %v1131_v12  ;;  %v8074_v12 = vld [vmem:[%s8320_s25 + $0x60] sm:$0xff] }
 0x24c   : > { %v2424_v49 = vmul.f32 %v7690_v47, %v2236_v44  ;;  %7294 = vmatmul.msk.f32.gmra.mxu3 %vm691_vm2, %v1586_v45  ;;  %v593_v50 = vpop.f32.mrf.mxu0 }
 0x24d   : > { %7691 = vpow2.f32 %v2109_v48  ;;  %v594_v51 = vadd.f32 %v8747_v27, %v593_v50 }
 0x24e   : > { %v1860_v52 = vpop.f32.mrf.mxu3  ;;  %2247 = vrot.lane.b32.xlu1 %v8071_v53, %s8273_s27  ;;  %2555 = vrot.lane.b32.xlu0 %v2424_v49, %s8274_s18  ;;  %v1018_v54 = vpop.f32.mrf.mxu1 }
 0x24f   : > { %v8827_v55 = vadd.f32 %v8756_v33, %v1860_v52  ;;  %v675_v57 = vmax.f32 %v594_v51, 0.0  ;;  %v1019_v58 = vadd.f32 %v8814_v11, %v1018_v54  ;;  %v1439_v59 = vpop.f32.mrf.mxu2 }
 0x250   : > { %v1440_v60 = vadd.f32 %v8615_v43, %v1439_v59 }
 0x251   : > { %13360 = vst [vmem:[#allocation7_spill] sm:$0xff] %v8827_v55  ;;  %v2042_v61 = vmul.f32 0.5, %v8827_v55  ;;  %v1132_v63 = vmax.f32 %v1019_v58, 0.0  ;;  %7200 = vmatmul.msk.f32.gmra.mxu1 %vm691_vm2, %v675_v57  ;;  %v8075_v57 = vld [vmem:[%s8320_s25 + $0x68] sm:$0xff] }
 0x252   : > { %v1587_v0 = vmax.f32 %v1440_v60, 0.0 }
 0x253   : > { %v7692_v1 = vpop.eup %7691  ;;  %v2111_v2 = vmul.f32 1.442695, %v2042_v61  ;;  %7248 = vmatmul.msk.f32.gmra.mxu2 %vm691_vm2, %v1132_v63 }
 0x254   : > { %v2425_v3 = vmul.f32 %v7692_v1, %v2238_v56  ;;  %7295 = vmatmul.msk.f32.gmra.mxu3 %vm691_vm2, %v1587_v0  ;;  %v596_v4 = vpop.f32.mrf.mxu0 }
 0x255   : > { %7693 = vpow2.f32 %v2111_v2  ;;  %v597_v5 = vadd.f32 %v8747_v27, %v596_v4 }
 0x256   : > { %v1863_v13 = vpop.f32.mrf.mxu3  ;;  %2557 = vrot.lane.b32.xlu2 %v2425_v3, %s8274_s18  ;;  %2249 = vrot.lane.b32.xlu0 %v8072_v14, %s8273_s27  ;;  %v1021_v15 = vpop.f32.mrf.mxu1 }
 0x257   : > { %v8840_v16 = vadd.f32 %v8756_v33, %v1863_v13  ;;  %v676_v17 = vmax.f32 %v597_v5, 0.0  ;;  %v1022_v18 = vadd.f32 %v8814_v11, %v1021_v15  ;;  %v1442_v19 = vpop.f32.mrf.mxu2 }
 0x258   : > { %v1443_v20 = vadd.f32 %v8615_v43, %v1442_v19 }
 0x259   : > { %13361 = vst [vmem:[#allocation8_spill] sm:$0xff] %v8840_v16  ;;  %v2043_v21 = vmul.f32 0.5, %v8840_v16  ;;  %v1133_v24 = vmax.f32 %v1022_v18, 0.0  ;;  %7201 = vmatmul.msk.f32.gmra.mxu1 %vm691_vm2, %v676_v17 }
 0x25a   : > { %v1588_v25 = vmax.f32 %v1443_v20, 0.0 }
 0x25b   : > { %v7694_v26 = vpop.eup %7693  ;;  %v2113_v28 = vmul.f32 1.442695, %v2043_v21  ;;  %7249 = vmatmul.msk.f32.gmra.mxu2 %vm691_vm2, %v1133_v24 }
 0x25c   : > { %v2426_v29 = vmul.f32 %v7694_v26, %v2240_v23  ;;  %7296 = vmatmul.msk.f32.gmra.mxu3 %vm691_vm2, %v1588_v25  ;;  %v599_v30 = vpop.f32.mrf.mxu0 }
 0x25d   : > { %7695 = vpow2.f32 %v2113_v28  ;;  %v600_v31 = vadd.f32 %v8747_v27, %v599_v30 }
 0x25e   : > { %2559 = vrot.lane.b32.xlu1 %v2426_v29, %s8274_s18  ;;  %2251 = vrot.lane.b32.xlu2 %v8073_v32, %s8273_s27  ;;  %v1024_v6 = vpop.f32.mrf.mxu1  ;;  %v8852_v8 = vpop.f32.mrf.mxu3 }
 0x25f   : > { %v677_v10 = vmax.f32 %v600_v31, 0.0  ;;  %v1025_v41 = vadd.f32 %v8814_v11, %v1024_v6  ;;  %v1445_v34 = vpop.f32.mrf.mxu2  ;;  %v3713_v6 = vld [vmem:[%s13175_s1 + $0xb8] sm:$0x3f] }
 0x260   : > { %v1446_v36 = vadd.f32 %v8615_v43, %v1445_v34  ;;  %7337 = vmatpush.msk.msrb.mxu1 %vm3908_vm3, %v3713_v6 }
 0x261   : > { %v1134_v9 = vmax.f32 %v1025_v41, 0.0  ;;  %7202 = vmatmul.msk.f32.gmra.mxu1 %vm691_vm2, %v677_v10  ;;  %v3712_v10 = vld [vmem:[%s13175_s1 + $0xb0] sm:$0xff] }
 0x262   : > { %v1589_v38 = vmax.f32 %v1446_v36, 0.0  ;;  %3926 = vmatpush.msrb.mxu1 %v3712_v10 }
 0x263   : > { %v7696_v39 = vpop.eup %7695  ;;  %7250 = vmatmul.msk.f32.gmra.mxu2 %vm691_vm2, %v1134_v9 }
 0x264   : > { %v2427_v40 = vmul.f32 %v7696_v39, %v2242_v37  ;;  %7297 = vmatmul.msk.f32.gmra.mxu3 %vm691_vm2, %v1589_v38  ;;  %v602_v42 = vpop.f32.mrf.mxu0 }
 0x265   : > { %v603_v44 = vadd.f32 %v8747_v27, %v602_v42 }
 0x266   : > { %2253 = vrot.lane.b32.xlu1 %v8074_v12, %s8273_s27  ;;  %2561 = vrot.lane.b32.xlu0 %v2427_v40, %s8274_s18  ;;  %v1027_v45 = vpop.f32.mrf.mxu1  ;;  %v8863_v47 = vpop.f32.mrf.mxu3 }
 0x267   : > { %v678_v48 = vmax.f32 %v603_v44, 0.0  ;;  %v1028_v49 = vadd.f32 %v8814_v11, %v1027_v45  ;;  %v1448_v50 = vpop.f32.mrf.mxu2  ;;  %v3711_v44 = vld [vmem:[%s13175_s1 + $0xa8] sm:$0xff]  ;;  %v8914_v45 = vadd.f32 %v8756_v33, %v8863_v47 }
 0x268   : > { %v1449_v51 = vadd.f32 %v8615_v43, %v1448_v50  ;;  %3927 = vmatpush.msrb.mxu1 %v3711_v44 }
 0x269   : > { %v1135_v52 = vmax.f32 %v1028_v49, 0.0  ;;  %7203 = vmatmul.msk.f32.gmra.mxu1 %vm691_vm2, %v678_v48  ;;  %13362 = vst [vmem:[#allocation9_spill] sm:$0xff] %v8914_v45 }
 0x26a   : > { %v1590_v53 = vmax.f32 %v1449_v51, 0.0 }
 0x26b   : > { %7251 = vmatmul.msk.f32.gmra.mxu2 %vm691_vm2, %v1135_v52 }
 0x26c   : > { %7298 = vmatmul.msk.f32.gmra.mxu3 %vm691_vm2, %v1590_v53  ;;  %v605_v54 = vpop.f32.mrf.mxu0 }
 0x26d   : > { %v606_v56 = vadd.f32 %v8747_v27, %v605_v54 }
 0x26e   : > { %2255 = vrot.lane.b32.xlu0 %v8075_v57, %s8273_s27  ;;  %v1030_v58 = vpop.f32.mrf.mxu1  ;;  %v8873_v59 = vpop.f32.mrf.mxu3 }
 0x26f   : > { %v679_v60 = vmax.f32 %v606_v56, 0.0  ;;  %v1031_v61 = vadd.f32 %v8814_v11, %v1030_v58  ;;  %v1451_v63 = vpop.f32.mrf.mxu2  ;;  %v2045_v56 = vmul.f32 0.5, %v8914_v45 }
 0x270   : > { %v1452_v0 = vadd.f32 %v8615_v43, %v1451_v63 }
 0x271   : > { %v1136_v1 = vmax.f32 %v1031_v61, 0.0  ;;  %7204 = vmatmul.msk.f32.gmra.mxu1 %vm691_vm2, %v679_v60  ;;  %v2117_v60 = vmul.f32 1.442695, %v2045_v56 }
 0x272   : > { %v1591_v2 = vmax.f32 %v1452_v0, 0.0 }
 0x273   : > { %7252 = vmatmul.msk.f32.gmra.mxu2 %vm691_vm2, %v1136_v1  ;;  %7697 = vpow2.f32 %v2117_v60 }
 0x274   : > { %7299 = vmatmul.msk.f32.gmra.mxu3 %vm691_vm2, %v1591_v2  ;;  %v608_v3 = vpop.f32.mrf.mxu0 }
 0x275   : > { %v609_v4 = vadd.f32 %v8747_v27, %v608_v3 }
 0x276   : > { %v1033_v5 = vpop.f32.mrf.mxu1  ;;  %v8881_v13 = vpop.f32.mrf.mxu3 }
 0x277   : > { %v680_v14 = vmax.f32 %v609_v4, 0.0  ;;  %v1034_v15 = vadd.f32 %v8814_v11, %v1033_v5  ;;  %v1454_v17 = vpop.f32.mrf.mxu2  ;;  %v8933_v5 = vadd.f32 %v8756_v33, %v8852_v8  ;;  %v8986_v60 = vadd.f32 %v8756_v33, %v8881_v13 }
 0x278   : > { %v1455_v18 = vadd.f32 %v8615_v43, %v1454_v17 }
 0x279   : > { %v1137_v19 = vmax.f32 %v1034_v15, 0.0  ;;  %7205 = vmatmul.msk.f32.gmra.mxu1 %vm691_vm2, %v680_v14  ;;  %13363 = vst [vmem:[#allocation10_spill] sm:$0xff] %v8933_v5  ;;  %v7698_v14 = vpop.eup %7697 }
 0x27a   : > { %v1592_v20 = vmax.f32 %v1455_v18, 0.0  ;;  %13366 = vst [vmem:[#allocation13_spill] sm:$0xff] %v8986_v60 }
 0x27b   : > { %7253 = vmatmul.msk.f32.gmra.mxu2 %vm691_vm2, %v1137_v19 }
 0x27c   : > { %7300 = vmatmul.msk.f32.gmra.mxu3 %vm691_vm2, %v1592_v20  ;;  %v611_v21 = vpop.f32.mrf.mxu0  ;;  %v2044_v20 = vmul.f32 0.5, %v8933_v5 }
 0x27d   : > { %v612_v23 = vadd.f32 %v8747_v27, %v611_v21  ;;  %v8943_v21 = vld [vmem:[%s13175_s1 + $0x13a] ss:$0 sm:$0xff] }
 0x27e   : > { %v1036_v24 = vpop.f32.mrf.mxu1  ;;  %v8889_v25 = vpop.f32.mrf.mxu3 }
 0x27f   : > { %v681_v26 = vmax.f32 %v612_v23, 0.0  ;;  %v1037_v28 = vadd.f32 %v8814_v11, %v1036_v24  ;;  %v1457_v29 = vpop.f32.mrf.mxu2 }
 0x280   : > { %v1458_v30 = vadd.f32 %v8615_v43, %v1457_v29  ;;  %v8950_v29 = vadd.f32 %v8756_v33, %v8889_v25 }
 0x281   : > { %v1138_v31 = vmax.f32 %v1037_v28, 0.0  ;;  %7206 = vmatmul.msk.f32.gmra.mxu1 %vm691_vm2, %v681_v26  ;;  %v2115_v28 = vmul.f32 1.442695, %v2044_v20 }
 0x282   : > { %v1593_v32 = vmax.f32 %v1458_v30, 0.0  ;;  %13364 = vst [vmem:[#allocation11_spill] sm:$0xff] %v8950_v29  ;;  %v2048_v10 = vmul.f32 0.5, %v8950_v29 }
 0x283   : > { %7254 = vmatmul.msk.f32.gmra.mxu2 %vm691_vm2, %v1138_v31  ;;  %7699 = vpow2.f32 %v2115_v28 }
 0x284   : > { %7301 = vmatmul.msk.f32.gmra.mxu3 %vm691_vm2, %v1593_v32  ;;  %v614_v41 = vpop.f32.mrf.mxu0 }
 0x285   : > { %v615_v34 = vadd.f32 %v8747_v27, %v614_v41 }
 0x286   : > { %v1039_v36 = vpop.f32.mrf.mxu1  ;;  %v8903_v37 = vpop.f32.mrf.mxu3 }
 0x287   : > { %v682_v9 = vmax.f32 %v615_v34, 0.0  ;;  %v1040_v38 = vadd.f32 %v8814_v11, %v1039_v36  ;;  %v1460_v39 = vpop.f32.mrf.mxu2 }
 0x288   : > { %v1461_v40 = vadd.f32 %v8615_v43, %v1460_v39  ;;  %v8967_v39 = vadd.f32 %v8756_v33, %v8873_v59 }
 0x289   : > { %v1139_v42 = vmax.f32 %v1040_v38, 0.0  ;;  %7207 = vmatmul.msk.f32.gmra.mxu1 %vm691_vm2, %v682_v9  ;;  %v8077_v38 = vld [vmem:[%s8320_s25 + $0x78] sm:$0xff] }
 0x28a   : > { %v1594_v12 = vmax.f32 %v1461_v40, 0.0  ;;  %13365 = vst [vmem:[#allocation12_spill] sm:$0xff] %v8967_v39  ;;  %v2123_v40 = vmul.f32 1.442695, %v2048_v10 }
 0x28b   : > { %7255 = vmatmul.msk.f32.gmra.mxu2 %vm691_vm2, %v1139_v42  ;;  %v7700_v42 = vpop.eup %7699 }
 0x28c   : > { %7302 = vmatmul.msk.f32.gmra.mxu3 %vm691_vm2, %v1594_v12  ;;  %v617_v48 = vpop.f32.mrf.mxu0  ;;  %7701 = vpow2.f32 %v2123_v40  ;;  %v9017_v40 = vadd.f32 %v8756_v33, %v8903_v37 }
 0x28d   : > { %v618_v49 = vadd.f32 %v8747_v27, %v617_v48 }
 0x28e   : > { %v1042_v50 = vpop.f32.mrf.mxu1  ;;  %v8918_v51 = vpop.f32.mrf.mxu3  ;;  %13367 = vst [vmem:[#allocation14_spill] sm:$0xff] %v9017_v40 }
 0x28f   : > { %v683_v52 = vmax.f32 %v618_v49, 0.0  ;;  %v1043_v53 = vadd.f32 %v8814_v11, %v1042_v50  ;;  %v1463_v54 = vpop.f32.mrf.mxu2  ;;  %v2046_v50 = vmul.f32 0.5, %v8967_v39 }
 0x290   : > { %v1464_v57 = vadd.f32 %v8615_v43, %v1463_v54 }
 0x291   : > { %v1140_v58 = vmax.f32 %v1043_v53, 0.0  ;;  %7208 = vmatmul.msk.f32.gmra.mxu1 %vm691_vm2, %v683_v52 }
 0x292   : > { %v1595_v47 = vmax.f32 %v1464_v57, 0.0 }
 0x293   : > { %7256 = vmatmul.msk.f32.gmra.mxu2 %vm691_vm2, %v1140_v58 }
 0x294   : > { %7303 = vmatmul.msk.f32.gmra.mxu3 %vm691_vm2, %v1595_v47  ;;  %v2119_v47 = vmul.f32 1.442695, %v2046_v50 }
 0x296   : > { %v1045_v27 = vpop.f32.mrf.mxu1  ;;  %v8926_v61 = vpop.f32.mrf.mxu3  ;;  %7703 = vpow2.f32 %v2119_v47 }
 0x297   : > { %v1046_v63 = vadd.f32 %v8814_v11, %v1045_v27  ;;  %v1466_v0 = vpop.f32.mrf.mxu2  ;;  %v7702_v27 = vpop.eup %7701 }
 0x298   : > { %v2552_v1 = vpop.permute.xlu2 %2551  ;;  %v1467_v2 = vadd.f32 %v8615_v43, %v1466_v0 }
 0x299   : > { %v1141_v3 = vmax.f32 %v1046_v63, 0.0  ;;  %v8979_v54 = vadd.f32 %v2552_v1, %v8772_v46  ;;  %v8095_v46 = vld [vmem:[%s8320_s25 + $0xf8] sm:$0xff] }
 0x29a   : > { %v1596_v4 = vmax.f32 %v1467_v2, 0.0 }
 0x29b   : > { %7257 = vmatmul.msk.f32.gmra.mxu2 %vm691_vm2, %v1141_v3  ;;  %v2047_v3 = vmul.f32 0.5, %v8986_v60 }
 0x29c   : > { %7304 = vmatmul.msk.f32.gmra.mxu3 %vm691_vm2, %v1596_v4 }
 0x29e   : > { %v1048_v15 = vpop.f32.mrf.mxu1  ;;  %v8936_v17 = vpop.f32.mrf.mxu3 }
 0x29f   : > { %v1049_v18 = vadd.f32 %v8814_v11, %v1048_v15  ;;  %v1469_v19 = vpop.f32.mrf.mxu2 }
 0x2a0   : > { %v2246_v43 = vpop.permute.xlu2 %2245  ;;  %v1470_v8 = vadd.f32 %v8943_v21, %v1469_v19 }
 0x2a1   : > { %v2429_v23 = vmul.f32 %v7698_v14, %v2246_v43  ;;  %v1142_v24 = vmax.f32 %v1049_v18, 0.0  ;;  %v2121_v43 = vmul.f32 1.442695, %v2047_v3 }
 0x2a2   : > { %v1597_v26 = vmax.f32 %v1470_v8, 0.0  ;;  %v8078_v8 = vld [vmem:[%s8320_s25 + $0x70] sm:$0xff] }
 0x2a3   : > { %2565 = vrot.lane.b32.xlu1 %v2429_v23, %s8274_s18  ;;  %7258 = vmatmul.msk.f32.gmra.mxu2 %vm691_vm2, %v1142_v24  ;;  %v7704_v23 = vpop.eup %7703  ;;  %7705 = vpow2.f32 %v2121_v43  ;;  %v8081_v43 = vld [vmem:[%s8320_s25 + $0x88] sm:$0xff] }
 0x2a4   : > { %7305 = vmatmul.msk.f32.gmra.mxu3 %vm691_vm2, %v1597_v26 }
 0x2a6   : > { %v1051_v30 = vpop.f32.mrf.mxu1  ;;  %v8953_v31 = vpop.f32.mrf.mxu3 }
 0x2a7   : > { %v1052_v32 = vadd.f32 %v8814_v11, %v1051_v30  ;;  %v1472_v6 = vpop.f32.mrf.mxu2 }
 0x2a8   : > { %v2550_v41 = vpop.permute.xlu0 %2549  ;;  %v1473_v34 = vadd.f32 %v8943_v21, %v1472_v6 }
 0x2a9   : > { %v8959_v36 = vadd.f32 %v2550_v41, %v8762_v35  ;;  %v1143_v25 = vmax.f32 %v1052_v32, 0.0 }
 0x2aa   : > { %v1598_v9 = vmax.f32 %v1473_v34, 0.0 }
 0x2ab   : > { %2259 = vrot.lane.b32.xlu1 %v8077_v38, %s8273_s27  ;;  %7338 = vmatmul.msk.f32.vlgmr.msrb.gmra.mxu1 %vm3573_vm4, %v8959_v36  ;;  %v8079_v38 = vld [vmem:[%s8320_s25 + $0x90] sm:$0xff] }
 0x2ac   : > { %7259 = vmatmul.msk.f32.gmra.mxu2 %vm691_vm2, %v1143_v25  ;;  %7306 = vmatmul.msk.f32.gmra.mxu3 %vm691_vm2, %v1598_v9 }
 0x2ae   : > { %v1054_v44 = vpop.f32.mrf.mxu1 }
 0x2af   : > { %v1055_v12 = vadd.f32 %v8814_v11, %v1054_v44  ;;  %v1475_v48 = vpop.f32.mrf.mxu2  ;;  %v8972_v49 = vpop.f32.mrf.mxu3 }
 0x2b0   : > { %v8975_v52 = vpop.permute.xlu2 %2557  ;;  %v2244_v53 = vpop.permute.xlu0 %2243  ;;  %v1476_v59 = vadd.f32 %v8943_v21, %v1475_v48 }
 0x2b1   : > { %v2428_v56 = vmul.f32 %v7700_v42, %v2244_v53  ;;  %v1144_v57 = vmax.f32 %v1055_v12, 0.0  ;;  %v7706_v42 = vpop.eup %7705  ;;  %v2049_v53 = vmul.f32 0.5, %v9017_v40 }
 0x2b2   : > { %v1599_v58 = vmax.f32 %v1476_v59, 0.0 }
 0x2b3   : > { %7339 = vmatmul.msk.f32.gmra.mxu1 %vm3573_vm4, %v8979_v54  ;;  %2563 = vrot.lane.b32.xlu2 %v2428_v56, %s8274_s18 }
 0x2b4   : > { %7260 = vmatmul.msk.f32.gmra.mxu2 %vm691_vm2, %v1144_v57  ;;  %7307 = vmatmul.msk.f32.gmra.mxu3 %vm691_vm2, %v1599_v58  ;;  %v9030_v58 = vadd.f32 %v8975_v52, %v8809_v7 }
 0x2b6   : > { %v1057_v63 = vpop.f32.mrf.mxu1 }
 0x2b7   : > { %v1058_v0 = vadd.f32 %v8814_v11, %v1057_v63  ;;  %v1478_v1 = vpop.f32.mrf.mxu2  ;;  %v8991_v2 = vpop.f32.mrf.mxu3  ;;  %v2125_v63 = vmul.f32 1.442695, %v2049_v53 }
 0x2b8   : > { %v2554_v4 = vpop.permute.xlu1 %2553  ;;  %v2252_v14 = vpop.permute.xlu2 %2251  ;;  %v1479_v13 = vadd.f32 %v8943_v21, %v1478_v1 }
 0x2b9   : > { %v8996_v15 = vadd.f32 %v2554_v4, %v8783_v62  ;;  %v2432_v18 = vmul.f32 %v7702_v27, %v2252_v14  ;;  %v1145_v19 = vmax.f32 %v1058_v0, 0.0  ;;  %v8080_v27 = vld [vmem:[%s8320_s25 + $0x80] sm:$0xff]  ;;  %v9037_v0 = vadd.f32 %v8756_v33, %v8918_v51 }
 0x2ba   : > { %v1600_v20 = vmax.f32 %v1479_v13, 0.0  ;;  %7707 = vpow2.f32 %v2125_v63  ;;  %v8082_v63 = vld [vmem:[%s8320_s25 + $0x98] sm:$0xff] }
 0x2bb   : > { %2571 = vrot.lane.b32.xlu1 %v2432_v18, %s8274_s18  ;;  %7340 = vmatmul.msk.f32.gmra.mxu1 %vm3573_vm4, %v8996_v15  ;;  %13368 = vst [vmem:[#allocation15_spill] sm:$0xff] %v9037_v0  ;;  %v2050_v14 = vmul.f32 0.5, %v9037_v0 }
 0x2bc   : > { %2257 = vrot.lane.b32.xlu2 %v8078_v8, %s8273_s27  ;;  %7261 = vmatmul.msk.f32.gmra.mxu2 %vm691_vm2, %v1145_v19 }
 0x2bd   : > { %7308 = vmatmul.msk.f32.gmra.mxu3 %vm691_vm2, %v1600_v20  ;;  %v2127_v8 = vmul.f32 1.442695, %v2050_v14 }
 0x2be   : > { %v1060_v24 = vpop.f32.mrf.mxu1 }
 0x2bf   : > { %v1061_v26 = vadd.f32 %v8814_v11, %v1060_v24  ;;  %v1481_v28 = vpop.f32.mrf.mxu2  ;;  %v9006_v30 = vpop.f32.mrf.mxu3  ;;  %7709 = vpow2.f32 %v2127_v8 }
 0x2c0   : > { %v2248_v32 = vpop.permute.xlu1 %2247  ;;  %v2556_v6 = vpop.permute.xlu0 %2555  ;;  %v1482_v10 = vadd.f32 %v8943_v21, %v1481_v28 }
 0x2c1   : > { %v2430_v41 = vmul.f32 %v7704_v23, %v2248_v32  ;;  %v9010_v34 = vadd.f32 %v2556_v6, %v8796_v22  ;;  %v1146_v25 = vmax.f32 %v1061_v26, 0.0  ;;  %v7708_v23 = vpop.eup %7707 }
 0x2c2   : > { %v1601_v9 = vmax.f32 %v1482_v10, 0.0 }
 0x2c3   : > { %2265 = vrot.lane.b32.xlu1 %v8079_v38, %s8273_s27  ;;  %2567 = vrot.lane.b32.xlu0 %v2430_v41, %s8274_s18 }
 0x2c4   : > { %7341 = vmatmul.msk.f32.gmra.mxu1 %vm3573_vm4, %v9010_v34  ;;  %7262 = vmatmul.msk.f32.gmra.mxu2 %vm691_vm2, %v1146_v25 }
 0x2c5   : > { %7309 = vmatmul.msk.f32.gmra.mxu3 %vm691_vm2, %v1601_v9 }
 0x2c6   : > { %v1063_v44 = vpop.f32.mrf.mxu1 }
 0x2c7   : > { %v1064_v12 = vadd.f32 %v8814_v11, %v1063_v44  ;;  %v1484_v48 = vpop.f32.mrf.mxu2  ;;  %v9024_v50 = vpop.f32.mrf.mxu3 }
 0x2c8   : > { %v2250_v59 = vpop.permute.xlu0 %2249  ;;  %v1485_v37 = vadd.f32 %v8943_v21, %v1484_v48  ;;  %v7710_v44 = vpop.eup %7709 }
 0x2c9   : > { %v2431_v56 = vmul.f32 %v7706_v42, %v2250_v59  ;;  %v1147_v57 = vmax.f32 %v1064_v12, 0.0 }
 0x2ca   : > { %v1602_v47 = vmax.f32 %v1485_v37, 0.0 }
 0x2cb   : > { %2261 = vrot.lane.b32.xlu0 %v8080_v27, %s8273_s27  ;;  %2569 = vrot.lane.b32.xlu2 %v2431_v56, %s8274_s18 }
 0x2cc   : > { %7342 = vmatmul.msk.f32.gmra.mxu1 %vm3573_vm4, %v9030_v58  ;;  %7263 = vmatmul.msk.f32.gmra.mxu2 %vm691_vm2, %v1147_v57 }
 0x2cd   : > { %7310 = vmatmul.msk.f32.gmra.mxu3 %vm691_vm2, %v1602_v47 }
 0x2ce   : > { %v1066_v52 = vpop.f32.mrf.mxu1 }
 0x2cf   : > { %v1067_v1 = vadd.f32 %v8814_v11, %v1066_v52  ;;  %v1487_v3 = vpop.f32.mrf.mxu2  ;;  %v9044_v4 = vpop.f32.mrf.mxu3 }
 0x2d0   : > { %v2560_v13 = vpop.permute.xlu1 %2559  ;;  %v1488_v51 = vadd.f32 %v8943_v21, %v1487_v3 }
 0x2d1   : > { %v9049_v18 = vadd.f32 %v2560_v13, %v8827_v55  ;;  %v1148_v19 = vmax.f32 %v1067_v1, 0.0 }
 0x2d2   : > { %v1603_v20 = vmax.f32 %v1488_v51, 0.0 }
 0x2d3   : > { %2263 = vrot.lane.b32.xlu2 %v8081_v43, %s8273_s27 }
 0x2d4   : > { %7343 = vmatmul.msk.f32.gmra.mxu1 %vm3573_vm4, %v9049_v18  ;;  %7264 = vmatmul.msk.f32.gmra.mxu2 %vm691_vm2, %v1148_v19 }
 0x2d5   : > { %7311 = vmatmul.msk.f32.gmra.mxu3 %vm691_vm2, %v1603_v20  ;;  %v8083_v20 = vld [vmem:[%s8320_s25 + $0xa0] sm:$0xff] }
 0x2d6   : > { %v1069_v24 = vpop.f32.mrf.mxu1 }
 0x2d7   : > { %v1070_v26 = vadd.f32 %v8814_v11, %v1069_v24  ;;  %v1490_v28 = vpop.f32.mrf.mxu2  ;;  %v9058_v32 = vpop.f32.mrf.mxu3 }
 0x2d8   : > { %v2254_v6 = vpop.permute.xlu1 %2253  ;;  %v2562_v10 = vpop.permute.xlu0 %2561  ;;  %v1491_v41 = vadd.f32 %v8943_v21, %v1490_v28 }
 0x2d9   : > { %v2433_v25 = vmul.f32 %v7708_v23, %v2254_v6  ;;  %v9062_v9 = vadd.f32 %v2562_v10, %v8840_v16  ;;  %v1149_v38 = vmax.f32 %v1070_v26, 0.0 }
 0x2da   : > { %v1604_v42 = vmax.f32 %v1491_v41, 0.0 }
 0x2db   : > { %2573 = vrot.lane.b32.xlu0 %v2433_v25, %s8274_s18 }
 0x2dc   : > { %7344 = vmatmul.msk.f32.gmra.mxu1 %vm3573_vm4, %v9062_v9  ;;  %7265 = vmatmul.msk.f32.gmra.mxu2 %vm691_vm2, %v1149_v38 }
 0x2dd   : > { %7312 = vmatmul.msk.f32.gmra.mxu3 %vm691_vm2, %v1604_v42 }
 0x2de   : > { %v1072_v12 = vpop.f32.mrf.mxu1 }
 0x2df   : > { %v1073_v48 = vadd.f32 %v8814_v11, %v1072_v12  ;;  %v1493_v53 = vpop.f32.mrf.mxu2  ;;  %v9070_v59 = vpop.f32.mrf.mxu3 }
 0x2e0   : > { %v2256_v37 = vpop.permute.xlu0 %2255  ;;  %v1494_v56 = vadd.f32 %v8943_v21, %v1493_v53 }
 0x2e1   : > { %v2434_v57 = vmul.f32 %v7710_v44, %v2256_v37  ;;  %v1150_v47 = vmax.f32 %v1073_v48, 0.0 }
 0x2e2   : > { %v1605_v27 = vmax.f32 %v1494_v56, 0.0 }
 0x2e3   : > { %2267 = vrot.lane.b32.xlu0 %v8082_v63, %s8273_s27  ;;  %2575 = vrot.lane.b32.xlu2 %v2434_v57, %s8274_s18  ;;  %v9107_v63 = vadd.f32 %v8756_v33, %v8926_v61 }
 0x2e4   : > { %7266 = vmatmul.msk.f32.gmra.mxu2 %vm691_vm2, %v1150_v47 }
 0x2e5   : > { %7313 = vmatmul.msk.f32.gmra.mxu3 %vm691_vm2, %v1605_v27  ;;  %v4189_v27 = vld [vmem:[%s13175_s1 + $0xe0] sm:$0xff]  ;;  %13369 = vst [vmem:[#allocation16_spill] sm:$0xff] %v9107_v63 }
 0x2e6   : > { %v1075_v52 = vpop.f32.mrf.mxu1  ;;  %4395 = vmatpush.msrb.mxu2 %v4189_v27 }
 0x2e7   : > { %v1076_v1 = vadd.f32 %v8814_v11, %v1075_v52  ;;  %v1496_v3 = vpop.f32.mrf.mxu2  ;;  %v9079_v14 = vpop.f32.mrf.mxu3 }
 0x2e8   : > { %v1497_v13 = vadd.f32 %v8943_v21, %v1496_v3 }
 0x2e9   : > { %v1151_v51 = vmax.f32 %v1076_v1, 0.0  ;;  %v2051_v1 = vmul.f32 0.5, %v9107_v63 }
 0x2ea   : > { %v1606_v19 = vmax.f32 %v1497_v13, 0.0  ;;  %v4188_v13 = vld [vmem:[%s13175_s1 + $0xd8] sm:$0xff] }
 0x2eb   : > { %2269 = vrot.lane.b32.xlu2 %v8083_v20, %s8273_s27  ;;  %4396 = vmatpush.msrb.mxu2 %v4188_v13 }
 0x2ec   : > { %7267 = vmatmul.msk.f32.gmra.mxu2 %vm691_vm2, %v1151_v51  ;;  %v4187_v51 = vld [vmem:[%s13175_s1 + $0xd0] sm:$0xff] }
 0x2ed   : > { %7314 = vmatmul.msk.f32.gmra.mxu3 %vm691_vm2, %v1606_v19  ;;  %4397 = vmatpush.msrb.mxu2 %v4187_v51 }
 0x2ee   : > { %v1078_v43 = vpop.f32.mrf.mxu1 }
 0x2ef   : > { %v1079_v8 = vadd.f32 %v8814_v11, %v1078_v43  ;;  %v1499_v23 = vpop.f32.mrf.mxu2  ;;  %v9087_v24 = vpop.f32.mrf.mxu3 }
 0x2f0   : > { %v1500_v26 = vadd.f32 %v8943_v21, %v1499_v23 }
 0x2f1   : > { %v1152_v28 = vmax.f32 %v1079_v8, 0.0  ;;  %v9124_v8 = vadd.f32 %v8756_v33, %v8936_v17 }
 0x2f2   : > { %v1607_v6 = vmax.f32 %v1500_v26, 0.0  ;;  %v2129_v26 = vmul.f32 1.442695, %v2051_v1 }
 0x2f3   : > { %13370 = vst [vmem:[#allocation17_spill] sm:$0xff] %v9124_v8 }
 0x2f4   : > { %7268 = vmatmul.msk.f32.gmra.mxu2 %vm691_vm2, %v1152_v28  ;;  %7711 = vpow2.f32 %v2129_v26 }
 0x2f5   : > { %7315 = vmatmul.msk.f32.gmra.mxu3 %vm691_vm2, %v1607_v6  ;;  %v4186_v6 = vld [vmem:[%s13175_s1 + $0xc8] sm:$0xff] }
 0x2f6   : > { %v1081_v10 = vpop.f32.mrf.mxu1  ;;  %4398 = vmatpush.msrb.mxu2 %v4186_v6 }
 0x2f7   : > { %v1082_v41 = vadd.f32 %v8814_v11, %v1081_v10  ;;  %v1502_v25 = vpop.f32.mrf.mxu2  ;;  %v9093_v38 = vpop.f32.mrf.mxu3  ;;  %v4185_v10 = vld [vmem:[%s13175_s1 + $0xc0] sm:$0xff] }
 0x2f8   : > { %v1503_v42 = vadd.f32 %v8943_v21, %v1502_v25  ;;  %4399 = vmatpush.msrb.mxu2 %v4185_v10 }
 0x2f9   : > { %v1153_v44 = vmax.f32 %v1082_v41, 0.0  ;;  %v2052_v41 = vmul.f32 0.5, %v9124_v8 }
 0x2fa   : > { %v1608_v12 = vmax.f32 %v1503_v42, 0.0 }
 0x2fc   : > { %7269 = vmatmul.msk.f32.gmra.mxu2 %vm691_vm2, %v1153_v44 }
 0x2fd   : > { %7316 = vmatmul.msk.f32.gmra.mxu3 %vm691_vm2, %v1608_v12 }
 0x2fe   : > { %v1084_v48 = vpop.f32.mrf.mxu1 }
 0x2ff   : > { %v1085_v53 = vadd.f32 %v8814_v11, %v1084_v48  ;;  %v1505_v37 = vpop.f32.mrf.mxu2  ;;  %v9099_v56 = vpop.f32.mrf.mxu3 }
 0x300   : > { %v1506_v57 = vadd.f32 %v8943_v21, %v1505_v37 }
 0x301   : > { %v1154_v47 = vmax.f32 %v1085_v53, 0.0  ;;  %v2131_v53 = vmul.f32 1.442695, %v2052_v41 }
 0x302   : > { %v1609_v52 = vmax.f32 %v1506_v57, 0.0 }
 0x303   : > { %7713 = vpow2.f32 %v2131_v53 }
 0x304   : > { %7270 = vmatmul.msk.f32.gmra.mxu2 %vm691_vm2, %v1154_v47  ;;  %v7712_v47 = vpop.eup %7711 }
 0x305   : > { %7317 = vmatmul.msk.f32.gmra.mxu3 %vm691_vm2, %v1609_v52 }
 0x306   : > { %v1087_v3 = vpop.f32.mrf.mxu1 }
 0x307   : > { %v1088_v61 = vadd.f32 %v8814_v11, %v1087_v3  ;;  %v1508_v19 = vpop.f32.mrf.mxu2  ;;  %v9119_v20 = vpop.f32.mrf.mxu3 }
 0x308   : > { %v1509_v43 = vadd.f32 %v8943_v21, %v1508_v19 }
 0x309   : > { %v1155_v23 = vmax.f32 %v1088_v61, 0.0  ;;  %v9157_v61 = vld [vmem:[%s13175_s1 + $0x13b] ss:$0 sm:$0xff] }
 0x30a   : > { %v1610_v28 = vmax.f32 %v1509_v43, 0.0  ;;  %v9161_v19 = vadd.f32 %v9157_v61, %v8972_v49 }
 0x30c   : > { %7271 = vmatmul.msk.f32.gmra.mxu2 %vm691_vm2, %v1155_v23  ;;  %13372 = vst [vmem:[#allocation19_spill] sm:$0xff] %v9161_v19  ;;  %v7714_v23 = vpop.eup %7713  ;;  %v2054_v26 = vmul.f32 0.5, %v9161_v19 }
 0x30d   : > { %v2564_v25 = vpop.permute.xlu2 %2563  ;;  %7318 = vmatmul.msk.f32.gmra.mxu3 %vm691_vm2, %v1610_v28 }
 0x30e   : > { %v9136_v33 = vadd.f32 %v2564_v25, %v8933_v5  ;;  %v1090_v17 = vpop.f32.mrf.mxu1  ;;  %v2135_v49 = vmul.f32 1.442695, %v2054_v26 }
 0x30f   : > { %v1091_v42 = vadd.f32 %v8814_v11, %v1090_v17  ;;  %v1511_v44 = vpop.f32.mrf.mxu2  ;;  %v9139_v12 = vpop.f32.mrf.mxu3  ;;  %v9172_v17 = vadd.f32 %v9157_v61, %v8991_v2  ;;  %v8086_v2 = vld [vmem:[%s8320_s25 + $0xb0] sm:$0xff] }
 0x310   : > { %7345 = vmatmul.msk.f32.gmra.mxu1 %vm3573_vm4, %v9136_v33  ;;  %v1512_v48 = vadd.f32 %v8943_v21, %v1511_v44  ;;  %7715 = vpow2.f32 %v2135_v49 }
 0x311   : > { %v1156_v37 = vmax.f32 %v1091_v42, 0.0  ;;  %13373 = vst [vmem:[#allocation20_spill] sm:$0xff] %v9172_v17  ;;  %v8085_v42 = vld [vmem:[%s8320_s25 + $0xa8] sm:$0xff] }
 0x312   : > { %v1611_v57 = vmax.f32 %v1512_v48, 0.0  ;;  %v2055_v48 = vmul.f32 0.5, %v9172_v17 }
 0x314   : > { %7272 = vmatmul.msk.f32.gmra.mxu2 %vm691_vm2, %v1156_v37  ;;  %v9180_v37 = vld [vmem:[%s13175_s1 + $0x13c] ss:$0 sm:$0xff] }
 0x315   : > { %v2566_v27 = vpop.permute.xlu1 %2565  ;;  %7319 = vmatmul.msk.f32.gmra.mxu3 %vm691_vm2, %v1611_v57 }
 0x316   : > { %v9147_v11 = vadd.f32 %v2566_v27, %v8914_v45  ;;  %v2258_v52 = vpop.permute.xlu2 %2257 }
 0x317   : > { %v2435_v1 = vmul.f32 %v7712_v47, %v2258_v52  ;;  %v1514_v3 = vpop.f32.mrf.mxu2  ;;  %v9149_v13 = vpop.f32.mrf.mxu3 }
 0x318   : > { %13371 = vst [vmem:[#allocation18_spill] sm:$0xff] %v9147_v11  ;;  %7346 = vmatmul.msk.f32.gmra.mxu1 %vm3573_vm4, %v9147_v11  ;;  %v1515_v51 = vadd.f32 %v8943_v21, %v1514_v3  ;;  %v2137_v3 = vmul.f32 1.442695, %v2055_v48 }
 0x319   : > { %2577 = vrot.lane.b32.xlu1 %v2435_v1, %s8274_s18  ;;  %v9190_v1 = vadd.f32 %v9157_v61, %v8953_v31 }
 0x31a   : > { %v1612_v43 = vmax.f32 %v1515_v51, 0.0  ;;  %7717 = vpow2.f32 %v2137_v3 }
 0x31b   : > { %13374 = vst [vmem:[#allocation21_spill] sm:$0xff] %v9190_v1 }
 0x31d   : > { %v2260_v28 = vpop.permute.xlu1 %2259  ;;  %7320 = vmatmul.msk.f32.gmra.mxu3 %vm691_vm2, %v1612_v43 }
 0x31e   : > { %v2436_v6 = vmul.f32 %v7714_v23, %v2260_v28  ;;  %v7716_v23 = vpop.eup %7715  ;;  %v2053_v28 = vmul.f32 0.5, %v9190_v1 }
 0x31f   : > { %v1517_v10 = vpop.f32.mrf.mxu2  ;;  %v9166_v41 = vpop.f32.mrf.mxu3 }
 0x320   : > { %2579 = vrot.lane.b32.xlu0 %v2436_v6, %s8274_s18  ;;  %v1518_v25 = vadd.f32 %v8943_v21, %v1517_v10  ;;  %v2133_v48 = vmul.f32 1.442695, %v2053_v28 }
 0x321   : > { %2271 = vrot.lane.b32.xlu1 %v8085_v42, %s8273_s27 }
 0x322   : > { %v1613_v44 = vmax.f32 %v1518_v25, 0.0  ;;  %7719 = vpow2.f32 %v2133_v48 }
 0x325   : > { %v2570_v53 = vpop.permute.xlu2 %2569  ;;  %7321 = vmatmul.msk.f32.gmra.mxu3 %vm691_vm2, %v1613_v44 }
 0x327   : > { %v1520_v57 = vpop.f32.mrf.mxu2  ;;  %v9183_v47 = vpop.f32.mrf.mxu3 }
 0x328   : > { %2273 = vrot.lane.b32.xlu0 %v8086_v2, %s8273_s27  ;;  %v3929_v27 = vpop.f32.mrf.mxu1  ;;  %v1521_v52 = vadd.f32 %v8943_v21, %v1520_v57  ;;  %v9202_v57 = vadd.f32 %v9157_v61, %v9024_v50 }
 0x329   : > { %v3930_v51 = vadd.f32 %v9180_v37, %v3929_v27 }
 0x32a   : > { %v1614_v43 = vmax.f32 %v1521_v52, 0.0  ;;  %13375 = vst [vmem:[#allocation22_spill] sm:$0xff] %v9202_v57  ;;  %v7718_v52 = vpop.eup %7717 }
 0x32b   : > { %v4121_v26 = vmax.f32 %v3930_v51, 0.0  ;;  %v2057_v51 = vmul.f32 0.5, %v9202_v57 }
 0x32d   : > { %v2572_v6 = vpop.permute.xlu1 %2571  ;;  %7402 = vmatmul.msk.f32.vlgmr.msrb.gmra.mxu2 %vm691_vm2, %v4121_v26  ;;  %v2264_v10 = vpop.permute.xlu2 %2263  ;;  %7322 = vmatmul.msk.f32.gmra.mxu3 %vm691_vm2, %v1614_v43 }
 0x32e   : > { %v2438_v25 = vmul.f32 %v7716_v23, %v2264_v10 }
 0x32f   : > { %v1523_v49 = vpop.f32.mrf.mxu2  ;;  %v9196_v42 = vpop.f32.mrf.mxu3 }
 0x330   : > { %v3932_v31 = vpop.f32.mrf.mxu1  ;;  %2583 = vrot.lane.b32.xlu1 %v2438_v25, %s8274_s18  ;;  %v1524_v44 = vadd.f32 %v8943_v21, %v1523_v49  ;;  %v8087_v49 = vld [vmem:[%s8320_s25 + $0xc0] sm:$0xff] }
 0x331   : > { %v3933_v2 = vadd.f32 %v9180_v37, %v3932_v31 }
 0x332   : > { %v1615_v27 = vmax.f32 %v1524_v44, 0.0  ;;  %v2141_v44 = vmul.f32 1.442695, %v2057_v51 }
 0x333   : > { %v4122_v3 = vmax.f32 %v3933_v2, 0.0 }
 0x334   : > { %7721 = vpow2.f32 %v2141_v44 }
 0x335   : > { %v2266_v43 = vpop.permute.xlu1 %2265  ;;  %7403 = vmatmul.msk.f32.gmra.mxu2 %vm691_vm2, %v4122_v3  ;;  %v2568_v23 = vpop.permute.xlu0 %2567  ;;  %7323 = vmatmul.msk.f32.gmra.mxu3 %vm691_vm2, %v1615_v27 }
 0x336   : > { %v2439_v26 = vmul.f32 %v7718_v52, %v2266_v43  ;;  %v9209_v28 = vadd.f32 %v2568_v23, %v8967_v39  ;;  %v7720_v27 = vpop.eup %7719 }
 0x337   : > { %v1526_v50 = vpop.f32.mrf.mxu2  ;;  %v9211_v10 = vpop.f32.mrf.mxu3 }
 0x338   : > { %13376 = vst [vmem:[#allocation23_spill] sm:$0xff] %v9209_v28  ;;  %2585 = vrot.lane.b32.xlu0 %v2439_v26, %s8274_s18  ;;  %v3935_v25 = vpop.f32.mrf.mxu1  ;;  %2277 = vrot.lane.b32.xlu1 %v8087_v49, %s8273_s27  ;;  %v1527_v31 = vadd.f32 %v8943_v21, %v1526_v50  ;;  %v9223_v26 = vadd.f32 %v2570_v53, %v8986_v60  ;;  %v8088_v50 = vld [vmem:[%s8320_s25 + $0xc8] sm:$0xff] }
 0x339   : > { %v3936_v48 = vadd.f32 %v9180_v37, %v3935_v25  ;;  %7347 = vmatmul.msk.f32.gmra.mxu1 %vm3573_vm4, %v9209_v28  ;;  %v8099_v28 = vld [vmem:[%s8320_s25 + $0x120] sm:$0xff] }
 0x33a   : > { %v1616_v2 = vmax.f32 %v1527_v31, 0.0  ;;  %v9233_v31 = vadd.f32 %v9157_v61, %v9006_v30  ;;  %v9242_v30 = vadd.f32 %v2572_v6, %v8950_v29 }
 0x33b   : > { %v4123_v52 = vmax.f32 %v3936_v48, 0.0 }
 0x33c   : > { %13377 = vst [vmem:[#allocation24_spill] sm:$0xff] %v9233_v31 }
 0x33d   : > { %7404 = vmatmul.msk.f32.gmra.mxu2 %vm691_vm2, %v4123_v52  ;;  %v2576_v3 = vpop.permute.xlu2 %2575  ;;  %v2262_v43 = vpop.permute.xlu0 %2261  ;;  %7324 = vmatmul.msk.f32.gmra.mxu3 %vm691_vm2, %v1616_v2  ;;  %v2056_v52 = vmul.f32 0.5, %v9233_v31  ;;  %13378 = vst [vmem:[#allocation25_spill] sm:$0xff] %v9242_v30 }
 0x33e   : > { %v2437_v23 = vmul.f32 %v7720_v27, %v2262_v43  ;;  %v7722_v2 = vpop.eup %7721 }
 0x33f   : > { %v1529_v51 = vpop.f32.mrf.mxu2 }
 0x340   : > { %2279 = vrot.lane.b32.xlu0 %v8088_v50, %s8273_s27  ;;  %2581 = vrot.lane.b32.xlu2 %v2437_v23, %s8274_s18  ;;  %v1530_v25 = vadd.f32 %v8943_v21, %v1529_v51  ;;  %v9229_v49 = vpop.f32.mrf.mxu3  ;;  %v8089_v50 = vld [vmem:[%s8320_s25 + $0xb8] sm:$0xff] }
 0x341   : > { %v3938_v44 = vpop.f32.mrf.mxu1  ;;  %7348 = vmatmul.msk.f32.gmra.mxu1 %vm3573_vm4, %v9223_v26 }
 0x342   : > { %v3939_v53 = vadd.f32 %v9180_v37, %v3938_v44  ;;  %v1617_v48 = vmax.f32 %v1530_v25, 0.0 }
 0x344   : > { %v4124_v27 = vmax.f32 %v3939_v53, 0.0  ;;  %v2139_v53 = vmul.f32 1.442695, %v2056_v52 }
 0x345   : > { %v2270_v43 = vpop.permute.xlu2 %2269  ;;  %7325 = vmatmul.msk.f32.gmra.mxu3 %vm691_vm2, %v1617_v48 }
 0x346   : > { %7405 = vmatmul.msk.f32.gmra.mxu2 %vm691_vm2, %v4124_v27  ;;  %v2441_v23 = vmul.f32 %v7722_v2, %v2270_v43  ;;  %7723 = vpow2.f32 %v2139_v53 }
 0x347   : > { %v1532_v51 = vpop.f32.mrf.mxu2 }
 0x348   : > { %2589 = vrot.lane.b32.xlu1 %v2441_v23, %s8274_s18  ;;  %2275 = vrot.lane.b32.xlu2 %v8089_v50, %s8273_s27  ;;  %v1533_v25 = vadd.f32 %v8943_v21, %v1532_v51  ;;  %v9248_v44 = vpop.f32.mrf.mxu3  ;;  %v8090_v51 = vld [vmem:[%s8320_s25 + $0xd8] sm:$0xff] }
 0x349   : > { %v3941_v45 = vpop.f32.mrf.mxu1  ;;  %7349 = vmatmul.msk.f32.gmra.mxu1 %vm3573_vm4, %v9242_v30 }
 0x34a   : > { %v3942_v48 = vadd.f32 %v9180_v37, %v3941_v45  ;;  %v1618_v6 = vmax.f32 %v1533_v25, 0.0 }
 0x34c   : > { %v4125_v2 = vmax.f32 %v3942_v48, 0.0  ;;  %v7724_v48 = vpop.eup %7723 }
 0x34d   : > { %v2574_v27 = vpop.permute.xlu0 %2573  ;;  %7326 = vmatmul.msk.f32.gmra.mxu3 %vm691_vm2, %v1618_v6 }
 0x34e   : > { %7406 = vmatmul.msk.f32.gmra.mxu2 %vm691_vm2, %v4125_v2  ;;  %v9256_v43 = vadd.f32 %v2574_v27, %v9017_v40 }
 0x34f   : > { %v1535_v23 = vpop.f32.mrf.mxu2 }
 0x350   : > { %13379 = vst [vmem:[#allocation26_spill] sm:$0xff] %v9256_v43  ;;  %2283 = vrot.lane.b32.xlu1 %v8090_v51, %s8273_s27  ;;  %v1536_v52 = vadd.f32 %v8943_v21, %v1535_v23  ;;  %v9261_v50 = vpop.f32.mrf.mxu3  ;;  %v9269_v23 = vadd.f32 %v2576_v3, %v9037_v0 }
 0x351   : > { %v3944_v45 = vpop.f32.mrf.mxu1  ;;  %7350 = vmatmul.msk.f32.gmra.mxu1 %vm3573_vm4, %v9256_v43 }
 0x352   : > { %v3945_v25 = vadd.f32 %v9180_v37, %v3944_v45  ;;  %v1619_v53 = vmax.f32 %v1536_v52, 0.0  ;;  %13380 = vst [vmem:[#allocation27_spill] sm:$0xff] %v9269_v23 }
 0x354   : > { %v4126_v6 = vmax.f32 %v3945_v25, 0.0 }
 0x355   : > { %v2268_v2 = vpop.permute.xlu0 %2267  ;;  %7327 = vmatmul.msk.f32.gmra.mxu3 %vm691_vm2, %v1619_v53 }
 0x356   : > { %7407 = vmatmul.msk.f32.gmra.mxu2 %vm691_vm2, %v4126_v6  ;;  %v2440_v27 = vmul.f32 %v7724_v48, %v2268_v2  ;;  %v8091_v48 = vld [vmem:[%s8320_s25 + $0xd0] sm:$0xff] }
 0x357   : > { %v1538_v51 = vpop.f32.mrf.mxu2 }
 0x358   : > { %2587 = vrot.lane.b32.xlu2 %v2440_v27, %s8274_s18  ;;  %v1539_v29 = vadd.f32 %v8943_v21, %v1538_v51  ;;  %v9273_v55 = vpop.f32.mrf.mxu3 }
 0x359   : > { %v3947_v52 = vpop.f32.mrf.mxu1  ;;  %7351 = vmatmul.msk.f32.gmra.mxu1 %vm3573_vm4, %v9269_v23 }
 0x35a   : > { %v3948_v45 = vadd.f32 %v9180_v37, %v3947_v52  ;;  %v1620_v25 = vmax.f32 %v1539_v29, 0.0 }
 0x35c   : > { %v4127_v53 = vmax.f32 %v3948_v45, 0.0 }
 0x35d   : > { %7328 = vmatmul.msk.f32.gmra.mxu3 %vm691_vm2, %v1620_v25 }
 0x35e   : > { %7408 = vmatmul.msk.f32.gmra.mxu2 %vm691_vm2, %v4127_v53 }
 0x35f   : > { %v1541_v3 = vpop.f32.mrf.mxu2 }
 0x360   : > { %2281 = vrot.lane.b32.xlu2 %v8091_v48, %s8273_s27  ;;  %v1542_v6 = vadd.f32 %v8943_v21, %v1541_v3  ;;  %v9283_v2 = vpop.f32.mrf.mxu3 }
 0x362   : > { %v1621_v27 = vmax.f32 %v1542_v6, 0.0 }
 0x365   : > { %7329 = vmatmul.msk.f32.gmra.mxu3 %vm691_vm2, %v1621_v27 }
 0x367   : > { %v1544_v51 = vpop.f32.mrf.mxu2 }
 0x368   : > { %v1545_v52 = vadd.f32 %v8943_v21, %v1544_v51  ;;  %v9287_v29 = vpop.f32.mrf.mxu3  ;;  %v9300_v51 = vadd.f32 %v9157_v61, %v9044_v4 }
 0x36a   : > { %v1622_v45 = vmax.f32 %v1545_v52, 0.0  ;;  %13381 = vst [vmem:[#allocation28_spill] sm:$0xff] %v9300_v51 }
 0x36d   : > { %7330 = vmatmul.msk.f32.gmra.mxu3 %vm691_vm2, %v1622_v45 }
 0x36f   : > { %v1547_v25 = vpop.f32.mrf.mxu2 }
 0x370   : > { %v1548_v53 = vadd.f32 %v8943_v21, %v1547_v25  ;;  %v9291_v62 = vpop.f32.mrf.mxu3 }
 0x372   : > { %v1623_v48 = vmax.f32 %v1548_v53, 0.0 }
 0x375   : > { %7331 = vmatmul.msk.f32.gmra.mxu3 %vm691_vm2, %v1623_v48  ;;  %v2058_v48 = vmul.f32 0.5, %v9300_v51 }
 0x377   : > { %v1550_v3 = vpop.f32.mrf.mxu2 }
 0x378   : > { %v1551_v6 = vadd.f32 %v8943_v21, %v1550_v3  ;;  %v9295_v27 = vpop.f32.mrf.mxu3  ;;  %v9309_v3 = vadd.f32 %v9157_v61, %v9058_v32 }
 0x37a   : > { %v1624_v40 = vmax.f32 %v1551_v6, 0.0  ;;  %13382 = vst [vmem:[#allocation29_spill] sm:$0xff] %v9309_v3  ;;  %v2143_v6 = vmul.f32 1.442695, %v2058_v48  ;;  %v2059_v16 = vmul.f32 0.5, %v9309_v3 }
 0x37c   : > { %7725 = vpow2.f32 %v2143_v6  ;;  %v2145_v48 = vmul.f32 1.442695, %v2059_v16  ;;  %v4660_v6 = vld [vmem:[%s13175_s1 + $0x100] sm:$0xff]  ;;  %v4659_v16 = vld [vmem:[%s13175_s1 + $0xf8] sm:$0xff] }
 0x37d   : > { %7332 = vmatmul.msk.f32.gmra.mxu3 %vm691_vm2, %v1624_v40 }
 0x37e   : > { %7727 = vpow2.f32 %v2145_v48  ;;  %v4657_v48 = vld [vmem:[%s13175_s1 + $0xe8] sm:$0xff] }
 0x37f   : > { %v1553_v52 = vpop.f32.mrf.mxu2 }
 0x380   : > { %v1554_v45 = vadd.f32 %v8943_v21, %v1553_v52  ;;  %v9303_v25 = vpop.f32.mrf.mxu3 }
 0x382   : > { %v1625_v53 = vmax.f32 %v1554_v45, 0.0  ;;  %v4661_v45 = vld [vmem:[%s13175_s1 + $0x108] sm:$0xff] }
 0x383   : > { %4867 = vmatpush.msrb.mxu3 %v4661_v45 }
 0x385   : > { %7333 = vmatmul.msk.f32.gmra.mxu3 %vm691_vm2, %v1625_v53 }
 0x386   : > { %4868 = vmatpush.msrb.mxu3 %v4660_v6 }
 0x387   : > { %v1556_v40 = vpop.f32.mrf.mxu2 }
 0x388   : > { %v1557_v39 = vadd.f32 %v8943_v21, %v1556_v40  ;;  %v9312_v4 = vpop.f32.mrf.mxu3  ;;  %v9324_v40 = vadd.f32 %v9157_v61, %v9070_v59  ;;  %v7726_v59 = vpop.eup %7725  ;;  %4869 = vmatpush.msrb.mxu3 %v4659_v16 }
 0x38a   : > { %v1626_v52 = vmax.f32 %v1557_v39, 0.0  ;;  %13384 = vst [vmem:[#allocation31_spill] sm:$0xff] %v9324_v40 }
 0x38b   : > { %v2578_v0 = vpop.permute.xlu1 %2577 }
 0x38c   : > { %v9319_v53 = vadd.f32 %v2578_v0, %v9107_v63 }
 0x38d   : > { %v3950_v32 = vpop.f32.mrf.mxu1  ;;  %7334 = vmatmul.msk.f32.gmra.mxu3 %vm691_vm2, %v1626_v52 }
 0x38e   : > { %13383 = vst [vmem:[#allocation30_spill] sm:$0xff] %v9319_v53  ;;  %v3951_v39 = vadd.f32 %v9180_v37, %v3950_v32  ;;  %7352 = vmatmul.msk.f32.gmra.mxu1 %vm3573_vm4, %v9319_v53  ;;  %v2060_v32 = vmul.f32 0.5, %v9324_v40 }
 0x38f   : > { %v1559_v0 = vpop.f32.mrf.mxu2 }
 0x390   : > { %v4128_v45 = vmax.f32 %v3951_v39, 0.0  ;;  %v1560_v63 = vadd.f32 %v8943_v21, %v1559_v0  ;;  %v9333_v52 = vpop.f32.mrf.mxu3  ;;  %v4658_v39 = vld [vmem:[%s13175_s1 + $0xf0] sm:$0xff] }
 0x391   : > { %4870 = vmatpush.msrb.mxu3 %v4658_v39 }
 0x392   : > { %7409 = vmatmul.msk.f32.gmra.mxu2 %vm691_vm2, %v4128_v45  ;;  %v2580_v22 = vpop.permute.xlu0 %2579  ;;  %v1627_v60 = vmax.f32 %v1560_v63, 0.0  ;;  %v2147_v45 = vmul.f32 1.442695, %v2060_v32  ;;  %v9352_v63 = vadd.f32 %v9157_v61, %v9079_v14 }
 0x393   : > { %v2272_v6 = vpop.permute.xlu1 %2271  ;;  %v9344_v0 = vadd.f32 %v2580_v22, %v9124_v8  ;;  %4871 = vmatpush.msrb.mxu3 %v4657_v48  ;;  %v8092_v48 = vld [vmem:[%s8320_s25 + $0xe0] sm:$0xff] }
 0x394   : > { %v2442_v35 = vmul.f32 %v7726_v59, %v2272_v6  ;;  %13386 = vst [vmem:[#allocation33_spill] sm:$0xff] %v9352_v63  ;;  %v7728_v59 = vpop.eup %7727  ;;  %7729 = vpow2.f32 %v2147_v45  ;;  %v2061_v14 = vmul.f32 0.5, %v9352_v63 }
 0x395   : > { %13385 = vst [vmem:[#allocation32_spill] sm:$0xff] %v9344_v0  ;;  %v3953_v16 = vpop.f32.mrf.mxu1  ;;  %7335 = vmatmul.msk.f32.gmra.mxu3 %vm691_vm2, %v1627_v60 }
 0x396   : > { %2591 = vrot.lane.b32.xlu0 %v2442_v35, %s8274_s18  ;;  %v3954_v5 = vadd.f32 %v9180_v37, %v3953_v16  ;;  %7353 = vmatmul.msk.f32.gmra.mxu1 %vm3573_vm4, %v9344_v0 }
 0x397   : > { %v1562_v22 = vpop.f32.mrf.mxu2 }
 0x398   : > { %v4129_v39 = vmax.f32 %v3954_v5, 0.0  ;;  %v1563_v6 = vadd.f32 %v8943_v21, %v1562_v22  ;;  %v9359_v60 = vpop.f32.mrf.mxu3  ;;  %v2149_v5 = vmul.f32 1.442695, %v2061_v14  ;;  %v9370_v21 = vadd.f32 %v9157_v61, %v9087_v24  ;;  %v8093_v24 = vld [vmem:[%s8320_s25 + $0xe8] sm:$0xff] }
 0x39a   : > { %7410 = vmatmul.msk.f32.gmra.mxu2 %vm691_vm2, %v4129_v39  ;;  %v2582_v35 = vpop.permute.xlu2 %2581  ;;  %v2274_v32 = vpop.permute.xlu0 %2273  ;;  %v1628_v16 = vmax.f32 %v1563_v6, 0.0  ;;  %13388 = vst [vmem:[#allocation35_spill] sm:$0xff] %v9370_v21  ;;  %7731 = vpow2.f32 %v2149_v5 }
 0x39b   : > { %v9364_v8 = vadd.f32 %v2582_v35, %v9190_v1  ;;  %v2443_v7 = vmul.f32 %v7728_v59, %v2274_v32  ;;  %v7730_v45 = vpop.eup %7729  ;;  %v9387_v32 = vadd.f32 %v9157_v61, %v9093_v38  ;;  %v9403_v38 = vld [vmem:[%s13175_s1 + $0x13d] ss:$0 sm:$0xff] }
 0x39d   : > { %13387 = vst [vmem:[#allocation34_spill] sm:$0xff] %v9364_v8  ;;  %2593 = vrot.lane.b32.xlu2 %v2443_v7, %s8274_s18  ;;  %7336 = vmatmul.msk.f32.gmra.mxu3 %vm691_vm2, %v1628_v16  ;;  %v2062_v7 = vmul.f32 0.5, %v9370_v21 }
 0x39e   : > { %2285 = vrot.lane.b32.xlu0 %v8092_v48, %s8273_s27  ;;  %7354 = vmatmul.msk.f32.gmra.mxu1 %vm3573_vm4, %v9364_v8  ;;  %13390 = vst [vmem:[#allocation37_spill] sm:$0xff] %v9387_v32  ;;  %v2063_v48 = vmul.f32 0.5, %v9387_v32 }
 0x39f   : > { %v2151_v35 = vmul.f32 1.442695, %v2062_v7  ;;  %v8094_v7 = vld [vmem:[%s8320_s25 + $0xf0] sm:$0xff] }
 0x3a0   : > { %v9376_v22 = vpop.f32.mrf.mxu3  ;;  %v7732_v16 = vpop.eup %7731 }
 0x3a1   : > { %7733 = vpow2.f32 %v2151_v35  ;;  %v9407_v35 = vadd.f32 %v9157_v61, %v9099_v56 }
 0x3a2   : > { %v2584_v59 = vpop.permute.xlu1 %2583  ;;  %v2276_v39 = vpop.permute.xlu2 %2275 }
 0x3a3   : > { %v9380_v6 = vadd.f32 %v2584_v59, %v9161_v19  ;;  %v2444_v14 = vmul.f32 %v7730_v45, %v2276_v39  ;;  %13392 = vst [vmem:[#allocation39_spill] sm:$0xff] %v9407_v35 }
 0x3a5   : > { %13389 = vst [vmem:[#allocation36_spill] sm:$0xff] %v9380_v6  ;;  %2595 = vrot.lane.b32.xlu1 %v2444_v14, %s8274_s18  ;;  %2287 = vrot.lane.b32.xlu2 %v8093_v24, %s8273_s27  ;;  %v2153_v24 = vmul.f32 1.442695, %v2063_v48 }
 0x3a6   : > { %7355 = vmatmul.msk.f32.gmra.mxu1 %vm3573_vm4, %v9380_v6 }
 0x3a7   : > { %7735 = vpow2.f32 %v2153_v24 }
 0x3a8   : > { %v9391_v5 = vpop.f32.mrf.mxu3 }
 0x3aa   : > { %v2278_v45 = vpop.permute.xlu1 %2277  ;;  %v2586_v59 = vpop.permute.xlu0 %2585 }
 0x3ab   : > { %v2445_v39 = vmul.f32 %v7732_v16, %v2278_v45  ;;  %v9395_v14 = vadd.f32 %v2586_v59, %v9172_v17  ;;  %v7734_v16 = vpop.eup %7733 }
 0x3ad   : > { %13391 = vst [vmem:[#allocation38_spill] sm:$0xff] %v9395_v14  ;;  %2597 = vrot.lane.b32.xlu0 %v2445_v39, %s8274_s18  ;;  %2289 = vrot.lane.b32.xlu1 %v8094_v7, %s8273_s27  ;;  %v2064_v7 = vmul.f32 0.5, %v9407_v35 }
 0x3ae   : > { %7356 = vmatmul.msk.f32.gmra.mxu1 %vm3573_vm4, %v9395_v14 }
 0x3af   : > { %v2155_v14 = vmul.f32 1.442695, %v2064_v7 }
 0x3b0   : > { %v4401_v45 = vpop.f32.mrf.mxu2  ;;  %v9411_v59 = vpop.f32.mrf.mxu3 }
 0x3b1   : > { %v4402_v39 = vadd.f32 %v9403_v38, %v4401_v45  ;;  %v7736_v45 = vpop.eup %7735  ;;  %7737 = vpow2.f32 %v2155_v14 }
 0x3b2   : > { %v2588_v19 = vpop.permute.xlu2 %2587  ;;  %v2280_v17 = vpop.permute.xlu0 %2279 }
 0x3b3   : > { %v4593_v1 = vmax.f32 %v4402_v39, 0.0  ;;  %v9416_v48 = vadd.f32 %v2588_v19, %v9233_v31  ;;  %v2446_v56 = vmul.f32 %v7734_v16, %v2280_v17 }
 0x3b5   : > { %13393 = vst [vmem:[#allocation40_spill] sm:$0xff] %v9416_v48  ;;  %7466 = vmatmul.msk.f32.vlgmr.msrb.gmra.mxu3 %vm691_vm2, %v4593_v1  ;;  %2291 = vrot.lane.b32.xlu0 %v8095_v46, %s8273_s27 }
 0x3b6   : > { %v3956_v6 = vpop.f32.mrf.mxu1  ;;  %7357 = vmatmul.msk.f32.gmra.mxu1 %vm3573_vm4, %v9416_v48  ;;  %2599 = vrot.lane.b32.xlu2 %v2446_v56, %s8274_s18 }
 0x3b7   : > { %v3957_v24 = vadd.f32 %v9180_v37, %v3956_v6 }
 0x3b8   : > { %v4404_v39 = vpop.f32.mrf.mxu2  ;;  %v9425_v19 = vpop.f32.mrf.mxu3 }
 0x3b9   : > { %v4130_v17 = vmax.f32 %v3957_v24, 0.0  ;;  %v4405_v1 = vadd.f32 %v9403_v38, %v4404_v39  ;;  %v8096_v24 = vld [vmem:[%s8320_s25 + $0x100] sm:$0xff]  ;;  %v7738_v39 = vpop.eup %7737 }
 0x3ba   : > { %v2590_v16 = vpop.permute.xlu1 %2589  ;;  %v2282_v46 = vpop.permute.xlu2 %2281 }
 0x3bb   : > { %v4594_v7 = vmax.f32 %v4405_v1, 0.0  ;;  %v9429_v31 = vadd.f32 %v2590_v16, %v9202_v57  ;;  %7411 = vmatmul.msk.f32.gmra.mxu2 %vm691_vm2, %v4130_v17  ;;  %v2447_v56 = vmul.f32 %v7736_v45, %v2282_v46  ;;  %v8097_v57 = vld [vmem:[%s8320_s25 + $0x108] sm:$0xff] }
 0x3bd   : > { %13394 = vst [vmem:[#allocation41_spill] sm:$0xff] %v9429_v31  ;;  %7467 = vmatmul.msk.f32.gmra.mxu3 %vm691_vm2, %v4594_v7  ;;  %2601 = vrot.lane.b32.xlu1 %v2447_v56, %s8274_s18 }
 0x3be   : > { %v3959_v6 = vpop.f32.mrf.mxu1  ;;  %7358 = vmatmul.msk.f32.gmra.mxu1 %vm3573_vm4, %v9429_v31  ;;  %2293 = vrot.lane.b32.xlu2 %v8096_v24, %s8273_s27 }
 0x3bf   : > { %v3960_v14 = vadd.f32 %v9180_v37, %v3959_v6 }
 0x3c0   : > { %v4407_v1 = vpop.f32.mrf.mxu2  ;;  %v9439_v16 = vpop.f32.mrf.mxu3 }
 0x3c1   : > { %v4131_v17 = vmax.f32 %v3960_v14, 0.0  ;;  %v4408_v45 = vadd.f32 %v9403_v38, %v4407_v1 }
 0x3c2   : > { %v2284_v46 = vpop.permute.xlu1 %2283 }
 0x3c3   : > { %v4595_v7 = vmax.f32 %v4408_v45, 0.0  ;;  %v2448_v56 = vmul.f32 %v7738_v39, %v2284_v46  ;;  %7412 = vmatmul.msk.f32.gmra.mxu2 %vm691_vm2, %v4131_v17  ;;  %v8098_v17 = vld [vmem:[%s8320_s25 + $0x110] sm:$0xff] }
 0x3c5   : > { %7468 = vmatmul.msk.f32.gmra.mxu3 %vm691_vm2, %v4595_v7  ;;  %2603 = vrot.lane.b32.xlu0 %v2448_v56, %s8274_s18 }
 0x3c6   : > { %v3962_v24 = vpop.f32.mrf.mxu1  ;;  %2295 = vrot.lane.b32.xlu1 %v8097_v57, %s8273_s27 }
 0x3c7   : > { %v3963_v6 = vadd.f32 %v9180_v37, %v3962_v24 }
 0x3c8   : > { %v9448_v31 = vpop.f32.mrf.mxu3 }
 0x3c9   : > { %v4132_v14 = vmax.f32 %v3963_v6, 0.0  ;;  %v4410_v1 = vpop.f32.mrf.mxu2 }
 0x3ca   : > { %v4411_v48 = vadd.f32 %v9403_v38, %v4410_v1 }
 0x3cb   : > { %7413 = vmatmul.msk.f32.gmra.mxu2 %vm691_vm2, %v4132_v14 }
 0x3cc   : > { %v4596_v39 = vmax.f32 %v4411_v48, 0.0 }
 0x3cd   : > { %2297 = vrot.lane.b32.xlu0 %v8098_v17, %s8273_s27 }
 0x3ce   : > { %7469 = vmatmul.msk.f32.gmra.mxu3 %vm691_vm2, %v4596_v39  ;;  %v3965_v45 = vpop.f32.mrf.mxu1 }
 0x3cf   : > { %v3966_v46 = vadd.f32 %v9180_v37, %v3965_v45 }
 0x3d0   : > { %v9456_v57 = vpop.f32.mrf.mxu3 }
 0x3d1   : > { %v4133_v7 = vmax.f32 %v3966_v46, 0.0  ;;  %v4413_v56 = vpop.f32.mrf.mxu2 }
 0x3d2   : > { %v4414_v24 = vadd.f32 %v9403_v38, %v4413_v56 }
 0x3d3   : > { %7414 = vmatmul.msk.f32.gmra.mxu2 %vm691_vm2, %v4133_v7 }
 0x3d4   : > { %v4597_v6 = vmax.f32 %v4414_v24, 0.0 }
 0x3d6   : > { %v3968_v1 = vpop.f32.mrf.mxu1  ;;  %7470 = vmatmul.msk.f32.gmra.mxu3 %vm691_vm2, %v4597_v6 }
 0x3d7   : > { %v3969_v48 = vadd.f32 %v9180_v37, %v3968_v1  ;;  %v9475_v1 = vadd.f32 %v9157_v61, %v9139_v12 }
 0x3d8   : > { %v9462_v14 = vpop.f32.mrf.mxu3 }
 0x3d9   : > { %v4134_v39 = vmax.f32 %v3969_v48, 0.0  ;;  %v4416_v17 = vpop.f32.mrf.mxu2  ;;  %13395 = vst [vmem:[#allocation42_spill] sm:$0xff] %v9475_v1  ;;  %v2066_v48 = vmul.f32 0.5, %v9475_v1 }
 0x3da   : > { %v4417_v45 = vadd.f32 %v9403_v38, %v4416_v17 }
 0x3db   : > { %7415 = vmatmul.msk.f32.gmra.mxu2 %vm691_vm2, %v4134_v39  ;;  %v2159_v17 = vmul.f32 1.442695, %v2066_v48  ;;  %v9490_v48 = vadd.f32 %v9157_v61, %v9183_v47 }
 0x3dc   : > { %v4598_v46 = vmax.f32 %v4417_v45, 0.0 }
 0x3dd   : > { %7739 = vpow2.f32 %v2159_v17  ;;  %13397 = vst [vmem:[#allocation44_spill] sm:$0xff] %v9490_v48  ;;  %v2069_v43 = vmul.f32 0.5, %v9490_v48 }
 0x3de   : > { %7471 = vmatmul.msk.f32.gmra.mxu3 %vm691_vm2, %v4598_v46 }
 0x3df   : > { %v2165_v47 = vmul.f32 1.442695, %v2069_v43  ;;  %v9518_v43 = vadd.f32 %v9157_v61, %v9166_v41  ;;  %v5132_v41 = vld [vmem:[%s13175_s1 + $0x128] sm:$0xff] }
 0x3e0   : > { %v9467_v56 = vpop.f32.mrf.mxu3 }
 0x3e1   : > { %v4419_v7 = vpop.f32.mrf.mxu2  ;;  %13401 = vst [vmem:[#allocation48_spill] sm:$0xff] %v9518_v43 }
 0x3e2   : > { %v4420_v24 = vadd.f32 %v9403_v38, %v4419_v7  ;;  %v9484_v7 = vadd.f32 %v9157_v61, %v9119_v20 }
 0x3e4   : > { %v4599_v8 = vmax.f32 %v4420_v24, 0.0  ;;  %13396 = vst [vmem:[#allocation43_spill] sm:$0xff] %v9484_v7  ;;  %v2065_v0 = vmul.f32 0.5, %v9484_v7 }
 0x3e6   : > { %7472 = vmatmul.msk.f32.gmra.mxu3 %vm691_vm2, %v4599_v8  ;;  %v7740_v8 = vpop.eup %7739  ;;  %v2157_v53 = vmul.f32 1.442695, %v2065_v0 }
 0x3e8   : > { %v9471_v6 = vpop.f32.mrf.mxu3  ;;  %7741 = vpow2.f32 %v2157_v53 }
 0x3e9   : > { %7743 = vpow2.f32 %v2165_v47 }
 0x3f0   : > { %v9478_v39 = vpop.f32.mrf.mxu3 }
 0x3f7   : > { %v2594_v45 = vpop.permute.xlu2 %2593 }
 0x3f8   : > { %v9480_v46 = vpop.f32.mrf.mxu3 }
 0x3ff   : > { %v2288_v24 = vpop.permute.xlu2 %2287 }
 0x400   : > { %v2450_v12 = vmul.f32 %v7740_v8, %v2288_v24  ;;  %v9492_v17 = vpop.f32.mrf.mxu3  ;;  %v9502_v8 = vadd.f32 %v9157_v61, %v9149_v13  ;;  %v7742_v24 = vpop.eup %7741 }
 0x402   : > { %2607 = vrot.lane.b32.xlu1 %v2450_v12, %s8274_s18  ;;  %13399 = vst [vmem:[#allocation46_spill] sm:$0xff] %v9502_v8  ;;  %v2067_v30 = vmul.f32 0.5, %v9502_v8 }
 0x408   : > { %v2592_v23 = vpop.permute.xlu0 %2591 }
 0x409   : > { %v9496_v20 = vadd.f32 %v2592_v23, %v9300_v51  ;;  %v9508_v23 = vpop.f32.mrf.mxu3  ;;  %v9514_v51 = vadd.f32 %v2594_v45, %v9309_v3  ;;  %v5133_v45 = vld [vmem:[%s13175_s1 + $0x130] sm:$0xff] }
 0x40a   : > { %2301 = vrot.lane.b32.xlu1 %v8099_v28, %s8273_s27  ;;  %5339 = vmatpush.msrb.mxu0 %v5133_v45 }
 0x40b   : > { %13398 = vst [vmem:[#allocation45_spill] sm:$0xff] %v9496_v20  ;;  %v3971_v0 = vpop.f32.mrf.mxu1  ;;  %7359 = vmatmul.msk.f32.gmra.mxu1 %vm3573_vm4, %v9496_v20  ;;  %v2161_v20 = vmul.f32 1.442695, %v2067_v30 }
 0x40c   : > { %v3972_v53 = vadd.f32 %v9180_v37, %v3971_v0  ;;  %13400 = vst [vmem:[#allocation47_spill] sm:$0xff] %v9514_v51  ;;  %5340 = vmatpush.msrb.mxu0 %v5132_v41 }
 0x40d   : > { %7745 = vpow2.f32 %v2161_v20 }
 0x40e   : > { %v4135_v12 = vmax.f32 %v3972_v53, 0.0 }
 0x410   : > { %7416 = vmatmul.msk.f32.gmra.mxu2 %vm691_vm2, %v4135_v12  ;;  %v9511_v28 = vpop.permute.xlu2 %2599  ;;  %v2286_v13 = vpop.permute.xlu0 %2285 }
 0x411   : > { %v2449_v11 = vmul.f32 %v7742_v24, %v2286_v13  ;;  %v7744_v12 = vpop.eup %7743  ;;  %v2068_v13 = vmul.f32 0.5, %v9518_v43  ;;  %v9540_v20 = vpop.f32.mrf.mxu3 }
 0x413   : > { %v3974_v0 = vpop.f32.mrf.mxu1  ;;  %7360 = vmatmul.msk.f32.gmra.mxu1 %vm3573_vm4, %v9514_v51  ;;  %2605 = vrot.lane.b32.xlu2 %v2449_v11, %s8274_s18  ;;  %v2163_v45 = vmul.f32 1.442695, %v2068_v13  ;;  %v5129_v13 = vld [vmem:[%s13175_s1 + $0x110] sm:$0xff] }
 0x414   : > { %v3975_v47 = vadd.f32 %v9180_v37, %v3974_v0 }
 0x415   : > { %v4422_v53 = vpop.f32.mrf.mxu2  ;;  %7747 = vpow2.f32 %v2163_v45  ;;  %v9567_v45 = vadd.f32 %v9157_v61, %v9196_v42  ;;  %v9583_v42 = vadd.f32 %v9157_v61, %v9211_v10  ;;  %v8103_v61 = vld [vmem:[%s8320_s25 + $0x130] sm:$0xff] }
 0x416   : > { %v4136_v24 = vmax.f32 %v3975_v47, 0.0  ;;  %v4423_v30 = vadd.f32 %v9403_v38, %v4422_v53  ;;  %v5131_v53 = vld [vmem:[%s13175_s1 + $0x120] sm:$0xff] }
 0x417   : > { %v2596_v11 = vpop.permute.xlu1 %2595  ;;  %5341 = vmatpush.msrb.mxu0 %v5131_v53  ;;  %13403 = vst [vmem:[#allocation50_spill] sm:$0xff] %v9567_v45 }
 0x418   : > { %v4600_v3 = vmax.f32 %v4423_v30, 0.0  ;;  %v9533_v0 = vadd.f32 %v2596_v11, %v9324_v40  ;;  %7417 = vmatmul.msk.f32.gmra.mxu2 %vm691_vm2, %v4136_v24  ;;  %v2294_v51 = vpop.permute.xlu2 %2293  ;;  %v8100_v24 = vld [vmem:[%s8320_s25 + $0x118] sm:$0xff]  ;;  %13405 = vst [vmem:[#allocation52_spill] sm:$0xff] %v9583_v42 }
 0x419   : > { %v2453_v47 = vmul.f32 %v7744_v12, %v2294_v51  ;;  %v5130_v51 = vld [vmem:[%s13175_s1 + $0x118] sm:$0xff] }
 0x41a   : > { %13402 = vst [vmem:[#allocation49_spill] sm:$0xff] %v9533_v0  ;;  %7473 = vmatmul.msk.f32.gmra.mxu3 %vm691_vm2, %v4600_v3  ;;  %5342 = vmatpush.msrb.mxu0 %v5130_v51  ;;  %v7746_v3 = vpop.eup %7745 }
 0x41b   : > { %v3977_v30 = vpop.f32.mrf.mxu1  ;;  %2613 = vrot.lane.b32.xlu1 %v2453_v47, %s8274_s18  ;;  %7361 = vmatmul.msk.f32.gmra.mxu1 %vm3573_vm4, %v9533_v0 }
 0x41c   : > { %v3978_v12 = vadd.f32 %v9180_v37, %v3977_v30  ;;  %2299 = vrot.lane.b32.xlu2 %v8100_v24, %s8273_s27  ;;  %5343 = vmatpush.msrb.mxu0 %v5129_v13 }
 0x41d   : > { %v4425_v41 = vpop.f32.mrf.mxu2 }
 0x41e   : > { %v4137_v11 = vmax.f32 %v3978_v12, 0.0  ;;  %v4426_v47 = vadd.f32 %v9403_v38, %v4425_v41  ;;  %v8101_v12 = vld [vmem:[%s8320_s25 + $0x138] sm:$0xff]  ;;  %v7748_v41 = vpop.eup %7747 }
 0x41f   : > { %v2290_v53 = vpop.permute.xlu1 %2289  ;;  %v2598_v40 = vpop.permute.xlu0 %2597 }
 0x420   : > { %v4601_v0 = vmax.f32 %v4426_v47, 0.0  ;;  %v2451_v30 = vmul.f32 %v7746_v3, %v2290_v53  ;;  %7418 = vmatmul.msk.f32.gmra.mxu2 %vm691_vm2, %v4137_v11  ;;  %v9557_v51 = vadd.f32 %v2598_v40, %v9352_v63  ;;  %v9570_v40 = vpop.f32.mrf.mxu3  ;;  %v2070_v11 = vmul.f32 0.5, %v9567_v45 }
 0x421   : > { %v9576_v53 = vadd.f32 %v9511_v28, %v9370_v21  ;;  %v8110_v21 = vld [vmem:[%s8320_s25 + $0x168] sm:$0xff] }
 0x422   : > { %7474 = vmatmul.msk.f32.gmra.mxu3 %vm691_vm2, %v4601_v0  ;;  %2609 = vrot.lane.b32.xlu0 %v2451_v30, %s8274_s18  ;;  %v8102_v30 = vld [vmem:[%s8320_s25 + $0x128] sm:$0xff] }
 0x423   : > { %v3980_v24 = vpop.f32.mrf.mxu1  ;;  %2307 = vrot.lane.b32.xlu1 %v8101_v12, %s8273_s27  ;;  %7362 = vmatmul.msk.f32.gmra.mxu1 %vm3573_vm4, %v9557_v51  ;;  %13404 = vst [vmem:[#allocation51_spill] sm:$0xff] %v9576_v53  ;;  %v2167_v12 = vmul.f32 1.442695, %v2070_v11 }
 0x424   : > { %v3981_v3 = vadd.f32 %v9180_v37, %v3980_v24 }
 0x425   : > { %7749 = vpow2.f32 %v2167_v12 }
 0x426   : > { %v4138_v0 = vmax.f32 %v3981_v3, 0.0 }
 0x427   : > { %v2292_v13 = vpop.permute.xlu0 %2291 }
 0x428   : > { %7419 = vmatmul.msk.f32.gmra.mxu2 %vm691_vm2, %v4138_v0  ;;  %v2452_v47 = vmul.f32 %v7748_v41, %v2292_v13  ;;  %v9588_v28 = vpop.f32.mrf.mxu3  ;;  %v2071_v0 = vmul.f32 0.5, %v9583_v42 }
 0x42a   : > { %2303 = vrot.lane.b32.xlu0 %v8102_v30, %s8273_s27  ;;  %2611 = vrot.lane.b32.xlu2 %v2452_v47, %s8274_s18  ;;  %v2169_v10 = vmul.f32 1.442695, %v2071_v0 }
 0x42b   : > { %v3983_v24 = vpop.f32.mrf.mxu1  ;;  %7363 = vmatmul.msk.f32.gmra.mxu1 %vm3573_vm4, %v9576_v53  ;;  %v7750_v12 = vpop.eup %7749 }
 0x42c   : > { %v3984_v3 = vadd.f32 %v9180_v37, %v3983_v24  ;;  %v9603_v24 = vld [vmem:[%s13175_s1 + $0x13e] ss:$0 sm:$0xff]  ;;  %7751 = vpow2.f32 %v2169_v10 }
 0x42e   : > { %v4139_v41 = vmax.f32 %v3984_v3, 0.0 }
 0x42f   : > { %v2602_v13 = vpop.permute.xlu1 %2601 }
 0x430   : > { %v9592_v47 = vadd.f32 %v2602_v13, %v9387_v32  ;;  %7420 = vmatmul.msk.f32.gmra.mxu2 %vm691_vm2, %v4139_v41 }
 0x432   : > { %13406 = vst [vmem:[#allocation53_spill] sm:$0xff] %v9592_v47  ;;  %2305 = vrot.lane.b32.xlu2 %v8103_v61, %s8273_s27 }
 0x433   : > { %v3986_v30 = vpop.f32.mrf.mxu1  ;;  %7364 = vmatmul.msk.f32.gmra.mxu1 %vm3573_vm4, %v9592_v47 }
 0x434   : > { %v3987_v11 = vadd.f32 %v9180_v37, %v3986_v30 }
 0x436   : > { %v4140_v3 = vmax.f32 %v3987_v11, 0.0  ;;  %v7752_v11 = vpop.eup %7751 }
 0x437   : > { %v2604_v13 = vpop.permute.xlu0 %2603 }
 0x438   : > { %v2296_v41 = vpop.permute.xlu1 %2295  ;;  %7421 = vmatmul.msk.f32.gmra.mxu2 %vm691_vm2, %v4140_v3  ;;  %v9607_v0 = vadd.f32 %v2604_v13, %v9407_v35  ;;  %v4873_v61 = vpop.f32.mrf.mxu3 }
 0x439   : > { %v2454_v32 = vmul.f32 %v7750_v12, %v2296_v41  ;;  %v4874_v47 = vadd.f32 %v9603_v24, %v4873_v61 }
 0x43a   : > { %13407 = vst [vmem:[#allocation54_spill] sm:$0xff] %v9607_v0 }
 0x43b   : > { %v5065_v30 = vmax.f32 %v4874_v47, 0.0  ;;  %2615 = vrot.lane.b32.xlu0 %v2454_v32, %s8274_s18  ;;  %v3989_v63 = vpop.f32.mrf.mxu1  ;;  %7365 = vmatmul.msk.f32.gmra.mxu1 %vm3573_vm4, %v9607_v0 }
 0x43c   : > { %v3990_v10 = vadd.f32 %v9180_v37, %v3989_v63  ;;  %v8104_v37 = vld [vmem:[%s8320_s25 + $0x140] sm:$0xff] }
 0x43d   : > { %7530 = vmatmul.msk.f32.vlgmr.msrb.gmra.mxu0 %vm691_vm2, %v5065_v30 }
 0x43e   : > { %v4141_v3 = vmax.f32 %v3990_v10, 0.0  ;;  %v4428_v13 = vpop.f32.mrf.mxu2 }
 0x43f   : > { %v4429_v35 = vadd.f32 %v9403_v38, %v4428_v13  ;;  %v2298_v12 = vpop.permute.xlu0 %2297 }
 0x440   : > { %7422 = vmatmul.msk.f32.gmra.mxu2 %vm691_vm2, %v4141_v3  ;;  %v2455_v47 = vmul.f32 %v7752_v11, %v2298_v12  ;;  %v4876_v32 = vpop.f32.mrf.mxu3 }
 0x441   : > { %v4602_v41 = vmax.f32 %v4429_v35, 0.0  ;;  %v4877_v61 = vadd.f32 %v9603_v24, %v4876_v32  ;;  %v8105_v35 = vld [vmem:[%s8320_s25 + $0x148] sm:$0xff] }
 0x442   : > { %2617 = vrot.lane.b32.xlu2 %v2455_v47, %s8274_s18 }
 0x443   : > { %v5066_v53 = vmax.f32 %v4877_v61, 0.0  ;;  %7475 = vmatmul.msk.f32.gmra.mxu3 %vm691_vm2, %v4602_v41  ;;  %2309 = vrot.lane.b32.xlu0 %v8104_v37, %s8273_s27 }
 0x445   : > { %7531 = vmatmul.msk.f32.gmra.mxu0 %vm691_vm2, %v5066_v53 }
 0x446   : > { %v4431_v63 = vpop.f32.mrf.mxu2 }
 0x447   : > { %v4432_v30 = vadd.f32 %v9403_v38, %v4431_v63 }
 0x448   : > { %v4879_v10 = vpop.f32.mrf.mxu3 }
 0x449   : > { %v4603_v3 = vmax.f32 %v4432_v30, 0.0  ;;  %v4880_v11 = vadd.f32 %v9603_v24, %v4879_v10 }
 0x44a   : > { %2311 = vrot.lane.b32.xlu2 %v8105_v35, %s8273_s27 }
 0x44b   : > { %v5067_v13 = vmax.f32 %v4880_v11, 0.0  ;;  %7476 = vmatmul.msk.f32.gmra.mxu3 %vm691_vm2, %v4603_v3 }
 0x44d   : > { %7532 = vmatmul.msk.f32.gmra.mxu0 %vm691_vm2, %v5067_v13 }
 0x44e   : > { %v4434_v12 = vpop.f32.mrf.mxu2 }
 0x44f   : > { %v4435_v47 = vadd.f32 %v9403_v38, %v4434_v12 }
 0x451   : > { %v4604_v32 = vmax.f32 %v4435_v47, 0.0  ;;  %v4882_v53 = vpop.f32.mrf.mxu3 }
 0x452   : > { %v4883_v41 = vadd.f32 %v9603_v24, %v4882_v53 }
 0x453   : > { %7477 = vmatmul.msk.f32.gmra.mxu3 %vm691_vm2, %v4604_v32  ;;  %v9641_v32 = vld [vmem:[%s13175_s1 + $0x13b] ss:$0 sm:$0xff] }
 0x454   : > { %v5068_v61 = vmax.f32 %v4883_v41, 0.0  ;;  %v9645_v53 = vadd.f32 %v9641_v32, %v9229_v49 }
 0x456   : > { %v4437_v37 = vpop.f32.mrf.mxu2  ;;  %7533 = vmatmul.msk.f32.gmra.mxu0 %vm691_vm2, %v5068_v61  ;;  %13408 = vst [vmem:[#allocation55_spill] sm:$0xff] %v9645_v53 }
 0x457   : > { %v4438_v63 = vadd.f32 %v9403_v38, %v4437_v37  ;;  %v2072_v37 = vmul.f32 0.5, %v9645_v53 }
 0x459   : > { %v4605_v30 = vmax.f32 %v4438_v63, 0.0  ;;  %v4885_v10 = vpop.f32.mrf.mxu3  ;;  %v9653_v63 = vadd.f32 %v9641_v32, %v9248_v44 }
 0x45a   : > { %v4886_v3 = vadd.f32 %v9603_v24, %v4885_v10  ;;  %v2171_v10 = vmul.f32 1.442695, %v2072_v37 }
 0x45b   : > { %7478 = vmatmul.msk.f32.gmra.mxu3 %vm691_vm2, %v4605_v30  ;;  %13409 = vst [vmem:[#allocation56_spill] sm:$0xff] %v9653_v63  ;;  %v2073_v49 = vmul.f32 0.5, %v9653_v63 }
 0x45c   : > { %v5069_v11 = vmax.f32 %v4886_v3, 0.0  ;;  %7753 = vpow2.f32 %v2171_v10 }
 0x45e   : > { %v4440_v35 = vpop.f32.mrf.mxu2  ;;  %7534 = vmatmul.msk.f32.gmra.mxu0 %vm691_vm2, %v5069_v11 }
 0x45f   : > { %v4441_v13 = vadd.f32 %v9403_v38, %v4440_v35 }
 0x461   : > { %v4606_v12 = vmax.f32 %v4441_v13, 0.0  ;;  %v4888_v47 = vpop.f32.mrf.mxu3 }
 0x462   : > { %v4889_v41 = vadd.f32 %v9603_v24, %v4888_v47  ;;  %v7754_v44 = vpop.eup %7753 }
 0x463   : > { %7479 = vmatmul.msk.f32.gmra.mxu3 %vm691_vm2, %v4606_v12  ;;  %v2173_v12 = vmul.f32 1.442695, %v2073_v49 }
 0x464   : > { %v5070_v61 = vmax.f32 %v4889_v41, 0.0 }
 0x465   : > { %7755 = vpow2.f32 %v2173_v12  ;;  %v9677_v12 = vadd.f32 %v9641_v32, %v9283_v2  ;;  %v9691_v2 = vld [vmem:[%s13175_s1 + $0x13c] ss:$0 sm:$0xff] }
 0x466   : > { %7535 = vmatmul.msk.f32.gmra.mxu0 %vm691_vm2, %v5070_v61 }
 0x467   : > { %13413 = vst [vmem:[#allocation60_spill] sm:$0xff] %v9677_v12 }
 0x469   : > { %v4891_v30 = vpop.f32.mrf.mxu3 }
 0x46a   : > { %v4892_v3 = vadd.f32 %v9603_v24, %v4891_v30  ;;  %v9668_v30 = vadd.f32 %v9641_v32, %v9273_v55 }
 0x46b   : > { %v7756_v10 = vpop.eup %7755 }
 0x46c   : > { %v5071_v11 = vmax.f32 %v4892_v3, 0.0  ;;  %13412 = vst [vmem:[#allocation59_spill] sm:$0xff] %v9668_v30  ;;  %v2075_v3 = vmul.f32 0.5, %v9668_v30 }
 0x46d   : > { %v2606_v35 = vpop.permute.xlu2 %2605 }
 0x46e   : > { %v9658_v13 = vadd.f32 %v2606_v35, %v9484_v7  ;;  %7536 = vmatmul.msk.f32.gmra.mxu0 %vm691_vm2, %v5071_v11  ;;  %v2177_v35 = vmul.f32 1.442695, %v2075_v3 }
 0x470   : > { %13410 = vst [vmem:[#allocation57_spill] sm:$0xff] %v9658_v13  ;;  %7366 = vmatmul.msk.f32.gmra.mxu1 %vm3573_vm4, %v9658_v13  ;;  %7757 = vpow2.f32 %v2177_v35 }
 0x474   : > { %v2608_v47 = vpop.permute.xlu1 %2607 }
 0x475   : > { %v9664_v41 = vadd.f32 %v2608_v47, %v9475_v1  ;;  %v2076_v47 = vmul.f32 0.5, %v9677_v12 }
 0x476   : > { %v2300_v61 = vpop.permute.xlu2 %2299 }
 0x477   : > { %13411 = vst [vmem:[#allocation58_spill] sm:$0xff] %v9664_v41  ;;  %v2456_v37 = vmul.f32 %v7754_v44, %v2300_v61  ;;  %v8107_v44 = vld [vmem:[%s8320_s25 + $0x150] sm:$0xff]  ;;  %v8108_v61 = vld [vmem:[%s8320_s25 + $0x158] sm:$0xff]  ;;  %v2179_v3 = vmul.f32 1.442695, %v2076_v47 }
 0x478   : > { %7367 = vmatmul.msk.f32.gmra.mxu1 %vm3573_vm4, %v9664_v41  ;;  %v9699_v41 = vadd.f32 %v9641_v32, %v9291_v62 }
 0x479   : > { %2619 = vrot.lane.b32.xlu1 %v2456_v37, %s8274_s18  ;;  %v9686_v37 = vadd.f32 %v9641_v32, %v9261_v50  ;;  %7759 = vpow2.f32 %v2179_v3 }
 0x47a   : > { %13415 = vst [vmem:[#allocation62_spill] sm:$0xff] %v9699_v41  ;;  %v2078_v3 = vmul.f32 0.5, %v9699_v41 }
 0x47b   : > { %13414 = vst [vmem:[#allocation61_spill] sm:$0xff] %v9686_v37 }
 0x47c   : > { %v2302_v49 = vpop.permute.xlu1 %2301 }
 0x47d   : > { %v2457_v11 = vmul.f32 %v7756_v10, %v2302_v49 }
 0x47f   : > { %2621 = vrot.lane.b32.xlu0 %v2457_v11, %s8274_s18  ;;  %v7758_v11 = vpop.eup %7757 }
 0x481   : > { %2313 = vrot.lane.b32.xlu1 %v8107_v44, %s8273_s27  ;;  %v2074_v44 = vmul.f32 0.5, %v9686_v37 }
 0x483   : > { %v2175_v47 = vmul.f32 1.442695, %v2074_v44 }
 0x484   : > { %v2612_v55 = vpop.permute.xlu2 %2611 }
 0x485   : > { %7761 = vpow2.f32 %v2175_v47 }
 0x487   : > { %2315 = vrot.lane.b32.xlu0 %v8108_v61, %s8273_s27 }
 0x488   : > { %v3992_v10 = vpop.f32.mrf.mxu1 }
 0x489   : > { %v3993_v49 = vadd.f32 %v9691_v2, %v3992_v10 }
 0x48b   : > { %v4142_v35 = vmax.f32 %v3993_v49, 0.0  ;;  %v7760_v49 = vpop.eup %7759 }
 0x48c   : > { %v2306_v1 = vpop.permute.xlu2 %2305 }
 0x48d   : > { %v2614_v61 = vpop.permute.xlu1 %2613  ;;  %7423 = vmatmul.msk.f32.gmra.mxu2 %vm691_vm2, %v4142_v35  ;;  %v2459_v50 = vmul.f32 %v7758_v11, %v2306_v1 }
 0x48f   : > { %2625 = vrot.lane.b32.xlu1 %v2459_v50, %s8274_s18 }
 0x490   : > { %v3995_v7 = vpop.f32.mrf.mxu1 }
 0x491   : > { %v3996_v10 = vadd.f32 %v9691_v2, %v3995_v7  ;;  %v2183_v7 = vmul.f32 1.442695, %v2078_v3 }
 0x493   : > { %v4143_v13 = vmax.f32 %v3996_v10, 0.0  ;;  %v4443_v0 = vpop.f32.mrf.mxu2  ;;  %7763 = vpow2.f32 %v2183_v7 }
 0x494   : > { %v4444_v35 = vadd.f32 %v9403_v38, %v4443_v0  ;;  %v2610_v1 = vpop.permute.xlu0 %2609 }
 0x495   : > { %v2308_v11 = vpop.permute.xlu1 %2307  ;;  %7424 = vmatmul.msk.f32.gmra.mxu2 %vm691_vm2, %v4143_v13  ;;  %v9706_v44 = vadd.f32 %v2610_v1, %v9502_v8  ;;  %v7762_v13 = vpop.eup %7761 }
 0x496   : > { %v4607_v62 = vmax.f32 %v4444_v35, 0.0  ;;  %v2460_v50 = vmul.f32 %v7760_v49, %v2308_v11  ;;  %v9717_v11 = vadd.f32 %v2612_v55, %v9518_v43 }
 0x497   : > { %13416 = vst [vmem:[#allocation63_spill] sm:$0xff] %v9706_v44  ;;  %2319 = vrot.lane.b32.xlu1 %v8110_v21, %s8273_s27  ;;  %7368 = vmatmul.msk.f32.gmra.mxu1 %vm3573_vm4, %v9706_v44 }
 0x498   : > { %7480 = vmatmul.msk.f32.gmra.mxu3 %vm691_vm2, %v4607_v62  ;;  %2627 = vrot.lane.b32.xlu0 %v2460_v50, %s8274_s18  ;;  %v3998_v0 = vpop.f32.mrf.mxu1  ;;  %13417 = vst [vmem:[#allocation64_spill] sm:$0xff] %v9717_v11 }
 0x499   : > { %v3999_v47 = vadd.f32 %v9691_v2, %v3998_v0  ;;  %v8111_v0 = vld [vmem:[%s8320_s25 + $0x170] sm:$0xff] }
 0x49b   : > { %v4144_v10 = vmax.f32 %v3999_v47, 0.0  ;;  %v4446_v1 = vpop.f32.mrf.mxu2  ;;  %v9729_v47 = vadd.f32 %v9641_v32, %v9287_v29 }
 0x49c   : > { %v4447_v49 = vadd.f32 %v9403_v38, %v4446_v1  ;;  %v2618_v35 = vpop.permute.xlu2 %2617  ;;  %v2304_v21 = vpop.permute.xlu0 %2303 }
 0x49d   : > { %7425 = vmatmul.msk.f32.gmra.mxu2 %vm691_vm2, %v4144_v10  ;;  %v2458_v3 = vmul.f32 %v7762_v13, %v2304_v21  ;;  %v4894_v62 = vpop.f32.mrf.mxu3  ;;  %13418 = vst [vmem:[#allocation65_spill] sm:$0xff] %v9729_v47  ;;  %v7764_v10 = vpop.eup %7763 }
 0x49e   : > { %v4608_v50 = vmax.f32 %v4447_v49, 0.0  ;;  %v4895_v8 = vadd.f32 %v9603_v24, %v4894_v62  ;;  %v9736_v62 = vadd.f32 %v2614_v61, %v9490_v48 }
 0x49f   : > { %7369 = vmatmul.msk.f32.gmra.mxu1 %vm3573_vm4, %v9717_v11  ;;  %2623 = vrot.lane.b32.xlu2 %v2458_v3, %s8274_s18  ;;  %v2077_v3 = vmul.f32 0.5, %v9729_v47 }
 0x4a0   : > { %v5072_v7 = vmax.f32 %v4895_v8, 0.0  ;;  %7481 = vmatmul.msk.f32.gmra.mxu3 %vm691_vm2, %v4608_v50  ;;  %2321 = vrot.lane.b32.xlu0 %v8111_v0, %s8273_s27  ;;  %v4001_v55 = vpop.f32.mrf.mxu1  ;;  %13419 = vst [vmem:[#allocation66_spill] sm:$0xff] %v9736_v62 }
 0x4a1   : > { %v4002_v13 = vadd.f32 %v9691_v2, %v4001_v55  ;;  %v2181_v61 = vmul.f32 1.442695, %v2077_v3 }
 0x4a2   : > { %7537 = vmatmul.msk.f32.gmra.mxu0 %vm691_vm2, %v5072_v7 }
 0x4a3   : > { %v4145_v1 = vmax.f32 %v4002_v13, 0.0  ;;  %v4449_v49 = vpop.f32.mrf.mxu2  ;;  %7765 = vpow2.f32 %v2181_v61 }
 0x4a4   : > { %v4450_v8 = vadd.f32 %v9403_v38, %v4449_v49  ;;  %v2312_v21 = vpop.permute.xlu2 %2311  ;;  %v8112_v49 = vld [vmem:[%s8320_s25 + $0x160] sm:$0xff] }
 0x4a5   : > { %7426 = vmatmul.msk.f32.gmra.mxu2 %vm691_vm2, %v4145_v1  ;;  %v2462_v29 = vmul.f32 %v7764_v10, %v2312_v21  ;;  %v4897_v50 = vpop.f32.mrf.mxu3 }
 0x4a6   : > { %v4609_v0 = vmax.f32 %v4450_v8, 0.0  ;;  %v4898_v55 = vadd.f32 %v9603_v24, %v4897_v50 }
 0x4a7   : > { %2631 = vrot.lane.b32.xlu1 %v2462_v29, %s8274_s18  ;;  %7370 = vmatmul.msk.f32.gmra.mxu1 %vm3573_vm4, %v9736_v62  ;;  %v8118_v62 = vld [vmem:[%s8320_s25 + $0x1a0] sm:$0xff] }
 0x4a8   : > { %v5073_v7 = vmax.f32 %v4898_v55, 0.0  ;;  %v4004_v13 = vpop.f32.mrf.mxu1  ;;  %7482 = vmatmul.msk.f32.gmra.mxu3 %vm691_vm2, %v4609_v0  ;;  %2317 = vrot.lane.b32.xlu2 %v8112_v49, %s8273_s27  ;;  %v8113_v0 = vld [vmem:[%s8320_s25 + $0x180] sm:$0xff] }
 0x4a9   : > { %v4005_v10 = vadd.f32 %v9691_v2, %v4004_v13  ;;  %v7766_v13 = vpop.eup %7765 }
 0x4aa   : > { %7538 = vmatmul.msk.f32.gmra.mxu0 %vm691_vm2, %v5073_v7 }
 0x4ab   : > { %v4146_v1 = vmax.f32 %v4005_v10, 0.0  ;;  %v4452_v8 = vpop.f32.mrf.mxu2 }
 0x4ac   : > { %v4453_v21 = vadd.f32 %v9403_v38, %v4452_v8  ;;  %v9762_v8 = vadd.f32 %v2618_v35, %v9583_v42 }
 0x4ad   : > { %7427 = vmatmul.msk.f32.gmra.mxu2 %vm691_vm2, %v4146_v1  ;;  %v2616_v29 = vpop.permute.xlu0 %2615 }
 0x4ae   : > { %v4610_v50 = vmax.f32 %v4453_v21, 0.0  ;;  %v9751_v55 = vadd.f32 %v2616_v29, %v9567_v45  ;;  %13421 = vst [vmem:[#allocation68_spill] sm:$0xff] %v9762_v8 }
 0x4af   : > { %2325 = vrot.lane.b32.xlu1 %v8113_v0, %s8273_s27 }
 0x4b0   : > { %13420 = vst [vmem:[#allocation67_spill] sm:$0xff] %v9751_v55  ;;  %v4007_v3 = vpop.f32.mrf.mxu1  ;;  %7483 = vmatmul.msk.f32.gmra.mxu3 %vm691_vm2, %v4610_v50  ;;  %7371 = vmatmul.msk.f32.gmra.mxu1 %vm3573_vm4, %v9751_v55 }
 0x4b1   : > { %v4008_v7 = vadd.f32 %v9691_v2, %v4007_v3 }
 0x4b3   : > { %v4147_v49 = vmax.f32 %v4008_v7, 0.0  ;;  %v4455_v61 = vpop.f32.mrf.mxu2 }
 0x4b4   : > { %v4456_v10 = vadd.f32 %v9403_v38, %v4455_v61 }
 0x4b5   : > { %7428 = vmatmul.msk.f32.gmra.mxu2 %vm691_vm2, %v4147_v49  ;;  %v2310_v1 = vpop.permute.xlu0 %2309 }
 0x4b6   : > { %v4611_v21 = vmax.f32 %v4456_v10, 0.0  ;;  %v2461_v29 = vmul.f32 %v7766_v13, %v2310_v1  ;;  %v8114_v13 = vld [vmem:[%s8320_s25 + $0x178] sm:$0xff] }
 0x4b8   : > { %v4010_v50 = vpop.f32.mrf.mxu1  ;;  %7372 = vmatmul.msk.f32.gmra.mxu1 %vm3573_vm4, %v9762_v8  ;;  %7484 = vmatmul.msk.f32.gmra.mxu3 %vm691_vm2, %v4611_v21  ;;  %v8164_v8 = vld [vmem:[%s8320_s25 + $0x108] sm:$0xff] }
 0x4b9   : > { %v4011_v0 = vadd.f32 %v9691_v2, %v4010_v50  ;;  %2629 = vrot.lane.b32.xlu2 %v2461_v29, %s8274_s18  ;;  %v2902_v11 = vmul.f32 %v8164_v8, %v8164_v8 }
 0x4bb   : > { %v4148_v3 = vmax.f32 %v4011_v0, 0.0  ;;  %v4458_v7 = vpop.f32.mrf.mxu2 }
 0x4bc   : > { %v4459_v49 = vadd.f32 %v9403_v38, %v4458_v7 }
 0x4bd   : > { %7429 = vmatmul.msk.f32.gmra.mxu2 %vm691_vm2, %v4148_v3 }
 0x4be   : > { %v4612_v35 = vmax.f32 %v4459_v49, 0.0 }
 0x4c0   : > { %7485 = vmatmul.msk.f32.gmra.mxu3 %vm691_vm2, %v4612_v35 }
 0x4c1   : > { %2323 = vrot.lane.b32.xlu2 %v8114_v13, %s8273_s27 }
 0x4c3   : > { %v4461_v61 = vpop.f32.mrf.mxu2 }
 0x4c4   : > { %v4462_v10 = vadd.f32 %v9403_v38, %v4461_v61 }
 0x4c6   : > { %v4613_v1 = vmax.f32 %v4462_v10, 0.0  ;;  %v4900_v21 = vpop.f32.mrf.mxu3  ;;  %v9784_v10 = vadd.f32 %v9641_v32, %v9295_v27 }
 0x4c7   : > { %v4901_v50 = vadd.f32 %v9603_v24, %v4900_v21 }
 0x4c8   : > { %7486 = vmatmul.msk.f32.gmra.mxu3 %vm691_vm2, %v4613_v1  ;;  %13422 = vst [vmem:[#allocation69_spill] sm:$0xff] %v9784_v10 }
 0x4c9   : > { %v5074_v29 = vmax.f32 %v4901_v50, 0.0  ;;  %v2079_v50 = vmul.f32 0.5, %v9784_v10 }
 0x4cb   : > { %7539 = vmatmul.msk.f32.gmra.mxu0 %vm691_vm2, %v5074_v29  ;;  %v9791_v29 = vadd.f32 %v9641_v32, %v9303_v25  ;;  %v9801_v25 = vadd.f32 %v9641_v32, %v9312_v4  ;;  %v9813_v4 = vadd.f32 %v9641_v32, %v9333_v52 }
 0x4cd   : > { %13423 = vst [vmem:[#allocation70_spill] sm:$0xff] %v9791_v29 }
 0x4ce   : > { %v4903_v0 = vpop.f32.mrf.mxu3  ;;  %13425 = vst [vmem:[#allocation72_spill] sm:$0xff] %v9801_v25 }
 0x4cf   : > { %v4904_v3 = vadd.f32 %v9603_v24, %v4903_v0  ;;  %13427 = vst [vmem:[#allocation74_spill] sm:$0xff] %v9813_v4 }
 0x4d1   : > { %v5075_v7 = vmax.f32 %v4904_v3, 0.0  ;;  %v2185_v3 = vmul.f32 1.442695, %v2079_v50 }
 0x4d3   : > { %7540 = vmatmul.msk.f32.gmra.mxu0 %vm691_vm2, %v5075_v7  ;;  %7767 = vpow2.f32 %v2185_v3 }
 0x4d6   : > { %v4906_v49 = vpop.f32.mrf.mxu3 }
 0x4d7   : > { %v4907_v35 = vadd.f32 %v9603_v24, %v4906_v49  ;;  %v2080_v49 = vmul.f32 0.5, %v9791_v29 }
 0x4d9   : > { %v5076_v13 = vmax.f32 %v4907_v35, 0.0 }
 0x4db   : > { %7541 = vmatmul.msk.f32.gmra.mxu0 %vm691_vm2, %v5076_v13 }
 0x4de   : > { %v4909_v61 = vpop.f32.mrf.mxu3 }
 0x4df   : > { %v4910_v1 = vadd.f32 %v9603_v24, %v4909_v61 }
 0x4e1   : > { %v5077_v21 = vmax.f32 %v4910_v1, 0.0  ;;  %v2187_v1 = vmul.f32 1.442695, %v2080_v49 }
 0x4e3   : > { %7542 = vmatmul.msk.f32.gmra.mxu0 %vm691_vm2, %v5077_v21  ;;  %7769 = vpow2.f32 %v2187_v1 }
 0x4e6   : > { %v4912_v0 = vpop.f32.mrf.mxu3 }
 0x4e7   : > { %v4913_v7 = vadd.f32 %v9603_v24, %v4912_v0  ;;  %v7768_v0 = vpop.eup %7767 }
 0x4e9   : > { %v5078_v35 = vmax.f32 %v4913_v7, 0.0  ;;  %v2081_v7 = vmul.f32 0.5, %v9801_v25 }
 0x4eb   : > { %v2620_v27 = vpop.permute.xlu1 %2619  ;;  %7543 = vmatmul.msk.f32.gmra.mxu0 %vm691_vm2, %v5078_v35 }
 0x4ec   : > { %v9796_v13 = vadd.f32 %v2620_v27, %v9645_v53  ;;  %v2189_v53 = vmul.f32 1.442695, %v2081_v7 }
 0x4ed   : > { %v4013_v61 = vpop.f32.mrf.mxu1 }
 0x4ee   : > { %13424 = vst [vmem:[#allocation71_spill] sm:$0xff] %v9796_v13  ;;  %v4014_v21 = vadd.f32 %v9691_v2, %v4013_v61  ;;  %7373 = vmatmul.msk.f32.gmra.mxu1 %vm3573_vm4, %v9796_v13  ;;  %7771 = vpow2.f32 %v2189_v53 }
 0x4f0   : > { %v4149_v50 = vmax.f32 %v4014_v21, 0.0  ;;  %v7770_v21 = vpop.eup %7769 }
 0x4f1   : > { %v2622_v3 = vpop.permute.xlu0 %2621 }
 0x4f2   : > { %7430 = vmatmul.msk.f32.gmra.mxu2 %vm691_vm2, %v4149_v50  ;;  %v9809_v35 = vadd.f32 %v2622_v3, %v9653_v63  ;;  %v2082_v50 = vmul.f32 0.5, %v9813_v4  ;;  %v8120_v63 = vld [vmem:[%s8320_s25 + $0x1a8] sm:$0xff] }
 0x4f3   : > { %v2314_v49 = vpop.permute.xlu1 %2313 }
 0x4f4   : > { %13426 = vst [vmem:[#allocation73_spill] sm:$0xff] %v9809_v35  ;;  %v2463_v27 = vmul.f32 %v7768_v0, %v2314_v49  ;;  %v2191_v7 = vmul.f32 1.442695, %v2082_v50  ;;  %v7772_v53 = vpop.eup %7771 }
 0x4f5   : > { %v4016_v61 = vpop.f32.mrf.mxu1 }
 0x4f6   : > { %2633 = vrot.lane.b32.xlu0 %v2463_v27, %s8274_s18  ;;  %v4017_v1 = vadd.f32 %v9691_v2, %v4016_v61  ;;  %7374 = vmatmul.msk.f32.gmra.mxu1 %vm3573_vm4, %v9809_v35  ;;  %v9827_v27 = vadd.f32 %v9641_v32, %v9359_v60  ;;  %v8115_v61 = vld [vmem:[%s8320_s25 + $0x188] sm:$0xff]  ;;  %7773 = vpow2.f32 %v2191_v7  ;;  %v8116_v60 = vld [vmem:[%s8320_s25 + $0x190] sm:$0xff]  ;;  %v9844_v7 = vadd.f32 %v9641_v32, %v9376_v22 }
 0x4f8   : > { %v4150_v0 = vmax.f32 %v4017_v1, 0.0  ;;  %13429 = vst [vmem:[#allocation76_spill] sm:$0xff] %v9827_v27 }
 0x4f9   : > { %v2624_v3 = vpop.permute.xlu2 %2623  ;;  %v2316_v48 = vpop.permute.xlu0 %2315  ;;  %13431 = vst [vmem:[#allocation78_spill] sm:$0xff] %v9844_v7 }
 0x4fa   : > { %v9821_v52 = vadd.f32 %v2624_v3, %v9686_v37  ;;  %v2464_v49 = vmul.f32 %v7770_v21, %v2316_v48  ;;  %7431 = vmatmul.msk.f32.gmra.mxu2 %vm691_vm2, %v4150_v0  ;;  %v2083_v48 = vmul.f32 0.5, %v9827_v27 }
 0x4fc   : > { %13428 = vst [vmem:[#allocation75_spill] sm:$0xff] %v9821_v52  ;;  %2635 = vrot.lane.b32.xlu2 %v2464_v49, %s8274_s18  ;;  %v2193_v0 = vmul.f32 1.442695, %v2083_v48  ;;  %v7774_v49 = vpop.eup %7773  ;;  %v9853_v48 = vadd.f32 %v9641_v32, %v9391_v5 }
 0x4fe   : > { %2327 = vrot.lane.b32.xlu0 %v8115_v61, %s8273_s27  ;;  %7375 = vmatmul.msk.f32.gmra.mxu1 %vm3573_vm4, %v9821_v52  ;;  %7775 = vpow2.f32 %v2193_v0  ;;  %13433 = vst [vmem:[#allocation80_spill] sm:$0xff] %v9853_v48 }
 0x501   : > { %v2626_v1 = vpop.permute.xlu1 %2625 }
 0x502   : > { %v9835_v21 = vadd.f32 %v2626_v1, %v9668_v30  ;;  %v2318_v50 = vpop.permute.xlu2 %2317 }
 0x503   : > { %v2465_v3 = vmul.f32 %v7772_v53, %v2318_v50  ;;  %v2084_v53 = vmul.f32 0.5, %v9844_v7 }
 0x504   : > { %13430 = vst [vmem:[#allocation77_spill] sm:$0xff] %v9835_v21  ;;  %2329 = vrot.lane.b32.xlu2 %v8116_v60, %s8273_s27  ;;  %v7776_v60 = vpop.eup %7775 }
 0x505   : > { %2637 = vrot.lane.b32.xlu1 %v2465_v3, %s8274_s18  ;;  %v8117_v3 = vld [vmem:[%s8320_s25 + $0x198] sm:$0xff]  ;;  %v2195_v22 = vmul.f32 1.442695, %v2084_v53 }
 0x506   : > { %7376 = vmatmul.msk.f32.gmra.mxu1 %vm3573_vm4, %v9835_v21 }
 0x507   : > { %7777 = vpow2.f32 %v2195_v22 }
 0x509   : > { %v2320_v61 = vpop.permute.xlu1 %2319 }
 0x50a   : > { %v2466_v1 = vmul.f32 %v7774_v49, %v2320_v61  ;;  %v2628_v30 = vpop.permute.xlu0 %2627  ;;  %v2085_v49 = vmul.f32 0.5, %v9853_v48 }
 0x50b   : > { %v9848_v50 = vadd.f32 %v2628_v30, %v9677_v12 }
 0x50c   : > { %2639 = vrot.lane.b32.xlu0 %v2466_v1, %s8274_s18  ;;  %v2197_v12 = vmul.f32 1.442695, %v2085_v49 }
 0x50d   : > { %13432 = vst [vmem:[#allocation79_spill] sm:$0xff] %v9848_v50  ;;  %2331 = vrot.lane.b32.xlu1 %v8117_v3, %s8273_s27 }
 0x50e   : > { %7377 = vmatmul.msk.f32.gmra.mxu1 %vm3573_vm4, %v9848_v50  ;;  %7779 = vpow2.f32 %v2197_v12 }
 0x510   : > { %v4464_v0 = vpop.f32.mrf.mxu2 }
 0x511   : > { %v4465_v30 = vadd.f32 %v9403_v38, %v4464_v0 }
 0x512   : > { %v2322_v61 = vpop.permute.xlu0 %2321 }
 0x513   : > { %v4614_v1 = vmax.f32 %v4465_v30, 0.0  ;;  %v2630_v21 = vpop.permute.xlu2 %2629  ;;  %v2467_v13 = vmul.f32 %v7776_v60, %v2322_v61  ;;  %v7778_v60 = vpop.eup %7777 }
 0x514   : > { %v9862_v5 = vadd.f32 %v2630_v21, %v9729_v47  ;;  %2333 = vrot.lane.b32.xlu0 %v8118_v62, %s8273_s27  ;;  %v4019_v3 = vpop.f32.mrf.mxu1  ;;  %v9874_v62 = vld [vmem:[%s13175_s1 + $0x13d] ss:$0 sm:$0xff] }
 0x515   : > { %7487 = vmatmul.msk.f32.gmra.mxu3 %vm691_vm2, %v4614_v1  ;;  %v4020_v53 = vadd.f32 %v9691_v2, %v4019_v3  ;;  %2641 = vrot.lane.b32.xlu2 %v2467_v13, %s8274_s18 }
 0x516   : > { %13434 = vst [vmem:[#allocation81_spill] sm:$0xff] %v9862_v5  ;;  %7378 = vmatmul.msk.f32.gmra.mxu1 %vm3573_vm4, %v9862_v5 }
 0x517   : > { %v4151_v38 = vmax.f32 %v4020_v53, 0.0 }
 0x518   : > { %v4467_v22 = vpop.f32.mrf.mxu2 }
 0x519   : > { %v4468_v21 = vadd.f32 %v9874_v62, %v4467_v22  ;;  %v2632_v0 = vpop.permute.xlu1 %2631  ;;  %7432 = vmatmul.msk.f32.gmra.mxu2 %vm691_vm2, %v4151_v38  ;;  %v7780_v38 = vpop.eup %7779 }
 0x51a   : > { %v9879_v13 = vadd.f32 %v2632_v0, %v9699_v41 }
 0x51b   : > { %v4615_v49 = vmax.f32 %v4468_v21, 0.0  ;;  %v2324_v30 = vpop.permute.xlu2 %2323  ;;  %v4915_v61 = vpop.f32.mrf.mxu3 }
 0x51c   : > { %13435 = vst [vmem:[#allocation82_spill] sm:$0xff] %v9879_v13  ;;  %v2468_v1 = vmul.f32 %v7778_v60, %v2324_v30  ;;  %v4916_v3 = vadd.f32 %v9603_v24, %v4915_v61  ;;  %v4022_v12 = vpop.f32.mrf.mxu1 }
 0x51d   : > { %v4023_v53 = vadd.f32 %v9691_v2, %v4022_v12  ;;  %7488 = vmatmul.msk.f32.gmra.mxu3 %vm691_vm2, %v4615_v49  ;;  %2335 = vrot.lane.b32.xlu2 %v8120_v63, %s8273_s27 }
 0x51e   : > { %v5079_v22 = vmax.f32 %v4916_v3, 0.0  ;;  %2643 = vrot.lane.b32.xlu1 %v2468_v1, %s8274_s18  ;;  %7379 = vmatmul.msk.f32.gmra.mxu1 %vm3573_vm4, %v9879_v13 }
 0x51f   : > { %v4152_v21 = vmax.f32 %v4023_v53, 0.0 }
 0x520   : > { %v4470_v60 = vpop.f32.mrf.mxu2  ;;  %7544 = vmatmul.msk.f32.gmra.mxu0 %vm691_vm2, %v5079_v22  ;;  %v8121_v22 = vld [vmem:[%s8320_s25 + $0x1b0] sm:$0xff] }
 0x521   : > { %v4471_v0 = vadd.f32 %v9874_v62, %v4470_v60  ;;  %v2326_v30 = vpop.permute.xlu1 %2325  ;;  %7433 = vmatmul.msk.f32.gmra.mxu2 %vm691_vm2, %v4152_v21 }
 0x522   : > { %v2469_v49 = vmul.f32 %v7780_v38, %v2326_v30 }
 0x523   : > { %v4616_v61 = vmax.f32 %v4471_v0, 0.0  ;;  %v4918_v63 = vpop.f32.mrf.mxu3 }
 0x524   : > { %v4919_v3 = vadd.f32 %v9603_v24, %v4918_v63  ;;  %2645 = vrot.lane.b32.xlu0 %v2469_v49, %s8274_s18  ;;  %v4025_v1 = vpop.f32.mrf.mxu1  ;;  %v8122_v49 = vld [vmem:[%s8320_s25 + $0x1b8] sm:$0xff] }
 0x525   : > { %7489 = vmatmul.msk.f32.gmra.mxu3 %vm691_vm2, %v4616_v61  ;;  %v4026_v12 = vadd.f32 %v9691_v2, %v4025_v1 }
 0x526   : > { %v5080_v53 = vmax.f32 %v4919_v3, 0.0  ;;  %2337 = vrot.lane.b32.xlu1 %v8121_v22, %s8273_s27 }
 0x527   : > { %v4153_v60 = vmax.f32 %v4026_v12, 0.0 }
 0x528   : > { %v4473_v13 = vpop.f32.mrf.mxu2  ;;  %7545 = vmatmul.msk.f32.gmra.mxu0 %vm691_vm2, %v5080_v53 }
 0x529   : > { %v4474_v38 = vadd.f32 %v9874_v62, %v4473_v13  ;;  %7434 = vmatmul.msk.f32.gmra.mxu2 %vm691_vm2, %v4153_v60 }
 0x52b   : > { %v4617_v21 = vmax.f32 %v4474_v38, 0.0  ;;  %v4921_v0 = vpop.f32.mrf.mxu3 }
 0x52c   : > { %v4922_v30 = vadd.f32 %v9603_v24, %v4921_v0  ;;  %2339 = vrot.lane.b32.xlu0 %v8122_v49, %s8273_s27 }
 0x52d   : > { %7490 = vmatmul.msk.f32.gmra.mxu3 %vm691_vm2, %v4617_v21  ;;  %v4028_v61 = vpop.f32.mrf.mxu1 }
 0x52e   : > { %v5081_v63 = vmax.f32 %v4922_v30, 0.0  ;;  %v4029_v3 = vadd.f32 %v9691_v2, %v4028_v61 }
 0x530   : > { %v4154_v1 = vmax.f32 %v4029_v3, 0.0  ;;  %v4476_v12 = vpop.f32.mrf.mxu2  ;;  %7546 = vmatmul.msk.f32.gmra.mxu0 %vm691_vm2, %v5081_v63 }
 0x531   : > { %v4477_v13 = vadd.f32 %v9874_v62, %v4476_v12 }
 0x532   : > { %7435 = vmatmul.msk.f32.gmra.mxu2 %vm691_vm2, %v4154_v1 }
 0x533   : > { %v4618_v53 = vmax.f32 %v4477_v13, 0.0  ;;  %v4924_v22 = vpop.f32.mrf.mxu3 }
 0x534   : > { %v4925_v60 = vadd.f32 %v9603_v24, %v4924_v22 }
 0x535   : > { %v4031_v38 = vpop.f32.mrf.mxu1  ;;  %7491 = vmatmul.msk.f32.gmra.mxu3 %vm691_vm2, %v4618_v53 }
 0x536   : > { %v5082_v21 = vmax.f32 %v4925_v60, 0.0  ;;  %v4032_v0 = vadd.f32 %v9691_v2, %v4031_v38 }
 0x538   : > { %v4155_v30 = vmax.f32 %v4032_v0, 0.0  ;;  %v4479_v49 = vpop.f32.mrf.mxu2  ;;  %7547 = vmatmul.msk.f32.gmra.mxu0 %vm691_vm2, %v5082_v21  ;;  %v9924_v0 = vadd.f32 %v9641_v32, %v9425_v19 }
 0x539   : > { %v4480_v61 = vadd.f32 %v9874_v62, %v4479_v49 }
 0x53a   : > { %7436 = vmatmul.msk.f32.gmra.mxu2 %vm691_vm2, %v4155_v30  ;;  %13436 = vst [vmem:[#allocation83_spill] sm:$0xff] %v9924_v0 }
 0x53b   : > { %v4619_v63 = vmax.f32 %v4480_v61, 0.0  ;;  %v4927_v3 = vpop.f32.mrf.mxu3 }
 0x53c   : > { %v4928_v1 = vadd.f32 %v9603_v24, %v4927_v3 }
 0x53d   : > { %7492 = vmatmul.msk.f32.gmra.mxu3 %vm691_vm2, %v4619_v63  ;;  %v2087_v63 = vmul.f32 0.5, %v9924_v0 }
 0x53e   : > { %v5083_v12 = vmax.f32 %v4928_v1, 0.0 }
 0x53f   : > { %v2201_v3 = vmul.f32 1.442695, %v2087_v63 }
 0x540   : > { %v4482_v13 = vpop.f32.mrf.mxu2  ;;  %7548 = vmatmul.msk.f32.gmra.mxu0 %vm691_vm2, %v5083_v12  ;;  %v9931_v12 = vadd.f32 %v9641_v32, %v9411_v59  ;;  %v8123_v59 = vld [vmem:[%s8320_s25 + $0x1c8] sm:$0xff] }
 0x541   : > { %v4483_v53 = vadd.f32 %v9874_v62, %v4482_v13  ;;  %7781 = vpow2.f32 %v2201_v3 }
 0x542   : > { %13437 = vst [vmem:[#allocation84_spill] sm:$0xff] %v9931_v12  ;;  %v2086_v19 = vmul.f32 0.5, %v9931_v12 }
 0x543   : > { %v4620_v22 = vmax.f32 %v4483_v53, 0.0  ;;  %v4930_v60 = vpop.f32.mrf.mxu3 }
 0x544   : > { %v4931_v38 = vadd.f32 %v9603_v24, %v4930_v60  ;;  %v9937_v60 = vadd.f32 %v9641_v32, %v9456_v57 }
 0x545   : > { %7493 = vmatmul.msk.f32.gmra.mxu3 %vm691_vm2, %v4620_v22 }
 0x546   : > { %v5084_v21 = vmax.f32 %v4931_v38, 0.0  ;;  %13438 = vst [vmem:[#allocation85_spill] sm:$0xff] %v9937_v60  ;;  %v2090_v38 = vmul.f32 0.5, %v9937_v60 }
 0x547   : > { %v7782_v13 = vpop.eup %7781 }
 0x548   : > { %7549 = vmatmul.msk.f32.gmra.mxu0 %vm691_vm2, %v5084_v21  ;;  %v2207_v57 = vmul.f32 1.442695, %v2090_v38 }
 0x54b   : > { %v4933_v30 = vpop.f32.mrf.mxu3 }
 0x54c   : > { %v4934_v49 = vadd.f32 %v9603_v24, %v4933_v30  ;;  %v2199_v24 = vmul.f32 1.442695, %v2086_v19 }
 0x54e   : > { %v5085_v61 = vmax.f32 %v4934_v49, 0.0  ;;  %7783 = vpow2.f32 %v2199_v24  ;;  %v9947_v49 = vadd.f32 %v9641_v32, %v9439_v16 }
 0x54f   : > { %7785 = vpow2.f32 %v2207_v57 }
 0x550   : > { %7550 = vmatmul.msk.f32.gmra.mxu0 %vm691_vm2, %v5085_v61  ;;  %13440 = vst [vmem:[#allocation87_spill] sm:$0xff] %v9947_v49 }
 0x554   : > { %v7784_v3 = vpop.eup %7783 }
 0x556   : > { %v2636_v1 = vpop.permute.xlu2 %2635 }
 0x557   : > { %v9955_v24 = vadd.f32 %v2636_v1, %v9791_v29 }
 0x559   : > { %13441 = vst [vmem:[#allocation88_spill] sm:$0xff] %v9955_v24 }
 0x55e   : > { %v2330_v53 = vpop.permute.xlu2 %2329 }
 0x55f   : > { %v2471_v22 = vmul.f32 %v7782_v13, %v2330_v53  ;;  %v2088_v53 = vmul.f32 0.5, %v9947_v49 }
 0x561   : > { %2649 = vrot.lane.b32.xlu1 %v2471_v22, %s8274_s18  ;;  %v2203_v38 = vmul.f32 1.442695, %v2088_v53 }
 0x563   : > { %7787 = vpow2.f32 %v2203_v38 }
 0x568   : > { %v2634_v21 = vpop.permute.xlu0 %2633 }
 0x569   : > { %v9941_v30 = vadd.f32 %v2634_v21, %v9784_v10  ;;  %2343 = vrot.lane.b32.xlu1 %v8123_v59, %s8273_s27  ;;  %v9959_v21 = vadd.f32 %v9641_v32, %v9448_v31 }
 0x56b   : > { %13439 = vst [vmem:[#allocation86_spill] sm:$0xff] %v9941_v30  ;;  %v4034_v61 = vpop.f32.mrf.mxu1  ;;  %7380 = vmatmul.msk.f32.gmra.mxu1 %vm3573_vm4, %v9941_v30 }
 0x56c   : > { %v4035_v63 = vadd.f32 %v9691_v2, %v4034_v61  ;;  %13442 = vst [vmem:[#allocation89_spill] sm:$0xff] %v9959_v21 }
 0x56e   : > { %v4156_v13 = vmax.f32 %v4035_v63, 0.0  ;;  %v7786_v63 = vpop.eup %7785 }
 0x56f   : > { %v2642_v19 = vpop.permute.xlu2 %2641 }
 0x570   : > { %7437 = vmatmul.msk.f32.gmra.mxu2 %vm691_vm2, %v4156_v13  ;;  %v2328_v22 = vpop.permute.xlu0 %2327  ;;  %v2089_v13 = vmul.f32 0.5, %v9959_v21 }
 0x571   : > { %v2470_v16 = vmul.f32 %v7784_v3, %v2328_v22 }
 0x573   : > { %v4037_v59 = vpop.f32.mrf.mxu1  ;;  %7381 = vmatmul.msk.f32.gmra.mxu1 %vm3573_vm4, %v9955_v24  ;;  %2647 = vrot.lane.b32.xlu2 %v2470_v16, %s8274_s18  ;;  %v2205_v24 = vmul.f32 1.442695, %v2089_v13 }
 0x574   : > { %v4038_v61 = vadd.f32 %v9691_v2, %v4037_v59 }
 0x575   : > { %v4485_v57 = vpop.f32.mrf.mxu2  ;;  %7789 = vpow2.f32 %v2205_v24 }
 0x576   : > { %v4157_v1 = vmax.f32 %v4038_v61, 0.0  ;;  %v4486_v3 = vadd.f32 %v9874_v62, %v4485_v57  ;;  %v8124_v61 = vld [vmem:[%s8320_s25 + $0x1c0] sm:$0xff]  ;;  %v7788_v57 = vpop.eup %7787 }
 0x577   : > { %v2638_v31 = vpop.permute.xlu1 %2637  ;;  %v2336_v22 = vpop.permute.xlu2 %2335 }
 0x578   : > { %v4621_v53 = vmax.f32 %v4486_v3, 0.0  ;;  %7438 = vmatmul.msk.f32.gmra.mxu2 %vm691_vm2, %v4157_v1  ;;  %v9969_v30 = vadd.f32 %v2638_v31, %v9801_v25  ;;  %v2474_v16 = vmul.f32 %v7786_v63, %v2336_v22 }
 0x57a   : > { %13443 = vst [vmem:[#allocation90_spill] sm:$0xff] %v9969_v30  ;;  %7494 = vmatmul.msk.f32.gmra.mxu3 %vm691_vm2, %v4621_v53  ;;  %2655 = vrot.lane.b32.xlu1 %v2474_v16, %s8274_s18 }
 0x57b   : > { %v4040_v59 = vpop.f32.mrf.mxu1  ;;  %7382 = vmatmul.msk.f32.gmra.mxu1 %vm3573_vm4, %v9969_v30  ;;  %2341 = vrot.lane.b32.xlu2 %v8124_v61, %s8273_s27  ;;  %v8125_v61 = vld [vmem:[%s8320_s25 + $0x1e0] sm:$0xff]  ;;  %v7790_v24 = vpop.eup %7789 }
 0x57c   : > { %v4041_v38 = vadd.f32 %v9691_v2, %v4040_v59 }
 0x57d   : > { %v4488_v63 = vpop.f32.mrf.mxu2 }
 0x57e   : > { %v2640_v1 = vpop.permute.xlu0 %2639  ;;  %v4158_v3 = vmax.f32 %v4041_v38, 0.0  ;;  %v4489_v22 = vadd.f32 %v9874_v62, %v4488_v63  ;;  %v9990_v38 = vadd.f32 %v9641_v32, %v9462_v14  ;;  %v10002_v14 = vadd.f32 %v9641_v32, %v9467_v56  ;;  %v8127_v56 = vld [vmem:[%s8320_s25 + $0x1d8] sm:$0xff] }
 0x57f   : > { %v2332_v13 = vpop.permute.xlu1 %2331  ;;  %v9979_v31 = vadd.f32 %v2640_v1, %v9813_v4 }
 0x580   : > { %v2472_v53 = vmul.f32 %v7788_v57, %v2332_v13  ;;  %7439 = vmatmul.msk.f32.gmra.mxu2 %vm691_vm2, %v4158_v3  ;;  %v4622_v16 = vmax.f32 %v4489_v22, 0.0  ;;  %13445 = vst [vmem:[#allocation92_spill] sm:$0xff] %v9990_v38  ;;  %v2091_v13 = vmul.f32 0.5, %v9990_v38  ;;  %v9996_v22 = vadd.f32 %v2642_v19, %v9827_v27 }
 0x581   : > { %13444 = vst [vmem:[#allocation91_spill] sm:$0xff] %v9979_v31 }
 0x582   : > { %2651 = vrot.lane.b32.xlu0 %v2472_v53, %s8274_s18  ;;  %2349 = vrot.lane.b32.xlu1 %v8125_v61, %s8273_s27  ;;  %13446 = vst [vmem:[#allocation93_spill] sm:$0xff] %v9996_v22  ;;  %v8126_v53 = vld [vmem:[%s8320_s25 + $0x1d0] sm:$0xff]  ;;  %v2092_v61 = vmul.f32 0.5, %v10002_v14 }
 0x583   : > { %v4043_v59 = vpop.f32.mrf.mxu1  ;;  %7383 = vmatmul.msk.f32.gmra.mxu1 %vm3573_vm4, %v9979_v31  ;;  %7495 = vmatmul.msk.f32.gmra.mxu3 %vm691_vm2, %v4622_v16  ;;  %13447 = vst [vmem:[#allocation94_spill] sm:$0xff] %v10002_v14 }
 0x584   : > { %v4044_v57 = vadd.f32 %v9691_v2, %v4043_v59  ;;  %v2209_v59 = vmul.f32 1.442695, %v2091_v13 }
 0x586   : > { %v4159_v1 = vmax.f32 %v4044_v57, 0.0  ;;  %v2334_v3 = vpop.permute.xlu0 %2333  ;;  %7791 = vpow2.f32 %v2209_v59 }
 0x587   : > { %v2473_v63 = vmul.f32 %v7790_v24, %v2334_v3  ;;  %v2211_v3 = vmul.f32 1.442695, %v2092_v61  ;;  %v10026_v61 = vld [vmem:[%s13175_s1 + $0x13e] ss:$0 sm:$0xff] }
 0x588   : > { %7440 = vmatmul.msk.f32.gmra.mxu2 %vm691_vm2, %v4159_v1 }
 0x589   : > { %2653 = vrot.lane.b32.xlu2 %v2473_v63, %s8274_s18  ;;  %7793 = vpow2.f32 %v2211_v3 }
 0x58a   : > { %2345 = vrot.lane.b32.xlu0 %v8126_v53, %s8273_s27 }
 0x58b   : > { %v4046_v16 = vpop.f32.mrf.mxu1  ;;  %7384 = vmatmul.msk.f32.gmra.mxu1 %vm3573_vm4, %v9996_v22 }
 0x58c   : > { %v4047_v19 = vadd.f32 %v9691_v2, %v4046_v16  ;;  %v7792_v53 = vpop.eup %7791 }
 0x58e   : > { %v4160_v24 = vmax.f32 %v4047_v19, 0.0 }
 0x590   : > { %v2644_v57 = vpop.permute.xlu1 %2643  ;;  %7441 = vmatmul.msk.f32.gmra.mxu2 %vm691_vm2, %v4160_v24 }
 0x591   : > { %v10011_v1 = vadd.f32 %v2644_v57, %v9844_v7  ;;  %2347 = vrot.lane.b32.xlu2 %v8127_v56, %s8273_s27 }
 0x593   : > { %13448 = vst [vmem:[#allocation95_spill] sm:$0xff] %v10011_v1  ;;  %v4049_v63 = vpop.f32.mrf.mxu1  ;;  %7385 = vmatmul.msk.f32.gmra.mxu1 %vm3573_vm4, %v10011_v1 }
 0x594   : > { %v4050_v13 = vadd.f32 %v9691_v2, %v4049_v63 }
 0x596   : > { %v4161_v16 = vmax.f32 %v4050_v13, 0.0  ;;  %v2646_v59 = vpop.permute.xlu0 %2645  ;;  %v7794_v13 = vpop.eup %7793 }
 0x597   : > { %v10020_v19 = vadd.f32 %v2646_v59, %v9853_v48 }
 0x598   : > { %v2338_v57 = vpop.permute.xlu1 %2337  ;;  %v4936_v31 = vpop.f32.mrf.mxu3  ;;  %7442 = vmatmul.msk.f32.gmra.mxu2 %vm691_vm2, %v4161_v16 }
 0x599   : > { %13449 = vst [vmem:[#allocation96_spill] sm:$0xff] %v10020_v19  ;;  %v2475_v24 = vmul.f32 %v7792_v53, %v2338_v57  ;;  %v4937_v56 = vadd.f32 %v10026_v61, %v4936_v31 }
 0x59b   : > { %v5086_v63 = vmax.f32 %v4937_v56, 0.0  ;;  %2657 = vrot.lane.b32.xlu0 %v2475_v24, %s8274_s18  ;;  %v4052_v3 = vpop.f32.mrf.mxu1  ;;  %7386 = vmatmul.msk.f32.gmra.mxu1 %vm3573_vm4, %v10020_v19  ;;  %v8129_v19 = vld [vmem:[%s8320_s25 + $0x1e8] sm:$0xff] }
 0x59c   : > { %v4053_v53 = vadd.f32 %v9691_v2, %v4052_v3  ;;  %v4491_v59 = vpop.f32.mrf.mxu2 }
 0x59d   : > { %v4492_v16 = vadd.f32 %v9874_v62, %v4491_v59  ;;  %7551 = vmatmul.msk.f32.gmra.mxu0 %vm691_vm2, %v5086_v63 }
 0x59e   : > { %v4162_v57 = vmax.f32 %v4053_v53, 0.0  ;;  %v2340_v1 = vpop.permute.xlu0 %2339 }
 0x59f   : > { %v4623_v22 = vmax.f32 %v4492_v16, 0.0  ;;  %v2476_v31 = vmul.f32 %v7794_v13, %v2340_v1  ;;  %v8130_v16 = vld [vmem:[%s8320_s25 + $0x1f0] sm:$0xff] }
 0x5a0   : > { %v4939_v56 = vpop.f32.mrf.mxu3  ;;  %7443 = vmatmul.msk.f32.gmra.mxu2 %vm691_vm2, %v4162_v57 }
 0x5a1   : > { %v4940_v24 = vadd.f32 %v10026_v61, %v4939_v56  ;;  %7496 = vmatmul.msk.f32.gmra.mxu3 %vm691_vm2, %v4623_v22  ;;  %2659 = vrot.lane.b32.xlu2 %v2476_v31, %s8274_s18 }
 0x5a3   : > { %v5087_v3 = vmax.f32 %v4940_v24, 0.0  ;;  %2351 = vrot.lane.b32.xlu0 %v8129_v19, %s8273_s27  ;;  %v10049_v24 = vpop.f32.mrf.mxu0 }
 0x5a4   : > { %v4494_v59 = vpop.f32.mrf.mxu2 }
 0x5a5   : > { %v4495_v63 = vadd.f32 %v9874_v62, %v4494_v59  ;;  %7552 = vmatmul.msk.f32.gmra.mxu0 %vm691_vm2, %v5087_v3 }
 0x5a7   : > { %v4624_v1 = vmax.f32 %v4495_v63, 0.0 }
 0x5a8   : > { %v4942_v13 = vpop.f32.mrf.mxu3 }
 0x5a9   : > { %v4943_v53 = vadd.f32 %v10026_v61, %v4942_v13  ;;  %7497 = vmatmul.msk.f32.gmra.mxu3 %vm691_vm2, %v4624_v1  ;;  %2353 = vrot.lane.b32.xlu2 %v8130_v16, %s8273_s27 }
 0x5ab   : > { %v5088_v22 = vmax.f32 %v4943_v53, 0.0 }
 0x5ac   : > { %v4497_v57 = vpop.f32.mrf.mxu2 }
 0x5ad   : > { %v4498_v31 = vadd.f32 %v9874_v62, %v4497_v57  ;;  %7553 = vmatmul.msk.f32.gmra.mxu0 %vm691_vm2, %v5088_v22  ;;  %v10057_v22 = vpop.f32.mrf.mxu0 }
 0x5af   : > { %v4625_v19 = vmax.f32 %v4498_v31, 0.0 }
 0x5b0   : > { %v4945_v56 = vpop.f32.mrf.mxu3 }
 0x5b1   : > { %v4946_v3 = vadd.f32 %v10026_v61, %v4945_v56  ;;  %7498 = vmatmul.msk.f32.gmra.mxu3 %vm691_vm2, %v4625_v19 }
 0x5b3   : > { %v5089_v59 = vmax.f32 %v4946_v3, 0.0 }
 0x5b5   : > { %v4500_v63 = vpop.f32.mrf.mxu2  ;;  %7554 = vmatmul.msk.f32.gmra.mxu0 %vm691_vm2, %v5089_v59  ;;  %v10064_v59 = vadd.f32 %v9641_v32, %v9471_v6 }
 0x5b6   : > { %v4501_v1 = vadd.f32 %v9874_v62, %v4500_v63 }
 0x5b7   : > { %13450 = vst [vmem:[#allocation97_spill] sm:$0xff] %v10064_v59 }
 0x5b8   : > { %v4626_v13 = vmax.f32 %v4501_v1, 0.0  ;;  %v4948_v53 = vpop.f32.mrf.mxu3  ;;  %v10067_v1 = vpop.f32.mrf.mxu0 }
 0x5b9   : > { %v4949_v16 = vadd.f32 %v10026_v61, %v4948_v53  ;;  %v2093_v53 = vmul.f32 0.5, %v10064_v59 }
 0x5ba   : > { %7499 = vmatmul.msk.f32.gmra.mxu3 %vm691_vm2, %v4626_v13 }
 0x5bb   : > { %v5090_v57 = vmax.f32 %v4949_v16, 0.0  ;;  %v10074_v16 = vld [vmem:[%s13175_s1 + $0x13b] ss:$0 sm:$0xff] }
 0x5bd   : > { %v4503_v31 = vpop.f32.mrf.mxu2  ;;  %7555 = vmatmul.msk.f32.gmra.mxu0 %vm691_vm2, %v5090_v57  ;;  %v10078_v57 = vadd.f32 %v10074_v16, %v9478_v39 }
 0x5be   : > { %v4504_v56 = vadd.f32 %v9874_v62, %v4503_v31  ;;  %v2213_v31 = vmul.f32 1.442695, %v2093_v53 }
 0x5bf   : > { %13451 = vst [vmem:[#allocation98_spill] sm:$0xff] %v10078_v57 }
 0x5c0   : > { %v4627_v19 = vmax.f32 %v4504_v56, 0.0  ;;  %v4951_v3 = vpop.f32.mrf.mxu3  ;;  %7795 = vpow2.f32 %v2213_v31  ;;  %v10095_v31 = vadd.f32 %v10074_v16, %v9492_v17  ;;  %v8132_v17 = vld [vmem:[%s8320_s25 + $0x1f8] sm:$0xff] }
 0x5c1   : > { %v4952_v63 = vadd.f32 %v10026_v61, %v4951_v3 }
 0x5c2   : > { %7500 = vmatmul.msk.f32.gmra.mxu3 %vm691_vm2, %v4627_v19  ;;  %v2094_v19 = vmul.f32 0.5, %v10078_v57  ;;  %13454 = vst [vmem:[#allocation101_spill] sm:$0xff] %v10095_v31 }
 0x5c3   : > { %v5091_v13 = vmax.f32 %v4952_v63, 0.0 }
 0x5c4   : > { %v2215_v48 = vmul.f32 1.442695, %v2094_v19  ;;  %v2096_v19 = vmul.f32 0.5, %v10095_v31 }
 0x5c5   : > { %7556 = vmatmul.msk.f32.gmra.mxu0 %vm691_vm2, %v5091_v13  ;;  %v10085_v13 = vpop.f32.mrf.mxu0 }
 0x5c6   : > { %v7796_v39 = vpop.eup %7795  ;;  %7797 = vpow2.f32 %v2215_v48  ;;  %v2219_v30 = vmul.f32 1.442695, %v2096_v19 }
 0x5c8   : > { %v4954_v6 = vpop.f32.mrf.mxu3  ;;  %7799 = vpow2.f32 %v2219_v30 }
 0x5c9   : > { %v4955_v32 = vadd.f32 %v10026_v61, %v4954_v6 }
 0x5cb   : > { %v5092_v56 = vmax.f32 %v4955_v32, 0.0 }
 0x5cd   : > { %v2648_v3 = vpop.permute.xlu2 %2647  ;;  %7557 = vmatmul.msk.f32.gmra.mxu0 %vm691_vm2, %v5092_v56  ;;  %v7798_v56 = vpop.eup %7797 }
 0x5ce   : > { %v10083_v63 = vadd.f32 %v2648_v3, %v9931_v12 }
 0x5d0   : > { %13452 = vst [vmem:[#allocation99_spill] sm:$0xff] %v10083_v63  ;;  %7387 = vmatmul.msk.f32.gmra.mxu1 %vm3573_vm4, %v10083_v63 }
 0x5d3   : > { %v2650_v53 = vpop.permute.xlu1 %2649 }
 0x5d4   : > { %v10091_v6 = vadd.f32 %v2650_v53, %v9924_v0  ;;  %v10104_v53 = vadd.f32 %v10074_v16, %v9508_v23 }
 0x5d5   : > { %v2342_v32 = vpop.permute.xlu2 %2341 }
 0x5d6   : > { %13453 = vst [vmem:[#allocation100_spill] sm:$0xff] %v10091_v6  ;;  %v2477_v3 = vmul.f32 %v7796_v39, %v2342_v32  ;;  %v2097_v32 = vmul.f32 0.5, %v10104_v53 }
 0x5d7   : > { %13455 = vst [vmem:[#allocation102_spill] sm:$0xff] %v10104_v53 }
 0x5d8   : > { %7388 = vmatmul.msk.f32.gmra.mxu1 %vm3573_vm4, %v10091_v6  ;;  %2661 = vrot.lane.b32.xlu1 %v2477_v3, %s8274_s18  ;;  %v10111_v3 = vadd.f32 %v10074_v16, %v9480_v46  ;;  %v10119_v46 = vadd.f32 %v10074_v16, %v9570_v40 }
 0x5da   : > { %13456 = vst [vmem:[#allocation103_spill] sm:$0xff] %v10111_v3  ;;  %v2095_v23 = vmul.f32 0.5, %v10111_v3 }
 0x5db   : > { %v2344_v63 = vpop.permute.xlu1 %2343  ;;  %13457 = vst [vmem:[#allocation104_spill] sm:$0xff] %v10119_v46 }
 0x5dc   : > { %v2478_v48 = vmul.f32 %v7798_v56, %v2344_v63  ;;  %v7800_v63 = vpop.eup %7799  ;;  %v2221_v56 = vmul.f32 1.442695, %v2097_v32  ;;  %v2217_v30 = vmul.f32 1.442695, %v2095_v23  ;;  %v10127_v32 = vpop.f32.mrf.mxu0 }
 0x5de   : > { %2663 = vrot.lane.b32.xlu0 %v2478_v48, %s8274_s18  ;;  %7801 = vpow2.f32 %v2221_v56 }
 0x5df   : > { %7803 = vpow2.f32 %v2217_v30 }
 0x5e0   : > { %2355 = vrot.lane.b32.xlu1 %v8132_v17, %s8273_s27 }
 0x5e3   : > { %v2654_v39 = vpop.permute.xlu2 %2653 }
 0x5e8   : > { %v4055_v6 = vpop.f32.mrf.mxu1 }
 0x5e9   : > { %v4056_v19 = vadd.f32 %v9691_v2, %v4055_v6  ;;  %v10124_v2 = vld [vmem:[%s13175_s1 + $0x13c] ss:$0 sm:$0xff] }
 0x5eb   : > { %v4163_v48 = vmax.f32 %v4056_v19, 0.0  ;;  %v2348_v4 = vpop.permute.xlu2 %2347 }
 0x5ec   : > { %v2480_v10 = vmul.f32 %v7800_v63, %v2348_v4  ;;  %v2656_v17 = vpop.permute.xlu1 %2655  ;;  %v7802_v4 = vpop.eup %7801 }
 0x5ed   : > { %7444 = vmatmul.msk.f32.gmra.mxu2 %vm691_vm2, %v4163_v48 }
 0x5ee   : > { %2667 = vrot.lane.b32.xlu0 %v2480_v10, %s8274_s18  ;;  %v2099_v10 = vmul.f32 0.5, %v10119_v46 }
 0x5f0   : > { %v4058_v0 = vpop.f32.mrf.mxu1 }
 0x5f1   : > { %v4059_v6 = vadd.f32 %v10124_v2, %v4058_v0  ;;  %v2225_v0 = vmul.f32 1.442695, %v2099_v10  ;;  %v10146_v10 = vadd.f32 %v2654_v39, %v9959_v21  ;;  %v10156_v39 = vadd.f32 %v10074_v16, %v9540_v20 }
 0x5f3   : > { %v4164_v63 = vmax.f32 %v4059_v6, 0.0  ;;  %v4506_v56 = vpop.f32.mrf.mxu2  ;;  %7805 = vpow2.f32 %v2225_v0  ;;  %13459 = vst [vmem:[#allocation106_spill] sm:$0xff] %v10146_v10 }
 0x5f4   : > { %v4507_v19 = vadd.f32 %v9874_v62, %v4506_v56  ;;  %v2652_v40 = vpop.permute.xlu0 %2651  ;;  %v2350_v48 = vpop.permute.xlu1 %2349  ;;  %13460 = vst [vmem:[#allocation107_spill] sm:$0xff] %v10156_v39 }
 0x5f5   : > { %7445 = vmatmul.msk.f32.gmra.mxu2 %vm691_vm2, %v4164_v63  ;;  %v10133_v23 = vadd.f32 %v2652_v40, %v9947_v49  ;;  %v2481_v12 = vmul.f32 %v7802_v4, %v2350_v48  ;;  %v7804_v56 = vpop.eup %7803 }
 0x5f6   : > { %v4628_v7 = vmax.f32 %v4507_v19, 0.0  ;;  %v10143_v19 = vpop.f32.mrf.mxu0 }
 0x5f7   : > { %13458 = vst [vmem:[#allocation105_spill] sm:$0xff] %v10133_v23  ;;  %7389 = vmatmul.msk.f32.gmra.mxu1 %vm3573_vm4, %v10133_v23  ;;  %2669 = vrot.lane.b32.xlu1 %v2481_v12, %s8274_s18 }
 0x5f8   : > { %v4061_v6 = vpop.f32.mrf.mxu1  ;;  %7501 = vmatmul.msk.f32.gmra.mxu3 %vm691_vm2, %v4628_v7 }
 0x5f9   : > { %v4062_v30 = vadd.f32 %v10124_v2, %v4061_v6 }
 0x5fb   : > { %v4165_v25 = vmax.f32 %v4062_v30, 0.0  ;;  %v4509_v27 = vpop.f32.mrf.mxu2  ;;  %v10141_v40 = vpop.permute.xlu2 %2659 }
 0x5fc   : > { %v4510_v63 = vadd.f32 %v9874_v62, %v4509_v27  ;;  %v2346_v4 = vpop.permute.xlu0 %2345  ;;  %v7806_v30 = vpop.eup %7805 }
 0x5fd   : > { %7446 = vmatmul.msk.f32.gmra.mxu2 %vm691_vm2, %v4165_v25  ;;  %v2479_v7 = vmul.f32 %v7804_v56, %v2346_v4  ;;  %v4957_v12 = vpop.f32.mrf.mxu3 }
 0x5fe   : > { %v4629_v48 = vmax.f32 %v4510_v63, 0.0  ;;  %v4958_v6 = vadd.f32 %v10026_v61, %v4957_v12  ;;  %v2098_v12 = vmul.f32 0.5, %v10156_v39 }
 0x5ff   : > { %7390 = vmatmul.msk.f32.gmra.mxu1 %vm3573_vm4, %v10146_v10  ;;  %2665 = vrot.lane.b32.xlu2 %v2479_v7, %s8274_s18  ;;  %v10162_v7 = vadd.f32 %v2656_v17, %v9937_v60  ;;  %v10230_v60 = vld [vmem:[%s8320_s25 + $0x18] sm:$0xff] }
 0x600   : > { %v5093_v27 = vmax.f32 %v4958_v6, 0.0  ;;  %v4064_v0 = vpop.f32.mrf.mxu1  ;;  %7502 = vmatmul.msk.f32.gmra.mxu3 %vm691_vm2, %v4629_v48  ;;  %v10166_v6 = vpop.f32.mrf.mxu0  ;;  %v2223_v17 = vmul.f32 1.442695, %v2098_v12 }
 0x601   : > { %v4065_v25 = vadd.f32 %v10124_v2, %v4064_v0  ;;  %13461 = vst [vmem:[#allocation108_spill] sm:$0xff] %v10162_v7 }
 0x602   : > { %7558 = vmatmul.msk.f32.gmra.mxu0 %vm691_vm2, %v5093_v27  ;;  %7807 = vpow2.f32 %v2223_v17 }
 0x603   : > { %v4166_v56 = vmax.f32 %v4065_v25, 0.0  ;;  %v4512_v63 = vpop.f32.mrf.mxu2  ;;  %v2354_v4 = vpop.permute.xlu2 %2353 }
 0x604   : > { %v4513_v48 = vadd.f32 %v9874_v62, %v4512_v63  ;;  %v2483_v20 = vmul.f32 %v7806_v30, %v2354_v4  ;;  %v10175_v30 = vld [vmem:[%s8320_s25 + $0x8] sm:$0xff] }
 0x605   : > { %7447 = vmatmul.msk.f32.gmra.mxu2 %vm691_vm2, %v4166_v56  ;;  %v2870_v4 = vmul.f32 %v10175_v30, %v10175_v30 }
 0x606   : > { %v4630_v0 = vmax.f32 %v4513_v48, 0.0  ;;  %v4960_v23 = vpop.f32.mrf.mxu3  ;;  %2673 = vrot.lane.b32.xlu0 %v2483_v20, %s8274_s18 }
 0x607   : > { %7391 = vmatmul.msk.f32.gmra.mxu1 %vm3573_vm4, %v10162_v7  ;;  %v4961_v27 = vadd.f32 %v10026_v61, %v4960_v23 }
 0x608   : > { %v4067_v25 = vpop.f32.mrf.mxu1  ;;  %7503 = vmatmul.msk.f32.gmra.mxu3 %vm691_vm2, %v4630_v0  ;;  %v10185_v0 = vpop.f32.mrf.mxu0 }
 0x609   : > { %v4068_v10 = vadd.f32 %v10124_v2, %v4067_v25  ;;  %v5094_v63 = vmax.f32 %v4961_v27, 0.0  ;;  %v7808_v17 = vpop.eup %7807 }
 0x60b   : > { %v4167_v56 = vmax.f32 %v4068_v10, 0.0  ;;  %v4515_v48 = vpop.f32.mrf.mxu2  ;;  %7559 = vmatmul.msk.f32.gmra.mxu0 %vm691_vm2, %v5094_v63 }
 0x60c   : > { %v4516_v23 = vadd.f32 %v9874_v62, %v4515_v48 }
 0x60d   : > { %7448 = vmatmul.msk.f32.gmra.mxu2 %vm691_vm2, %v4167_v56  ;;  %v2658_v12 = vpop.permute.xlu0 %2657  ;;  %v10193_v56 = vld [vmem:[%s8320_s25 + $0x20] sm:$0xff] }
 0x60e   : > { %v10183_v20 = vadd.f32 %v2658_v12, %v9990_v38  ;;  %v4631_v10 = vmax.f32 %v4516_v23, 0.0  ;;  %2999 = vrot.lane.b32.xlu0 %v2870_v4, %s8275_s6  ;;  %v2873_v48 = vmul.f32 %v10193_v56, %v10193_v56 }
 0x610   : > { %13462 = vst [vmem:[#allocation109_spill] sm:$0xff] %v10183_v20  ;;  %v4070_v27 = vpop.f32.mrf.mxu1  ;;  %7392 = vmatmul.msk.f32.gmra.mxu1 %vm3573_vm4, %v10183_v20  ;;  %7504 = vmatmul.msk.f32.gmra.mxu3 %vm691_vm2, %v4631_v10  ;;  %v10207_v7 = vpop.f32.mrf.mxu0 }
 0x611   : > { %v4071_v25 = vadd.f32 %v10124_v2, %v4070_v27  ;;  %v10201_v27 = vadd.f32 %v10141_v40, %v10002_v14  ;;  %v10212_v40 = vld [vmem:[%s8320_s25 + $0x38] sm:$0xff] }
 0x613   : > { %v4168_v63 = vmax.f32 %v4071_v25, 0.0  ;;  %v4518_v23 = vpop.f32.mrf.mxu2  ;;  %13463 = vst [vmem:[#allocation110_spill] sm:$0xff] %v10201_v27 }
 0x614   : > { %v4519_v12 = vadd.f32 %v9874_v62, %v4518_v23 }
 0x615   : > { %7449 = vmatmul.msk.f32.gmra.mxu2 %vm691_vm2, %v4168_v63  ;;  %v2352_v4 = vpop.permute.xlu0 %2351 }
 0x616   : > { %v2482_v10 = vmul.f32 %v7808_v17, %v2352_v4  ;;  %v4632_v20 = vmax.f32 %v4519_v12, 0.0  ;;  %3005 = vrot.lane.b32.xlu0 %v2873_v48, %s8275_s6  ;;  %v2876_v17 = vmul.f32 %v10212_v40, %v10212_v40  ;;  %v10217_v12 = vld [vmem:[%s8320_s25] sm:$0xff] }
 0x617   : > { %v2869_v4 = vmul.f32 %v10217_v12, %v10217_v12 }
 0x618   : > { %v4073_v25 = vpop.f32.mrf.mxu1  ;;  %7393 = vmatmul.msk.f32.gmra.mxu1 %vm3573_vm4, %v10201_v27  ;;  %2671 = vrot.lane.b32.xlu2 %v2482_v10, %s8274_s18 }
 0x619   : > { %v4074_v63 = vadd.f32 %v10124_v2, %v4073_v25  ;;  %7505 = vmatmul.msk.f32.gmra.mxu3 %vm691_vm2, %v4632_v20  ;;  %v10225_v20 = vpop.f32.mrf.mxu0 }
 0x61b   : > { %v4169_v23 = vmax.f32 %v4074_v63, 0.0  ;;  %v4521_v48 = vpop.f32.mrf.mxu2  ;;  %v8138_v63 = vld [vmem:[%s8320_s25 + $0x50] sm:$0xff] }
 0x61c   : > { %v4522_v10 = vadd.f32 %v9874_v62, %v4521_v48  ;;  %v2879_v27 = vmul.f32 %v8138_v63, %v8138_v63  ;;  %v8140_v63 = vld [vmem:[%s8320_s25 + $0x68] sm:$0xff] }
 0x61d   : > { %7450 = vmatmul.msk.f32.gmra.mxu2 %vm691_vm2, %v4169_v23  ;;  %v2872_v23 = vmul.f32 %v10230_v60, %v10230_v60  ;;  %v2882_v14 = vmul.f32 %v8140_v63, %v8140_v63 }
 0x61e   : > { %v4633_v25 = vmax.f32 %v4522_v10, 0.0  ;;  %3011 = vrot.lane.b32.xlu0 %v2876_v17, %s8275_s6 }
 0x620   : > { %2997 = vrot.lane.b32.xlu2 %v2869_v4, %s8275_s6 }
 0x621   : > { %7506 = vmatmul.msk.f32.gmra.mxu3 %vm691_vm2, %v4633_v25  ;;  %v10240_v25 = vpop.f32.mrf.mxu0 }
 0x623   : > { %v4524_v38 = vpop.f32.mrf.mxu2 }
 0x624   : > { %v4963_v49 = vpop.f32.mrf.mxu3  ;;  %v4525_v48 = vadd.f32 %v9874_v62, %v4524_v38  ;;  %v10244_v62 = vld [vmem:[%s8320_s25 + $0x30] sm:$0xff] }
 0x625   : > { %v4964_v17 = vadd.f32 %v10026_v61, %v4963_v49  ;;  %v2875_v49 = vmul.f32 %v10244_v62, %v10244_v62 }
 0x626   : > { %v4634_v4 = vmax.f32 %v4525_v48, 0.0  ;;  %3017 = vrot.lane.b32.xlu0 %v2879_v27, %s8275_s6 }
 0x627   : > { %v5095_v10 = vmax.f32 %v4964_v17, 0.0 }
 0x628   : > { %3003 = vrot.lane.b32.xlu2 %v2872_v23, %s8275_s6  ;;  %v8142_v23 = vld [vmem:[%s8320_s25 + $0x80] sm:$0xff] }
 0x629   : > { %7507 = vmatmul.msk.f32.gmra.mxu3 %vm691_vm2, %v4634_v4  ;;  %7560 = vmatmul.msk.f32.gmra.mxu0 %vm691_vm2, %v5095_v10  ;;  %v2885_v48 = vmul.f32 %v8142_v23, %v8142_v23  ;;  %v8143_v4 = vld [vmem:[%s8320_s25 + $0x48] sm:$0xff]  ;;  %v10254_v63 = vpop.f32.mrf.mxu0 }
 0x62a   : > { %v2878_v10 = vmul.f32 %v8143_v4, %v8143_v4  ;;  %v10274_v4 = vadd.f32 %v10074_v16, %v9588_v28 }
 0x62c   : > { %v4966_v21 = vpop.f32.mrf.mxu3  ;;  %13464 = vst [vmem:[#allocation111_spill] sm:$0xff] %v10274_v4 }
 0x62d   : > { %v4967_v38 = vadd.f32 %v10026_v61, %v4966_v21  ;;  %v10261_v21 = vld [vmem:[%s13175_s1 + $0x13f] ss:$0 sm:$0xff] }
 0x62e   : > { %3023 = vrot.lane.b32.xlu0 %v2882_v14, %s8275_s6  ;;  %v8144_v14 = vld [vmem:[%s8320_s25 + $0x98] sm:$0xff]  ;;  %v5352_v16 = vadd.f32 %v10261_v21, %v10067_v1  ;;  %v8148_v1 = vld [vmem:[%s8320_s25 + $0xc8] sm:$0xff] }
 0x62f   : > { %v5096_v27 = vmax.f32 %v4967_v38, 0.0  ;;  %v5346_v38 = vadd.f32 %v10261_v21, %v10049_v24 }
 0x630   : > { %3009 = vrot.lane.b32.xlu2 %v2875_v49, %s8275_s6  ;;  %v2888_v49 = vmul.f32 %v8144_v14, %v8144_v14 }
 0x631   : > { %7561 = vmatmul.msk.f32.gmra.mxu0 %vm691_vm2, %v5096_v27  ;;  %v8145_v27 = vld [vmem:[%s8320_s25 + $0x60] sm:$0xff] }
 0x632   : > { %v2881_v23 = vmul.f32 %v8145_v27, %v8145_v27  ;;  %v2100_v27 = vmul.f32 0.5, %v10274_v4 }
 0x634   : > { %v4969_v17 = vpop.f32.mrf.mxu3 }
 0x635   : > { %v4970_v41 = vadd.f32 %v10026_v61, %v4969_v17 }
 0x636   : > { %3029 = vrot.lane.b32.xlu0 %v2885_v48, %s8275_s6  ;;  %v5349_v48 = vadd.f32 %v10261_v21, %v10057_v22  ;;  %v8146_v22 = vld [vmem:[%s8320_s25 + $0xb0] sm:$0xff] }
 0x637   : > { %v5097_v29 = vmax.f32 %v4970_v41, 0.0  ;;  %v2891_v45 = vmul.f32 %v8146_v22, %v8146_v22  ;;  %v2894_v22 = vmul.f32 %v8148_v1, %v8148_v1 }
 0x638   : > { %3015 = vrot.lane.b32.xlu2 %v2878_v10, %s8275_s6  ;;  %v7594_v10 = vmul.f32 -1.442695, %v5346_v38  ;;  %v7595_v24 = vmul.f32 -1.442695, %v5349_v48  ;;  %v2227_v38 = vmul.f32 1.442695, %v2100_v27 }
 0x639   : > { %7562 = vmatmul.msk.f32.gmra.mxu0 %vm691_vm2, %v5097_v29  ;;  %v10276_v29 = vpop.f32.mrf.mxu0  ;;  %v7596_v48 = vmul.f32 -1.442695, %v5352_v16 }
 0x63a   : > { %7809 = vpow2.f32 %v7594_v10 }
 0x63b   : > { %7811 = vpow2.f32 %v7595_v24 }
 0x63c   : > { %7813 = vpow2.f32 %v2227_v38 }
 0x63d   : > { %v4972_v41 = vpop.f32.mrf.mxu3  ;;  %7815 = vpow2.f32 %v7596_v48 }
 0x63e   : > { %v4973_v17 = vadd.f32 %v10026_v61, %v4972_v41  ;;  %3035 = vrot.lane.b32.xlu0 %v2888_v49, %s8275_s6  ;;  %v8147_v41 = vld [vmem:[%s8320_s25 + $0x78] sm:$0xff] }
 0x63f   : > { %v2884_v28 = vmul.f32 %v8147_v41, %v8147_v41 }
 0x640   : > { %v5098_v14 = vmax.f32 %v4973_v17, 0.0  ;;  %3021 = vrot.lane.b32.xlu2 %v2881_v23, %s8275_s6  ;;  %v7810_v10 = vpop.eup %7809 }
 0x641   : > { %v10289_v17 = vpop.f32.mrf.mxu0  ;;  %v7812_v24 = vpop.eup %7811 }
 0x642   : > { %7563 = vmatmul.msk.f32.gmra.mxu0 %vm691_vm2, %v5098_v14  ;;  %v7814_v38 = vpop.eup %7813 }
 0x643   : > { %v7816_v1 = vpop.eup %7815 }
 0x644   : > { %v10318_v37 = vadd.f32 1.0, %v7816_v1 }
 0x645   : > { %v4975_v47 = vpop.f32.mrf.mxu3 }
 0x646   : > { %v4976_v49 = vadd.f32 %v10026_v61, %v4975_v47  ;;  %3041 = vrot.lane.b32.xlu0 %v2891_v45, %s8275_s6  ;;  %v8149_v47 = vld [vmem:[%s8320_s25 + $0x90] sm:$0xff]  ;;  %v10297_v45 = vadd.f32 1.0, %v7810_v10  ;;  %vm5828_vm13 = vweird.f32 %v10318_v37 }
 0x647   : > { %v2887_v27 = vmul.f32 %v8149_v47, %v8149_v47  ;;  %v8150_v47 = vld [vmem:[%s8320_s25 + $0xe0] sm:$0xff] }
 0x648   : > { %v5099_v23 = vmax.f32 %v4976_v49, 0.0  ;;  %3027 = vrot.lane.b32.xlu2 %v2884_v28, %s8275_s6  ;;  %v10302_v49 = vadd.f32 1.0, %v7812_v24  ;;  %7817 = vrcp.f32 %v10297_v45  ;;  %v5355_v24 = vadd.f32 %v10261_v21, %v10085_v13 }
 0x649   : > { %vm5798_vm5 = vweird.f32 %v10297_v45 }
 0x64a   : > { %7564 = vmatmul.msk.f32.gmra.mxu0 %vm691_vm2, %v5099_v23  ;;  %v2662_v14 = vpop.permute.xlu1 %2661  ;;  %v10307_v23 = vpop.f32.mrf.mxu0  ;;  %7819 = vrcp.f32 %v10302_v49  ;;  %vm5813_vm9 = vweird.f32 %v10302_v49 }
 0x64b   : > { %v10294_v41 = vadd.f32 %v2662_v14, %v10064_v59  ;;  %7821 = vrcp.f32 %v10318_v37 }
 0x64d   : > { %13465 = vst [vmem:[#allocation112_spill] sm:$0xff] %v10294_v41  ;;  %v4076_v28 = vpop.f32.mrf.mxu1  ;;  %7394 = vmatmul.msk.f32.gmra.mxu1 %vm3573_vm4, %v10294_v41  ;;  %v8151_v41 = vld [vmem:[%s8320_s25 + $0xa8] sm:$0xff] }
 0x64e   : > { %v4077_v16 = vadd.f32 %v10124_v2, %v4076_v28  ;;  %3047 = vrot.lane.b32.xlu0 %v2894_v22, %s8275_s6  ;;  %v2890_v59 = vmul.f32 %v8151_v41, %v8151_v41  ;;  %v10324_v13 = vpop.eup %7817 }
 0x64f   : > { %vm5799_vm6 = vweird.f32 %v10324_v13 }
 0x650   : > { %3033 = vrot.lane.b32.xlu2 %v2887_v27, %s8275_s6  ;;  %v4170_v48 = vmax.f32 %v4077_v16, 0.0  ;;  %v2664_v10 = vpop.permute.xlu0 %2663  ;;  %v2897_v27 = vmul.f32 %v8150_v47, %v8150_v47  ;;  %v10336_v47 = vld [vmem:[%s8320_s25 + $0x10] sm:$0xff]  ;;  %vm10428_vm8 = vmor %vm5798_vm5, %vm5799_vm6 }
 0x651   : > { %v10310_v14 = vadd.f32 %v2664_v10, %v10078_v57  ;;  %v7597_v57 = vmul.f32 -1.442695, %v5355_v24  ;;  %v2871_v24 = vmul.f32 %v10336_v47, %v10336_v47 }
 0x652   : > { %v2356_v22 = vpop.permute.xlu1 %2355  ;;  %7451 = vmatmul.msk.f32.gmra.mxu2 %vm691_vm2, %v4170_v48  ;;  %v10330_v48 = vpop.eup %7819 }
 0x653   : > { %13466 = vst [vmem:[#allocation113_spill] sm:$0xff] %v10310_v14  ;;  %v2484_v28 = vmul.f32 %v7814_v38, %v2356_v22  ;;  %v5358_v38 = vadd.f32 %v10261_v21, %v10127_v32  ;;  %v5794_v22 = vmul.f32 %v10324_v13, %v10297_v45  ;;  %7823 = vpow2.f32 %v7597_v57 }
 0x654   : > { %v5361_v57 = vadd.f32 %v10261_v21, %v10143_v19  ;;  %vm5814_vm7 = vweird.f32 %v10330_v48 }
 0x655   : > { %v4079_v16 = vpop.f32.mrf.mxu1  ;;  %2675 = vrot.lane.b32.xlu1 %v2484_v28, %s8274_s18  ;;  %7395 = vmatmul.msk.f32.gmra.mxu1 %vm3573_vm4, %v10310_v14  ;;  %v7598_v32 = vmul.f32 -1.442695, %v5358_v38  ;;  %v8153_v28 = vld [vmem:[%s8320_s25 + $0xf8] sm:$0xff]  ;;  %v8154_v14 = vld [vmem:[%s8320_s25 + $0xc0] sm:$0xff]  ;;  %v5795_v50 = vsub.f32 1.0, %v5794_v22  ;;  %v10356_v38 = vpop.eup %7821  ;;  %v10361_v22 = vmul.f32 %v8959_v36, %v8959_v36  ;;  %v8156_v36 = vld [vmem:[%s8320_s25 + $0x110] sm:$0xff] }
 0x656   : > { %v4080_v10 = vadd.f32 %v10124_v2, %v4079_v16  ;;  %3053 = vrot.lane.b32.xlu0 %v2897_v27, %s8275_s6  ;;  %v10340_v27 = vpop.f32.mrf.mxu0  ;;  %v2900_v16 = vmul.f32 %v8153_v28, %v8153_v28  ;;  %v2893_v5 = vmul.f32 %v8154_v14, %v8154_v14  ;;  %vm10453_vm11 = vmor %vm5813_vm9, %vm5814_vm7  ;;  %vm5829_vm14 = vweird.f32 %v10356_v38 }
 0x657   : > { %7825 = vpow2.f32 %v7598_v32  ;;  %v5796_v19 = vmul.f32 %v10324_v13, %v5795_v50  ;;  %v5364_v32 = vadd.f32 %v10261_v21, %v10166_v6  ;;  %v10385_v50 = vmul.f32 %v8996_v15, %v8996_v15  ;;  %vm10528_vm15 = vmor %vm5828_vm13, %vm5829_vm14 }
 0x658   : > { %v4171_v41 = vmax.f32 %v4080_v10, 0.0  ;;  %3039 = vrot.lane.b32.xlu2 %v2890_v59, %s8275_s6  ;;  %v5809_v10 = vmul.f32 %v10330_v48, %v10302_v49  ;;  %v10401_v15 = vmul.f32 %v9062_v9, %v9062_v9  ;;  %v5802_v9 = vand.u32 2147483647, %v10297_v45 }
 0x659   : > { %v2666_v1 = vpop.permute.xlu2 %2665  ;;  %13469 = vst [vmem:[#allocation116_spill] sm:$0xff] %v10385_v50  ;;  %v5367_v50 = vadd.f32 %v10261_v21, %v10185_v0  ;;  %v13481_v0 = vld [vmem:[#allocation27_spill] sm:$0xff] }
 0x65a   : > { %7452 = vmatmul.msk.f32.gmra.mxu2 %vm691_vm2, %v4171_v41  ;;  %v10344_v59 = vadd.f32 %v2666_v1, %v10111_v3  ;;  %v5810_v41 = vsub.f32 1.0, %v5809_v10  ;;  %v7824_v1 = vpop.eup %7823  ;;  %v7599_v10 = vmul.f32 -1.442695, %v5361_v57  ;;  %v8157_v3 = vld [vmem:[%s8320_s25 + $0xd8] sm:$0xff]  ;;  %vm5803_vm10 = vcmp.eq.f32.partialorder %v5802_v9, 8.507059e+37  ;;  %v8160_v9 = vld [vmem:[%s8320_s25 + $0xf0] sm:$0xff] }
 0x65b   : > { %v2896_v42 = vmul.f32 %v8157_v3, %v8157_v3  ;;  %v5797_v3 = vadd.f32 %v10324_v13, %v5796_v19 }
 0x65c   : > { %13467 = vst [vmem:[#allocation114_spill] sm:$0xff] %v10344_v59  ;;  %v5811_v6 = vmul.f32 %v10330_v48, %v5810_v41  ;;  %v10405_v41 = vmul.f32 %v9136_v33, %v9136_v33  ;;  %v5804_v33 = vand.u32 2147483648, %v10297_v45  ;;  %7827 = vpow2.f32 %v7599_v10 }
 0x65d   : > { %3001 = vrot.lane.b32.xlu1 %v2871_v24, %s8275_s6  ;;  %7396 = vmatmul.msk.f32.gmra.mxu1 %vm3573_vm4, %v10344_v59  ;;  %v10365_v24 = vmul.f32 %v8979_v54, %v8979_v54  ;;  %v2903_v59 = vmul.f32 %v8156_v36, %v8156_v36  ;;  %v10381_v54 = vmul.f32 %v9030_v58, %v9030_v58  ;;  %v7826_v57 = vpop.eup %7825  ;;  %v13473_v36 = vld [vmem:[#allocation18_spill] sm:$0xff]  ;;  %v5817_v45 = vand.u32 2147483647, %v10302_v49 }
 0x65e   : > { %3059 = vrot.lane.b32.xlu0 %v2900_v16, %s8275_s6  ;;  %v10393_v52 = vpop.f32.mrf.mxu0  ;;  %v10397_v58 = vmul.f32 %v9010_v34, %v9010_v34  ;;  %v7600_v34 = vmul.f32 -1.442695, %v5364_v32  ;;  %v10423_v32 = vadd.f32 1.0, %v7826_v57  ;;  %v10436_v10 = vmul.f32 %v9223_v26, %v9223_v26  ;;  %v10447_v57 = vld [vmem:[%s8320_s25 + $0x40] sm:$0xff] }
 0x65f   : > { %v5805_v26 = vor.u32 1.1754944e-38, %v5804_v33  ;;  %v2899_v33 = vmul.f32 %v8160_v9, %v8160_v9  ;;  %vm5818_vm12 = vcmp.eq.f32.partialorder %v5817_v45, 8.507059e+37 }
 0x660   : > { %3045 = vrot.lane.b32.xlu2 %v2893_v5, %s8275_s6  ;;  %v2668_v14 = vpop.permute.xlu0 %2667  ;;  %v10374_v5 = vld [vmem:[%s8320_s25 + $0x28] sm:$0xff]  ;;  %vm5858_vm7 = vweird.f32 %v10423_v32 }
 0x661   : > { %v10371_v28 = vadd.f32 %v2668_v14, %v10095_v31  ;;  %v2874_v16 = vmul.f32 %v10374_v5, %v10374_v5  ;;  %v5824_v14 = vmul.f32 %v10356_v38, %v10318_v37  ;;  %v10390_v31 = vadd.f32 1.0, %v7824_v1 }
 0x662   : > { %v10409_v1 = vmul.f32 %v9049_v18, %v9049_v18  ;;  %v5812_v18 = vadd.f32 %v10330_v48, %v5811_v6  ;;  %v10440_v6 = vmul.f32 %v13473_v36, %v13473_v36 }
 0x663   : > { %13468 = vst [vmem:[#allocation115_spill] sm:$0xff] %v10371_v28  ;;  %v5825_v19 = vsub.f32 1.0, %v5824_v14  ;;  %7829 = vrcp.f32 %v10390_v31  ;;  %vm5843_vm3 = vweird.f32 %v10390_v31 }
 0x664   : > { %13470 = vst [vmem:[#allocation117_spill] sm:$0xff] %v10409_v1  ;;  %7831 = vpow2.f32 %v7600_v34 }
 0x665   : > { %3007 = vrot.lane.b32.xlu1 %v2874_v16, %s8275_s6  ;;  %7397 = vmatmul.msk.f32.gmra.mxu1 %vm3573_vm4, %v10371_v28  ;;  %13474 = vst [vmem:[#allocation18_spill] sm:$0xff] %v10440_v6  ;;  %v2877_v28 = vmul.f32 %v10447_v57, %v10447_v57  ;;  %v5826_v34 = vmul.f32 %v10356_v38, %v5825_v19  ;;  %7833 = vrcp.f32 %v10423_v32  ;;  %v7828_v6 = vpop.eup %7827 }
 0x666   : > { %3065 = vrot.lane.b32.xlu0 %v2903_v59, %s8275_s6  ;;  %v5819_v59 = vand.u32 2147483648, %v10302_v49  ;;  %v10489_v45 = vpop.f32.mrf.mxu0 }
 0x668   : > { %3051 = vrot.lane.b32.xlu2 %v2896_v42, %s8275_s6  ;;  %v5801_v42 = vsel %vm10428_vm8, %v10324_v13, %v5797_v3  ;;  %v8159_v13 = vld [vmem:[%s8320_s25 + $0x128] sm:$0xff]  ;;  %v5816_v3 = vsel %vm10453_vm11, %v10330_v48, %v5812_v18  ;;  %v5820_v35 = vor.u32 1.1754944e-38, %v5819_v59  ;;  %v5370_v48 = vadd.f32 %v10261_v21, %v10207_v7  ;;  %v13482_v7 = vld [vmem:[#allocation26_spill] sm:$0xff] }
 0x669   : > { %v2670_v14 = vpop.permute.xlu1 %2669  ;;  %v2906_v49 = vmul.f32 %v8159_v13, %v8159_v13  ;;  %v5806_v1 = vsel %vm5803_vm10, %v5805_v26, %v5801_v42  ;;  %v10473_v13 = vpop.eup %7829  ;;  %v13480_v18 = vld [vmem:[#allocation23_spill] sm:$0xff]  ;;  %v10486_v59 = vmul.f32 %v13481_v0, %v13481_v0  ;;  %v13483_v26 = vld [vmem:[#allocation30_spill] sm:$0xff] }
 0x66a   : > { %v10458_v16 = vadd.f32 %v2670_v14, %v10104_v53  ;;  %v13478_v14 = vld [vmem:[#allocation25_spill] sm:$0xff]  ;;  %v10482_v19 = vmul.f32 %v13480_v18, %v13480_v18  ;;  %v5821_v42 = vsel %vm5818_vm12, %v5820_v35, %v5816_v3  ;;  %v10498_v36 = vmul.f32 %v13483_v26, %v13483_v26  ;;  %v7832_v9 = vpop.eup %7831 }
 0x66b   : > { %v10471_v53 = vmul.f32 %v13478_v14, %v13478_v14  ;;  %v6753_v14 = vsub.f32 %v10217_v12, %v5806_v1  ;;  %v5827_v35 = vadd.f32 %v10356_v38, %v5826_v34  ;;  %v10503_v3 = vadd.f32 1.0, %v7828_v6  ;;  %v10512_v12 = vld [vmem:[%s13175_s1 + $0x13d] ss:$0 sm:$0xff]  ;;  %v10515_v34 = vpop.eup %7833 }
 0x66c   : > { %13477 = vst [vmem:[#allocation118_spill] sm:$0xff] %v10458_v16  ;;  %v5839_v0 = vmul.f32 %v10473_v13, %v10390_v31  ;;  %v6754_v6 = vsub.f32 %v10175_v30, %v5821_v42  ;;  %v7602_v26 = vmul.f32 -1.442695, %v5370_v48  ;;  %v8163_v48 = vld [vmem:[%s8320_s25 + $0x140] sm:$0xff]  ;;  %vm5844_vm6 = vweird.f32 %v10473_v13 }
 0x66d   : > { %13479 = vst [vmem:[#allocation25_spill] sm:$0xff] %v10471_v53  ;;  %3013 = vrot.lane.b32.xlu1 %v2877_v28, %s8275_s6  ;;  %7398 = vmatmul.msk.f32.gmra.mxu1 %vm3573_vm4, %v10458_v16  ;;  %v10494_v28 = vmul.f32 %v13482_v7, %v13482_v7  ;;  %v7601_v7 = vmul.f32 -1.442695, %v5367_v50  ;;  %v10532_v53 = vadd.f32 1.0, %v7832_v9  ;;  %v2909_v55 = vmul.f32 %v8163_v48, %v8163_v48  ;;  %vm10627_vm8 = vmor %vm5843_vm3, %vm5844_vm6 }
 0x66e   : > { %3071 = vrot.lane.b32.xlu0 %v2906_v49, %s8275_s6  ;;  %13484 = vst [vmem:[#allocation23_spill] sm:$0xff] %v10498_v36  ;;  %v5832_v49 = vand.u32 2147483647, %v10318_v37  ;;  %v10520_v36 = vld [vmem:[%s8320_s25 + $0x58] sm:$0xff]  ;;  %v6817_v43 = vmul.f32 %v6753_v14, %v6753_v14  ;;  %v5831_v4 = vsel %vm10528_vm15, %v10356_v38, %v5827_v35  ;;  %7835 = vrcp.f32 %v10503_v3  ;;  %v13489_v38 = vld [vmem:[#allocation32_spill] sm:$0xff] }
 0x66f   : > { %13485 = vst [vmem:[#allocation27_spill] sm:$0xff] %v10520_v36  ;;  %v2880_v50 = vmul.f32 %v10520_v36, %v10520_v36  ;;  %v5840_v44 = vsub.f32 1.0, %v5839_v0  ;;  %v5854_v9 = vmul.f32 %v10515_v34, %v10423_v32  ;;  %7837 = vpow2.f32 %v7601_v7  ;;  %v8166_v36 = vld [vmem:[%s8320_s25 + $0x120] sm:$0xff] }
 0x670   : > { %v4527_v18 = vpop.f32.mrf.mxu2  ;;  %3057 = vrot.lane.b32.xlu2 %v2899_v33, %s8275_s6  ;;  %v5834_v33 = vand.u32 2147483648, %v10318_v37  ;;  %v5849_v14 = vand.u32 2147483648, %v10390_v31  ;;  %7839 = vpow2.f32 %v7602_v26  ;;  %v10553_v8 = vmul.f32 %v13489_v38, %v13489_v38 }
 0x671   : > { %v4528_v1 = vadd.f32 %v10512_v12, %v4527_v18  ;;  %v6818_v35 = vmul.f32 %v6754_v6, %v6754_v6  ;;  %vm5833_vm0 = vcmp.eq.f32.partialorder %v5832_v49, 8.507059e+37  ;;  %7841 = vrcp.f32 %v10532_v53 }
 0x672   : > { %v2672_v16 = vpop.permute.xlu2 %2671  ;;  %v6881_v49 = vsel %vm214_vm1, %v6817_v43, 0.0  ;;  %v5841_v48 = vmul.f32 %v10473_v13, %v5840_v44  ;;  %v10584_v44 = vld [vmem:[%s8320_s25 + $0x70] sm:$0xff]  ;;  %vm5859_vm10 = vweird.f32 %v10515_v34  ;;  %vm5873_vm12 = vweird.f32 %v10503_v3 }
 0x673   : > { %v4635_v30 = vmax.f32 %v4528_v1, 0.0  ;;  %v10535_v42 = vadd.f32 %v2672_v16, %v10156_v39  ;;  %v5835_v1 = vor.u32 1.1754944e-38, %v5834_v33  ;;  %v5847_v33 = vand.u32 2147483647, %v10390_v31  ;;  %13496 = vst [vmem:[#allocation119_spill] sm:$0xff] %v10584_v44  ;;  %vm10674_vm11 = vmor %vm5858_vm7, %vm5859_vm10 }
 0x674   : > { %v4082_v37 = vpop.f32.mrf.mxu1  ;;  %vm5888_vm15 = vweird.f32 %v10532_v53 }
 0x675   : > { %13488 = vst [vmem:[#allocation26_spill] sm:$0xff] %v10535_v42  ;;  %7508 = vmatmul.msk.f32.gmra.mxu3 %vm691_vm2, %v4635_v30  ;;  %v4083_v16 = vadd.f32 %v10124_v2, %v4082_v37  ;;  %3019 = vrot.lane.b32.xlu1 %v2880_v50, %s8275_s6  ;;  %v5836_v7 = vsel %vm5833_vm0, %v5835_v1, %v5831_v4  ;;  %v13490_v50 = vld [vmem:[#allocation34_spill] sm:$0xff]  ;;  %v13492_v30 = vld [vmem:[#allocation36_spill] sm:$0xff]  ;;  %v10569_v4 = vpop.f32.mrf.mxu0  ;;  %v10576_v1 = vor.u32 1.1754944e-38, %v5849_v14  ;;  %vm10592_vm5 = vcmp.eq.f32.partialorder %v5847_v33, 8.507059e+37 }
 0x676   : > { %7399 = vmatmul.msk.f32.gmra.mxu1 %vm3573_vm4, %v10535_v42  ;;  %3077 = vrot.lane.b32.xlu0 %v2909_v55, %s8275_s6  ;;  %v10561_v18 = vmul.f32 %v13490_v50, %v13490_v50  ;;  %v10565_v6 = vmul.f32 %v13492_v30, %v13492_v30  ;;  %v5855_v55 = vsub.f32 1.0, %v5854_v9  ;;  %v2883_v9 = vmul.f32 %v10584_v44, %v10584_v44 }
 0x677   : > { %v4172_v0 = vmax.f32 %v4083_v16, 0.0  ;;  %v10573_v16 = vpop.eup %7835  ;;  %v6755_v50 = vsub.f32 %v10336_v47, %v5836_v7  ;;  %v2905_v47 = vmul.f32 %v8166_v36, %v8166_v36 }
 0x678   : > { %v4530_v26 = vpop.f32.mrf.mxu2  ;;  %3063 = vrot.lane.b32.xlu2 %v2902_v11, %s8275_s6  ;;  %13491 = vst [vmem:[#allocation30_spill] sm:$0xff] %v10561_v18  ;;  %v2674_v11 = vpop.permute.xlu0 %2673  ;;  %v5856_v33 = vmul.f32 %v10515_v34, %v5855_v55  ;;  %vm5874_vm13 = vweird.f32 %v10573_v16 }
 0x679   : > { %13493 = vst [vmem:[#allocation32_spill] sm:$0xff] %v10565_v6  ;;  %v4531_v37 = vadd.f32 %v10512_v12, %v4530_v26  ;;  %7453 = vmatmul.msk.f32.gmra.mxu2 %vm691_vm2, %v4172_v0  ;;  %v10581_v43 = vadd.f32 %v2674_v11, %v10119_v46  ;;  %v7838_v26 = vpop.eup %7837  ;;  %v6882_v0 = vsel %vm214_vm1, %v6818_v35, 0.0  ;;  %v5862_v11 = vand.u32 2147483647, %v10423_v32  ;;  %vm10744_vm3 = vmor %vm5873_vm12, %vm5874_vm13 }
 0x67a   : > { %v10578_v38 = vpop.permute.xlu2 %2997  ;;  %v7840_v39 = vpop.eup %7839  ;;  %v5373_v46 = vadd.f32 %v10261_v21, %v10225_v20  ;;  %v10612_v20 = vadd.f32 1.0, %v7838_v26 }
 0x67b   : > { %13494 = vst [vmem:[#allocation34_spill] sm:$0xff] %v10578_v38  ;;  %v4636_v30 = vmax.f32 %v4531_v37, 0.0  ;;  %v4978_v42 = vpop.f32.mrf.mxu3  ;;  %v10601_v7 = vpop.eup %7841  ;;  %v5842_v37 = vadd.f32 %v10473_v13, %v5841_v48  ;;  %v10608_v38 = vadd.f32 %v6882_v0, %v6881_v49  ;;  %v10619_v48 = vadd.f32 1.0, %v7840_v39  ;;  %v13499_v49 = vld [vmem:[#allocation3_spill] sm:$0xff] }
 0x67c   : > { %13495 = vst [vmem:[#allocation36_spill] sm:$0xff] %v10581_v43  ;;  %v4979_v44 = vadd.f32 %v10026_v61, %v4978_v42  ;;  %v4085_v35 = vpop.f32.mrf.mxu1  ;;  %v5869_v61 = vmul.f32 %v10573_v16, %v10503_v3  ;;  %v5864_v42 = vand.u32 2147483648, %v10423_v32  ;;  %v6819_v0 = vmul.f32 %v6755_v50, %v6755_v50 }
 0x67d   : > { %7509 = vmatmul.msk.f32.gmra.mxu3 %vm691_vm2, %v4636_v30  ;;  %v4086_v14 = vadd.f32 %v10124_v2, %v4085_v35  ;;  %3025 = vrot.lane.b32.xlu1 %v2883_v9, %s8275_s6  ;;  %vm10631_vm9 = vcmp.eq.f32.partialorder %v5862_v11, 8.507059e+37  ;;  %v5884_v39 = vmul.f32 %v10601_v7, %v10532_v53  ;;  %v7603_v26 = vmul.f32 -1.442695, %v5373_v46 }
 0x67e   : > { %v5100_v36 = vmax.f32 %v4979_v44, 0.0  ;;  %7400 = vmatmul.msk.f32.gmra.mxu1 %vm3573_vm4, %v10581_v43  ;;  %3319 = vrot.lane.b32.xlu0 %v13499_v49, %s8274_s18  ;;  %v5846_v31 = vsel %vm10627_vm8, %v10473_v13, %v5842_v37  ;;  %v5857_v50 = vadd.f32 %v10515_v34, %v5856_v33  ;;  %v5870_v46 = vsub.f32 1.0, %v5869_v61  ;;  %v8167_v13 = vld [vmem:[%s8320_s25 + $0x88] sm:$0xff]  ;;  %v8169_v43 = vld [vmem:[%s8320_s25 + $0x138] sm:$0xff] }
 0x67f   : > { %v4173_v55 = vmax.f32 %v4086_v14, 0.0  ;;  %7843 = vrcp.f32 %v10612_v20  ;;  %v2886_v37 = vmul.f32 %v8167_v13, %v8167_v13  ;;  %v5879_v33 = vand.u32 2147483648, %v10503_v3 }
 0x680   : > { %v4533_v30 = vpop.f32.mrf.mxu2  ;;  %7565 = vmatmul.msk.f32.gmra.mxu0 %vm691_vm2, %v5100_v36  ;;  %3069 = vrot.lane.b32.xlu2 %v2905_v47, %s8275_s6  ;;  %v10646_v11 = vpop.permute.xlu0 %2999  ;;  %7845 = vrcp.f32 %v10619_v48  ;;  %v5885_v44 = vsub.f32 1.0, %v5884_v39  ;;  %v5861_v6 = vsel %vm10674_vm11, %v10515_v34, %v5857_v50  ;;  %v5871_v32 = vmul.f32 %v10573_v16, %v5870_v46 }
 0x681   : > { %v4534_v14 = vadd.f32 %v10512_v12, %v4533_v30  ;;  %7454 = vmatmul.msk.f32.gmra.mxu2 %vm691_vm2, %v4173_v55  ;;  %13504 = vst [vmem:[#allocation3_spill] sm:$0xff] %v10646_v11  ;;  %v10656_v36 = vpop.f32.mrf.mxu0  ;;  %7847 = vpow2.f32 %v7603_v26  ;;  %v10663_v30 = vld [vmem:[%s13175_s1 + $0x13e] ss:$0 sm:$0xff]  ;;  %v2908_v11 = vmul.f32 %v8169_v43, %v8169_v43  ;;  %v5877_v26 = vand.u32 2147483647, %v10503_v3 }
 0x682   : > { %v10649_v35 = vpop.permute.xlu2 %3003  ;;  %v10689_v61 = vsel %vm214_vm1, %v6819_v0, 0.0  ;;  %v5886_v50 = vmul.f32 %v10601_v7, %v5885_v44  ;;  %v5382_v9 = vadd.f32 %v10261_v21, %v10276_v29  ;;  %vm5889_vm0 = vweird.f32 %v10601_v7 }
 0x683   : > { %v4637_v55 = vmax.f32 %v4534_v14, 0.0  ;;  %v4981_v49 = vpop.f32.mrf.mxu3  ;;  %v5851_v14 = vsel %vm10592_vm5, %v10576_v1, %v5846_v31  ;;  %v5865_v1 = vor.u32 1.1754944e-38, %v5864_v42  ;;  %v5880_v42 = vor.u32 1.1754944e-38, %v5879_v33  ;;  %vm10758_vm5 = vmor %vm5888_vm15, %vm5889_vm0 }
 0x684   : > { %v4982_v13 = vadd.f32 %v10663_v30, %v4981_v49  ;;  %v4088_v47 = vpop.f32.mrf.mxu1  ;;  %v5376_v49 = vadd.f32 %v10261_v21, %v10240_v25  ;;  %v5379_v25 = vadd.f32 %v10261_v21, %v10254_v63  ;;  %v6756_v34 = vsub.f32 %v10230_v60, %v5851_v14 }
 0x685   : > { %7510 = vmatmul.msk.f32.gmra.mxu3 %vm691_vm2, %v4637_v55  ;;  %v4089_v43 = vadd.f32 %v10124_v2, %v4088_v47  ;;  %3031 = vrot.lane.b32.xlu1 %v2886_v37, %s8275_s6  ;;  %v13507_v47 = vld [vmem:[#allocation6_spill] sm:$0xff]  ;;  %v10696_v39 = vpop.eup %7843  ;;  %v5866_v46 = vsel %vm10631_vm9, %v5865_v1, %v5861_v6  ;;  %vm10707_vm14 = vcmp.eq.f32.partialorder %v5877_v26, 8.507059e+37  ;;  %v5892_v60 = vand.u32 2147483647, %v10532_v53 }
 0x686   : > { %v5101_v31 = vmax.f32 %v4982_v13, 0.0  ;;  %3325 = vrot.lane.b32.xlu0 %v13507_v47, %s8274_s18  ;;  %v10703_v63 = vpop.eup %7845  ;;  %v7604_v33 = vmul.f32 -1.442695, %v5376_v49  ;;  %v8170_v6 = vld [vmem:[%s8320_s25 + $0xa0] sm:$0xff]  ;;  %v5899_v49 = vmul.f32 %v10696_v39, %v10612_v20  ;;  %v5894_v26 = vand.u32 2147483648, %v10532_v53 }
 0x687   : > { %v4174_v55 = vmax.f32 %v4089_v43, 0.0  ;;  %v7848_v14 = vpop.eup %7847  ;;  %v2889_v1 = vmul.f32 %v8170_v6, %v8170_v6  ;;  %v5914_v6 = vmul.f32 %v10703_v63, %v10619_v48  ;;  %v7606_v47 = vmul.f32 -1.442695, %v5382_v9 }
 0x688   : > { %v4536_v0 = vpop.f32.mrf.mxu2  ;;  %7566 = vmatmul.msk.f32.gmra.mxu0 %vm691_vm2, %v5101_v31  ;;  %3075 = vrot.lane.b32.xlu2 %v2908_v11, %s8275_s6  ;;  %v10714_v13 = vpop.permute.xlu0 %3005  ;;  %v5872_v11 = vadd.f32 %v10573_v16, %v5871_v32  ;;  %v7605_v31 = vmul.f32 -1.442695, %v5379_v25  ;;  %v5887_v32 = vadd.f32 %v10601_v7, %v5886_v50  ;;  %7849 = vpow2.f32 %v7604_v33 }
 0x689   : > { %v4537_v44 = vadd.f32 %v10512_v12, %v4536_v0  ;;  %7455 = vmatmul.msk.f32.gmra.mxu2 %vm691_vm2, %v4174_v55  ;;  %13510 = vst [vmem:[#allocation6_spill] sm:$0xff] %v10714_v13  ;;  %v6820_v0 = vmul.f32 %v6756_v34, %v6756_v34  ;;  %v10734_v13 = vadd.f32 1.0, %v7848_v14  ;;  %v10736_v25 = vpop.f32.mrf.mxu0  ;;  %v6757_v34 = vsub.f32 %v10193_v56, %v5866_v46 }
 0x68a   : > { %v10719_v43 = vpop.permute.xlu2 %3009  ;;  %vm10762_vm6 = vcmp.eq.f32.partialorder %v5892_v60, 8.507059e+37  ;;  %v5900_v46 = vsub.f32 1.0, %v5899_v49  ;;  %7851 = vpow2.f32 %v7605_v31  ;;  %v5385_v53 = vadd.f32 %v10261_v21, %v10289_v17  ;;  %v13518_v60 = vld [vmem:[#allocation2_spill] sm:$0xff] }
 0x68b   : > { %v4638_v55 = vmax.f32 %v4537_v44, 0.0  ;;  %v4984_v29 = vpop.f32.mrf.mxu3  ;;  %v5915_v49 = vsub.f32 1.0, %v5914_v6  ;;  %7853 = vrcp.f32 %v10734_v13  ;;  %v10800_v3 = vmul.f32 %v6757_v34, %v6757_v34 }
 0x68c   : > { %v4985_v14 = vadd.f32 %v10663_v30, %v4984_v29  ;;  %v5895_v29 = vor.u32 1.1754944e-38, %v5894_v26  ;;  %7855 = vpow2.f32 %v7606_v47  ;;  %v6885_v47 = vadd.f32 %v10689_v61, %v10608_v38 }
 0x68d   : > { %v4091_v44 = vpop.f32.mrf.mxu1  ;;  %7511 = vmatmul.msk.f32.gmra.mxu3 %vm691_vm2, %v4638_v55  ;;  %3037 = vrot.lane.b32.xlu1 %v2889_v1, %s8275_s6  ;;  %v5876_v55 = vsel %vm10744_vm3, %v10573_v16, %v5872_v11  ;;  %v5891_v16 = vsel %vm10758_vm5, %v10601_v7, %v5887_v32  ;;  %v8171_v32 = vld [vmem:[%s8320_s25 + $0xb8] sm:$0xff]  ;;  %v7607_v56 = vmul.f32 -1.442695, %v5385_v53  ;;  %vm5903_vm7 = vweird.f32 %v10612_v20 }
 0x68e   : > { %v4092_v33 = vadd.f32 %v10124_v2, %v4091_v44  ;;  %v13517_v2 = vld [vmem:[#allocation10_spill] sm:$0xff]  ;;  %v5102_v11 = vmax.f32 %v4985_v14, 0.0  ;;  %v5881_v7 = vsel %vm10707_vm14, %v5880_v42, %v5876_v55  ;;  %v2892_v6 = vmul.f32 %v8171_v32, %v8171_v32  ;;  %v7850_v50 = vpop.eup %7849 }
 0x68f   : > { %3331 = vrot.lane.b32.xlu0 %v13517_v2, %s8274_s18  ;;  %v5896_v14 = vsel %vm10762_vm6, %v5895_v29, %v5891_v16  ;;  %v6886_v55 = vsel %vm214_vm1, %v6820_v0, 0.0  ;;  %v5916_v16 = vmul.f32 %v10703_v63, %v5915_v49  ;;  %v10814_v53 = vadd.f32 1.0, %v7850_v50 }
 0x690   : > { %v4175_v9 = vmax.f32 %v4092_v33, 0.0  ;;  %v4539_v1 = vpop.f32.mrf.mxu2  ;;  %3317 = vrot.lane.b32.xlu2 %v13518_v60, %s8274_s18  ;;  %v10777_v44 = vpop.permute.xlu0 %3011  ;;  %7567 = vmatmul.msk.f32.gmra.mxu0 %vm691_vm2, %v5102_v11  ;;  %v5901_v33 = vmul.f32 %v10696_v39, %v5900_v46  ;;  %v13519_v11 = vld [vmem:[#allocation38_spill] sm:$0xff]  ;;  %v10803_v46 = vsub.f32 %v10374_v5, %v5881_v7  ;;  %v10811_v0 = vsub.f32 %v10244_v62, %v5896_v14  ;;  %v10820_v5 = vld [vmem:[%s13175_s1 + $0x13c] ss:$0 sm:$0xff] }
 0x691   : > { %v4540_v31 = vadd.f32 %v10512_v12, %v4539_v1  ;;  %v7852_v1 = vpop.eup %7851  ;;  %v10806_v60 = vpop.f32.mrf.mxu0  ;;  %vm5904_vm8 = vweird.f32 %v10696_v39  ;;  %v5907_v62 = vand.u32 2147483647, %v10612_v20  ;;  %v13520_v7 = vld [vmem:[#allocation13_spill] sm:$0xff]  ;;  %7857 = vpow2.f32 %v7607_v56 }
 0x692   : > { %7456 = vmatmul.msk.f32.gmra.mxu2 %vm691_vm2, %v4175_v9  ;;  %v10783_v17 = vpop.permute.xlu2 %3015  ;;  %v10798_v9 = vmul.f32 %v13519_v11, %v13519_v11  ;;  %v10823_v29 = vpop.eup %7853  ;;  %v5902_v49 = vadd.f32 %v10696_v39, %v5901_v33  ;;  %v5917_v33 = vadd.f32 %v10703_v63, %v5916_v16  ;;  %vm5919_vm9 = vweird.f32 %v10703_v63  ;;  %vm10845_vm10 = vmor %vm5903_vm7, %vm5904_vm8 }
 0x693   : > { %v4639_v37 = vmax.f32 %v4540_v31, 0.0  ;;  %v4987_v2 = vpop.f32.mrf.mxu3  ;;  %v5909_v31 = vand.u32 2147483648, %v10612_v20  ;;  %v7856_v32 = vpop.eup %7855  ;;  %v5924_v11 = vand.u32 2147483648, %v10619_v48  ;;  %7859 = vrcp.f32 %v10814_v53 }
 0x694   : > { %v4988_v38 = vadd.f32 %v10663_v30, %v4987_v2  ;;  %v13521_v2 = vld [vmem:[#allocation5_spill] sm:$0xff]  ;;  %vm5918_vm11 = vweird.f32 %v10619_v48  ;;  %vm5908_vm12 = vcmp.eq.f32.partialorder %v5907_v62, 8.507059e+37  ;;  %v5388_v62 = vadd.f32 %v10261_v21, %v10307_v23 }
 0x695   : > { %v4094_v61 = vpop.f32.mrf.mxu1  ;;  %7512 = vmatmul.msk.f32.gmra.mxu3 %vm691_vm2, %v4639_v37  ;;  %3043 = vrot.lane.b32.xlu1 %v2892_v6, %s8275_s6  ;;  %v10831_v6 = vadd.f32 1.0, %v7852_v1  ;;  %v5929_v1 = vmul.f32 %v10823_v29, %v10734_v13  ;;  %vm10871_vm13 = vmor %vm5918_vm11, %vm5919_vm9  ;;  %v5925_v56 = vor.u32 1.1754944e-38, %v5924_v11  ;;  %v6822_v23 = vmul.f32 %v10803_v46, %v10803_v46  ;;  %v13529_v11 = vld [vmem:[#allocation8_spill] sm:$0xff] }
 0x696   : > { %v4095_v34 = vadd.f32 %v10820_v5, %v4094_v61  ;;  %v5103_v50 = vmax.f32 %v4988_v38, 0.0  ;;  %vm5934_vm15 = vweird.f32 %v10823_v29  ;;  %vm5933_vm0 = vweird.f32 %v10734_v13 }
 0x697   : > { %3337 = vrot.lane.b32.xlu0 %v13520_v7, %s8274_s18  ;;  %7861 = vrcp.f32 %v10831_v6  ;;  %vm10949_vm3 = vmor %vm5933_vm0, %vm5934_vm15  ;;  %vm5948_vm6 = vweird.f32 %v10814_v53 }
 0x698   : > { %v4176_v14 = vmax.f32 %v4095_v34, 0.0  ;;  %v4542_v37 = vpop.f32.mrf.mxu2  ;;  %3323 = vrot.lane.b32.xlu2 %v13521_v2, %s8274_s18  ;;  %v10839_v7 = vpop.permute.xlu0 %3017  ;;  %7568 = vmatmul.msk.f32.gmra.mxu0 %vm691_vm2, %v5103_v50  ;;  %v8173_v34 = vld [vmem:[%s8320_s25 + $0xd0] sm:$0xff]  ;;  %v10862_v2 = vadd.f32 1.0, %v7856_v32  ;;  %v5910_v50 = vor.u32 1.1754944e-38, %v5909_v31 }
 0x699   : > { %v4543_v61 = vadd.f32 %v10512_v12, %v4542_v37  ;;  %13522 = vst [vmem:[#allocation10_spill] sm:$0xff] %v10839_v7  ;;  %v2895_v20 = vmul.f32 %v8173_v34, %v8173_v34  ;;  %v5906_v37 = vsel %vm10845_vm10, %v10696_v39, %v5902_v49  ;;  %v6887_v7 = vadd.f32 %v6886_v55, %v6885_v47  ;;  %v13527_v31 = vld [vmem:[#allocation40_spill] sm:$0xff] }
 0x69a   : > { %7457 = vmatmul.msk.f32.gmra.mxu2 %vm691_vm2, %v4176_v14  ;;  %v10854_v16 = vpop.permute.xlu2 %3021  ;;  %v5922_v14 = vand.u32 2147483647, %v10619_v48  ;;  %v10879_v32 = vmul.f32 %v13527_v31, %v13527_v31  ;;  %v7858_v48 = vpop.eup %7857  ;;  %v5921_v47 = vsel %vm10871_vm13, %v10703_v63, %v5917_v33  ;;  %v5930_v55 = vsub.f32 1.0, %v5929_v1 }
 0x69b   : > { %v4640_v42 = vmax.f32 %v4543_v61, 0.0  ;;  %v5911_v61 = vsel %vm5908_vm12, %v5910_v50, %v5906_v37  ;;  %7863 = vrcp.f32 %v10862_v2  ;;  %v13528_v37 = vld [vmem:[#allocation15_spill] sm:$0xff]  ;;  %v10894_v50 = vpop.eup %7859  ;;  %v6888_v63 = vsel %vm214_vm1, %v10800_v3, 0.0 }
 0x69c   : > { %v4990_v38 = vpop.f32.mrf.mxu3  ;;  %v6823_v33 = vmul.f32 %v10811_v0, %v10811_v0  ;;  %vm5923_vm14 = vcmp.eq.f32.partialorder %v5922_v14, 8.507059e+37  ;;  %v6760_v1 = vsub.f32 %v10212_v40, %v5911_v61  ;;  %v10905_v39 = vadd.f32 1.0, %v7858_v48  ;;  %v8174_v40 = vld [vmem:[%s8320_s25 + $0xe8] sm:$0xff] }
 0x69d   : > { %v4991_v49 = vadd.f32 %v10663_v30, %v4990_v38  ;;  %7513 = vmatmul.msk.f32.gmra.mxu3 %vm691_vm2, %v4640_v42  ;;  %3049 = vrot.lane.b32.xlu1 %v2895_v20, %s8275_s6  ;;  %v5391_v42 = vadd.f32 %v10261_v21, %v10340_v27  ;;  %v10890_v38 = vpop.f32.mrf.mxu0  ;;  %v5926_v20 = vsel %vm5923_vm14, %v5925_v56, %v5921_v47  ;;  %v10910_v31 = vpop.eup %7861  ;;  %vm5949_vm7 = vweird.f32 %v10894_v50 }
 0x69e   : > { %v5931_v46 = vmul.f32 %v10823_v29, %v5930_v55  ;;  %v2898_v61 = vmul.f32 %v8174_v40, %v8174_v40  ;;  %v5944_v48 = vmul.f32 %v10894_v50, %v10814_v53  ;;  %v6890_v55 = vsel %vm214_vm1, %v6822_v23, 0.0  ;;  %vm11019_vm9 = vmor %vm5948_vm6, %vm5949_vm7 }
 0x69f   : > { %v5104_v34 = vmax.f32 %v4991_v49, 0.0  ;;  %3343 = vrot.lane.b32.xlu0 %v13528_v37, %s8274_s18  ;;  %v7608_v37 = vmul.f32 -1.442695, %v5388_v62  ;;  %v6761_v62 = vsub.f32 %v10447_v57, %v5926_v20  ;;  %v6892_v40 = vsel %vm214_vm1, %v6823_v33, 0.0 }
 0x6a0   : > { %v4545_v27 = vpop.f32.mrf.mxu2  ;;  %3329 = vrot.lane.b32.xlu2 %v13529_v11, %s8274_s18  ;;  %v10908_v3 = vpop.permute.xlu0 %3023  ;;  %v13531_v11 = vld [vmem:[#allocation47_spill] sm:$0xff]  ;;  %7865 = vrcp.f32 %v10905_v39  ;;  %v5932_v57 = vadd.f32 %v10823_v29, %v5931_v46  ;;  %v5939_v23 = vand.u32 2147483648, %v10734_v13  ;;  %v5945_v33 = vsub.f32 1.0, %v5944_v48 }
 0x6a1   : > { %v4546_v49 = vadd.f32 %v10512_v12, %v4545_v27  ;;  %7569 = vmatmul.msk.f32.gmra.mxu0 %vm691_vm2, %v5104_v34  ;;  %v7609_v12 = vmul.f32 -1.442695, %v5391_v42  ;;  %v6889_v27 = vadd.f32 %v6888_v63, %v6887_v7  ;;  %v10927_v26 = vmul.f32 %v13531_v11, %v13531_v11  ;;  %v10929_v14 = vpop.eup %7863 }
 0x6a2   : > { %v10914_v0 = vpop.permute.xlu2 %3027  ;;  %v5959_v42 = vmul.f32 %v10910_v31, %v10831_v6  ;;  %v6824_v63 = vmul.f32 %v6760_v1, %v6760_v1  ;;  %7867 = vpow2.f32 %v7608_v37  ;;  %v6825_v11 = vmul.f32 %v6761_v62, %v6761_v62  ;;  %v13534_v37 = vld [vmem:[#allocation12_spill] sm:$0xff] }
 0x6a3   : > { %13530 = vst [vmem:[#allocation2_spill] sm:$0xff] %v10914_v0  ;;  %v4641_v47 = vmax.f32 %v4546_v49, 0.0  ;;  %7869 = vpow2.f32 %v7609_v12  ;;  %v13533_v49 = vld [vmem:[#allocation21_spill] sm:$0xff]  ;;  %v5937_v1 = vand.u32 2147483647, %v10734_v13  ;;  %v5974_v46 = vmul.f32 %v10929_v14, %v10862_v2 }
 0x6a4   : > { %v4993_v34 = vpop.f32.mrf.mxu3  ;;  %13532 = vst [vmem:[#allocation38_spill] sm:$0xff] %v10927_v26  ;;  %v5960_v12 = vsub.f32 1.0, %v5959_v42  ;;  %v13538_v13 = vld [vmem:[#allocation45_spill] sm:$0xff]  ;;  %v5946_v0 = vmul.f32 %v10894_v50, %v5945_v33  ;;  %v10982_v48 = vsel %vm214_vm1, %v6825_v11, 0.0  ;;  %vm5964_vm8 = vweird.f32 %v10910_v31 }
 0x6a5   : > { %v4994_v7 = vadd.f32 %v10663_v30, %v4993_v34  ;;  %7514 = vmatmul.msk.f32.gmra.mxu3 %vm691_vm2, %v4641_v47  ;;  %3055 = vrot.lane.b32.xlu1 %v2898_v61, %s8275_s6  ;;  %v6891_v61 = vadd.f32 %v6890_v55, %v6889_v27  ;;  %v5394_v47 = vadd.f32 %v10261_v21, %v10393_v52  ;;  %v10955_v62 = vpop.f32.mrf.mxu0  ;;  %v5954_v55 = vand.u32 2147483648, %v10814_v53  ;;  %v8175_v21 = vld [vmem:[%s8320_s25 + $0x100] sm:$0xff] }
 0x6a6   : > { %v5936_v27 = vsel %vm10949_vm3, %v10823_v29, %v5932_v57  ;;  %vm5938_vm5 = vcmp.eq.f32.partialorder %v5937_v1, 8.507059e+37  ;;  %v5975_v52 = vsub.f32 1.0, %v5974_v46  ;;  %v5947_v1 = vadd.f32 %v10894_v50, %v5946_v0  ;;  %v13541_v0 = vld [vmem:[#allocation14_spill] sm:$0xff] }
 0x6a7   : > { %v5105_v20 = vmax.f32 %v4994_v7, 0.0  ;;  %3349 = vrot.lane.b32.xlu0 %v13533_v49, %s8274_s18  ;;  %v10961_v7 = vmul.f32 %v13538_v13, %v13538_v13  ;;  %v2901_v49 = vmul.f32 %v8175_v21, %v8175_v21  ;;  %v10975_v56 = vadd.f32 %v6892_v40, %v6891_v61 }
 0x6a8   : > { %3335 = vrot.lane.b32.xlu2 %v13534_v37, %s8274_s18  ;;  %v10957_v34 = vpop.permute.xlu0 %3029  ;;  %v10973_v37 = vpop.eup %7865  ;;  %v5940_v13 = vor.u32 1.1754944e-38, %v5939_v23  ;;  %v5961_v40 = vmul.f32 %v10910_v31, %v5960_v12  ;;  %v7610_v23 = vmul.f32 -1.442695, %v5394_v47  ;;  %v5952_v61 = vand.u32 2147483647, %v10814_v53  ;;  %v13540_v12 = vld [vmem:[#allocation24_spill] sm:$0xff] }
 0x6a9   : > { %13537 = vst [vmem:[#allocation13_spill] sm:$0xff] %v10957_v34  ;;  %7570 = vmatmul.msk.f32.gmra.mxu0 %vm691_vm2, %v5105_v20  ;;  %v7868_v57 = vpop.eup %7867  ;;  %v6894_v20 = vsel %vm214_vm1, %v6824_v63, 0.0  ;;  %v5955_v29 = vor.u32 1.1754944e-38, %v5954_v55  ;;  %v10991_v63 = vld [vmem:[%s13175_s1 + $0x13f] ss:$0 sm:$0xff]  ;;  %v8177_v47 = vld [vmem:[%s8320_s25 + $0x48] sm:$0xff]  ;;  %vm5963_vm10 = vweird.f32 %v10831_v6  ;;  %v5951_v53 = vsel %vm11019_vm9, %v10894_v50, %v5947_v1 }
 0x6aa   : > { %13539 = vst [vmem:[#allocation5_spill] sm:$0xff] %v10961_v7  ;;  %v10968_v42 = vpop.permute.xlu2 %3033  ;;  %v7870_v21 = vpop.eup %7869  ;;  %v5941_v18 = vsel %vm5938_vm5, %v5940_v13, %v5936_v27  ;;  %v5397_v11 = vadd.f32 %v10991_v63, %v10489_v45  ;;  %v5976_v27 = vmul.f32 %v10929_v14, %v5975_v52  ;;  %v5989_v45 = vmul.f32 %v10973_v37, %v10905_v39  ;;  %vm11041_vm11 = vmor %vm5963_vm10, %vm5964_vm8 }
 0x6ab   : > { %v11006_v55 = vadd.f32 1.0, %v7870_v21  ;;  %v5969_v13 = vand.u32 2147483648, %v10831_v6  ;;  %7871 = vpow2.f32 %v7610_v23  ;;  %v8178_v23 = vld [vmem:[%s8320_s25 + $0x118] sm:$0xff]  ;;  %vm5979_vm12 = vweird.f32 %v10929_v14 }
 0x6ac   : > { %v4996_v34 = vpop.f32.mrf.mxu3  ;;  %v7611_v52 = vmul.f32 -1.442695, %v5397_v11  ;;  %v5990_v50 = vsub.f32 1.0, %v5989_v45  ;;  %vm5953_vm13 = vcmp.eq.f32.partialorder %v5952_v61, 8.507059e+37  ;;  %vm5978_vm14 = vweird.f32 %v10862_v2 }
 0x6ad   : > { %v4997_v33 = vadd.f32 %v10663_v30, %v4996_v34  ;;  %3061 = vrot.lane.b32.xlu1 %v2901_v49, %s8275_s6  ;;  %v10998_v30 = vadd.f32 1.0, %v7868_v57  ;;  %v6762_v34 = vsub.f32 %v8177_v47, %v5941_v18  ;;  %v5962_v49 = vadd.f32 %v10910_v31, %v5961_v40  ;;  %v11035_v47 = vpop.f32.mrf.mxu0  ;;  %vm11058_vm0 = vmor %vm5978_vm14, %vm5979_vm12 }
 0x6ae   : > { %v5970_v1 = vor.u32 1.1754944e-38, %v5969_v13  ;;  %v5984_v18 = vand.u32 2147483648, %v10862_v2  ;;  %v5982_v11 = vand.u32 2147483647, %v10862_v2  ;;  %v6895_v45 = vadd.f32 %v6894_v20, %v10975_v56  ;;  %v13551_v13 = vld [vmem:[#allocation17_spill] sm:$0xff] }
 0x6af   : > { %v5106_v46 = vmax.f32 %v4997_v33, 0.0  ;;  %3355 = vrot.lane.b32.xlu0 %v13540_v12, %s8274_s18  ;;  %v2904_v33 = vmul.f32 %v8178_v23, %v8178_v23  ;;  %v5967_v12 = vand.u32 2147483647, %v10831_v6  ;;  %7873 = vrcp.f32 %v10998_v30 }
 0x6b0   : > { %3341 = vrot.lane.b32.xlu2 %v13541_v0, %s8274_s18  ;;  %v11013_v57 = vpop.permute.xlu0 %3035  ;;  %v5977_v0 = vadd.f32 %v10929_v14, %v5976_v27  ;;  %7875 = vrcp.f32 %v11006_v55  ;;  %v5966_v6 = vsel %vm11041_vm11, %v10910_v31, %v5962_v49  ;;  %v5956_v23 = vsel %vm5953_vm13, %v5955_v29, %v5951_v53  ;;  %v13549_v29 = vld [vmem:[#allocation29_spill] sm:$0xff]  ;;  %v13557_v31 = vld [vmem:[#allocation35_spill] sm:$0xff] }
 0x6b1   : > { %7571 = vmatmul.msk.f32.gmra.mxu0 %vm691_vm2, %v5106_v46  ;;  %7877 = vpow2.f32 %v7611_v52  ;;  %v7872_v27 = vpop.eup %7871  ;;  %v6826_v61 = vmul.f32 %v6762_v34, %v6762_v34  ;;  %vm5968_vm15 = vcmp.eq.f32.partialorder %v5967_v12, 8.507059e+37  ;;  %v11066_v2 = vmul.f32 %v9557_v51, %v9557_v51  ;;  %v8179_v51 = vld [vmem:[%s8320_s25 + $0x50] sm:$0xff] }
 0x6b2   : > { %v11025_v21 = vpop.permute.xlu2 %3039  ;;  %v5971_v49 = vsel %vm5968_vm15, %v5970_v1, %v5966_v6  ;;  %v5981_v56 = vsel %vm11058_vm0, %v10929_v14, %v5977_v0  ;;  %v5991_v20 = vmul.f32 %v10973_v37, %v5990_v50  ;;  %v5400_v34 = vadd.f32 %v10991_v63, %v10569_v4  ;;  %v8180_v1 = vld [vmem:[%s8320_s25 + $0x130] sm:$0xff] }
 0x6b3   : > { %13544 = vst [vmem:[#allocation40_spill] sm:$0xff] %v11025_v21  ;;  %v6763_v53 = vsub.f32 %v8179_v51, %v5956_v23  ;;  %v5985_v12 = vor.u32 1.1754944e-38, %v5984_v18  ;;  %v5403_v46 = vadd.f32 %v10991_v63, %v10656_v36  ;;  %vm5983_vm3 = vcmp.eq.f32.partialorder %v5982_v11, 8.507059e+37  ;;  %v13554_v23 = vld [vmem:[#allocation27_spill] sm:$0xff] }
 0x6b4   : > { %13550 = vst [vmem:[#allocation15_spill] sm:$0xff] %v11066_v2  ;;  %v11086_v50 = vadd.f32 1.0, %v7872_v27  ;;  %v6898_v18 = vsel %vm214_vm1, %v6826_v61, 0.0  ;;  %v5992_v11 = vadd.f32 %v10973_v37, %v5991_v20  ;;  %vm5994_vm5 = vweird.f32 %v10973_v37 }
 0x6b5   : > { %3067 = vrot.lane.b32.xlu1 %v2904_v33, %s8275_s6  ;;  %v11076_v52 = vpop.eup %7873  ;;  %v6897_v33 = vadd.f32 %v10982_v48, %v6895_v45  ;;  %v2907_v48 = vmul.f32 %v8180_v1, %v8180_v1  ;;  %v6764_v45 = vsub.f32 %v13554_v23, %v5971_v49  ;;  %v5986_v36 = vsel %vm5983_vm3, %v5985_v12, %v5981_v56  ;;  %v11104_v56 = vpop.f32.mrf.mxu0  ;;  %v8181_v12 = vld [vmem:[%s8320_s25 + $0x60] sm:$0xff] }
 0x6b6   : > { %v11084_v0 = vpop.eup %7875  ;;  %v6004_v27 = vmul.f32 %v11076_v52, %v10998_v30  ;;  %v6827_v51 = vmul.f32 %v6763_v53, %v6763_v53  ;;  %v5999_v1 = vand.u32 2147483648, %v10905_v39  ;;  %v7613_v49 = vmul.f32 -1.442695, %v5403_v46  ;;  %v13568_v53 = vld [vmem:[#allocation57_spill] sm:$0xff] }
 0x6b7   : > { %3361 = vrot.lane.b32.xlu0 %v13549_v29, %s8274_s18  ;;  %v7878_v29 = vpop.eup %7877  ;;  %v6019_v61 = vmul.f32 %v11084_v0, %v11006_v55  ;;  %v6765_v23 = vsub.f32 %v8181_v12, %v5986_v36  ;;  %vm5993_vm6 = vweird.f32 %v10905_v39  ;;  %v5997_v20 = vand.u32 2147483647, %v10905_v39  ;;  %v13558_v36 = vld [vmem:[#allocation54_spill] sm:$0xff]  ;;  %v13560_v39 = vld [vmem:[#allocation51_spill] sm:$0xff] }
 0x6b8   : > { %3347 = vrot.lane.b32.xlu2 %v13551_v13, %s8274_s18  ;;  %v11082_v14 = vpop.permute.xlu0 %3041  ;;  %v7612_v13 = vmul.f32 -1.442695, %v5400_v34  ;;  %7879 = vrcp.f32 %v11086_v50  ;;  %v6828_v34 = vmul.f32 %v6764_v45, %v6764_v45  ;;  %vm11113_vm7 = vmor %vm5993_vm6, %vm5994_vm5  ;;  %v11117_v46 = vadd.f32 1.0, %v7878_v29  ;;  %v13562_v29 = vld [vmem:[#allocation20_spill] sm:$0xff] }
 0x6b9   : > { %13552 = vst [vmem:[#allocation8_spill] sm:$0xff] %v11082_v14  ;;  %v11123_v12 = vmul.f32 %v13558_v36, %v13558_v36  ;;  %v6899_v45 = vadd.f32 %v6898_v18, %v6897_v33  ;;  %v5996_v6 = vsel %vm11113_vm7, %v10973_v37, %v5992_v11  ;;  %v6005_v40 = vsub.f32 1.0, %v6004_v27  ;;  %v8182_v37 = vld [vmem:[%s8320_s25 + $0x148] sm:$0xff] }
 0x6ba   : > { %v11088_v4 = vpop.permute.xlu2 %3045  ;;  %7881 = vpow2.f32 %v7612_v13  ;;  %v6020_v36 = vsub.f32 1.0, %v6019_v61  ;;  %v6829_v14 = vmul.f32 %v6765_v23, %v6765_v23  ;;  %vm5998_vm8 = vcmp.eq.f32.partialorder %v5997_v20, 8.507059e+37  ;;  %v13565_v23 = vld [vmem:[#allocation41_spill] sm:$0xff] }
 0x6bb   : > { %13553 = vst [vmem:[#allocation47_spill] sm:$0xff] %v11088_v4  ;;  %v6000_v4 = vor.u32 1.1754944e-38, %v5999_v1  ;;  %7883 = vpow2.f32 %v7613_v49  ;;  %v2910_v18 = vmul.f32 %v8182_v37, %v8182_v37  ;;  %v6902_v11 = vsel %vm214_vm1, %v6828_v34, 0.0 }
 0x6bc   : > { %13559 = vst [vmem:[#allocation21_spill] sm:$0xff] %v11123_v12  ;;  %7885 = vrcp.f32 %v11117_v46  ;;  %v6006_v61 = vmul.f32 %v11076_v52, %v6005_v40  ;;  %v5406_v49 = vadd.f32 %v10991_v63, %v10736_v25  ;;  %v11153_v20 = vmul.f32 %v13565_v23, %v13565_v23  ;;  %v8183_v23 = vld [vmem:[%s8320_s25 + $0x68] sm:$0xff] }
 0x6bd   : > { %3073 = vrot.lane.b32.xlu1 %v2907_v48, %s8275_s6  ;;  %v11127_v48 = vmul.f32 %v13560_v39, %v13560_v39  ;;  %v6001_v27 = vsel %vm5998_vm8, %v6000_v4, %v5996_v6  ;;  %v6021_v34 = vmul.f32 %v11084_v0, %v6020_v36  ;;  %v13566_v4 = vld [vmem:[#allocation63_spill] sm:$0xff]  ;;  %v6904_v37 = vsel %vm214_vm1, %v6829_v14, 0.0  ;;  %v13572_v36 = vld [vmem:[#allocation68_spill] sm:$0xff]  ;;  %v11181_v14 = vpop.f32.mrf.mxu0 }
 0x6be   : > { %v11158_v6 = vmul.f32 %v13566_v4, %v13566_v4  ;;  %v6766_v13 = vsub.f32 %v8183_v23, %v6001_v27  ;;  %v11173_v4 = vmul.f32 %v13572_v36, %v13572_v36  ;;  %vm6008_vm9 = vweird.f32 %v10998_v30  ;;  %v13574_v27 = vld [vmem:[#allocation43_spill] sm:$0xff] }
 0x6bf   : > { %3367 = vrot.lane.b32.xlu0 %v13557_v31, %s8274_s18  ;;  %13561 = vst [vmem:[#allocation12_spill] sm:$0xff] %v11127_v48  ;;  %v6900_v31 = vsel %vm214_vm1, %v6827_v51, 0.0  ;;  %v11146_v51 = vpop.eup %7879  ;;  %vm6009_vm10 = vweird.f32 %v11076_v52  ;;  %v7614_v23 = vmul.f32 -1.442695, %v5406_v49  ;;  %vm6024_vm11 = vweird.f32 %v11084_v0 }
 0x6c0   : > { %3353 = vrot.lane.b32.xlu2 %v13562_v29, %s8274_s18  ;;  %v11135_v2 = vpop.permute.xlu0 %3047  ;;  %v6901_v1 = vadd.f32 %v6900_v31, %v6899_v45  ;;  %13567 = vst [vmem:[#allocation14_spill] sm:$0xff] %v11158_v6  ;;  %v11162_v29 = vmul.f32 %v13568_v53, %v13568_v53  ;;  %v13570_v45 = vld [vmem:[#allocation64_spill] sm:$0xff]  ;;  %v7882_v31 = vpop.eup %7881  ;;  %v6012_v53 = vand.u32 2147483647, %v10998_v30  ;;  %v6027_v26 = vand.u32 2147483647, %v11006_v55  ;;  %vm11213_vm12 = vmor %vm6008_vm9, %vm6009_vm10 }
 0x6c1   : > { %13563 = vst [vmem:[#allocation45_spill] sm:$0xff] %v11135_v2  ;;  %v11166_v40 = vmul.f32 %v13570_v45, %v13570_v45  ;;  %v7884_v33 = vpop.eup %7883  ;;  %v6034_v45 = vmul.f32 %v11146_v51, %v11086_v50  ;;  %v11194_v2 = vadd.f32 1.0, %v7882_v31  ;;  %v6029_v49 = vand.u32 2147483648, %v11006_v55 }
 0x6c2   : > { %v11137_v39 = vpop.permute.xlu2 %3051  ;;  %13569 = vst [vmem:[#allocation29_spill] sm:$0xff] %v11162_v29  ;;  %v6903_v25 = vadd.f32 %v6902_v11, %v6901_v1  ;;  %v5409_v11 = vadd.f32 %v10991_v63, %v10806_v60  ;;  %v6014_v1 = vand.u32 2147483648, %v10998_v30  ;;  %v11190_v12 = vpop.eup %7885  ;;  %v6022_v60 = vadd.f32 %v11084_v0, %v6021_v34 }
 0x6c3   : > { %13564 = vst [vmem:[#allocation24_spill] sm:$0xff] %v11137_v39  ;;  %v13575_v39 = vld [vmem:[#allocation28_spill] sm:$0xff]  ;;  %v11203_v21 = vadd.f32 1.0, %v7884_v33  ;;  %vm6023_vm13 = vweird.f32 %v11006_v55  ;;  %v6049_v55 = vmul.f32 %v11190_v12, %v11117_v46  ;;  %7887 = vpow2.f32 %v7614_v23 }
 0x6c4   : > { %13571 = vst [vmem:[#allocation17_spill] sm:$0xff] %v11166_v40  ;;  %vm11227_vm14 = vmor %vm6023_vm13, %vm6024_vm11  ;;  %v6015_v33 = vor.u32 1.1754944e-38, %v6014_v1  ;;  %7889 = vrcp.f32 %v11194_v2  ;;  %vm6013_vm15 = vcmp.eq.f32.partialorder %v6012_v53, 8.507059e+37  ;;  %vm6028_vm0 = vcmp.eq.f32.partialorder %v6027_v26, 8.507059e+37 }
 0x6c5   : > { %3079 = vrot.lane.b32.xlu1 %v2910_v18, %s8275_s6  ;;  %13573 = vst [vmem:[#allocation27_spill] sm:$0xff] %v11173_v4  ;;  %v6007_v18 = vadd.f32 %v11076_v52, %v6006_v61  ;;  %7891 = vrcp.f32 %v11203_v21  ;;  %v5412_v53 = vadd.f32 %v10991_v63, %v10890_v38  ;;  %vm6039_vm3 = vweird.f32 %v11146_v51 }
 0x6c6   : > { %vm6038_vm5 = vweird.f32 %v11086_v50  ;;  %vm6054_vm8 = vweird.f32 %v11190_v12  ;;  %v6059_v40 = vand.u32 2147483648, %v11117_v46  ;;  %vm6053_vm9 = vweird.f32 %v11117_v46 }
 0x6c7   : > { %3373 = vrot.lane.b32.xlu0 %v13574_v27, %s8274_s18  ;;  %v2676_v36 = vpop.permute.xlu1 %2675  ;;  %v13576_v27 = vld [vmem:[#allocation111_spill] sm:$0xff]  ;;  %v6011_v34 = vsel %vm11213_vm12, %v11076_v52, %v6007_v18  ;;  %v6030_v52 = vor.u32 1.1754944e-38, %v6029_v49  ;;  %v13584_v18 = vld [vmem:[#allocation4_spill] sm:$0xff]  ;;  %vm11295_vm7 = vmor %vm6038_vm5, %vm6039_vm3  ;;  %vm6068_vm12 = vweird.f32 %v11194_v2  ;;  %vm6083_vm3 = vweird.f32 %v11203_v21 }
 0x6c8   : > { %3359 = vrot.lane.b32.xlu2 %v13575_v39, %s8274_s18  ;;  %v11197_v48 = vadd.f32 %v2676_v36, %v13576_v27  ;;  %v11199_v61 = vpop.permute.xlu0 %3053  ;;  %v6035_v36 = vsub.f32 1.0, %v6034_v45  ;;  %v7615_v27 = vmul.f32 -1.442695, %v5409_v11  ;;  %v6830_v11 = vmul.f32 %v6766_v13, %v6766_v13  ;;  %v13585_v13 = vld [vmem:[#allocation48_spill] sm:$0xff]  ;;  %v13588_v49 = vld [vmem:[#allocation67_spill] sm:$0xff]  ;;  %vm11350_vm10 = vmor %vm6053_vm9, %vm6054_vm8 }
 0x6c9   : > { %13578 = vst [vmem:[#allocation54_spill] sm:$0xff] %v11199_v61  ;;  %v6016_v31 = vsel %vm6013_vm15, %v6015_v33, %v6011_v34  ;;  %v11252_v34 = vmul.f32 %v13588_v49, %v13588_v49  ;;  %v11255_v33 = vpop.f32.mrf.mxu0  ;;  %v13596_v49 = vld [vmem:[#allocation75_spill] sm:$0xff] }
 0x6ca   : > { %13577 = vst [vmem:[#allocation35_spill] sm:$0xff] %v11197_v48  ;;  %v11205_v39 = vpop.permute.xlu2 %3057  ;;  %v4097_v7 = vpop.f32.mrf.mxu1  ;;  %7401 = vmatmul.msk.f32.gmra.mxu1 %vm3573_vm4, %v11197_v48  ;;  %v6026_v48 = vsel %vm11227_vm14, %v11084_v0, %v6022_v60  ;;  %v6036_v23 = vmul.f32 %v11146_v51, %v6035_v36  ;;  %7893 = vpow2.f32 %v7615_v27  ;;  %v6050_v0 = vsub.f32 1.0, %v6049_v55  ;;  %v13587_v60 = vld [vmem:[#allocation33_spill] sm:$0xff] }
 0x6cb   : > { %13579 = vst [vmem:[#allocation51_spill] sm:$0xff] %v11205_v39  ;;  %v4098_v45 = vadd.f32 %v10820_v5, %v4097_v7  ;;  %v6031_v1 = vsel %vm6028_vm0, %v6030_v52, %v6026_v48  ;;  %v6905_v27 = vadd.f32 %v6904_v37, %v6903_v25  ;;  %v6042_v36 = vand.u32 2147483647, %v11086_v50  ;;  %v13592_v55 = vld [vmem:[#allocation73_spill] sm:$0xff]  ;;  %v7888_v52 = vpop.eup %7887 }
 0x6cc   : > { %13589 = vst [vmem:[#allocation41_spill] sm:$0xff] %v11252_v34  ;;  %v6044_v37 = vand.u32 2147483648, %v11086_v50  ;;  %v11273_v30 = vpop.eup %7889  ;;  %v6037_v48 = vadd.f32 %v11146_v51, %v6036_v23  ;;  %v7616_v39 = vmul.f32 -1.442695, %v5412_v53  ;;  %v13611_v23 = vld [vmem:[#allocation79_spill] sm:$0xff] }
 0x6cd   : > { %3321 = vrot.lane.b32.xlu1 %v13584_v18, %s8274_s18  ;;  %v4177_v7 = vmax.f32 %v4098_v45, 0.0  ;;  %v11264_v45 = vmul.f32 %v13592_v55, %v13592_v55  ;;  %v6906_v18 = vsel %vm214_vm1, %v6830_v11, 0.0  ;;  %vm11289_vm6 = vcmp.eq.f32.partialorder %v6042_v36, 8.507059e+37 }
 0x6ce   : > { %v11293_v11 = vadd.f32 1.0, %v7888_v52  ;;  %v6045_v53 = vor.u32 1.1754944e-38, %v6044_v37  ;;  %v6041_v52 = vsel %vm11295_vm7, %v11146_v51, %v6037_v48  ;;  %7895 = vpow2.f32 %v7616_v39  ;;  %v13605_v48 = vld [vmem:[#allocation39_spill] sm:$0xff] }
 0x6cf   : > { %3379 = vrot.lane.b32.xlu0 %v13585_v13, %s8274_s18  ;;  %v11246_v26 = vpop.permute.xlu1 %3001  ;;  %7458 = vmatmul.msk.f32.gmra.mxu2 %vm691_vm2, %v4177_v7  ;;  %13593 = vst [vmem:[#allocation57_spill] sm:$0xff] %v11264_v45  ;;  %v13594_v13 = vld [vmem:[#allocation119_spill] sm:$0xff]  ;;  %v8184_v7 = vld [vmem:[%s8320_s25 + $0x78] sm:$0xff]  ;;  %vm6069_vm13 = vweird.f32 %v11273_v30 }
 0x6d0   : > { %13586 = vst [vmem:[#allocation20_spill] sm:$0xff] %v11246_v26  ;;  %3365 = vrot.lane.b32.xlu2 %v13587_v60, %s8274_s18  ;;  %v11260_v38 = vpop.permute.xlu0 %3059  ;;  %v6767_v25 = vsub.f32 %v13594_v13, %v6016_v31  ;;  %v6768_v26 = vsub.f32 %v8184_v7, %v6031_v1  ;;  %v11280_v31 = vpop.eup %7891  ;;  %v6051_v13 = vmul.f32 %v11190_v12, %v6050_v0  ;;  %7897 = vrcp.f32 %v11293_v11  ;;  %vm11418_vm14 = vmor %vm6068_vm12, %vm6069_vm13 }
 0x6d1   : > { %13591 = vst [vmem:[#allocation63_spill] sm:$0xff] %v11260_v38  ;;  %v11286_v38 = vmul.f32 %v13596_v49, %v13596_v49  ;;  %v7894_v1 = vpop.eup %7893  ;;  %v6907_v7 = vadd.f32 %v6906_v18, %v6905_v27  ;;  %v6064_v49 = vmul.f32 %v11273_v30, %v11194_v2  ;;  %v13602_v27 = vld [vmem:[#allocation7_spill] sm:$0xff]  ;;  %v11310_v18 = vld [vmem:[%s13175_s1 + $0x13d] ss:$0 sm:$0xff]  ;;  %v5415_v0 = vadd.f32 %v10991_v63, %v10955_v62 }
 0x6d2   : > { %v11269_v60 = vpop.permute.xlu2 %3063  ;;  %v4100_v55 = vpop.f32.mrf.mxu1  ;;  %v6832_v36 = vmul.f32 %v6768_v26, %v6768_v26  ;;  %v6052_v37 = vadd.f32 %v11190_v12, %v6051_v13  ;;  %v6079_v26 = vmul.f32 %v11280_v31, %v11203_v21  ;;  %v13606_v13 = vld [vmem:[#allocation117_spill] sm:$0xff]  ;;  %vm6084_vm15 = vweird.f32 %v11280_v31 }
 0x6d3   : > { %13595 = vst [vmem:[#allocation64_spill] sm:$0xff] %v11269_v60  ;;  %v4101_v6 = vadd.f32 %v10820_v5, %v4100_v55  ;;  %v6831_v60 = vmul.f32 %v6767_v25, %v6767_v25  ;;  %v7617_v62 = vmul.f32 -1.442695, %v5415_v0  ;;  %vm11438_vm5 = vmor %vm6083_vm3, %vm6084_vm15  ;;  %vm6098_vm8 = vweird.f32 %v11293_v11 }
 0x6d4   : > { %13597 = vst [vmem:[#allocation68_spill] sm:$0xff] %v11286_v38  ;;  %v6910_v29 = vsel %vm214_vm1, %v6832_v36, 0.0  ;;  %v6080_v36 = vsub.f32 1.0, %v6079_v26  ;;  %v13625_v38 = vld [vmem:[#allocation65_spill] sm:$0xff] }
 0x6d5   : > { %v4178_v55 = vmax.f32 %v4101_v6, 0.0  ;;  %3327 = vrot.lane.b32.xlu1 %v13602_v27, %s8274_s18  ;;  %v4548_v50 = vpop.f32.mrf.mxu2  ;;  %v13603_v6 = vld [vmem:[#allocation52_spill] sm:$0xff]  ;;  %v11318_v27 = vadd.f32 1.0, %v7894_v1  ;;  %v6908_v39 = vsel %vm214_vm1, %v6831_v60, 0.0 }
 0x6d6   : > { %v4549_v25 = vadd.f32 %v11310_v18, %v4548_v50  ;;  %v11327_v50 = vpop.f32.mrf.mxu0 }
 0x6d7   : > { %3385 = vrot.lane.b32.xlu0 %v13603_v6, %s8274_s18  ;;  %v11320_v51 = vpop.permute.xlu1 %3007  ;;  %7459 = vmatmul.msk.f32.gmra.mxu2 %vm691_vm2, %v4178_v55  ;;  %7899 = vrcp.f32 %v11318_v27  ;;  %v6056_v55 = vsel %vm11350_vm10, %v11190_v12, %v6052_v37  ;;  %v8186_v37 = vld [vmem:[%s8320_s25 + $0x80] sm:$0xff]  ;;  %vm6113_vm12 = vweird.f32 %v11318_v27 }
 0x6d8   : > { %13604 = vst [vmem:[#allocation43_spill] sm:$0xff] %v11320_v51  ;;  %3371 = vrot.lane.b32.xlu2 %v13605_v48, %s8274_s18  ;;  %v4642_v6 = vmax.f32 %v4549_v25, 0.0  ;;  %v11332_v1 = vpop.permute.xlu0 %3065  ;;  %v6065_v48 = vsub.f32 1.0, %v6064_v49  ;;  %v6057_v25 = vand.u32 2147483647, %v11117_v46  ;;  %v6046_v49 = vsel %vm11289_vm6, %v6045_v53, %v6041_v52  ;;  %v7896_v52 = vpop.eup %7895 }
 0x6d9   : > { %13607 = vst [vmem:[#allocation28_spill] sm:$0xff] %v11332_v1  ;;  %v11361_v53 = vmul.f32 %v13611_v23, %v13611_v23  ;;  %v13613_v1 = vld [vmem:[#allocation9_spill] sm:$0xff]  ;;  %v11370_v34 = vpop.eup %7897  ;;  %v6769_v0 = vsub.f32 %v8186_v37, %v6046_v49  ;;  %v11385_v49 = vadd.f32 1.0, %v7896_v52  ;;  %7901 = vpow2.f32 %v7617_v62  ;;  %v8187_v37 = vld [vmem:[%s8320_s25 + $0x88] sm:$0xff] }
 0x6da   : > { %v11336_v61 = vpop.permute.xlu2 %3069  ;;  %7515 = vmatmul.msk.f32.gmra.mxu3 %vm691_vm2, %v4642_v6  ;;  %v4103_v60 = vpop.f32.mrf.mxu1  ;;  %v6909_v6 = vadd.f32 %v6908_v39, %v6907_v7  ;;  %v6066_v45 = vmul.f32 %v11273_v30, %v6065_v48  ;;  %vm6058_vm11 = vcmp.eq.f32.partialorder %v6057_v25, 8.507059e+37  ;;  %v13616_v39 = vld [vmem:[#allocation61_spill] sm:$0xff]  ;;  %v6094_v23 = vmul.f32 %v11370_v34, %v11293_v11 }
 0x6db   : > { %13608 = vst [vmem:[#allocation4_spill] sm:$0xff] %v11336_v61  ;;  %v4104_v46 = vadd.f32 %v10820_v5, %v4103_v60  ;;  %v6060_v61 = vor.u32 1.1754944e-38, %v6059_v40  ;;  %v13614_v60 = vld [vmem:[#allocation81_spill] sm:$0xff]  ;;  %v5418_v52 = vadd.f32 %v10991_v63, %v11035_v47  ;;  %v6833_v47 = vmul.f32 %v6769_v0, %v6769_v0 }
 0x6dc   : > { %13612 = vst [vmem:[#allocation48_spill] sm:$0xff] %v11361_v53  ;;  %v11368_v7 = vmul.f32 %v13614_v60, %v13614_v60  ;;  %v11372_v12 = vadd.f32 %v6910_v29, %v6909_v6  ;;  %v13618_v29 = vld [vmem:[#allocation46_spill] sm:$0xff]  ;;  %v6089_v25 = vand.u32 2147483648, %v11203_v21  ;;  %7903 = vrcp.f32 %v11385_v49 }
 0x6dd   : > { %v4179_v26 = vmax.f32 %v4104_v46, 0.0  ;;  %3333 = vrot.lane.b32.xlu1 %v13613_v1, %s8274_s18  ;;  %v4551_v4 = vpop.f32.mrf.mxu2  ;;  %v6061_v48 = vsel %vm6058_vm11, %v6060_v61, %v6056_v55  ;;  %v6081_v1 = vmul.f32 %v11280_v31, %v6080_v36  ;;  %v11392_v55 = vpop.eup %7899  ;;  %v6067_v36 = vadd.f32 %v11273_v30, %v6066_v45 }
 0x6de   : > { %13615 = vst [vmem:[#allocation33_spill] sm:$0xff] %v11368_v7  ;;  %v4552_v40 = vadd.f32 %v11310_v18, %v4551_v4  ;;  %v6109_v0 = vmul.f32 %v11392_v55, %v11318_v27  ;;  %v7618_v45 = vmul.f32 -1.442695, %v5418_v52  ;;  %v6912_v51 = vsel %vm214_vm1, %v6833_v47, 0.0 }
 0x6df   : > { %3391 = vrot.lane.b32.xlu0 %v13616_v39, %s8274_s18  ;;  %v11381_v46 = vpop.permute.xlu1 %3013  ;;  %7460 = vmatmul.msk.f32.gmra.mxu2 %vm691_vm2, %v4179_v26  ;;  %v6072_v26 = vand.u32 2147483647, %v11194_v2  ;;  %v6074_v39 = vand.u32 2147483648, %v11194_v2  ;;  %v7902_v53 = vpop.eup %7901  ;;  %v5421_v52 = vadd.f32 %v10991_v63, %v11104_v56  ;;  %vm6099_vm7 = vweird.f32 %v11370_v34 }
 0x6e0   : > { %13617 = vst [vmem:[#allocation67_spill] sm:$0xff] %v11381_v46  ;;  %3377 = vrot.lane.b32.xlu2 %v13618_v29, %s8274_s18  ;;  %v4643_v4 = vmax.f32 %v4552_v40, 0.0  ;;  %v11390_v61 = vpop.permute.xlu0 %3071  ;;  %v6770_v40 = vsub.f32 %v8187_v37, %v6061_v48  ;;  %v11406_v29 = vpop.f32.mrf.mxu0  ;;  %v6087_v46 = vand.u32 2147483647, %v11203_v21  ;;  %v6095_v37 = vsub.f32 1.0, %v6094_v23  ;;  %vm11512_vm10 = vmor %vm6098_vm8, %vm6099_vm7 }
 0x6e1   : > { %13620 = vst [vmem:[#allocation73_spill] sm:$0xff] %v11390_v61  ;;  %vm6073_vm0 = vcmp.eq.f32.partialorder %v6072_v26, 8.507059e+37  ;;  %v6090_v23 = vor.u32 1.1754944e-38, %v6089_v25  ;;  %7905 = vpow2.f32 %v7618_v45  ;;  %v8189_v45 = vld [vmem:[%s8320_s25 + $0x90] sm:$0xff]  ;;  %v7619_v48 = vmul.f32 -1.442695, %v5421_v52 }
 0x6e2   : > { %v11399_v60 = vpop.permute.xlu2 %3075  ;;  %7516 = vmatmul.msk.f32.gmra.mxu3 %vm691_vm2, %v4643_v4  ;;  %v4106_v6 = vpop.f32.mrf.mxu1  ;;  %v6082_v4 = vadd.f32 %v11280_v31, %v6081_v1  ;;  %v6834_v61 = vmul.f32 %v6770_v40, %v6770_v40  ;;  %v6075_v1 = vor.u32 1.1754944e-38, %v6074_v39  ;;  %vm11442_vm6 = vcmp.eq.f32.partialorder %v6087_v46, 8.507059e+37  ;;  %v13632_v46 = vld [vmem:[#allocation25_spill] sm:$0xff] }
 0x6e3   : > { %13621 = vst [vmem:[#allocation119_spill] sm:$0xff] %v11399_v60  ;;  %v4107_v62 = vadd.f32 %v10820_v5, %v4106_v6  ;;  %v6071_v6 = vsel %vm11418_vm14, %v11273_v30, %v6067_v36  ;;  %v13624_v60 = vld [vmem:[#allocation11_spill] sm:$0xff]  ;;  %v6110_v40 = vsub.f32 1.0, %v6109_v0  ;;  %v6096_v56 = vmul.f32 %v11370_v34, %v6095_v37 }
 0x6e4   : > { %v11461_v39 = vadd.f32 1.0, %v7902_v53  ;;  %v6102_v0 = vand.u32 2147483647, %v11293_v11  ;;  %v8188_v53 = vld [vmem:[%s8320_s25 + $0x158] sm:$0xff]  ;;  %vm6114_vm11 = vweird.f32 %v11392_v55 }
 0x6e5   : > { %v4180_v2 = vmax.f32 %v4107_v62, 0.0  ;;  %3339 = vrot.lane.b32.xlu1 %v13624_v60, %s8274_s18  ;;  %v6076_v60 = vsel %vm6073_vm0, %v6075_v1, %v6071_v6  ;;  %v6086_v62 = vsel %vm11438_vm5, %v11280_v31, %v6082_v4  ;;  %v11465_v31 = vpop.eup %7903  ;;  %v6914_v4 = vsel %vm214_vm1, %v6834_v61, 0.0  ;;  %vm11542_vm13 = vmor %vm6113_vm12, %vm6114_vm11 }
 0x6e6   : > { %v6771_v26 = vsub.f32 %v8189_v45, %v6076_v60  ;;  %v6913_v61 = vadd.f32 %v6912_v51, %v11372_v12  ;;  %v6091_v7 = vsel %vm11442_vm6, %v6090_v23, %v6086_v62  ;;  %7907 = vrcp.f32 %v11461_v39  ;;  %v13637_v12 = vld [vmem:[#allocation49_spill] sm:$0xff] }
 0x6e7   : > { %3397 = vrot.lane.b32.xlu0 %v13625_v38, %s8274_s18  ;;  %v11448_v21 = vpop.permute.xlu1 %3019  ;;  %v13631_v38 = vld [vmem:[#allocation50_spill] sm:$0xff]  ;;  %7461 = vmatmul.msk.f32.gmra.mxu2 %vm691_vm2, %v4180_v2  ;;  %v11495_v36 = vmul.f32 %v13637_v12, %v13637_v12  ;;  %v13638_v23 = vld [vmem:[#allocation53_spill] sm:$0xff]  ;;  %v7906_v62 = vpop.eup %7905  ;;  %vm11501_vm9 = vcmp.eq.f32.partialorder %v6102_v0, 8.507059e+37  ;;  %7909 = vpow2.f32 %v7619_v48  ;;  %v5424_v45 = vadd.f32 %v10991_v63, %v11181_v14 }
 0x6e8   : > { %13630 = vst [vmem:[#allocation75_spill] sm:$0xff] %v11448_v21  ;;  %3383 = vrot.lane.b32.xlu2 %v13631_v38, %s8274_s18  ;;  %v11458_v25 = vpop.permute.xlu0 %3077  ;;  %v11469_v6 = vpop.f32.mrf.mxu0  ;;  %v13634_v2 = vld [vmem:[#allocation34_spill] sm:$0xff]  ;;  %v2912_v38 = vmul.f32 %v8188_v53, %v8188_v53  ;;  %v6104_v21 = vand.u32 2147483648, %v11293_v11  ;;  %v11489_v51 = vadd.f32 %v6914_v4, %v6913_v61  ;;  %v11499_v60 = vmul.f32 %v13638_v23, %v13638_v23  ;;  %v13643_v11 = vld [vmem:[#allocation56_spill] sm:$0xff] }
 0x6e9   : > { %13633 = vst [vmem:[#allocation7_spill] sm:$0xff] %v11458_v25  ;;  %v13635_v1 = vsub.f32 %v10361_v22, %v13634_v2  ;;  %v6111_v22 = vmul.f32 %v11392_v55, %v6110_v40  ;;  %v6124_v2 = vmul.f32 %v11465_v31, %v11385_v49  ;;  %v6835_v40 = vmul.f32 %v6771_v26, %v6771_v26 }
 0x6ea   : > { %v3318_v47 = vpop.permute.xlu2 %3317  ;;  %v4109_v37 = vpop.f32.mrf.mxu1  ;;  %13639 = vst [vmem:[#allocation52_spill] sm:$0xff] %v11499_v60  ;;  %v6119_v23 = vand.u32 2147483648, %v11318_v27  ;;  %vm6129_vm15 = vweird.f32 %v11465_v31  ;;  %v13659_v48 = vsub.f32 %v10401_v15, %v10719_v43  ;;  %vm6128_vm0 = vweird.f32 %v11385_v49 }
 0x6eb   : > { %v3509_v30 = vsub.f32 %v13635_v1, %v3318_v47  ;;  %v4110_v25 = vadd.f32 %v10820_v5, %v4109_v37  ;;  %v6097_v47 = vadd.f32 %v11370_v34, %v6096_v56  ;;  %v13636_v5 = vld [vmem:[#allocation16_spill] sm:$0xff]  ;;  %v6105_v56 = vor.u32 1.1754944e-38, %v6104_v21  ;;  %v8190_v1 = vld [vmem:[%s8320_s25 + $0x98] sm:$0xff]  ;;  %v13646_v21 = vld [vmem:[#allocation23_spill] sm:$0xff] }
 0x6ec   : > { %v6772_v37 = vsub.f32 %v8190_v1, %v6091_v7  ;;  %v6112_v26 = vadd.f32 %v11392_v55, %v6111_v22  ;;  %v6916_v53 = vsel %vm214_vm1, %v6835_v40, 0.0  ;;  %vm11620_vm3 = vmor %vm6128_vm0, %vm6129_vm15  ;;  %vm6143_vm7 = vweird.f32 %v11461_v39 }
 0x6ed   : > { %v4181_v52 = vmax.f32 %v4110_v25, 0.0  ;;  %3345 = vrot.lane.b32.xlu1 %v13636_v5, %s8274_s18  ;;  %v6101_v7 = vsel %vm11512_vm10, %v11370_v34, %v6097_v47  ;;  %v13647_v5 = vld [vmem:[#allocation3_spill] sm:$0xff]  ;;  %v11538_v47 = vpop.eup %7907 }
 0x6ee   : > { %v13648_v22 = vsub.f32 %v10365_v24, %v13647_v5  ;;  %v6117_v24 = vand.u32 2147483647, %v11318_v27  ;;  %v6116_v27 = vsel %vm11542_vm13, %v11392_v55, %v6112_v26  ;;  %v7910_v5 = vpop.eup %7909  ;;  %v13652_v25 = vld [vmem:[#allocation19_spill] sm:$0xff]  ;;  %v6139_v55 = vmul.f32 %v11538_v47, %v11461_v39  ;;  %v13653_v26 = vld [vmem:[#allocation70_spill] sm:$0xff] }
 0x6ef   : > { %3083 = vrot.lane.b32.xlu0 %v2912_v38, %s8275_s6  ;;  %v11505_v4 = vpop.permute.xlu1 %3025  ;;  %7462 = vmatmul.msk.f32.gmra.mxu2 %vm691_vm2, %v4181_v52  ;;  %v6125_v38 = vsub.f32 1.0, %v6124_v2  ;;  %v13649_v52 = vsub.f32 %v10397_v58, %v10649_v35  ;;  %v3574_v2 = vsel %vm3573_vm4, %v3509_v30, 0.0  ;;  %vm6144_vm6 = vweird.f32 %v11538_v47 }
 0x6f0   : > { %13642 = vst [vmem:[#allocation39_spill] sm:$0xff] %v11505_v4  ;;  %3389 = vrot.lane.b32.xlu2 %v13643_v11, %s8274_s18  ;;  %v3320_v0 = vpop.permute.xlu0 %3319  ;;  %v11531_v11 = vadd.f32 1.0, %v7906_v62  ;;  %v11551_v62 = vld [vmem:[%s13175_s1 + $0x13c] ss:$0 sm:$0xff]  ;;  %v11561_v30 = vpop.f32.mrf.mxu0  ;;  %vm6118_vm14 = vcmp.eq.f32.partialorder %v6117_v24, 8.507059e+37 }
 0x6f1   : > { %v3510_v12 = vsub.f32 %v13648_v22, %v3320_v0  ;;  %v6106_v0 = vsel %vm11501_vm9, %v6105_v56, %v6101_v7  ;;  %v6126_v22 = vmul.f32 %v11465_v31, %v6125_v38  ;;  %v6836_v56 = vmul.f32 %v6772_v37, %v6772_v37  ;;  %v13655_v37 = vld [vmem:[#allocation60_spill] sm:$0xff]  ;;  %v11590_v24 = vld [vmem:[%s13175_s1 + $0x13e] ss:$0 sm:$0xff]  ;;  %vm11686_vm9 = vmor %vm6143_vm7, %vm6144_vm6 }
 0x6f2   : > { %v3324_v61 = vpop.permute.xlu2 %3323  ;;  %v6120_v7 = vor.u32 1.1754944e-38, %v6119_v23  ;;  %7911 = vrcp.f32 %v11531_v11  ;;  %vm6158_vm11 = vweird.f32 %v11531_v11 }
 0x6f3   : > { %v11536_v1 = vsub.f32 %v13649_v52, %v3324_v61  ;;  %v4112_v34 = vpop.f32.mrf.mxu1  ;;  %v3575_v35 = vsel %vm3573_vm4, %v3510_v12, 0.0  ;;  %v7620_v52 = vmul.f32 -1.442695, %v5424_v45  ;;  %v5427_v12 = vadd.f32 %v10991_v63, %v11255_v33 }
 0x6f4   : > { %v4113_v58 = vadd.f32 %v11551_v62, %v4112_v34  ;;  %v11563_v61 = vadd.f32 %v3575_v35, %v3574_v2  ;;  %v8192_v34 = vld [vmem:[%s8320_s25 + $0xa0] sm:$0xff]  ;;  %v6132_v33 = vand.u32 2147483647, %v11385_v49  ;;  %v6121_v23 = vsel %vm6118_vm14, %v6120_v7, %v6116_v27 }
 0x6f5   : > { %3351 = vrot.lane.b32.xlu1 %v13652_v25, %s8274_s18  ;;  %v6773_v38 = vsub.f32 %v8192_v34, %v6106_v0  ;;  %v11582_v2 = vadd.f32 1.0, %v7910_v5  ;;  %7913 = vpow2.f32 %v7620_v52  ;;  %v7621_v27 = vmul.f32 -1.442695, %v5427_v12  ;;  %v13657_v7 = vld [vmem:[#allocation6_spill] sm:$0xff] }
 0x6f6   : > { %v4182_v40 = vmax.f32 %v4113_v58, 0.0  ;;  %v13658_v34 = vsub.f32 %v10381_v54, %v13657_v7  ;;  %v8194_v58 = vld [vmem:[%s8320_s25 + $0x170] sm:$0xff]  ;;  %v6134_v52 = vand.u32 2147483648, %v11385_v49  ;;  %v5430_v12 = vadd.f32 %v10991_v63, %v11327_v50 }
 0x6f7   : > { %3403 = vrot.lane.b32.xlu0 %v13653_v26, %s8274_s18  ;;  %v11578_v45 = vpop.permute.xlu1 %3031  ;;  %v6127_v26 = vadd.f32 %v11465_v31, %v6126_v22  ;;  %v2915_v4 = vmul.f32 %v8194_v58, %v8194_v58  ;;  %v6917_v22 = vadd.f32 %v6916_v53, %v11489_v51  ;;  %7915 = vrcp.f32 %v11582_v2  ;;  %v13662_v53 = vld [vmem:[#allocation22_spill] sm:$0xff] }
 0x6f8   : > { %13654 = vst [vmem:[#allocation117_spill] sm:$0xff] %v11578_v45  ;;  %v4999_v14 = vpop.f32.mrf.mxu3  ;;  %3395 = vrot.lane.b32.xlu2 %v13655_v37, %s8274_s18  ;;  %7463 = vmatmul.msk.f32.gmra.mxu2 %vm691_vm2, %v4182_v40  ;;  %v3326_v25 = vpop.permute.xlu0 %3325  ;;  %v6140_v40 = vsub.f32 1.0, %v6139_v55  ;;  %v6918_v43 = vsel %vm214_vm1, %v6836_v56, 0.0  ;;  %v6837_v51 = vmul.f32 %v6773_v38, %v6773_v38  ;;  %7917 = vpow2.f32 %v7621_v27 }
 0x6f9   : > { %v5000_v0 = vadd.f32 %v11590_v24, %v4999_v14  ;;  %v11597_v37 = vsub.f32 %v13658_v34, %v3326_v25  ;;  %v11610_v55 = vpop.eup %7911  ;;  %v6131_v49 = vsel %vm11620_vm3, %v11465_v31, %v6127_v26  ;;  %vm11629_vm5 = vcmp.eq.f32.partialorder %v6132_v33, 8.507059e+37  ;;  %v11634_v38 = vpop.f32.mrf.mxu0  ;;  %v13665_v26 = vld [vmem:[#allocation62_spill] sm:$0xff] }
 0x6fa   : > { %v3330_v5 = vpop.permute.xlu2 %3329  ;;  %v6141_v56 = vmul.f32 %v11538_v47, %v6140_v40  ;;  %v6135_v27 = vor.u32 1.1754944e-38, %v6134_v52  ;;  %v6154_v34 = vmul.f32 %v11610_v55, %v11531_v11  ;;  %vm6159_vm10 = vweird.f32 %v11610_v55 }
 0x6fb   : > { %v5107_v35 = vmax.f32 %v5000_v0, 0.0  ;;  %v11602_v45 = vsub.f32 %v13659_v48, %v3330_v5  ;;  %v4115_v14 = vpop.f32.mrf.mxu1  ;;  %v8195_v0 = vld [vmem:[%s8320_s25 + $0xa8] sm:$0xff]  ;;  %v6147_v5 = vand.u32 2147483647, %v11461_v39  ;;  %vm11753_vm12 = vmor %vm6158_vm11, %vm6159_vm10  ;;  %vm6173_vm15 = vweird.f32 %v11582_v2 }
 0x6fc   : > { %v4116_v54 = vadd.f32 %v11551_v62, %v4115_v14  ;;  %v4554_v25 = vpop.f32.mrf.mxu2  ;;  %v6774_v7 = vsub.f32 %v8195_v0, %v6121_v23  ;;  %v7622_v14 = vmul.f32 -1.442695, %v5430_v12  ;;  %v6136_v12 = vsel %vm11629_vm5, %v6135_v27, %v6131_v49 }
 0x6fd   : > { %7572 = vmatmul.msk.f32.gmra.mxu0 %vm691_vm2, %v5107_v35  ;;  %v4555_v15 = vadd.f32 %v11310_v18, %v4554_v25  ;;  %3357 = vrot.lane.b32.xlu1 %v13662_v53, %s8274_s18  ;;  %v7914_v35 = vpop.eup %7913  ;;  %v5433_v0 = vadd.f32 %v10991_v63, %v11406_v29  ;;  %v6142_v53 = vadd.f32 %v11538_v47, %v6141_v56  ;;  %v6920_v56 = vsel %vm214_vm1, %v6837_v51, 0.0 }
 0x6fe   : > { %v4183_v48 = vmax.f32 %v4116_v54, 0.0  ;;  %v6838_v40 = vmul.f32 %v6774_v7, %v6774_v7  ;;  %v6149_v54 = vand.u32 2147483648, %v11461_v39  ;;  %v13667_v49 = vsub.f32 %v10482_v19, %v10783_v17  ;;  %v8197_v17 = vld [vmem:[%s8320_s25 + $0xb0] sm:$0xff] }
 0x6ff   : > { %v4644_v58 = vmax.f32 %v4555_v15, 0.0  ;;  %3089 = vrot.lane.b32.xlu0 %v2915_v4, %s8275_s6  ;;  %v11640_v31 = vpop.permute.xlu1 %3037  ;;  %v13666_v15 = vsub.f32 %v10405_v41, %v10777_v44  ;;  %7919 = vpow2.f32 %v7622_v14  ;;  %v5436_v41 = vadd.f32 %v10991_v63, %v11469_v6  ;;  %v13670_v6 = vld [vmem:[#allocation31_spill] sm:$0xff] }
 0x700   : > { %v5002_v33 = vpop.f32.mrf.mxu3  ;;  %3399 = vrot.lane.b32.xlu2 %v13665_v26, %s8274_s18  ;;  %7464 = vmatmul.msk.f32.gmra.mxu2 %vm691_vm2, %v4183_v48  ;;  %v11660_v48 = vpop.eup %7915  ;;  %v8196_v26 = vld [vmem:[%s8320_s25 + $0x160] sm:$0xff]  ;;  %vm11678_vm8 = vcmp.eq.f32.partialorder %v6147_v5, 8.507059e+37  ;;  %v6150_v14 = vor.u32 1.1754944e-38, %v6149_v54  ;;  %v7623_v63 = vmul.f32 -1.442695, %v5433_v0  ;;  %v13673_v5 = vld [vmem:[#allocation76_spill] sm:$0xff] }
 0x701   : > { %v5003_v52 = vadd.f32 %v11590_v24, %v5002_v33  ;;  %7517 = vmatmul.msk.f32.gmra.mxu3 %vm691_vm2, %v4644_v58  ;;  %v3332_v25 = vpop.permute.xlu0 %3331  ;;  %v11663_v58 = vadd.f32 1.0, %v7914_v35  ;;  %v7918_v29 = vpop.eup %7917  ;;  %v6155_v33 = vsub.f32 1.0, %v6154_v34  ;;  %v6775_v35 = vsub.f32 %v8197_v17, %v6136_v12 }
 0x702   : > { %v3336_v7 = vpop.permute.xlu2 %3335  ;;  %v11658_v50 = vsub.f32 %v13666_v15, %v3332_v25  ;;  %v2913_v25 = vmul.f32 %v8196_v26, %v8196_v26  ;;  %v6919_v15 = vadd.f32 %v6918_v43, %v6917_v22  ;;  %v6169_v39 = vmul.f32 %v11660_v48, %v11582_v2 }
 0x703   : > { %v5108_v23 = vmax.f32 %v5003_v52, 0.0  ;;  %v11668_v27 = vsub.f32 %v13667_v49, %v3336_v7  ;;  %7921 = vrcp.f32 %v11663_v58  ;;  %v11693_v43 = vadd.f32 1.0, %v7918_v29 }
 0x704   : > { %v4557_v44 = vpop.f32.mrf.mxu2  ;;  %v6922_v54 = vsel %vm214_vm1, %v6838_v40, 0.0  ;;  %v6146_v52 = vsel %vm11686_vm9, %v11538_v47, %v6142_v53  ;;  %v6156_v12 = vmul.f32 %v11610_v55, %v6155_v33  ;;  %v7624_v0 = vmul.f32 -1.442695, %v5436_v41 }
 0x705   : > { %7573 = vmatmul.msk.f32.gmra.mxu0 %vm691_vm2, %v5108_v23  ;;  %v4558_v19 = vadd.f32 %v11310_v18, %v4557_v44  ;;  %3363 = vrot.lane.b32.xlu1 %v13670_v6, %s8274_s18  ;;  %v6162_v49 = vand.u32 2147483647, %v11531_v11  ;;  %v6164_v29 = vand.u32 2147483648, %v11531_v11  ;;  %v11707_v44 = vpop.f32.mrf.mxu0  ;;  %v7920_v33 = vpop.eup %7919  ;;  %v6839_v41 = vmul.f32 %v6775_v35, %v6775_v35 }
 0x706   : > { %7923 = vpow2.f32 %v7623_v63  ;;  %v6151_v6 = vsel %vm11678_vm8, %v6150_v14, %v6146_v52  ;;  %v6170_v22 = vsub.f32 1.0, %v6169_v39  ;;  %v6157_v35 = vadd.f32 %v11610_v55, %v6156_v12  ;;  %v13677_v39 = vld [vmem:[#allocation58_spill] sm:$0xff]  ;;  %v8199_v12 = vld [vmem:[%s8320_s25 + $0xb8] sm:$0xff] }
 0x707   : > { %v4645_v51 = vmax.f32 %v4558_v19, 0.0  ;;  %3409 = vrot.lane.b32.xlu0 %v13673_v5, %s8274_s18  ;;  %v11702_v7 = vpop.permute.xlu1 %3043  ;;  %7925 = vrcp.f32 %v11693_v43  ;;  %v13676_v63 = vsub.f32 %v10494_v28, %v10854_v16  ;;  %v6921_v34 = vadd.f32 %v6920_v56, %v6919_v15  ;;  %v13679_v28 = vld [vmem:[#allocation37_spill] sm:$0xff]  ;;  %v13680_v16 = vld [vmem:[#allocation66_spill] sm:$0xff]  ;;  %v13682_v56 = vld [vmem:[#allocation71_spill] sm:$0xff] }
 0x708   : > { %v5005_v23 = vpop.f32.mrf.mxu3  ;;  %3085 = vrot.lane.b32.xlu2 %v2913_v25, %s8275_s6  ;;  %v13674_v25 = vld [vmem:[#allocation10_spill] sm:$0xff]  ;;  %7927 = vpow2.f32 %v7624_v0  ;;  %v11736_v52 = vmul.f32 %v13677_v39, %v13677_v39  ;;  %v6776_v0 = vsub.f32 %v8199_v12, %v6151_v6  ;;  %v11745_v15 = vmul.f32 %v13680_v16, %v13680_v16  ;;  %v13689_v39 = vld [vmem:[#allocation72_spill] sm:$0xff] }
 0x709   : > { %v5006_v47 = vadd.f32 %v11590_v24, %v5005_v23  ;;  %7518 = vmatmul.msk.f32.gmra.mxu3 %vm691_vm2, %v4645_v51  ;;  %v3338_v53 = vpop.permute.xlu0 %3337  ;;  %v13675_v19 = vsub.f32 %v10436_v10, %v13674_v25  ;;  %v8198_v51 = vld [vmem:[%s8320_s25 + $0x188] sm:$0xff]  ;;  %v11731_v25 = vadd.f32 1.0, %v7920_v33  ;;  %v6923_v33 = vadd.f32 %v6922_v54, %v6921_v34 }
 0x70a   : > { %v3342_v26 = vpop.permute.xlu2 %3341  ;;  %v2918_v5 = vmul.f32 %v8198_v51, %v8198_v51  ;;  %13678 = vst [vmem:[#allocation79_spill] sm:$0xff] %v11736_v52  ;;  %vm11757_vm13 = vcmp.eq.f32.partialorder %v6162_v49, 8.507059e+37  ;;  %v6161_v54 = vsel %vm11753_vm12, %v11610_v55, %v6157_v35  ;;  %v6179_v12 = vand.u32 2147483648, %v11582_v2  ;;  %v8215_v52 = vld [vmem:[%s8320_s25 + $0x168] sm:$0xff] }
 0x70b   : > { %v11717_v17 = vsub.f32 %v13675_v19, %v3338_v53  ;;  %v5109_v23 = vmax.f32 %v5006_v47, 0.0  ;;  %v11727_v40 = vsub.f32 %v13676_v63, %v3342_v26  ;;  %v11729_v53 = vpop.eup %7921  ;;  %13681 = vst [vmem:[#allocation9_spill] sm:$0xff] %v11745_v15  ;;  %v11749_v47 = vmul.f32 %v13682_v56, %v13682_v56 }
 0x70c   : > { %v4560_v10 = vpop.f32.mrf.mxu2  ;;  %v6171_v19 = vmul.f32 %v11660_v48, %v6170_v22  ;;  %v7924_v51 = vpop.eup %7923  ;;  %v6165_v63 = vor.u32 1.1754944e-38, %v6164_v29  ;;  %7929 = vrcp.f32 %v11731_v25  ;;  %v13690_v26 = vsub.f32 %v10486_v59, %v10908_v3  ;;  %v8201_v3 = vld [vmem:[%s8320_s25 + $0x178] sm:$0xff] }
 0x70d   : > { %v4561_v14 = vadd.f32 %v11310_v18, %v4560_v10  ;;  %7574 = vmatmul.msk.f32.gmra.mxu0 %vm691_vm2, %v5109_v23  ;;  %3369 = vrot.lane.b32.xlu1 %v13679_v28, %s8274_s18  ;;  %13683 = vst [vmem:[#allocation81_spill] sm:$0xff] %v11749_v47  ;;  %v6924_v23 = vsel %vm214_vm1, %v6839_v41, 0.0  ;;  %v6184_v10 = vmul.f32 %v11729_v53, %v11663_v58  ;;  %v11773_v22 = vpop.eup %7925  ;;  %v11785_v28 = vld [vmem:[%s13175_s1 + $0x13f] ss:$0 sm:$0xff]  ;;  %vm6174_vm14 = vweird.f32 %v11660_v48  ;;  %v11800_v41 = vpop.f32.mrf.mxu0 }
 0x70e   : > { %v7928_v35 = vpop.eup %7927  ;;  %v5439_v16 = vadd.f32 %v11785_v28, %v11561_v30  ;;  %v6925_v11 = vadd.f32 %v6924_v23, %v6923_v33  ;;  %vm11827_vm3 = vmor %vm6173_vm15, %vm6174_vm14  ;;  %vm6189_vm5 = vweird.f32 %v11729_v53  ;;  %vm6188_vm6 = vweird.f32 %v11663_v58 }
 0x70f   : > { %v4646_v6 = vmax.f32 %v4561_v14, 0.0  ;;  %3095 = vrot.lane.b32.xlu0 %v2918_v5, %s8275_s6  ;;  %v11769_v49 = vpop.permute.xlu1 %3049  ;;  %v6177_v5 = vand.u32 2147483647, %v11582_v2  ;;  %v6840_v14 = vmul.f32 %v6776_v0, %v6776_v0  ;;  %v6166_v0 = vsel %vm11757_vm13, %v6165_v63, %v6161_v54  ;;  %v8202_v63 = vld [vmem:[%s8320_s25 + $0xc0] sm:$0xff]  ;;  %vm11886_vm8 = vmor %vm6188_vm6, %vm6189_vm5 }
 0x710   : > { %13688 = vst [vmem:[#allocation61_spill] sm:$0xff] %v11769_v49  ;;  %v5008_v34 = vpop.f32.mrf.mxu3  ;;  %3405 = vrot.lane.b32.xlu2 %v13689_v39, %s8274_s18  ;;  %v11798_v39 = vadd.f32 1.0, %v7924_v51  ;;  %v6185_v4 = vsub.f32 1.0, %v6184_v10  ;;  %v13691_v49 = vld [vmem:[#allocation2_spill] sm:$0xff]  ;;  %v11811_v54 = vadd.f32 1.0, %v7928_v35  ;;  %v13698_v35 = vld [vmem:[#allocation84_spill] sm:$0xff]  ;;  %vm6203_vm9 = vweird.f32 %v11693_v43 }
 0x711   : > { %v5009_v55 = vadd.f32 %v11590_v24, %v5008_v34  ;;  %7519 = vmatmul.msk.f32.gmra.mxu3 %vm691_vm2, %v4646_v6  ;;  %v3344_v29 = vpop.permute.xlu0 %3343  ;;  %v6172_v6 = vadd.f32 %v11660_v48, %v6171_v19  ;;  %v13692_v60 = vsub.f32 %v10553_v8, %v13691_v49  ;;  %v6199_v19 = vmul.f32 %v11773_v22, %v11693_v43 }
 0x712   : > { %v3348_v56 = vpop.permute.xlu2 %3347  ;;  %v11792_v34 = vsub.f32 %v13690_v26, %v3344_v29  ;;  %v2916_v29 = vmul.f32 %v8201_v3, %v8201_v3  ;;  %v6777_v26 = vsub.f32 %v8202_v63, %v6166_v0  ;;  %vm11814_vm0 = vcmp.eq.f32.partialorder %v6177_v5, 8.507059e+37  ;;  %v11822_v2 = vpop.eup %7929 }
 0x713   : > { %v5110_v30 = vmax.f32 %v5009_v55, 0.0  ;;  %v11805_v59 = vsub.f32 %v13692_v60, %v3348_v56  ;;  %v7625_v8 = vmul.f32 -1.442695, %v5439_v16  ;;  %v13695_v60 = vld [vmem:[#allocation42_spill] sm:$0xff]  ;;  %v6926_v23 = vsel %vm214_vm1, %v6840_v14, 0.0 }
 0x714   : > { %v6180_v5 = vor.u32 1.1754944e-38, %v6179_v12  ;;  %v6192_v55 = vand.u32 2147483647, %v11663_v58  ;;  %7931 = vrcp.f32 %v11798_v39  ;;  %v6176_v16 = vsel %vm11827_vm3, %v11660_v48, %v6172_v6 }
 0x715   : > { %v4563_v51 = vpop.f32.mrf.mxu2  ;;  %3375 = vrot.lane.b32.xlu1 %v13695_v60, %s8274_s18  ;;  %7575 = vmatmul.msk.f32.gmra.mxu0 %vm691_vm2, %v5110_v30  ;;  %v6186_v14 = vmul.f32 %v11729_v53, %v6185_v4  ;;  %v5442_v56 = vadd.f32 %v11785_v28, %v11634_v38  ;;  %v6200_v3 = vsub.f32 1.0, %v6199_v19  ;;  %7933 = vrcp.f32 %v11811_v54  ;;  %v11854_v60 = vpop.f32.mrf.mxu0 }
 0x716   : > { %v4564_v33 = vadd.f32 %v11310_v18, %v4563_v51  ;;  %v6841_v4 = vmul.f32 %v6777_v26, %v6777_v26  ;;  %v6194_v63 = vand.u32 2147483648, %v11663_v58  ;;  %v6214_v38 = vmul.f32 %v11822_v2, %v11731_v25 }
 0x717   : > { %3415 = vrot.lane.b32.xlu0 %v13698_v35, %s8274_s18  ;;  %v11841_v30 = vpop.permute.xlu1 %3055  ;;  %7935 = vpow2.f32 %v7625_v8  ;;  %v6181_v19 = vsel %vm11814_vm0, %v6180_v5, %v6176_v16  ;;  %v13700_v49 = vsub.f32 %v10798_v9, %v10968_v42  ;;  %v8203_v35 = vld [vmem:[%s8320_s25 + $0x1a0] sm:$0xff]  ;;  %v6187_v51 = vadd.f32 %v11729_v53, %v6186_v14 }
 0x718   : > { %v4647_v0 = vmax.f32 %v4564_v33, 0.0  ;;  %13699 = vst [vmem:[#allocation46_spill] sm:$0xff] %v11841_v30  ;;  %v5011_v12 = vpop.f32.mrf.mxu3  ;;  %3091 = vrot.lane.b32.xlu2 %v2916_v29, %s8275_s6  ;;  %v7626_v8 = vmul.f32 -1.442695, %v5442_v56  ;;  %v13702_v30 = vld [vmem:[#allocation13_spill] sm:$0xff]  ;;  %vm11872_vm7 = vcmp.eq.f32.partialorder %v6192_v55, 8.507059e+37  ;;  %v6201_v42 = vmul.f32 %v11773_v22, %v6200_v3 }
 0x719   : > { %v5012_v48 = vadd.f32 %v11590_v24, %v5011_v12  ;;  %v3350_v6 = vpop.permute.xlu0 %3349  ;;  %v2921_v12 = vmul.f32 %v8203_v35, %v8203_v35  ;;  %v8204_v56 = vld [vmem:[%s8320_s25 + $0xc8] sm:$0xff]  ;;  %v6195_v35 = vor.u32 1.1754944e-38, %v6194_v63  ;;  %v6209_v55 = vand.u32 2147483648, %v11693_v43 }
 0x71a   : > { %7520 = vmatmul.msk.f32.gmra.mxu3 %vm691_vm2, %v4647_v0  ;;  %v3354_v29 = vpop.permute.xlu2 %3353  ;;  %v13701_v0 = vld [vmem:[#allocation30_spill] sm:$0xff]  ;;  %v11869_v16 = vpop.eup %7931  ;;  %v6191_v63 = vsel %vm11886_vm8, %v11729_v53, %v6187_v51  ;;  %vm6204_vm10 = vweird.f32 %v11773_v22  ;;  %7937 = vpow2.f32 %v7626_v8  ;;  %v13711_v58 = vsub.f32 %v10879_v32, %v11013_v57 }
 0x71b   : > { %v5111_v33 = vmax.f32 %v5012_v48, 0.0  ;;  %v11859_v26 = vsub.f32 %v13700_v49, %v3354_v29  ;;  %v13703_v10 = vsub.f32 %v13701_v0, %v13702_v30  ;;  %v6927_v48 = vadd.f32 %v6926_v23, %v6925_v11  ;;  %v11882_v11 = vpop.eup %7933  ;;  %v13710_v0 = vld [vmem:[#allocation78_spill] sm:$0xff]  ;;  %vm11933_vm11 = vmor %vm6203_vm9, %vm6204_vm10 }
 0x71c   : > { %v6928_v29 = vsel %vm214_vm1, %v6841_v4, 0.0  ;;  %v6778_v49 = vsub.f32 %v8204_v56, %v6181_v19  ;;  %v6215_v30 = vsub.f32 1.0, %v6214_v38  ;;  %v6207_v23 = vand.u32 2147483647, %v11693_v43 }
 0x71d   : > { %v11867_v5 = vsub.f32 %v13703_v10, %v3350_v6  ;;  %v4566_v14 = vpop.f32.mrf.mxu2  ;;  %v13706_v6 = vld [vmem:[#allocation44_spill] sm:$0xff]  ;;  %7576 = vmatmul.msk.f32.gmra.mxu0 %vm691_vm2, %v5111_v33  ;;  %v7936_v4 = vpop.eup %7935  ;;  %v6229_v38 = vmul.f32 %v11869_v16, %v11798_v39  ;;  %v6244_v8 = vmul.f32 %v11882_v11, %v11811_v54  ;;  %v6196_v15 = vsel %vm11872_vm7, %v6195_v35, %v6191_v63 }
 0x71e   : > { %3381 = vrot.lane.b32.xlu1 %v13706_v6, %s8274_s18  ;;  %v4567_v3 = vadd.f32 %v11310_v18, %v4566_v14  ;;  %v6202_v18 = vadd.f32 %v11773_v22, %v6201_v42  ;;  %v6842_v14 = vmul.f32 %v6778_v49, %v6778_v49  ;;  %v6216_v56 = vmul.f32 %v11822_v2, %v6215_v30  ;;  %v13712_v49 = vld [vmem:[#allocation5_spill] sm:$0xff]  ;;  %v13713_v10 = vld [vmem:[#allocation40_spill] sm:$0xff]  ;;  %v11947_v63 = vpop.f32.mrf.mxu0 }
 0x71f   : > { %3101 = vrot.lane.b32.xlu0 %v2921_v12, %s8275_s6  ;;  %v11901_v19 = vpop.permute.xlu1 %3061  ;;  %v11917_v42 = vadd.f32 1.0, %v7936_v4  ;;  %v13714_v30 = vsub.f32 %v13712_v49, %v13713_v10  ;;  %v6230_v57 = vsub.f32 1.0, %v6229_v38  ;;  %v8205_v4 = vld [vmem:[%s8320_s25 + $0x190] sm:$0xff]  ;;  %v6929_v10 = vadd.f32 %v6928_v29, %v6927_v48  ;;  %v13719_v48 = vld [vmem:[#allocation55_spill] sm:$0xff] }
 0x720   : > { %13709 = vst [vmem:[#allocation11_spill] sm:$0xff] %v11901_v19  ;;  %v5014_v33 = vpop.f32.mrf.mxu3  ;;  %3411 = vrot.lane.b32.xlu2 %v13710_v0, %s8274_s18  ;;  %v4648_v12 = vmax.f32 %v4567_v3, 0.0  ;;  %v5445_v3 = vadd.f32 %v11785_v28, %v11707_v44  ;;  %v5448_v44 = vadd.f32 %v11785_v28, %v11800_v41  ;;  %v6206_v9 = vsel %vm11933_vm11, %v11773_v22, %v6202_v18  ;;  %v8206_v29 = vld [vmem:[%s8320_s25 + $0xd0] sm:$0xff]  ;;  %v13720_v18 = vld [vmem:[#allocation89_spill] sm:$0xff] }
 0x721   : > { %v5015_v53 = vadd.f32 %v11590_v24, %v5014_v33  ;;  %v3356_v51 = vpop.permute.xlu0 %3355  ;;  %vm11943_vm12 = vcmp.eq.f32.partialorder %v6207_v23, 8.507059e+37  ;;  %v6210_v43 = vor.u32 1.1754944e-38, %v6209_v55  ;;  %v6217_v38 = vadd.f32 %v11822_v2, %v6216_v56  ;;  %v13725_v35 = vld [vmem:[#allocation8_spill] sm:$0xff] }
 0x722   : > { %v3360_v6 = vpop.permute.xlu2 %3359  ;;  %v11915_v0 = vsub.f32 %v13711_v58, %v3356_v51  ;;  %7521 = vmatmul.msk.f32.gmra.mxu3 %vm691_vm2, %v4648_v12  ;;  %v2919_v12 = vmul.f32 %v8205_v4, %v8205_v4  ;;  %vm6219_vm13 = vweird.f32 %v11822_v2  ;;  %v6224_v41 = vand.u32 2147483648, %v11731_v25 }
 0x723   : > { %v5112_v33 = vmax.f32 %v5015_v53, 0.0  ;;  %v11925_v19 = vsub.f32 %v13714_v30, %v3360_v6  ;;  %v7938_v53 = vpop.eup %7937  ;;  %v6245_v51 = vsub.f32 1.0, %v6244_v8  ;;  %v6930_v22 = vsel %vm214_vm1, %v6842_v14, 0.0 }
 0x724   : > { %v6779_v23 = vsub.f32 %v8206_v29, %v6196_v15  ;;  %7939 = vrcp.f32 %v11917_v42  ;;  %v7627_v55 = vmul.f32 -1.442695, %v5445_v3  ;;  %v6211_v56 = vsel %vm11943_vm12, %v6210_v43, %v6206_v9  ;;  %v13724_v9 = vld [vmem:[#allocation38_spill] sm:$0xff]  ;;  %v13728_v29 = vld [vmem:[#allocation47_spill] sm:$0xff] }
 0x725   : > { %7577 = vmatmul.msk.f32.gmra.mxu0 %vm691_vm2, %v5112_v33  ;;  %vm6218_vm14 = vweird.f32 %v11731_v25  ;;  %v6231_v8 = vmul.f32 %v11869_v16, %v6230_v57  ;;  %v7628_v6 = vmul.f32 -1.442695, %v5448_v44  ;;  %v6222_v14 = vand.u32 2147483647, %v11731_v25 }
 0x726   : > { %3387 = vrot.lane.b32.xlu1 %v13719_v48, %s8274_s18  ;;  %vm11969_vm15 = vmor %vm6218_vm14, %vm6219_vm13  ;;  %v11974_v3 = vadd.f32 1.0, %v7938_v53  ;;  %v6225_v44 = vor.u32 1.1754944e-38, %v6224_v41  ;;  %v6246_v4 = vmul.f32 %v11882_v11, %v6245_v51  ;;  %v13726_v43 = vsub.f32 %v13724_v9, %v13725_v35  ;;  %v13727_v48 = vld [vmem:[#allocation15_spill] sm:$0xff]  ;;  %v13731_v51 = vld [vmem:[#allocation77_spill] sm:$0xff] }
 0x727   : > { %3421 = vrot.lane.b32.xlu0 %v13720_v18, %s8274_s18  ;;  %v11964_v58 = vpop.permute.xlu1 %3067  ;;  %v6221_v57 = vsel %vm11969_vm15, %v11822_v2, %v6217_v38  ;;  %7941 = vpow2.f32 %v7627_v55  ;;  %v13729_v18 = vsub.f32 %v13727_v48, %v13728_v29  ;;  %v6232_v2 = vadd.f32 %v11869_v16, %v6231_v8 }
 0x728   : > { %13721 = vst [vmem:[#allocation65_spill] sm:$0xff] %v11964_v58  ;;  %v5017_v33 = vpop.f32.mrf.mxu3  ;;  %3097 = vrot.lane.b32.xlu2 %v2919_v12, %s8275_s6  ;;  %vm6234_vm0 = vweird.f32 %v11869_v16  ;;  %v6239_v38 = vand.u32 2147483648, %v11798_v39  ;;  %7943 = vpow2.f32 %v7628_v6  ;;  %vm6223_vm3 = vcmp.eq.f32.partialorder %v6222_v14, 8.507059e+37  ;;  %v8208_v14 = vld [vmem:[%s8320_s25 + $0xd8] sm:$0xff] }
 0x729   : > { %v5018_v30 = vadd.f32 %v11590_v24, %v5017_v33  ;;  %v3362_v32 = vpop.permute.xlu0 %3361  ;;  %v8207_v33 = vld [vmem:[%s8320_s25 + $0x1b8] sm:$0xff]  ;;  %7945 = vrcp.f32 %v11974_v3  ;;  %v12002_v55 = vmul.f32 %v13731_v51, %v13731_v51  ;;  %v6931_v15 = vadd.f32 %v6930_v22, %v6929_v10 }
 0x72a   : > { %v3366_v12 = vpop.permute.xlu2 %3365  ;;  %v11986_v25 = vsub.f32 %v13726_v43, %v3362_v32  ;;  %v2924_v49 = vmul.f32 %v8207_v33, %v8207_v33  ;;  %v11997_v41 = vpop.eup %7939  ;;  %vm6233_vm5 = vweird.f32 %v11798_v39  ;;  %v6237_v8 = vand.u32 2147483647, %v11798_v39  ;;  %v13733_v32 = vld [vmem:[#allocation59_spill] sm:$0xff]  ;;  %v8209_v43 = vld [vmem:[%s8320_s25 + $0xe0] sm:$0xff]  ;;  %v13741_v51 = vld [vmem:[#allocation45_spill] sm:$0xff] }
 0x72b   : > { %v5113_v53 = vmax.f32 %v5018_v30, 0.0  ;;  %v11991_v24 = vsub.f32 %v13729_v18, %v3366_v12  ;;  %13732 = vst [vmem:[#allocation25_spill] sm:$0xff] %v12002_v55  ;;  %v6226_v30 = vsel %vm6223_vm3, %v6225_v44, %v6221_v57  ;;  %v6843_v6 = vmul.f32 %v6779_v23, %v6779_v23  ;;  %vm12012_vm6 = vmor %vm6233_vm5, %vm6234_vm0  ;;  %v12018_v39 = vpop.f32.mrf.mxu0 }
 0x72c   : > { %v6780_v12 = vsub.f32 %v8208_v14, %v6211_v56  ;;  %v6247_v10 = vadd.f32 %v11882_v11, %v6246_v4  ;;  %vm6249_vm7 = vweird.f32 %v11882_v11  ;;  %v6236_v22 = vsel %vm12012_vm6, %v11869_v16, %v6232_v2  ;;  %v13737_v4 = vld [vmem:[#allocation83_spill] sm:$0xff]  ;;  %v13744_v16 = vld [vmem:[#allocation21_spill] sm:$0xff] }
 0x72d   : > { %13730 = vst [vmem:[#allocation50_spill] sm:$0xff] %v11991_v24  ;;  %7578 = vmatmul.msk.f32.gmra.mxu0 %vm691_vm2, %v5113_v53  ;;  %v6240_v23 = vor.u32 1.1754944e-38, %v6239_v38  ;;  %v6254_v56 = vand.u32 2147483648, %v11811_v54  ;;  %v6259_v57 = vmul.f32 %v11997_v41, %v11917_v42  ;;  %v7942_v35 = vpop.eup %7941  ;;  %v6781_v53 = vsub.f32 %v8209_v43, %v6226_v30  ;;  %v13740_v38 = vld [vmem:[#allocation12_spill] sm:$0xff] }
 0x72e   : > { %3393 = vrot.lane.b32.xlu1 %v13733_v32, %s8274_s18  ;;  %vm6248_vm8 = vweird.f32 %v11811_v54  ;;  %v7944_v29 = vpop.eup %7943  ;;  %vm6238_vm9 = vcmp.eq.f32.partialorder %v6237_v8, 8.507059e+37  ;;  %v5451_v33 = vadd.f32 %v11785_v28, %v11854_v60  ;;  %v8210_v32 = vld [vmem:[%s8320_s25 + $0x150] sm:$0xff]  ;;  %v6844_v8 = vmul.f32 %v6780_v12, %v6780_v12 }
 0x72f   : > { %3107 = vrot.lane.b32.xlu0 %v2924_v49, %s8275_s6  ;;  %v12027_v44 = vpop.permute.xlu1 %3073  ;;  %v6252_v49 = vand.u32 2147483647, %v11811_v54  ;;  %vm12038_vm10 = vmor %vm6248_vm8, %vm6249_vm7  ;;  %v13742_v54 = vsub.f32 %v13740_v38, %v13741_v51  ;;  %v2911_v14 = vmul.f32 %v8210_v32, %v8210_v32  ;;  %v12050_v9 = vpop.eup %7945  ;;  %v6255_v58 = vor.u32 1.1754944e-38, %v6254_v56  ;;  %v8211_v51 = vld [vmem:[%s8320_s25 + $0x1a8] sm:$0xff]  ;;  %v13748_v56 = vld [vmem:[#allocation82_spill] sm:$0xff] }
 0x730   : > { %13736 = vst [vmem:[#allocation34_spill] sm:$0xff] %v12027_v44  ;;  %3417 = vrot.lane.b32.xlu2 %v13737_v4, %s8274_s18  ;;  %v6241_v4 = vsel %vm6238_vm9, %v6240_v23, %v6236_v22  ;;  %v6251_v43 = vsel %vm12038_vm10, %v11882_v11, %v6247_v10  ;;  %v13745_v44 = vld [vmem:[#allocation24_spill] sm:$0xff]  ;;  %v6260_v38 = vsub.f32 1.0, %v6259_v57  ;;  %v6932_v32 = vsel %vm214_vm1, %v6843_v6, 0.0  ;;  %v8212_v22 = vld [vmem:[%s8320_s25 + $0xe8] sm:$0xff]  ;;  %v13749_v6 = vld [vmem:[#allocation94_spill] sm:$0xff] }
 0x731   : > { %v3368_v48 = vpop.permute.xlu0 %3367  ;;  %v13746_v60 = vsub.f32 %v13744_v16, %v13745_v44  ;;  %v6845_v47 = vmul.f32 %v6781_v53, %v6781_v53  ;;  %vm6253_vm11 = vcmp.eq.f32.partialorder %v6252_v49, 8.507059e+37  ;;  %v12064_v12 = vadd.f32 1.0, %v7944_v29  ;;  %v8213_v29 = vld [vmem:[%s8320_s25 + $0xf0] sm:$0xff] }
 0x732   : > { %v3372_v2 = vpop.permute.xlu2 %3371  ;;  %v12047_v30 = vsub.f32 %v13742_v54, %v3368_v48  ;;  %v12060_v48 = vadd.f32 1.0, %v7942_v35  ;;  %v2922_v54 = vmul.f32 %v8211_v51, %v8211_v51  ;;  %v6782_v11 = vsub.f32 %v8212_v22, %v6241_v4  ;;  %v13755_v22 = vld [vmem:[#allocation51_spill] sm:$0xff] }
 0x733   : > { %v12058_v55 = vsub.f32 %v13746_v60, %v3372_v2  ;;  %v6256_v10 = vsel %vm6253_vm11, %v6255_v58, %v6251_v43  ;;  %v6274_v23 = vmul.f32 %v12050_v9, %v11974_v3  ;;  %v7629_v44 = vmul.f32 -1.442695, %v5451_v33  ;;  %v12085_v33 = vpop.f32.mrf.mxu0  ;;  %v13750_v43 = vld [vmem:[#allocation29_spill] sm:$0xff]  ;;  %v13751_v60 = vld [vmem:[#allocation54_spill] sm:$0xff] }
 0x734   : > { %13743 = vst [vmem:[#allocation16_spill] sm:$0xff] %v12047_v30  ;;  %v12072_v57 = vmul.f32 %v13748_v56, %v13748_v56  ;;  %v6933_v35 = vadd.f32 %v6932_v32, %v6931_v15  ;;  %v6934_v53 = vsel %vm214_vm1, %v6844_v8, 0.0  ;;  %v6261_v49 = vmul.f32 %v11997_v41, %v6260_v38  ;;  %v13754_v32 = vld [vmem:[#allocation14_spill] sm:$0xff]  ;;  %v13768_v15 = vld [vmem:[#allocation63_spill] sm:$0xff] }
 0x735   : > { %13747 = vst [vmem:[#allocation49_spill] sm:$0xff] %v12058_v55  ;;  %7947 = vrcp.f32 %v12060_v48  ;;  %v6936_v16 = vsel %vm214_vm1, %v6845_v47, 0.0  ;;  %v6783_v18 = vsub.f32 %v8213_v29, %v6256_v10  ;;  %v6275_v8 = vsub.f32 1.0, %v6274_v23  ;;  %v13771_v55 = vld [vmem:[#allocation64_spill] sm:$0xff] }
 0x736   : > { %3081 = vrot.lane.b32.xlu1 %v2911_v14, %s8275_s6  ;;  %7949 = vrcp.f32 %v12064_v12  ;;  %v6846_v14 = vmul.f32 %v6782_v11, %v6782_v11  ;;  %v13752_v38 = vsub.f32 %v13750_v43, %v13751_v60  ;;  %v6267_v47 = vand.u32 2147483647, %v11917_v42 }
 0x737   : > { %3427 = vrot.lane.b32.xlu0 %v13749_v6, %s8274_s18  ;;  %v12079_v58 = vpop.permute.xlu1 %3079  ;;  %7951 = vpow2.f32 %v7629_v44  ;;  %v13756_v10 = vsub.f32 %v13754_v32, %v13755_v22  ;;  %v8214_v6 = vld [vmem:[%s8320_s25 + $0x1d0] sm:$0xff]  ;;  %v6935_v11 = vadd.f32 %v6934_v53, %v6933_v35  ;;  %v6262_v23 = vadd.f32 %v11997_v41, %v6261_v49  ;;  %v13763_v22 = vld [vmem:[#allocation85_spill] sm:$0xff] }
 0x738   : > { %3103 = vrot.lane.b32.xlu2 %v2922_v54, %s8275_s6  ;;  %v6269_v54 = vand.u32 2147483648, %v11917_v42  ;;  %v2927_v29 = vmul.f32 %v8214_v6, %v8214_v6  ;;  %vm6264_vm12 = vweird.f32 %v11997_v41  ;;  %v5454_v44 = vadd.f32 %v11785_v28, %v11947_v63  ;;  %v13764_v6 = vld [vmem:[#allocation116_spill] sm:$0xff]  ;;  %v8216_v63 = vld [vmem:[%s8320_s25 + $0x1c0] sm:$0xff] }
 0x739   : > { %v3374_v2 = vpop.permute.xlu0 %3373  ;;  %v6937_v60 = vadd.f32 %v6936_v16, %v6935_v11  ;;  %vm6263_vm13 = vweird.f32 %v11917_v42  ;;  %v6938_v35 = vsel %vm214_vm1, %v6846_v14, 0.0  ;;  %vm12119_vm15 = vcmp.eq.f32.partialorder %v6267_v47, 8.507059e+37 }
 0x73a   : > { %v3378_v4 = vpop.permute.xlu2 %3377  ;;  %v12092_v51 = vsub.f32 %v13752_v38, %v3374_v2  ;;  %v6847_v2 = vmul.f32 %v6783_v18, %v6783_v18  ;;  %v6276_v38 = vmul.f32 %v12050_v9, %v6275_v8  ;;  %vm12115_vm14 = vmor %vm6263_vm13, %vm6264_vm12  ;;  %v6270_v49 = vor.u32 1.1754944e-38, %v6269_v54 }
 0x73b   : > { %v12099_v56 = vsub.f32 %v13756_v10, %v3378_v4  ;;  %v12106_v43 = vpop.eup %7947  ;;  %v13758_v4 = vld [vmem:[#allocation69_spill] sm:$0xff]  ;;  %vm6278_vm0 = vweird.f32 %v11974_v3  ;;  %v6266_v16 = vsel %vm12115_vm14, %v11997_v41, %v6262_v23  ;;  %v6282_v18 = vand.u32 2147483647, %v11974_v3 }
 0x73c   : > { %13753 = vst [vmem:[#allocation53_spill] sm:$0xff] %v12092_v51  ;;  %v12112_v32 = vpop.eup %7949  ;;  %v6284_v14 = vand.u32 2147483648, %v11974_v3  ;;  %v7630_v8 = vmul.f32 -1.442695, %v5454_v44  ;;  %v6940_v54 = vsel %vm214_vm1, %v6847_v2, 0.0  ;;  %vm6279_vm3 = vweird.f32 %v12050_v9 }
 0x73d   : > { %13757 = vst [vmem:[#allocation56_spill] sm:$0xff] %v12099_v56  ;;  %v7952_v42 = vpop.eup %7951  ;;  %v6289_v10 = vmul.f32 %v12106_v43, %v12060_v48  ;;  %v6304_v44 = vmul.f32 %v12112_v32, %v12064_v12  ;;  %v2914_v51 = vmul.f32 %v8215_v52, %v8215_v52  ;;  %vm12168_vm5 = vmor %vm6278_vm0, %vm6279_vm3  ;;  %vm12172_vm6 = vcmp.eq.f32.partialorder %v6282_v18, 8.507059e+37 }
 0x73e   : > { %3401 = vrot.lane.b32.xlu1 %v13758_v4, %s8274_s18  ;;  %v6277_v4 = vadd.f32 %v12050_v9, %v6276_v38  ;;  %7953 = vpow2.f32 %v7630_v8  ;;  %v6285_v18 = vor.u32 1.1754944e-38, %v6284_v14  ;;  %vm6293_vm7 = vweird.f32 %v12060_v48 }
 0x73f   : > { %3113 = vrot.lane.b32.xlu0 %v2927_v29, %s8275_s6  ;;  %v3322_v47 = vpop.permute.xlu1 %3321  ;;  %v13765_v29 = vld [vmem:[#allocation20_spill] sm:$0xff]  ;;  %vm6294_vm9 = vweird.f32 %v12106_v43  ;;  %vm6309_vm10 = vweird.f32 %v12112_v32  ;;  %vm6308_vm12 = vweird.f32 %v12064_v12 }
 0x740   : > { %3423 = vrot.lane.b32.xlu2 %v13763_v22, %s8274_s18  ;;  %v13766_v11 = vsub.f32 %v13764_v6, %v13765_v29  ;;  %v13767_v22 = vld [vmem:[#allocation17_spill] sm:$0xff]  ;;  %v6271_v6 = vsel %vm12119_vm15, %v6270_v49, %v6266_v16  ;;  %v12152_v29 = vpop.f32.mrf.mxu0  ;;  %v6939_v49 = vadd.f32 %v6938_v35, %v6937_v60  ;;  %v6281_v60 = vsel %vm12168_vm5, %v12050_v9, %v6277_v4  ;;  %vm12244_vm11 = vmor %vm6293_vm7, %vm6294_vm9 }
 0x741   : > { %v3380_v23 = vpop.permute.xlu0 %3379  ;;  %v13769_v2 = vsub.f32 %v13767_v22, %v13768_v15  ;;  %v5457_v15 = vadd.f32 %v11785_v28, %v12018_v39  ;;  %v3579_v39 = vsel %vm3573_vm4, %v11536_v1, 0.0  ;;  %v6305_v35 = vsub.f32 1.0, %v6304_v44  ;;  %v13777_v1 = vld [vmem:[#allocation103_spill] sm:$0xff]  ;;  %vm12262_vm13 = vmor %vm6308_vm12, %vm6309_vm10 }
 0x742   : > { %v3511_v41 = vsub.f32 %v13766_v11, %v3322_v47  ;;  %v3384_v53 = vpop.permute.xlu2 %3383  ;;  %v12150_v47 = vadd.f32 1.0, %v7952_v42  ;;  %v13770_v11 = vld [vmem:[#allocation41_spill] sm:$0xff]  ;;  %v12183_v8 = vadd.f32 %v6940_v54, %v6939_v49  ;;  %v13781_v49 = vld [vmem:[#allocation28_spill] sm:$0xff] }
 0x743   : > { %v12145_v56 = vsub.f32 %v13769_v2, %v3380_v23  ;;  %v13772_v30 = vsub.f32 %v13770_v11, %v13771_v55  ;;  %v2925_v23 = vmul.f32 %v8216_v63, %v8216_v63  ;;  %v7631_v9 = vmul.f32 -1.442695, %v5457_v15 }
 0x744   : > { %v3577_v38 = vsel %vm3573_vm4, %v3511_v41, 0.0  ;;  %v6297_v41 = vand.u32 2147483647, %v12060_v48  ;;  %7955 = vrcp.f32 %v12150_v47  ;;  %v6299_v15 = vand.u32 2147483648, %v12060_v48 }
 0x745   : > { %v12158_v24 = vsub.f32 %v13772_v30, %v3384_v53  ;;  %v3578_v52 = vadd.f32 %v3577_v38, %v11563_v61  ;;  %v6290_v30 = vsub.f32 1.0, %v6289_v10  ;;  %v8217_v61 = vld [vmem:[%s8320_s25 + $0xf8] sm:$0xff]  ;;  %v3581_v10 = vsel %vm3573_vm4, %v11597_v37, 0.0  ;;  %v13778_v37 = vld [vmem:[#allocation43_spill] sm:$0xff]  ;;  %v7954_v38 = vpop.eup %7953 }
 0x746   : > { %v6784_v16 = vsub.f32 %v8217_v61, %v6271_v6  ;;  %3087 = vrot.lane.b32.xlu1 %v2914_v51, %s8275_s6  ;;  %v6286_v51 = vsel %vm12172_vm6, %v6285_v18, %v6281_v60  ;;  %v13779_v54 = vsub.f32 %v13606_v13, %v13778_v37  ;;  %vm12207_vm8 = vcmp.eq.f32.partialorder %v6297_v41, 8.507059e+37  ;;  %v13786_v61 = vld [vmem:[#allocation4_spill] sm:$0xff]  ;;  %v8219_v18 = vld [vmem:[%s8320_s25 + $0x100] sm:$0xff] }
 0x747   : > { %v3580_v3 = vadd.f32 %v3579_v39, %v3578_v52  ;;  %3433 = vrot.lane.b32.xlu0 %v13777_v1, %s8274_s18  ;;  %v3328_v4 = vpop.permute.xlu1 %3327  ;;  %v4118_v53 = vpop.f32.mrf.mxu1  ;;  %v6291_v14 = vmul.f32 %v12106_v43, %v6290_v30  ;;  %v6306_v52 = vmul.f32 %v12112_v32, %v6305_v35  ;;  %v13785_v39 = vld [vmem:[#allocation57_spill] sm:$0xff]  ;;  %7957 = vpow2.f32 %v7631_v9 }
 0x748   : > { %3109 = vrot.lane.b32.xlu2 %v2925_v23, %s8275_s6  ;;  %v3514_v22 = vsub.f32 %v13779_v54, %v3328_v4  ;;  %v4119_v2 = vadd.f32 %v11551_v62, %v4118_v53  ;;  %v6848_v11 = vmul.f32 %v6784_v16, %v6784_v16  ;;  %v13780_v23 = vld [vmem:[#allocation27_spill] sm:$0xff]  ;;  %v13787_v16 = vsub.f32 %v13785_v39, %v13786_v61  ;;  %v5465_v54 = vpop.f32.mrf.mxu0 }
 0x749   : > { %v3582_v44 = vadd.f32 %v3581_v10, %v3580_v3  ;;  %v3386_v6 = vpop.permute.xlu0 %3385  ;;  %v13782_v42 = vsub.f32 %v13780_v23, %v13781_v49  ;;  %v8218_v3 = vld [vmem:[%s8320_s25 + $0x1e8] sm:$0xff]  ;;  %v6785_v10 = vsub.f32 %v8219_v18, %v6286_v51  ;;  %v5460_v1 = vadd.f32 %v11785_v28, %v12085_v33  ;;  %v13791_v23 = vld [vmem:[#allocation97_spill] sm:$0xff]  ;;  %v13792_v49 = vld [vmem:[#allocation18_spill] sm:$0xff] }
 0x74a   : > { %v3390_v63 = vpop.permute.xlu2 %3389  ;;  %v3583_v13 = vsel %vm3573_vm4, %v3514_v22, 0.0  ;;  %v4184_v62 = vmax.f32 %v4119_v2, 0.0  ;;  %v2930_v35 = vmul.f32 %v8218_v3, %v8218_v3  ;;  %v6292_v4 = vadd.f32 %v12106_v43, %v6291_v14  ;;  %v12228_v22 = vpop.eup %7955  ;;  %v13788_v14 = vld [vmem:[#allocation74_spill] sm:$0xff]  ;;  %v13800_v18 = vld [vmem:[#allocation73_spill] sm:$0xff]  ;;  %v13805_v61 = vld [vmem:[#allocation107_spill] sm:$0xff] }
 0x74b   : > { %v12205_v55 = vsub.f32 %v13782_v42, %v3386_v6  ;;  %v12215_v60 = vsub.f32 %v13787_v16, %v3390_v63  ;;  %v3584_v41 = vadd.f32 %v3583_v13, %v3582_v44  ;;  %v3585_v53 = vsel %vm3573_vm4, %v11602_v45, 0.0  ;;  %v13793_v42 = vld [vmem:[#allocation67_spill] sm:$0xff] }
 0x74c   : > { %v12225_v37 = vadd.f32 1.0, %v7954_v38  ;;  %7465 = vmatmul.msk.f32.gmra.mxu2 %vm691_vm2, %v4184_v62  ;;  %v6942_v9 = vsel %vm214_vm1, %v6848_v11, 0.0  ;;  %v6300_v51 = vor.u32 1.1754944e-38, %v6299_v15  ;;  %v6312_v33 = vand.u32 2147483647, %v12064_v12 }
 0x74d   : > { %v3586_v44 = vadd.f32 %v3585_v53, %v3584_v41  ;;  %v6307_v2 = vadd.f32 %v12112_v32, %v6306_v52  ;;  %v6314_v45 = vand.u32 2147483648, %v12064_v12  ;;  %v3587_v6 = vsel %vm3573_vm4, %v11658_v50, 0.0  ;;  %v7958_v39 = vpop.eup %7957  ;;  %v8220_v41 = vld [vmem:[%s8320_s25 + $0x180] sm:$0xff] }
 0x74e   : > { %3407 = vrot.lane.b32.xlu1 %v13788_v14, %s8274_s18  ;;  %v6849_v38 = vmul.f32 %v6785_v10, %v6785_v10  ;;  %v7632_v15 = vmul.f32 -1.442695, %v5460_v1  ;;  %v6296_v50 = vsel %vm12244_vm11, %v12106_v43, %v6292_v4  ;;  %v6319_v48 = vmul.f32 %v12228_v22, %v12150_v47  ;;  %v13802_v14 = vld [vmem:[#allocation48_spill] sm:$0xff] }
 0x74f   : > { %3119 = vrot.lane.b32.xlu0 %v2930_v35, %s8275_s6  ;;  %v3334_v52 = vpop.permute.xlu1 %3333  ;;  %v3588_v63 = vadd.f32 %v3587_v6, %v3586_v44  ;;  %7959 = vrcp.f32 %v12225_v37  ;;  %v13794_v13 = vsub.f32 %v13792_v49, %v13793_v42  ;;  %vm12266_vm14 = vcmp.eq.f32.partialorder %v6312_v33, 8.507059e+37  ;;  %v13799_v35 = vld [vmem:[#allocation68_spill] sm:$0xff]  ;;  %v13803_v6 = vld [vmem:[#allocation119_spill] sm:$0xff]  ;;  %v8221_v42 = vld [vmem:[%s8320_s25 + $0x1d8] sm:$0xff] }
 0x750   : > { %3429 = vrot.lane.b32.xlu2 %v13791_v23, %s8274_s18  ;;  %v5463_v16 = vadd.f32 %v11785_v28, %v12152_v29  ;;  %v13801_v10 = vsub.f32 %v13799_v35, %v13800_v18  ;;  %v2917_v4 = vmul.f32 %v8220_v41, %v8220_v41  ;;  %v6311_v53 = vsel %vm12262_vm13, %v12112_v32, %v6307_v2  ;;  %v8223_v35 = vld [vmem:[%s8320_s25 + $0x108] sm:$0xff] }
 0x751   : > { %v3517_v12 = vsub.f32 %v13794_v13, %v3334_v52  ;;  %v3392_v62 = vpop.permute.xlu0 %3391  ;;  %v6315_v44 = vor.u32 1.1754944e-38, %v6314_v45  ;;  %v13804_v11 = vsub.f32 %v13802_v14, %v13803_v6  ;;  %v6301_v29 = vsel %vm12207_vm8, %v6300_v51, %v6296_v50  ;;  %v12297_v45 = vld [vmem:[%s13175_s1 + $0x13d] ss:$0 sm:$0xff] }
 0x752   : > { %v3396_v3 = vpop.permute.xlu2 %3395  ;;  %v12275_v1 = vsub.f32 %v13801_v10, %v3392_v62  ;;  %7961 = vpow2.f32 %v7632_v15  ;;  %v4569_v49 = vpop.f32.mrf.mxu2  ;;  %v2928_v13 = vmul.f32 %v8221_v42, %v8221_v42  ;;  %v6320_v62 = vsub.f32 1.0, %v6319_v48 }
 0x753   : > { %v3589_v33 = vsel %vm3573_vm4, %v3517_v12, 0.0  ;;  %v12285_v52 = vsub.f32 %v13804_v11, %v3396_v3  ;;  %v3591_v32 = vsel %vm3573_vm4, %v11668_v27, 0.0  ;;  %v12292_v2 = vadd.f32 1.0, %v7958_v39  ;;  %v5468_v12 = vpop.f32.mrf.mxu0  ;;  %v13806_v3 = vld [vmem:[#allocation88_spill] sm:$0xff] }
 0x754   : > { %v3590_v23 = vadd.f32 %v3589_v33, %v3588_v63  ;;  %v4570_v30 = vadd.f32 %v12297_v45, %v4569_v49  ;;  %v6316_v51 = vsel %vm12266_vm14, %v6315_v44, %v6311_v53  ;;  %v7633_v15 = vmul.f32 -1.442695, %v5463_v16  ;;  %v13807_v53 = vld [vmem:[#allocation75_spill] sm:$0xff] }
 0x755   : > { %v12303_v50 = vpop.eup %7959  ;;  %v6943_v27 = vadd.f32 %v6942_v9, %v12183_v8  ;;  %v3593_v48 = vsel %vm3573_vm4, %v11717_v17, 0.0  ;;  %v12312_v43 = vmul.f32 %v13806_v3, %v13806_v3  ;;  %v6944_v16 = vsel %vm214_vm1, %v6849_v38, 0.0  ;;  %v8224_v17 = vld [vmem:[%s8320_s25 + $0x110] sm:$0xff] }
 0x756   : > { %v3592_v63 = vadd.f32 %v3591_v32, %v3590_v23  ;;  %3093 = vrot.lane.b32.xlu1 %v2917_v4, %s8275_s6  ;;  %v4649_v39 = vmax.f32 %v4570_v30, 0.0  ;;  %v6786_v18 = vsub.f32 %v8223_v35, %v6301_v29  ;;  %v5466_v10 = vadd.f32 %v11785_v28, %v5465_v54  ;;  %v13809_v29 = vld [vmem:[#allocation33_spill] sm:$0xff]  ;;  %v13810_v23 = vld [vmem:[#allocation7_spill] sm:$0xff]  ;;  %v13813_v30 = vld [vmem:[#allocation90_spill] sm:$0xff] }
 0x757   : > { %3439 = vrot.lane.b32.xlu0 %v13805_v61, %s8274_s18  ;;  %v3340_v41 = vpop.permute.xlu1 %3339  ;;  %v6787_v9 = vsub.f32 %v8224_v17, %v6316_v51  ;;  %v6321_v4 = vmul.f32 %v12228_v22, %v6320_v62  ;;  %7963 = vrcp.f32 %v12292_v2  ;;  %v13808_v44 = vsub.f32 %v13632_v46, %v13807_v53  ;;  %v13814_v35 = vld [vmem:[#allocation80_spill] sm:$0xff] }
 0x758   : > { %v3594_v8 = vadd.f32 %v3593_v48, %v3592_v63  ;;  %3115 = vrot.lane.b32.xlu2 %v2928_v13, %s8275_s6  ;;  %7522 = vmatmul.msk.f32.gmra.mxu3 %vm691_vm2, %v4649_v39  ;;  %v7962_v14 = vpop.eup %7961  ;;  %v6334_v54 = vmul.f32 %v12303_v50, %v12225_v37  ;;  %7965 = vpow2.f32 %v7633_v15  ;;  %v5469_v6 = vadd.f32 %v11785_v28, %v5468_v12 }
 0x759   : > { %v3520_v33 = vsub.f32 %v13808_v44, %v3340_v41  ;;  %v3398_v38 = vpop.permute.xlu0 %3397  ;;  %v13811_v49 = vsub.f32 %v13809_v29, %v13810_v23  ;;  %v12333_v13 = vadd.f32 %v6944_v16, %v6943_v27  ;;  %v13812_v62 = vsub.f32 %v12072_v57, %v12079_v58 }
 0x75a   : > { %v3400_v11 = vpop.permute.xlu2 %3399  ;;  %v12343_v51 = vmul.f32 %v13813_v30, %v13813_v30  ;;  %v12345_v28 = vmul.f32 %v6786_v18, %v6786_v18  ;;  %v3597_v15 = vsel %vm3573_vm4, %v11727_v40, 0.0  ;;  %v7634_v63 = vmul.f32 -1.442695, %v5466_v10  ;;  %v4572_v27 = vpop.f32.mrf.mxu2  ;;  %v8226_v30 = vld [vmem:[%s8320_s25 + $0x198] sm:$0xff] }
 0x75b   : > { %v12331_v42 = vsub.f32 %v13811_v49, %v3398_v38  ;;  %v3595_v46 = vsel %vm3573_vm4, %v3520_v33, 0.0  ;;  %v12339_v32 = vsub.f32 %v13812_v62, %v3400_v11  ;;  %v6322_v12 = vadd.f32 %v12228_v22, %v6321_v4  ;;  %v13819_v11 = vld [vmem:[#allocation39_spill] sm:$0xff] }
 0x75c   : > { %v3596_v48 = vadd.f32 %v3595_v46, %v3594_v8  ;;  %vm6324_vm15 = vweird.f32 %v12228_v22  ;;  %v12351_v39 = vadd.f32 1.0, %v7962_v14  ;;  %v4573_v57 = vadd.f32 %v12297_v45, %v4572_v27  ;;  %v12366_v8 = vld [vmem:[%s13175_s1 + $0x13e] ss:$0 sm:$0xff] }
 0x75d   : > { %v12354_v58 = vmul.f32 %v6787_v9, %v6787_v9  ;;  %v6335_v61 = vsub.f32 1.0, %v6334_v54  ;;  %v7635_v3 = vmul.f32 -1.442695, %v5469_v6  ;;  %v5020_v40 = vpop.f32.mrf.mxu3  ;;  %v12358_v18 = vpop.eup %7963  ;;  %vm6323_vm0 = vweird.f32 %v12150_v47  ;;  %v13815_v9 = vld [vmem:[#allocation111_spill] sm:$0xff]  ;;  %v13818_v14 = vld [vmem:[#allocation101_spill] sm:$0xff] }
 0x75e   : > { %v3598_v16 = vadd.f32 %v3597_v15, %v3596_v48  ;;  %3413 = vrot.lane.b32.xlu1 %v13814_v35, %s8274_s18  ;;  %v3599_v10 = vsel %vm3573_vm4, %v11792_v34, 0.0  ;;  %v4650_v41 = vmax.f32 %v4573_v57, 0.0  ;;  %v5021_v17 = vadd.f32 %v12366_v8, %v5020_v40  ;;  %v7966_v4 = vpop.eup %7965  ;;  %vm12373_vm3 = vmor %vm6323_vm0, %vm6324_vm15 }
 0x75f   : > { %3443 = vrot.lane.b32.xlu0 %v13815_v9, %s8274_s18  ;;  %v6327_v34 = vand.u32 2147483647, %v12150_v47  ;;  %v6329_v44 = vand.u32 2147483648, %v12150_v47  ;;  %7967 = vpow2.f32 %v7634_v63  ;;  %v3346_v33 = vpop.permute.xlu1 %3345  ;;  %v6326_v54 = vsel %vm12373_vm3, %v12228_v22, %v6322_v12 }
 0x760   : > { %v3600_v38 = vadd.f32 %v3599_v10, %v3598_v16  ;;  %3435 = vrot.lane.b32.xlu2 %v13818_v14, %s8274_s18  ;;  %7969 = vrcp.f32 %v12351_v39  ;;  %v5114_v6 = vmax.f32 %v5021_v17, 0.0  ;;  %v13820_v29 = vsub.f32 %v13646_v21, %v13819_v11  ;;  %7523 = vmatmul.msk.f32.gmra.mxu3 %vm691_vm2, %v4650_v41 }
 0x761   : > { %v3084_v47 = vpop.permute.xlu0 %3083  ;;  %v6336_v49 = vmul.f32 %v12303_v50, %v6335_v61  ;;  %7971 = vpow2.f32 %v7635_v3  ;;  %v2920_v22 = vmul.f32 %v8226_v30, %v8226_v30  ;;  %v6349_v15 = vmul.f32 %v12358_v18, %v12292_v2  ;;  %v8227_v61 = vld [vmem:[%s8320_s25 + $0x1f0] sm:$0xff] }
 0x762   : > { %v3523_v23 = vsub.f32 %v13820_v29, %v3346_v33  ;;  %v12390_v46 = vpop.permute.xlu2 %3085  ;;  %v3232_v62 = vsub.f32 %v12312_v43, %v3084_v47  ;;  %v12396_v63 = vadd.f32 1.0, %v7966_v4  ;;  %7579 = vmatmul.msk.f32.gmra.mxu0 %vm691_vm2, %v5114_v6  ;;  %vm6328_vm5 = vcmp.eq.f32.partialorder %v6327_v34, 8.507059e+37  ;;  %v4575_v57 = vpop.f32.mrf.mxu2  ;;  %v8228_v6 = vld [vmem:[%s8320_s25 + $0x118] sm:$0xff] }
 0x763   : > { %v3233_v48 = vsub.f32 %v12343_v51, %v12390_v46  ;;  %v6330_v27 = vor.u32 1.1754944e-38, %v6329_v44  ;;  %v2931_v43 = vmul.f32 %v8227_v61, %v8227_v61  ;;  %vm6339_vm6 = vweird.f32 %v12303_v50 }
 0x764   : > { %v3601_v21 = vsel %vm3573_vm4, %v3523_v23, 0.0  ;;  %v6342_v3 = vand.u32 2147483647, %v12225_v37  ;;  %v3603_v16 = vsel %vm3573_vm4, %v11805_v59, 0.0  ;;  %v4576_v35 = vadd.f32 %v12297_v45, %v4575_v57 }
 0x765   : > { %v3602_v12 = vadd.f32 %v3601_v21, %v3600_v38  ;;  %v7968_v40 = vpop.eup %7967  ;;  %v6331_v10 = vsel %vm6328_vm5, %v6330_v27, %v6326_v54  ;;  %v6337_v41 = vadd.f32 %v12303_v50, %v6336_v49  ;;  %v3605_v17 = vsel %vm3573_vm4, %v11867_v5, 0.0  ;;  %v5023_v4 = vpop.f32.mrf.mxu3  ;;  %v13824_v49 = vld [vmem:[#allocation117_spill] sm:$0xff] }
 0x766   : > { %3099 = vrot.lane.b32.xlu1 %v2920_v22, %s8275_s6  ;;  %v12412_v53 = vpop.eup %7969  ;;  %v6350_v34 = vsub.f32 1.0, %v6349_v15  ;;  %7973 = vrcp.f32 %v12396_v63  ;;  %v4651_v59 = vmax.f32 %v4576_v35, 0.0  ;;  %v5024_v44 = vadd.f32 %v12366_v8, %v5023_v4 }
 0x767   : > { %v3604_v9 = vadd.f32 %v3603_v16, %v3602_v12  ;;  %v7972_v33 = vpop.eup %7971  ;;  %v6946_v38 = vsel %vm214_vm1, %v12345_v28, 0.0  ;;  %vm6338_vm7 = vweird.f32 %v12225_v37  ;;  %v6344_v5 = vand.u32 2147483648, %v12225_v37  ;;  %v3352_v14 = vpop.permute.xlu1 %3351  ;;  %v13823_v28 = vld [vmem:[#allocation32_spill] sm:$0xff] }
 0x768   : > { %3121 = vrot.lane.b32.xlu2 %v2931_v43, %s8275_s6  ;;  %v6788_v11 = vsub.f32 %v8228_v6, %v6331_v10  ;;  %vm12424_vm8 = vmor %vm6338_vm7, %vm6339_vm6  ;;  %v12428_v23 = vadd.f32 1.0, %v7968_v40  ;;  %v5115_v47 = vmax.f32 %v5024_v44, 0.0  ;;  %v13825_v30 = vsub.f32 %v13823_v28, %v13824_v49  ;;  %7524 = vmatmul.msk.f32.gmra.mxu3 %vm691_vm2, %v4651_v59  ;;  %v13828_v59 = vld [vmem:[#allocation87_spill] sm:$0xff] }
 0x769   : > { %v3606_v54 = vadd.f32 %v3605_v17, %v3604_v9  ;;  %v3404_v37 = vpop.permute.xlu0 %3403  ;;  %v6948_v15 = vsel %vm214_vm1, %v12354_v58, 0.0  ;;  %v6341_v21 = vsel %vm12424_vm8, %v12303_v50, %v6337_v41  ;;  %vm12439_vm9 = vcmp.eq.f32.partialorder %v6342_v3, 8.507059e+37 }
 0x76a   : > { %v3526_v22 = vsub.f32 %v13825_v30, %v3352_v14  ;;  %v12443_v12 = vsub.f32 %v3232_v62, %v3404_v37  ;;  %v6351_v57 = vmul.f32 %v12358_v18, %v6350_v34  ;;  %v6364_v61 = vmul.f32 %v12412_v53, %v12351_v39  ;;  %7580 = vmatmul.msk.f32.gmra.mxu0 %vm691_vm2, %v5115_v47  ;;  %v4578_v40 = vpop.f32.mrf.mxu2 }
 0x76b   : > { %v12448_v43 = vadd.f32 1.0, %v7972_v33  ;;  %v6345_v58 = vor.u32 1.1754944e-38, %v6344_v5  ;;  %v6357_v50 = vand.u32 2147483647, %v12292_v2  ;;  %v6359_v3 = vand.u32 2147483648, %v12292_v2 }
 0x76c   : > { %v3607_v16 = vsel %vm3573_vm4, %v3526_v22, 0.0  ;;  %v12454_v62 = vpop.eup %7973  ;;  %v6852_v10 = vmul.f32 %v6788_v11, %v6788_v11  ;;  %v3609_v41 = vsel %vm3573_vm4, %v11859_v26, 0.0  ;;  %7975 = vrcp.f32 %v12428_v23 }
 0x76d   : > { %v3608_v35 = vadd.f32 %v3607_v16, %v3606_v54  ;;  %v4579_v17 = vadd.f32 %v12297_v45, %v4578_v40  ;;  %v6346_v9 = vsel %vm12439_vm9, %v6345_v58, %v6341_v21  ;;  %vm6354_vm10 = vweird.f32 %v12358_v18 }
 0x76e   : > { %v3611_v4 = vsel %vm3573_vm4, %v11915_v0, 0.0  ;;  %3419 = vrot.lane.b32.xlu1 %v13828_v59, %s8274_s18  ;;  %v6352_v44 = vadd.f32 %v12358_v18, %v6351_v57  ;;  %v6365_v26 = vsub.f32 1.0, %v6364_v61  ;;  %7977 = vrcp.f32 %v12448_v43  ;;  %v13829_v0 = vld [vmem:[#allocation104_spill] sm:$0xff] }
 0x76f   : > { %v3610_v34 = vadd.f32 %v3609_v41, %v3608_v35  ;;  %v4652_v33 = vmax.f32 %v4579_v17, 0.0  ;;  %v6947_v5 = vadd.f32 %v6946_v38, %v12333_v13  ;;  %v6379_v14 = vmul.f32 %v12454_v62, %v12396_v63  ;;  %v3358_v54 = vpop.permute.xlu1 %3357  ;;  %v8229_v13 = vld [vmem:[%s8320_s25 + $0x120] sm:$0xff] }
 0x770   : > { %3441 = vrot.lane.b32.xlu2 %v13829_v0, %s8274_s18  ;;  %v6950_v11 = vsel %vm214_vm1, %v6852_v10, 0.0  ;;  %vm6353_vm11 = vweird.f32 %v12292_v2  ;;  %v13830_v29 = vsub.f32 %v11153_v20, %v11640_v31  ;;  %v6789_v38 = vsub.f32 %v8229_v13, %v6346_v9  ;;  %v8230_v2 = vld [vmem:[%s8320_s25 + $0x1b0] sm:$0xff]  ;;  %v13840_v13 = vld [vmem:[#allocation50_spill] sm:$0xff] }
 0x771   : > { %v3612_v6 = vadd.f32 %v3611_v4, %v3610_v34  ;;  %7525 = vmatmul.msk.f32.gmra.mxu3 %vm691_vm2, %v4652_v33  ;;  %v6949_v28 = vadd.f32 %v6948_v15, %v6947_v5  ;;  %vm12483_vm12 = vmor %vm6353_vm11, %vm6354_vm10  ;;  %vm12487_vm13 = vcmp.eq.f32.partialorder %v6357_v50, 8.507059e+37  ;;  %v2923_v22 = vmul.f32 %v8230_v2, %v8230_v2  ;;  %v8231_v5 = vld [vmem:[%s8320_s25 + $0x128] sm:$0xff] }
 0x772   : > { %v3529_v47 = vsub.f32 %v13830_v29, %v3358_v54  ;;  %v12492_v37 = vpop.eup %7975  ;;  %v6356_v20 = vsel %vm12483_vm12, %v12358_v18, %v6352_v44  ;;  %v6360_v31 = vor.u32 1.1754944e-38, %v6359_v3  ;;  %v6366_v15 = vmul.f32 %v12412_v53, %v6365_v26  ;;  %v4581_v58 = vpop.f32.mrf.mxu2  ;;  %v8234_v29 = vld [vmem:[%s8320_s25 + $0x1c8] sm:$0xff] }
 0x773   : > { %v12499_v27 = vadd.f32 %v6950_v11, %v6949_v28  ;;  %v6372_v57 = vand.u32 2147483647, %v12351_v39  ;;  %v6380_v61 = vsub.f32 1.0, %v6379_v14  ;;  %vm6368_vm14 = vweird.f32 %v12351_v39 }
 0x774   : > { %v3613_v21 = vsel %vm3573_vm4, %v3529_v47, 0.0  ;;  %v12502_v50 = vpop.eup %7977  ;;  %v6374_v35 = vand.u32 2147483648, %v12351_v39  ;;  %v3615_v18 = vsel %vm3573_vm4, %v11925_v19, 0.0  ;;  %v4582_v3 = vadd.f32 %v12297_v45, %v4581_v58  ;;  %v12553_v39 = vld [vmem:[%s13175_s1 + $0x13f] ss:$0 sm:$0xff] }
 0x775   : > { %v3614_v16 = vadd.f32 %v3613_v21, %v3612_v6  ;;  %v6853_v40 = vmul.f32 %v6789_v38, %v6789_v38  ;;  %v6361_v10 = vsel %vm12487_vm13, %v6360_v31, %v6356_v20  ;;  %v6394_v41 = vmul.f32 %v12492_v37, %v12428_v23 }
 0x776   : > { %3105 = vrot.lane.b32.xlu1 %v2923_v22, %s8275_s6  ;;  %v6367_v9 = vadd.f32 %v12412_v53, %v6366_v15  ;;  %vm6369_vm15 = vweird.f32 %v12412_v53  ;;  %v3617_v19 = vsel %vm3573_vm4, %v11986_v25, 0.0  ;;  %v4653_v4 = vmax.f32 %v4582_v3, 0.0 }
 0x777   : > { %v3616_v17 = vadd.f32 %v3615_v18, %v3614_v16  ;;  %vm12518_vm0 = vcmp.eq.f32.partialorder %v6372_v57, 8.507059e+37  ;;  %v6381_v59 = vmul.f32 %v12454_v62, %v6380_v61  ;;  %v6409_v44 = vmul.f32 %v12502_v50, %v12448_v43  ;;  %v3364_v26 = vpop.permute.xlu1 %3363  ;;  %vm12538_vm3 = vmor %vm6368_vm14, %vm6369_vm15  ;;  %v13843_v18 = vld [vmem:[#allocation92_spill] sm:$0xff] }
 0x778   : > { %v6790_v14 = vsub.f32 %v8231_v5, %v6361_v10  ;;  %v6375_v54 = vor.u32 1.1754944e-38, %v6374_v35  ;;  %v6387_v6 = vand.u32 2147483647, %v12396_v63  ;;  %v13837_v25 = vsub.f32 %v11495_v36, %v11702_v7  ;;  %v13846_v10 = vld [vmem:[#allocation16_spill] sm:$0xff] }
 0x779   : > { %v3618_v33 = vadd.f32 %v3617_v19, %v3616_v17  ;;  %7526 = vmatmul.msk.f32.gmra.mxu3 %vm691_vm2, %v4653_v4  ;;  %v12532_v11 = vsel %vm214_vm1, %v6853_v40, 0.0  ;;  %vm6383_vm5 = vweird.f32 %v12396_v63  ;;  %v6389_v47 = vand.u32 2147483648, %v12396_v63  ;;  %v13848_v5 = vld [vmem:[#allocation52_spill] sm:$0xff] }
 0x77a   : > { %v3532_v0 = vsub.f32 %v13837_v25, %v3364_v26  ;;  %v6395_v28 = vsub.f32 1.0, %v6394_v41  ;;  %v5471_v36 = vpop.f32.mrf.mxu0  ;;  %v6371_v7 = vsel %vm12538_vm3, %v12412_v53, %v6367_v9  ;;  %v3621_v38 = vsel %vm3573_vm4, %v13840_v13, 0.0  ;;  %v13847_v26 = vld [vmem:[#allocation49_spill] sm:$0xff] }
 0x77b   : > { %v5472_v30 = vadd.f32 %v12553_v39, %v5471_v36  ;;  %v6382_v2 = vadd.f32 %v12454_v62, %v6381_v59  ;;  %vm6384_vm6 = vweird.f32 %v12454_v62  ;;  %v6410_v22 = vsub.f32 1.0, %v6409_v44  ;;  %v4584_v31 = vpop.f32.mrf.mxu2  ;;  %v8233_v59 = vld [vmem:[%s8320_s25 + $0x130] sm:$0xff] }
 0x77c   : > { %v3619_v49 = vsel %vm3573_vm4, %v3532_v0, 0.0  ;;  %v12558_v53 = vmul.f32 %v6790_v14, %v6790_v14  ;;  %vm12560_vm7 = vcmp.eq.f32.partialorder %v6387_v6, 8.507059e+37  ;;  %v4585_v57 = vadd.f32 %v12297_v45, %v4584_v31  ;;  %vm12573_vm8 = vmor %vm6383_vm5, %vm6384_vm6  ;;  %v13849_v14 = vld [vmem:[#allocation61_spill] sm:$0xff] }
 0x77d   : > { %v3620_v20 = vadd.f32 %v3619_v49, %v3618_v33  ;;  %v7636_v21 = vmul.f32 -1.442695, %v5472_v30  ;;  %v6376_v61 = vsel %vm12518_vm0, %v6375_v54, %v6371_v7  ;;  %v6396_v16 = vmul.f32 %v12492_v37, %v6395_v28 }
 0x77e   : > { %v6402_v58 = vand.u32 2147483647, %v12428_v23  ;;  %3425 = vrot.lane.b32.xlu1 %v13843_v18, %s8274_s18  ;;  %v6404_v40 = vand.u32 2147483648, %v12428_v23  ;;  %v3623_v41 = vsel %vm3573_vm4, %v13846_v10, 0.0  ;;  %v4654_v17 = vmax.f32 %v4585_v57, 0.0 }
 0x77f   : > { %v3622_v35 = vadd.f32 %v3621_v38, %v3620_v20  ;;  %7979 = vpow2.f32 %v7636_v21  ;;  %v6386_v9 = vsel %vm12573_vm8, %v12454_v62, %v6382_v2  ;;  %v6390_v19 = vor.u32 1.1754944e-38, %v6389_v47  ;;  %v3370_v63 = vpop.permute.xlu1 %3369 }
 0x780   : > { %v6411_v4 = vmul.f32 %v12502_v50, %v6410_v22  ;;  %v6791_v44 = vsub.f32 %v8233_v59, %v6376_v61  ;;  %vm6398_vm9 = vweird.f32 %v12428_v23  ;;  %v3627_v33 = vsel %vm3573_vm4, %v13847_v26, 0.0 }
 0x781   : > { %v3624_v34 = vadd.f32 %v3623_v41, %v3622_v35  ;;  %v13850_v54 = vsub.f32 %v13848_v5, %v13849_v14  ;;  %7527 = vmatmul.msk.f32.gmra.mxu3 %vm691_vm2, %v4654_v17  ;;  %v6397_v62 = vadd.f32 %v12492_v37, %v6396_v16  ;;  %vm6399_vm10 = vweird.f32 %v12492_v37  ;;  %v8235_v35 = vld [vmem:[%s8320_s25 + $0x138] sm:$0xff] }
 0x782   : > { %vm12594_vm11 = vcmp.eq.f32.partialorder %v6402_v58, 8.507059e+37  ;;  %v5474_v0 = vpop.f32.mrf.mxu0  ;;  %v2926_v47 = vmul.f32 %v8234_v29, %v8234_v29  ;;  %v6391_v28 = vsel %vm12560_vm7, %v6390_v19, %v6386_v9  ;;  %v6405_v36 = vor.u32 1.1754944e-38, %v6404_v40  ;;  %vm12610_vm14 = vmor %vm6398_vm9, %vm6399_vm10  ;;  %v13857_v41 = vld [vmem:[#allocation53_spill] sm:$0xff] }
 0x783   : > { %v3535_v6 = vsub.f32 %v13850_v54, %v3370_v63  ;;  %v5475_v13 = vadd.f32 %v12553_v39, %v5474_v0  ;;  %v6412_v38 = vadd.f32 %v12502_v50, %v6411_v4  ;;  %vm6413_vm12 = vweird.f32 %v12448_v43  ;;  %v4587_v30 = vpop.f32.mrf.mxu2  ;;  %v13858_v4 = vld [vmem:[#allocation79_spill] sm:$0xff]  ;;  %v13859_v63 = vld [vmem:[#allocation46_spill] sm:$0xff] }
 0x784   : > { %vm6414_vm13 = vweird.f32 %v12502_v50  ;;  %v5026_v2 = vpop.f32.mrf.mxu3  ;;  %v6419_v31 = vand.u32 2147483648, %v12448_v43  ;;  %v4588_v21 = vadd.f32 %v12297_v45, %v4587_v30  ;;  %v6401_v61 = vsel %vm12610_vm14, %v12492_v37, %v6397_v62 }
 0x785   : > { %v3625_v7 = vsel %vm3573_vm4, %v3535_v6, 0.0  ;;  %v7980_v22 = vpop.eup %7979  ;;  %v7637_v15 = vmul.f32 -1.442695, %v5475_v13  ;;  %v5027_v57 = vadd.f32 %v12366_v8, %v5026_v2  ;;  %v6417_v16 = vand.u32 2147483647, %v12448_v43  ;;  %vm12629_vm15 = vmor %vm6413_vm12, %vm6414_vm13  ;;  %v8236_v6 = vld [vmem:[%s8320_s25 + $0x140] sm:$0xff] }
 0x786   : > { %v3626_v49 = vadd.f32 %v3625_v7, %v3624_v34  ;;  %v12621_v58 = vadd.f32 1.0, %v7980_v22  ;;  %3111 = vrot.lane.b32.xlu1 %v2926_v47, %s8275_s6  ;;  %v6792_v18 = vsub.f32 %v8235_v35, %v6391_v28  ;;  %v4655_v3 = vmax.f32 %v4588_v21, 0.0  ;;  %v8237_v13 = vld [vmem:[%s8320_s25 + $0x148] sm:$0xff]  ;;  %v13862_v22 = vld [vmem:[#allocation98_spill] sm:$0xff]  ;;  %v13863_v35 = vld [vmem:[#allocation9_spill] sm:$0xff] }
 0x787   : > { %7981 = vpow2.f32 %v7637_v15  ;;  %v5116_v37 = vmax.f32 %v5027_v57, 0.0  ;;  %v6855_v40 = vmul.f32 %v6791_v44, %v6791_v44  ;;  %v6416_v10 = vsel %vm12629_vm15, %v12502_v50, %v6412_v38  ;;  %v3376_v9 = vpop.permute.xlu1 %3375 }
 0x788   : > { %v3628_v23 = vadd.f32 %v3627_v33, %v3626_v49  ;;  %v3629_v17 = vsel %vm3573_vm4, %v13857_v41, 0.0  ;;  %7983 = vrcp.f32 %v12621_v58  ;;  %v6406_v43 = vsel %vm12594_vm11, %v6405_v36, %v6401_v61  ;;  %v13861_v36 = vld [vmem:[#allocation56_spill] sm:$0xff] }
 0x789   : > { %v6420_v19 = vor.u32 1.1754944e-38, %v6419_v31  ;;  %v13860_v34 = vsub.f32 %v13858_v4, %v13859_v63  ;;  %7528 = vmatmul.msk.f32.gmra.mxu3 %vm691_vm2, %v4655_v3  ;;  %7581 = vmatmul.msk.f32.gmra.mxu0 %vm691_vm2, %v5116_v37  ;;  %v6954_v50 = vsel %vm214_vm1, %v12558_v53, 0.0  ;;  %vm6418_vm0 = vcmp.eq.f32.partialorder %v6417_v16, 8.507059e+37 }
 0x78a   : > { %v3630_v44 = vadd.f32 %v3629_v17, %v3628_v23  ;;  %v6953_v26 = vadd.f32 %v12532_v11, %v12499_v27  ;;  %v6856_v33 = vmul.f32 %v6792_v18, %v6792_v18  ;;  %v5477_v54 = vpop.f32.mrf.mxu0  ;;  %v6793_v62 = vsub.f32 %v8236_v6, %v6406_v43  ;;  %v13864_v18 = vld [vmem:[#allocation11_spill] sm:$0xff]  ;;  %v8238_v17 = vld [vmem:[%s8320_s25 + $0x1e0] sm:$0xff] }
 0x78b   : > { %v3538_v59 = vsub.f32 %v13860_v34, %v3376_v9  ;;  %v6421_v5 = vsel %vm6418_vm0, %v6420_v19, %v6416_v10  ;;  %v5478_v0 = vadd.f32 %v12553_v39, %v5477_v54  ;;  %v6956_v53 = vsel %vm214_vm1, %v6855_v40, 0.0 }
 0x78c   : > { %v5029_v29 = vpop.f32.mrf.mxu3  ;;  %v6955_v28 = vadd.f32 %v6954_v50, %v6953_v26  ;;  %v3633_v7 = vsel %vm3573_vm4, %v13861_v36, 0.0  ;;  %v6794_v38 = vsub.f32 %v8237_v13, %v6421_v5  ;;  %v6958_v20 = vsel %vm214_vm1, %v6856_v33, 0.0  ;;  %v12689_v36 = vpop.permute.xlu2 %3405 }
 0x78d   : > { %v3631_v14 = vsel %vm3573_vm4, %v3538_v59, 0.0  ;;  %v7982_v47 = vpop.eup %7981  ;;  %v5030_v27 = vadd.f32 %v12366_v8, %v5029_v29  ;;  %v7638_v2 = vmul.f32 -1.442695, %v5478_v0  ;;  %v6857_v57 = vmul.f32 %v6793_v62, %v6793_v62 }
 0x78e   : > { %v3632_v25 = vadd.f32 %v3631_v14, %v3630_v44  ;;  %v7984_v11 = vpop.eup %7983  ;;  %v12658_v49 = vadd.f32 1.0, %v7982_v47  ;;  %3431 = vrot.lane.b32.xlu1 %v13862_v22, %s8274_s18  ;;  %v6957_v21 = vadd.f32 %v6956_v53, %v6955_v28  ;;  %v3635_v61 = vsel %vm3573_vm4, %v12145_v56, 0.0 }
 0x78f   : > { %v6424_v31 = vmul.f32 %v7984_v11, %v12621_v58  ;;  %v5117_v15 = vmax.f32 %v5030_v27, 0.0  ;;  %v13865_v45 = vsub.f32 %v13863_v35, %v13864_v18  ;;  %v6858_v10 = vmul.f32 %v6794_v38, %v6794_v38 }
 0x790   : > { %v3634_v30 = vadd.f32 %v3633_v7, %v3632_v25  ;;  %7985 = vrcp.f32 %v12658_v49  ;;  %v3382_v16 = vpop.permute.xlu1 %3381  ;;  %v6959_v40 = vadd.f32 %v6958_v20, %v6957_v21  ;;  %v6434_v41 = vand.u32 2147483648, %v12621_v58  ;;  %v8239_v7 = vld [vmem:[%s8320_s25 + $0x150] sm:$0xff] }
 0x791   : > { %v6425_v23 = vsub.f32 1.0, %v6424_v31  ;;  %7987 = vpow2.f32 %v7638_v2  ;;  %v3541_v3 = vsub.f32 %v13865_v45, %v3382_v16  ;;  %7582 = vmatmul.msk.f32.gmra.mxu0 %vm691_vm2, %v5117_v15  ;;  %v2929_v9 = vmul.f32 %v8238_v17, %v8238_v17  ;;  %v13867_v2 = vld [vmem:[#allocation65_spill] sm:$0xff] }
 0x792   : > { %v3636_v37 = vadd.f32 %v3635_v61, %v3634_v30  ;;  %vm6429_vm3 = vweird.f32 %v7984_v11  ;;  %v6432_v56 = vand.u32 2147483647, %v12621_v58  ;;  %v5480_v4 = vpop.f32.mrf.mxu0  ;;  %v6960_v63 = vsel %vm214_vm1, %v6857_v57, 0.0  ;;  %v13866_v30 = vld [vmem:[#allocation81_spill] sm:$0xff] }
 0x793   : > { %v6426_v43 = vmul.f32 %v7984_v11, %v6425_v23  ;;  %v3637_v19 = vsel %vm3573_vm4, %v3541_v3, 0.0  ;;  %v3639_v34 = vsel %vm3573_vm4, %v12158_v24, 0.0  ;;  %v5481_v44 = vadd.f32 %v12553_v39, %v5480_v4 }
 0x794   : > { %v3638_v59 = vadd.f32 %v3637_v19, %v3636_v37  ;;  %v5032_v50 = vpop.f32.mrf.mxu3  ;;  %v3641_v26 = vsel %vm3573_vm4, %v12205_v55, 0.0  ;;  %vm6428_vm5 = vweird.f32 %v12621_v58  ;;  %v6962_v54 = vsel %vm214_vm1, %v6858_v10, 0.0 }
 0x795   : > { %v6427_v33 = vadd.f32 %v7984_v11, %v6426_v43  ;;  %v5033_v5 = vadd.f32 %v12366_v8, %v5032_v50  ;;  %vm6430_vm6 = vmor %vm6428_vm5, %vm6429_vm3  ;;  %v6435_v6 = vor.u32 1.1754944e-38, %v6434_v41  ;;  %v7639_v62 = vmul.f32 -1.442695, %v5481_v44  ;;  %v13869_v43 = vld [vmem:[#allocation102_spill] sm:$0xff]  ;;  %v12712_v50 = vpop.permute.xlu0 %3089 }
 0x796   : > { %v7986_v14 = vpop.eup %7985  ;;  %v3640_v24 = vadd.f32 %v3639_v34, %v3638_v59  ;;  %3117 = vrot.lane.b32.xlu1 %v2929_v9, %s8275_s6  ;;  %vm6433_vm7 = vcmp.eq.f32.partialorder %v6432_v56, 8.507059e+37  ;;  %v6449_v38 = vand.u32 2147483648, %v12658_v49  ;;  %v6961_v20 = vadd.f32 %v6960_v63, %v6959_v40 }
 0x797   : > { %v7988_v25 = vpop.eup %7987  ;;  %v6431_v0 = vsel %vm6430_vm6, %v7984_v11, %v6427_v33  ;;  %v6439_v55 = vmul.f32 %v7986_v14, %v12658_v49  ;;  %v5118_v29 = vmax.f32 %v5033_v5, 0.0  ;;  %7989 = vpow2.f32 %v7639_v62 }
 0x798   : > { %v6436_v58 = vsel %vm6433_vm7, %v6435_v6, %v6431_v0  ;;  %v12687_v47 = vadd.f32 1.0, %v7988_v25  ;;  %v3388_v28 = vpop.permute.xlu1 %3387  ;;  %v3642_v53 = vadd.f32 %v3641_v26, %v3640_v24  ;;  %v13868_v11 = vsub.f32 %v13866_v30, %v13867_v2  ;;  %v8240_v26 = vld [vmem:[%s8320_s25 + $0x158] sm:$0xff]  ;;  %v12722_v25 = vpop.permute.xlu2 %3091 }
 0x799   : > { %v6795_v27 = vsub.f32 %v8239_v7, %v6436_v58  ;;  %v6440_v13 = vsub.f32 1.0, %v6439_v55  ;;  %7583 = vmatmul.msk.f32.gmra.mxu0 %vm691_vm2, %v5118_v29  ;;  %v6447_v31 = vand.u32 2147483647, %v12658_v49  ;;  %vm6444_vm8 = vweird.f32 %v7986_v14  ;;  %v8241_v24 = vld [vmem:[%s8320_s25 + $0x1f8] sm:$0xff] }
 0x79a   : > { %v3544_v22 = vsub.f32 %v13868_v11, %v3388_v28  ;;  %7991 = vrcp.f32 %v12687_v47  ;;  %v5483_v61 = vpop.f32.mrf.mxu0  ;;  %v6963_v16 = vadd.f32 %v6962_v54, %v6961_v20  ;;  %v3645_v23 = vsel %vm3573_vm4, %v12215_v60, 0.0 }
 0x79b   : > { %v6859_v15 = vmul.f32 %v6795_v27, %v6795_v27  ;;  %v6441_v21 = vmul.f32 %v7986_v14, %v6440_v13  ;;  %v5484_v18 = vadd.f32 %v12553_v39, %v5483_v61  ;;  %vm6443_vm9 = vweird.f32 %v12658_v49 }
 0x79c   : > { %v3643_v57 = vsel %vm3573_vm4, %v3544_v22, 0.0  ;;  %v6450_v37 = vor.u32 1.1754944e-38, %v6449_v38  ;;  %vm6445_vm10 = vmor %vm6443_vm9, %vm6444_vm8  ;;  %v3647_v56 = vsel %vm3573_vm4, %v12275_v1, 0.0  ;;  %vm6448_vm11 = vcmp.eq.f32.partialorder %v6447_v31, 8.507059e+37  ;;  %v13870_v1 = vld [vmem:[#allocation25_spill] sm:$0xff] }
 0x79d   : > { %v3644_v35 = vadd.f32 %v3643_v57, %v3642_v53  ;;  %v6964_v45 = vsel %vm214_vm1, %v6859_v15, 0.0  ;;  %v6442_v3 = vadd.f32 %v7986_v14, %v6441_v21  ;;  %v5035_v40 = vpop.f32.mrf.mxu3  ;;  %v7990_v10 = vpop.eup %7989  ;;  %v7640_v9 = vmul.f32 -1.442695, %v5484_v18 }
 0x79e   : > { %v6965_v41 = vadd.f32 %v6964_v45, %v6963_v16  ;;  %3437 = vrot.lane.b32.xlu1 %v13869_v43, %s8274_s18  ;;  %v5036_v60 = vadd.f32 %v12366_v8, %v5035_v40  ;;  %v12710_v49 = vadd.f32 1.0, %v7990_v10  ;;  %v2932_v62 = vmul.f32 %v8241_v24, %v8241_v24  ;;  %v8242_v10 = vld [vmem:[%s8320_s25 + $0x160] sm:$0xff] }
 0x79f   : > { %v3646_v17 = vadd.f32 %v3645_v23, %v3644_v35  ;;  %v6446_v19 = vsel %vm6445_vm10, %v7986_v14, %v6442_v3  ;;  %7993 = vpow2.f32 %v7640_v9  ;;  %v13871_v14 = vld [vmem:[#allocation34_spill] sm:$0xff]  ;;  %v6462_v58 = vand.u32 2147483647, %v12687_v47 }
 0x7a0   : > { %v7992_v4 = vpop.eup %7991  ;;  %v6451_v63 = vsel %vm6448_vm11, %v6450_v37, %v6446_v19  ;;  %v5119_v34 = vmax.f32 %v5036_v60, 0.0  ;;  %v3394_v59 = vpop.permute.xlu1 %3393  ;;  %7995 = vrcp.f32 %v12710_v49  ;;  %v13872_v54 = vsub.f32 %v13870_v1, %v13871_v14 }
 0x7a1   : > { %v3648_v44 = vadd.f32 %v3647_v56, %v3646_v17  ;;  %v6796_v33 = vsub.f32 %v8240_v26, %v6451_v63  ;;  %v6454_v5 = vmul.f32 %v7992_v4, %v12687_v47  ;;  %v6464_v28 = vand.u32 2147483648, %v12687_v47 }
 0x7a2   : > { %v3547_v6 = vsub.f32 %v13872_v54, %v3394_v59  ;;  %7584 = vmatmul.msk.f32.gmra.mxu0 %vm691_vm2, %v5119_v34  ;;  %v5486_v29 = vpop.f32.mrf.mxu0  ;;  %vm6459_vm12 = vweird.f32 %v7992_v4  ;;  %v3651_v2 = vsel %vm3573_vm4, %v12285_v52, 0.0  ;;  %vm6458_vm13 = vweird.f32 %v12687_v47  ;;  %v13873_v47 = vld [vmem:[#allocation86_spill] sm:$0xff] }
 0x7a3   : > { %v6860_v0 = vmul.f32 %v6796_v33, %v6796_v33  ;;  %v6455_v55 = vsub.f32 1.0, %v6454_v5  ;;  %v5487_v7 = vadd.f32 %v12553_v39, %v5486_v29  ;;  %vm6460_vm14 = vmor %vm6458_vm13, %vm6459_vm12  ;;  %v6465_v16 = vor.u32 1.1754944e-38, %v6464_v28 }
 0x7a4   : > { %v3649_v53 = vsel %vm3573_vm4, %v3547_v6, 0.0  ;;  %vm6463_vm15 = vcmp.eq.f32.partialorder %v6462_v58, 8.507059e+37  ;;  %v2847_v18 = vmul.f32 %v13873_v47, %v13873_v47  ;;  %v3653_v40 = vsel %vm3573_vm4, %v12331_v42, 0.0 }
 0x7a5   : > { %v6966_v27 = vsel %vm214_vm1, %v6860_v0, 0.0  ;;  %v6456_v13 = vmul.f32 %v7992_v4, %v6455_v55  ;;  %v3650_v38 = vadd.f32 %v3649_v53, %v3648_v44  ;;  %v7994_v30 = vpop.eup %7993  ;;  %v7641_v22 = vmul.f32 -1.442695, %v5487_v7  ;;  %v5038_v20 = vpop.f32.mrf.mxu3  ;;  %v8243_v55 = vld [vmem:[%s8320_s25 + $0x168] sm:$0xff] }
 0x7a6   : > { %v6967_v11 = vadd.f32 %v6966_v27, %v6965_v41  ;;  %3123 = vrot.lane.b32.xlu1 %v2932_v62, %s8275_s6  ;;  %v7996_v31 = vpop.eup %7995  ;;  %v12733_v21 = vadd.f32 1.0, %v7994_v30  ;;  %v5039_v61 = vadd.f32 %v12366_v8, %v5038_v20  ;;  %v12742_v8 = vpop.permute.xlu0 %3409  ;;  %v6479_v17 = vand.u32 2147483648, %v12710_v49 }
 0x7a7   : > { %v6457_v15 = vadd.f32 %v7992_v4, %v6456_v13  ;;  %v3652_v57 = vadd.f32 %v3651_v2, %v3650_v38  ;;  %v6469_v23 = vmul.f32 %v7996_v31, %v12710_v49  ;;  %7997 = vpow2.f32 %v7641_v22 }
 0x7a8   : > { %v3082_v52 = vpop.permute.xlu1 %3081  ;;  %7999 = vrcp.f32 %v12733_v21  ;;  %v5120_v37 = vmax.f32 %v5039_v61, 0.0  ;;  %vm6474_vm0 = vweird.f32 %v7996_v31  ;;  %v6477_v56 = vand.u32 2147483647, %v12710_v49 }
 0x7a9   : > { %v6461_v35 = vsel %vm6460_vm14, %v7992_v4, %v6457_v15  ;;  %v6470_v3 = vsub.f32 1.0, %v6469_v23  ;;  %v3231_v9 = vsub.f32 %v2847_v18, %v3082_v52  ;;  %v12749_v4 = vpop.permute.xlu2 %3411  ;;  %v3654_v42 = vadd.f32 %v3653_v40, %v3652_v57 }
 0x7aa   : > { %v6466_v45 = vsel %vm6463_vm15, %v6465_v16, %v6461_v35  ;;  %v5489_v43 = vpop.f32.mrf.mxu0  ;;  %7585 = vmatmul.msk.f32.gmra.mxu0 %vm691_vm2, %v5120_v37  ;;  %v3655_v59 = vsel %vm3573_vm4, %v12339_v32, 0.0  ;;  %vm6473_vm3 = vweird.f32 %v12710_v49  ;;  %v6480_v1 = vor.u32 1.1754944e-38, %v6479_v17  ;;  %v8244_v35 = vld [vmem:[%s8320_s25 + $0x170] sm:$0xff]  ;;  %v13875_v17 = vld [vmem:[#allocation91_spill] sm:$0xff] }
 0x7ab   : > { %v6797_v41 = vsub.f32 %v8242_v10, %v6466_v45  ;;  %v6471_v60 = vmul.f32 %v7996_v31, %v6470_v3  ;;  %v5490_v19 = vadd.f32 %v12553_v39, %v5489_v43  ;;  %vm6475_vm5 = vmor %vm6473_vm3, %vm6474_vm0  ;;  %v3656_v54 = vadd.f32 %v3655_v59, %v3654_v42  ;;  %v13874_v10 = vld [vmem:[#allocation93_spill] sm:$0xff]  ;;  %v13876_v43 = vld [vmem:[#allocation95_spill] sm:$0xff] }
 0x7ac   : > { %vm6478_vm6 = vcmp.eq.f32.partialorder %v6477_v56, 8.507059e+37  ;;  %v6494_v58 = vand.u32 2147483648, %v12733_v21  ;;  %v6492_v27 = vand.u32 2147483647, %v12733_v21  ;;  %v3553_v13 = vsub.f32 %v3233_v48, %v12689_v36 }
 0x7ad   : > { %v6861_v63 = vmul.f32 %v6797_v41, %v6797_v41  ;;  %v7998_v34 = vpop.eup %7997  ;;  %v6472_v44 = vadd.f32 %v7996_v31, %v6471_v60  ;;  %v7642_v26 = vmul.f32 -1.442695, %v5490_v19  ;;  %vm6488_vm8 = vweird.f32 %v12733_v21 }
 0x7ae   : > { %v8000_v33 = vpop.eup %7999  ;;  %v12755_v14 = vadd.f32 1.0, %v7998_v34  ;;  %v12766_v38 = vpop.permute.xlu0 %3095  ;;  %v6495_v51 = vor.u32 1.1754944e-38, %v6494_v58  ;;  %vm6493_vm10 = vcmp.eq.f32.partialorder %v6492_v27, 8.507059e+37  ;;  %v2851_v41 = vmul.f32 %v13874_v10, %v13874_v10 }
 0x7af   : > { %v6968_v5 = vsel %vm214_vm1, %v6861_v63, 0.0  ;;  %v6476_v24 = vsel %vm6475_vm5, %v7996_v31, %v6472_v44  ;;  %v6484_v62 = vmul.f32 %v8000_v33, %v12733_v21  ;;  %vm6489_vm7 = vweird.f32 %v8000_v33 }
 0x7b0   : > { %v6969_v6 = vadd.f32 %v6968_v5, %v6967_v11  ;;  %v3402_v0 = vpop.permute.xlu1 %3401  ;;  %v6481_v32 = vsel %vm6478_vm6, %v6480_v1, %v6476_v24  ;;  %8001 = vrcp.f32 %v12755_v14  ;;  %v3659_v31 = vsel %vm3573_vm4, %v12443_v12, 0.0  ;;  %vm6490_vm9 = vmor %vm6488_vm8, %vm6489_vm7 }
 0x7b1   : > { %v6798_v49 = vsub.f32 %v8243_v55, %v6481_v32  ;;  %v6485_v29 = vsub.f32 1.0, %v6484_v62  ;;  %8003 = vpow2.f32 %v7642_v26  ;;  %v3551_v28 = vsub.f32 %v3231_v9, %v3402_v0  ;;  %v12773_v15 = vpop.permute.xlu2 %3097 }
 0x7b2   : > { %v3661_v21 = vsel %vm3573_vm4, %v3553_v13, 0.0  ;;  %v6509_v45 = vand.u32 2147483648, %v12755_v14  ;;  %v6507_v40 = vand.u32 2147483647, %v12755_v14  ;;  %v2850_v9 = vmul.f32 %v13875_v17, %v13875_v17  ;;  %v8247_v17 = vld [vmem:[%s13175_s1 + $0x13d] ss:$0 sm:$0xff] }
 0x7b3   : > { %v6862_v53 = vmul.f32 %v6798_v49, %v6798_v49  ;;  %v6486_v7 = vmul.f32 %v8000_v33, %v6485_v29  ;;  %v3657_v30 = vsel %vm3573_vm4, %v3551_v28, 0.0  ;;  %v2852_v60 = vmul.f32 %v13876_v43, %v13876_v43 }
 0x7b4   : > { %v3658_v22 = vadd.f32 %v3657_v30, %v3656_v54  ;;  %vm6503_vm12 = vweird.f32 %v12755_v14  ;;  %v3235_v63 = vsub.f32 %v2851_v41, %v12712_v50  ;;  %v6510_v59 = vor.u32 1.1754944e-38, %v6509_v45 }
 0x7b5   : > { %v6970_v2 = vsel %vm214_vm1, %v6862_v53, 0.0  ;;  %v6487_v11 = vadd.f32 %v8000_v33, %v6486_v7  ;;  %vm6508_vm14 = vcmp.eq.f32.partialorder %v6507_v40, 8.507059e+37  ;;  %v3236_v1 = vsub.f32 %v2852_v60, %v12722_v25 }
 0x7b6   : > { %v8002_v20 = vpop.eup %8001  ;;  %v6971_v57 = vadd.f32 %v6970_v2, %v6969_v6  ;;  %v3660_v61 = vadd.f32 %v3659_v31, %v3658_v22  ;;  %v3416_v42 = vpop.permute.xlu0 %3415  ;;  %v3555_v54 = vsub.f32 %v3235_v63, %v12742_v8 }
 0x7b7   : > { %v8004_v46 = vpop.eup %8003  ;;  %v6491_v48 = vsel %vm6490_vm9, %v8000_v33, %v6487_v11  ;;  %v6499_v36 = vmul.f32 %v8002_v20, %v12755_v14  ;;  %vm6504_vm11 = vweird.f32 %v8002_v20  ;;  %v8245_v14 = vld [vmem:[%s8320_s25 + $0x178] sm:$0xff]  ;;  %v3556_v50 = vsub.f32 %v3236_v1, %v12749_v4 }
 0x7b8   : > { %v3088_v16 = vpop.permute.xlu1 %3087  ;;  %v6496_v23 = vsel %vm6493_vm10, %v6495_v51, %v6491_v48  ;;  %v5777_v52 = vadd.f32 1.0, %v8004_v46  ;;  %v3662_v12 = vadd.f32 %v3661_v21, %v3660_v61  ;;  %vm6505_vm13 = vmor %vm6503_vm12, %vm6504_vm11  ;;  %v3665_v28 = vsel %vm3573_vm4, %v3555_v54, 0.0  ;;  %v8246_v46 = vld [vmem:[%s8320_s25 + $0x180] sm:$0xff]  ;;  %v13881_v54 = vld [vmem:[#allocation105_spill] sm:$0xff] }
 0x7b9   : > { %v6799_v47 = vsub.f32 %v8244_v35, %v6496_v23  ;;  %v6500_v18 = vsub.f32 1.0, %v6499_v36  ;;  %v3234_v44 = vsub.f32 %v2850_v9, %v3088_v16  ;;  %v3418_v6 = vpop.permute.xlu2 %3417  ;;  %v3667_v13 = vsel %vm3573_vm4, %v3556_v50, 0.0  ;;  %v13877_v36 = vld [vmem:[#allocation99_spill] sm:$0xff]  ;;  %v13878_v16 = vld [vmem:[#allocation96_spill] sm:$0xff] }
 0x7ba   : > { %8005 = vrcp.f32 %v5777_v52  ;;  %v6522_v53 = vand.u32 2147483647, %v5777_v52  ;;  %v6524_v7 = vand.u32 2147483648, %v5777_v52  ;;  %vm6518_vm0 = vweird.f32 %v5777_v52  ;;  %v13879_v23 = vld [vmem:[#allocation100_spill] sm:$0xff] }
 0x7bb   : > { %v6863_v3 = vmul.f32 %v6799_v47, %v6799_v47  ;;  %v6501_v37 = vmul.f32 %v8002_v20, %v6500_v18  ;;  %v2854_v61 = vmul.f32 %v13877_v36, %v13877_v36  ;;  %v2853_v21 = vmul.f32 %v13878_v16, %v13878_v16 }
 0x7bc   : > { %vm6523_vm5 = vcmp.eq.f32.partialorder %v6522_v53, 8.507059e+37 }
 0x7bd   : > { %v6972_v56 = vsel %vm214_vm1, %v6863_v3, 0.0  ;;  %v6502_v19 = vadd.f32 %v8002_v20, %v6501_v37  ;;  %v3238_v47 = vsub.f32 %v2854_v61, %v12766_v38 }
 0x7be   : > { %v6973_v34 = vadd.f32 %v6972_v56, %v6971_v57  ;;  %v3102_v22 = vpop.permute.xlu0 %3101 }
 0x7bf   : > { %v6506_v26 = vsel %vm6505_vm13, %v8002_v20, %v6502_v19  ;;  %v6525_v20 = vor.u32 1.1754944e-38, %v6524_v7  ;;  %v3558_v40 = vsub.f32 %v3238_v47, %v3416_v42 }
 0x7c0   : > { %v3408_v33 = vpop.permute.xlu1 %3407  ;;  %v8006_v5 = vpop.eup %8005  ;;  %v6511_v24 = vsel %vm6508_vm14, %v6510_v59, %v6506_v26 }
 0x7c1   : > { %v3554_v62 = vsub.f32 %v3234_v44, %v3408_v33  ;;  %v6800_v0 = vsub.f32 %v8245_v14, %v6511_v24  ;;  %v6514_v32 = vmul.f32 %v8006_v5, %v5777_v52  ;;  %vm6519_vm15 = vweird.f32 %v8006_v5  ;;  %v3104_v57 = vpop.permute.xlu2 %3103  ;;  %v13880_v33 = vld [vmem:[#allocation106_spill] sm:$0xff]  ;;  %v12823_v24 = vld [vmem:[%s13175_s1 + $0x13e] ss:$0 sm:$0xff]  ;;  %v13882_v14 = vld [vmem:[#allocation108_spill] sm:$0xff] }
 0x7c2   : > { %vm6520_vm3 = vmor %vm6518_vm0, %vm6519_vm15  ;;  %v2855_v52 = vmul.f32 %v13879_v23, %v13879_v23 }
 0x7c3   : > { %v3663_v55 = vsel %vm3573_vm4, %v3554_v62, 0.0  ;;  %v6864_v49 = vmul.f32 %v6800_v0, %v6800_v0  ;;  %v6515_v29 = vsub.f32 1.0, %v6514_v32  ;;  %v2858_v0 = vmul.f32 %v13882_v14, %v13882_v14 }
 0x7c4   : > { %v3664_v58 = vadd.f32 %v3663_v55, %v3662_v12  ;;  %v3239_v12 = vsub.f32 %v2855_v52, %v12773_v15  ;;  %v3671_v15 = vsel %vm3573_vm4, %v3558_v40, 0.0  ;;  %v13885_v40 = vld [vmem:[#allocation112_spill] sm:$0xff] }
 0x7c5   : > { %v6974_v25 = vsel %vm214_vm1, %v6864_v49, 0.0  ;;  %v6516_v8 = vmul.f32 %v8006_v5, %v6515_v29 }
 0x7c6   : > { %v3666_v27 = vadd.f32 %v3665_v28, %v3664_v58  ;;  %v6975_v30 = vadd.f32 %v6974_v25, %v6973_v34  ;;  %v3559_v43 = vsub.f32 %v3239_v12, %v3418_v6  ;;  %v3422_v60 = vpop.permute.xlu0 %3421  ;;  %v2856_v6 = vmul.f32 %v13881_v54, %v13881_v54  ;;  %v13884_v12 = vld [vmem:[#allocation110_spill] sm:$0xff] }
 0x7c7   : > { %v6517_v2 = vadd.f32 %v8006_v5, %v6516_v8  ;;  %v3242_v28 = vsub.f32 %v2858_v0, %v3104_v57 }
 0x7c8   : > { %v3094_v4 = vpop.permute.xlu1 %3093  ;;  %v3668_v11 = vadd.f32 %v3667_v13, %v3666_v27  ;;  %v3673_v34 = vsel %vm3573_vm4, %v3559_v43, 0.0 }
 0x7c9   : > { %v6521_v31 = vsel %vm6520_vm3, %v8006_v5, %v6517_v2  ;;  %v3237_v18 = vsub.f32 %v2853_v21, %v3094_v4  ;;  %v3424_v63 = vpop.permute.xlu2 %3423  ;;  %v2857_v5 = vmul.f32 %v13880_v33, %v13880_v33 }
 0x7ca   : > { %v6526_v51 = vsel %vm6523_vm5, %v6525_v20, %v6521_v31  ;;  %v3562_v8 = vsub.f32 %v3242_v28, %v3424_v63 }
 0x7cb   : > { %v6801_v48 = vsub.f32 %v8246_v46, %v6526_v51  ;;  %v3241_v32 = vsub.f32 %v2857_v5, %v3102_v22 }
 0x7cc   : > { %v3679_v20 = vsel %vm3573_vm4, %v3562_v8, 0.0  ;;  %v13887_v8 = vld [vmem:[#allocation113_spill] sm:$0xff] }
 0x7cd   : > { %v6865_v35 = vmul.f32 %v6801_v48, %v6801_v48  ;;  %v3561_v53 = vsub.f32 %v3241_v32, %v3422_v60 }
 0x7ce   : > { %v3108_v1 = vpop.permute.xlu0 %3107 }
 0x7cf   : > { %v6976_v45 = vsel %vm214_vm1, %v6865_v35, 0.0  ;;  %v4590_v37 = vpop.f32.mrf.mxu2  ;;  %v3677_v4 = vsel %vm3573_vm4, %v3561_v53, 0.0  ;;  %v13883_v35 = vld [vmem:[#allocation109_spill] sm:$0xff]  ;;  %v13886_v53 = vld [vmem:[#allocation114_spill] sm:$0xff] }
 0x7d0   : > { %v3414_v3 = vpop.permute.xlu1 %3413  ;;  %v12807_v10 = vadd.f32 %v6976_v45, %v6975_v30  ;;  %v4591_v9 = vadd.f32 %v8247_v17, %v4590_v37  ;;  %v2859_v47 = vmul.f32 %v13883_v35, %v13883_v35  ;;  %v2860_v45 = vmul.f32 %v13884_v12, %v13884_v12 }
 0x7d1   : > { %v3557_v41 = vsub.f32 %v3237_v18, %v3414_v3  ;;  %v3110_v50 = vpop.permute.xlu2 %3109 }
 0x7d2   : > { %v4656_v56 = vmax.f32 %v4591_v9, 0.0  ;;  %v3244_v17 = vsub.f32 %v2860_v45, %v3108_v1 }
 0x7d3   : > { %v3669_v38 = vsel %vm3573_vm4, %v3557_v41, 0.0  ;;  %v2861_v41 = vmul.f32 %v13885_v40, %v13885_v40 }
 0x7d4   : > { %v3670_v19 = vadd.f32 %v3669_v38, %v3668_v11  ;;  %7529 = vmatmul.msk.f32.gmra.mxu3 %vm691_vm2, %v4656_v56 }
 0x7d5   : > { %v3245_v38 = vsub.f32 %v2861_v41, %v3110_v50 }
 0x7d6   : > { %v3672_v42 = vadd.f32 %v3671_v15, %v3670_v19  ;;  %v3428_v31 = vpop.permute.xlu0 %3427 }
 0x7d7   : > { %v3564_v56 = vsub.f32 %v3244_v17, %v3428_v31 }
 0x7d8   : > { %v3100_v59 = vpop.permute.xlu1 %3099  ;;  %v3674_v44 = vadd.f32 %v3673_v34, %v3672_v42 }
 0x7d9   : > { %v3240_v55 = vsub.f32 %v2856_v6, %v3100_v59  ;;  %v3430_v36 = vpop.permute.xlu2 %3429  ;;  %v3683_v1 = vsel %vm3573_vm4, %v3564_v56, 0.0 }
 0x7da   : > { %v3565_v34 = vsub.f32 %v3245_v38, %v3430_v36 }
 0x7db   : > { %v5041_v26 = vpop.f32.mrf.mxu3 }
 0x7dc   : > { %v5042_v62 = vadd.f32 %v12823_v24, %v5041_v26  ;;  %v3685_v14 = vsel %vm3573_vm4, %v3565_v34, 0.0 }
 0x7de   : > { %v5121_v49 = vmax.f32 %v5042_v62, 0.0  ;;  %v3114_v43 = vpop.permute.xlu0 %3113 }
 0x7df   : > { %v5492_v58 = vpop.f32.mrf.mxu0 }
 0x7e0   : > { %v3420_v29 = vpop.permute.xlu1 %3419  ;;  %v5493_v25 = vadd.f32 %v12553_v39, %v5492_v58  ;;  %7586 = vmatmul.msk.f32.gmra.mxu0 %vm691_vm2, %v5121_v49 }
 0x7e1   : > { %v3560_v7 = vsub.f32 %v3240_v55, %v3420_v29  ;;  %v3116_v15 = vpop.permute.xlu2 %3115 }
 0x7e2   : > { %v7643_v13 = vmul.f32 -1.442695, %v5493_v25 }
 0x7e3   : > { %v3675_v27 = vsel %vm3573_vm4, %v3560_v7, 0.0  ;;  %v5044_v2 = vpop.f32.mrf.mxu3  ;;  %v2863_v7 = vmul.f32 %v13886_v53, %v13886_v53 }
 0x7e4   : > { %v3676_v30 = vadd.f32 %v3675_v27, %v3674_v44  ;;  %8007 = vpow2.f32 %v7643_v13  ;;  %v5045_v11 = vadd.f32 %v12823_v24, %v5044_v2  ;;  %v2862_v27 = vmul.f32 %v13887_v8, %v13887_v8  ;;  %v13891_v8 = vld [vmem:[#allocation36_spill] sm:$0xff] }
 0x7e5   : > { %v3247_v31 = vsub.f32 %v2863_v7, %v3114_v43  ;;  %v12885_v7 = vld [vmem:[%s13175_s1 + $0x13f] ss:$0 sm:$0xff] }
 0x7e6   : > { %v3678_v22 = vadd.f32 %v3677_v4, %v3676_v30  ;;  %v5122_v57 = vmax.f32 %v5045_v11, 0.0  ;;  %v3434_v29 = vpop.permute.xlu0 %3433 }
 0x7e7   : > { %v5495_v46 = vpop.f32.mrf.mxu0 }
 0x7e8   : > { %v3106_v51 = vpop.permute.xlu1 %3105  ;;  %v3680_v48 = vadd.f32 %v3679_v20, %v3678_v22  ;;  %v5496_v61 = vadd.f32 %v12553_v39, %v5495_v46  ;;  %7587 = vmatmul.msk.f32.gmra.mxu0 %vm691_vm2, %v5122_v57  ;;  %v13888_v22 = vld [vmem:[#allocation115_spill] sm:$0xff] }
 0x7e9   : > { %v3243_v3 = vsub.f32 %v2859_v47, %v3106_v51  ;;  %v3436_v30 = vpop.permute.xlu2 %3435  ;;  %v2864_v20 = vmul.f32 %v13888_v22, %v13888_v22  ;;  %v8249_v51 = vld [vmem:[%s8320_s25 + $0x188] sm:$0xff] }
 0x7ea   : > { %v8008_v16 = vpop.eup %8007  ;;  %v7644_v21 = vmul.f32 -1.442695, %v5496_v61 }
 0x7eb   : > { %v5778_v23 = vadd.f32 1.0, %v8008_v16  ;;  %v5047_v52 = vpop.f32.mrf.mxu3  ;;  %v3248_v16 = vsub.f32 %v2864_v20, %v3116_v15 }
 0x7ec   : > { %8009 = vpow2.f32 %v7644_v21  ;;  %v5048_v18 = vadd.f32 %v12823_v24, %v5047_v52  ;;  %v3567_v21 = vsub.f32 %v3247_v31, %v3434_v29 }
 0x7ed   : > { %8011 = vrcp.f32 %v5778_v23  ;;  %v6539_v0 = vand.u32 2147483648, %v5778_v23  ;;  %v6537_v55 = vand.u32 2147483647, %v5778_v23  ;;  %vm6533_vm7 = vweird.f32 %v5778_v23 }
 0x7ee   : > { %v5123_v37 = vmax.f32 %v5048_v18, 0.0  ;;  %v3568_v45 = vsub.f32 %v3248_v16, %v3436_v30  ;;  %v3120_v38 = vpop.permute.xlu0 %3119  ;;  %v13892_v16 = vld [vmem:[#allocation35_spill] sm:$0xff] }
 0x7ef   : > { %v6540_v25 = vor.u32 1.1754944e-38, %v6539_v0  ;;  %vm6538_vm9 = vcmp.eq.f32.partialorder %v6537_v55, 8.507059e+37 }
 0x7f0   : > { %v3426_v9 = vpop.permute.xlu1 %3425  ;;  %7588 = vmatmul.msk.f32.gmra.mxu0 %vm691_vm2, %v5123_v37  ;;  %v3691_v34 = vsel %vm3573_vm4, %v3568_v45, 0.0 }
 0x7f1   : > { %v3563_v60 = vsub.f32 %v3243_v3, %v3426_v9 }
 0x7f2   : > { %v8010_v19 = vpop.eup %8009 }
 0x7f3   : > { %v3681_v63 = vsel %vm3573_vm4, %v3563_v60, 0.0  ;;  %v8012_v42 = vpop.eup %8011  ;;  %v12845_v59 = vadd.f32 1.0, %v8010_v19  ;;  %v3689_v60 = vsel %vm3573_vm4, %v3567_v21, 0.0  ;;  %v2868_v21 = vmul.f32 %v13892_v16, %v13892_v16 }
 0x7f4   : > { %v3682_v44 = vadd.f32 %v3681_v63, %v3680_v48  ;;  %v5050_v26 = vpop.f32.mrf.mxu3  ;;  %v6529_v33 = vmul.f32 %v8012_v42, %v5778_v23  ;;  %vm6534_vm6 = vweird.f32 %v8012_v42 }
 0x7f5   : > { %v5051_v5 = vadd.f32 %v12823_v24, %v5050_v26  ;;  %8013 = vrcp.f32 %v12845_v59  ;;  %vm6535_vm8 = vmor %vm6533_vm7, %vm6534_vm6  ;;  %v6552_v23 = vand.u32 2147483647, %v12845_v59  ;;  %v6554_v52 = vand.u32 2147483648, %v12845_v59 }
 0x7f6   : > { %v6530_v54 = vsub.f32 1.0, %v6529_v33  ;;  %v3684_v6 = vadd.f32 %v3683_v1, %v3682_v44  ;;  %vm6548_vm11 = vweird.f32 %v12845_v59  ;;  %v8250_v44 = vld [vmem:[%s8320_s25 + $0x190] sm:$0xff] }
 0x7f7   : > { %v5124_v62 = vmax.f32 %v5051_v5, 0.0  ;;  %v6555_v17 = vor.u32 1.1754944e-38, %v6554_v52  ;;  %vm6553_vm13 = vcmp.eq.f32.partialorder %v6552_v23, 8.507059e+37 }
 0x7f8   : > { %v3112_v32 = vpop.permute.xlu1 %3111  ;;  %v6531_v50 = vmul.f32 %v8012_v42, %v6530_v54  ;;  %v3686_v49 = vadd.f32 %v3685_v14, %v3684_v6 }
 0x7f9   : > { %7589 = vmatmul.msk.f32.gmra.mxu0 %vm691_vm2, %v5124_v62  ;;  %v3246_v36 = vsub.f32 %v2862_v27, %v3112_v32  ;;  %v13889_v32 = vld [vmem:[#allocation118_spill] sm:$0xff]  ;;  %v2867_v27 = vmul.f32 %v13891_v8, %v13891_v8 }
 0x7fa   : > { %v6532_v58 = vadd.f32 %v8012_v42, %v6531_v50  ;;  %v2865_v50 = vmul.f32 %v13889_v32, %v13889_v32 }
 0x7fb   : > { %v8014_v28 = vpop.eup %8013 }
 0x7fc   : > { %v5053_v13 = vpop.f32.mrf.mxu3  ;;  %v6536_v2 = vsel %vm6535_vm8, %v8012_v42, %v6532_v58  ;;  %v6544_v4 = vmul.f32 %v8014_v28, %v12845_v59  ;;  %vm6549_vm10 = vweird.f32 %v8014_v28  ;;  %v3122_v59 = vpop.permute.xlu2 %3121 }
 0x7fd   : > { %v5054_v11 = vadd.f32 %v12823_v24, %v5053_v13  ;;  %v6541_v57 = vsel %vm6538_vm9, %v6540_v25, %v6536_v2  ;;  %vm6550_vm12 = vmor %vm6548_vm11, %vm6549_vm10  ;;  %v3440_v58 = vpop.permute.xlu0 %3439  ;;  %v3251_v20 = vsub.f32 %v2867_v27, %v3122_v59  ;;  %v8252_v59 = vld [vmem:[%s8320_s25 + $0x198] sm:$0xff] }
 0x7fe   : > { %v6802_v46 = vsub.f32 %v8249_v51, %v6541_v57  ;;  %v6545_v48 = vsub.f32 1.0, %v6544_v4 }
 0x7ff   : > { %v5125_v61 = vmax.f32 %v5054_v11, 0.0 }
 0x800   : > { %v3432_v35 = vpop.permute.xlu1 %3431  ;;  %v6866_v47 = vmul.f32 %v6802_v46, %v6802_v46  ;;  %v6546_v18 = vmul.f32 %v8014_v28, %v6545_v48 }
 0x801   : > { %v3566_v12 = vsub.f32 %v3246_v36, %v3432_v35  ;;  %7590 = vmatmul.msk.f32.gmra.mxu0 %vm691_vm2, %v5125_v61 }
 0x802   : > { %v6978_v3 = vsel %vm214_vm1, %v6866_v47, 0.0  ;;  %v6547_v37 = vadd.f32 %v8014_v28, %v6546_v18 }
 0x803   : > { %v3687_v40 = vsel %vm3573_vm4, %v3566_v12, 0.0  ;;  %v6979_v41 = vadd.f32 %v6978_v3, %v12807_v10 }
 0x804   : > { %v3688_v9 = vadd.f32 %v3687_v40, %v3686_v49  ;;  %v5056_v43 = vpop.f32.mrf.mxu3  ;;  %v6551_v56 = vsel %vm6550_vm12, %v8014_v28, %v6547_v37  ;;  %v13890_v49 = vld [vmem:[#allocation26_spill] sm:$0xff]  ;;  %v3442_v4 = vpop.permute.xlu2 %3441 }
 0x805   : > { %v5057_v19 = vadd.f32 %v12823_v24, %v5056_v43  ;;  %v6556_v15 = vsel %vm6553_vm13, %v6555_v17, %v6551_v56  ;;  %v3571_v46 = vsub.f32 %v3251_v20, %v3442_v4  ;;  %v3444_v45 = vpop.permute.xlu0 %3443 }
 0x806   : > { %v3690_v63 = vadd.f32 %v3689_v60, %v3688_v9  ;;  %v5498_v42 = vpop.f32.mrf.mxu0  ;;  %v6803_v26 = vsub.f32 %v8250_v44, %v6556_v15 }
 0x807   : > { %v5126_v10 = vmax.f32 %v5057_v19, 0.0  ;;  %v5499_v33 = vadd.f32 %v12553_v39, %v5498_v42  ;;  %v2866_v39 = vmul.f32 %v13890_v49, %v13890_v49  ;;  %v3697_v23 = vsel %vm3573_vm4, %v3571_v46, 0.0 }
 0x808   : > { %v3118_v5 = vpop.permute.xlu1 %3117  ;;  %v3692_v1 = vadd.f32 %v3691_v34, %v3690_v63  ;;  %v6867_v54 = vmul.f32 %v6803_v26, %v6803_v26 }
 0x809   : > { %v7645_v6 = vmul.f32 -1.442695, %v5499_v33  ;;  %7591 = vmatmul.msk.f32.gmra.mxu0 %vm691_vm2, %v5126_v10  ;;  %v3249_v28 = vsub.f32 %v2865_v50, %v3118_v5  ;;  %v3250_v13 = vsub.f32 %v2866_v39, %v3120_v38 }
 0x80a   : > { %v6980_v62 = vsel %vm214_vm1, %v6867_v54, 0.0 }
 0x80b   : > { %8015 = vpow2.f32 %v7645_v6  ;;  %v12875_v14 = vadd.f32 %v6980_v62, %v6979_v41  ;;  %v3570_v31 = vsub.f32 %v3250_v13, %v3440_v58 }
 0x80c   : > { %v5059_v0 = vpop.f32.mrf.mxu3 }
 0x80d   : > { %v5060_v55 = vadd.f32 %v12823_v24, %v5059_v0  ;;  %v3695_v36 = vsel %vm3573_vm4, %v3570_v31, 0.0 }
 0x80e   : > { %v5501_v29 = vpop.f32.mrf.mxu0 }
 0x80f   : > { %v5127_v53 = vmax.f32 %v5060_v55, 0.0  ;;  %v5502_v25 = vadd.f32 %v12885_v7, %v5501_v29  ;;  %v8253_v55 = vld [vmem:[%s8320_s25 + $0x1a0] sm:$0xff] }
 0x810   : > { %v3438_v30 = vpop.permute.xlu1 %3437 }
 0x811   : > { %v8016_v2 = vpop.eup %8015  ;;  %v3569_v11 = vsub.f32 %v3249_v28, %v3438_v30  ;;  %v7646_v22 = vmul.f32 -1.442695, %v5502_v25  ;;  %7592 = vmatmul.msk.f32.gmra.mxu0 %vm691_vm2, %v5127_v53 }
 0x812   : > { %v5780_v57 = vadd.f32 1.0, %v8016_v2 }
 0x813   : > { %v3693_v51 = vsel %vm3573_vm4, %v3569_v11, 0.0  ;;  %8017 = vpow2.f32 %v7646_v22 }
 0x814   : > { %8019 = vrcp.f32 %v5780_v57  ;;  %v3694_v48 = vadd.f32 %v3693_v51, %v3692_v1  ;;  %v6569_v9 = vand.u32 2147483648, %v5780_v57  ;;  %v6567_v38 = vand.u32 2147483647, %v5780_v57 }
 0x815   : > { %vm6563_vm15 = vweird.f32 %v5780_v57 }
 0x816   : > { %v3696_v61 = vadd.f32 %v3695_v36, %v3694_v48  ;;  %v6570_v15 = vor.u32 1.1754944e-38, %v6569_v9  ;;  %vm6568_vm3 = vcmp.eq.f32.partialorder %v6567_v38, 8.507059e+37  ;;  %v5504_v8 = vpop.f32.mrf.mxu0 }
 0x817   : > { %v5505_v31 = vadd.f32 %v12885_v7, %v5504_v8 }
 0x818   : > { %v3124_v52 = vpop.permute.xlu1 %3123  ;;  %v3698_v18 = vadd.f32 %v3697_v23, %v3696_v61 }
 0x819   : > { %v8018_v35 = vpop.eup %8017  ;;  %v3252_v47 = vsub.f32 %v2868_v21, %v3124_v52  ;;  %v7647_v48 = vmul.f32 -1.442695, %v5505_v31 }
 0x81a   : > { %v8020_v12 = vpop.eup %8019  ;;  %v5781_v3 = vadd.f32 1.0, %v8018_v35 }
 0x81b   : > { %v6559_v37 = vmul.f32 %v8020_v12, %v5780_v57  ;;  %v3572_v40 = vsub.f32 %v3252_v47, %v3444_v45  ;;  %vm6564_vm14 = vweird.f32 %v8020_v12 }
 0x81c   : > { %8021 = vrcp.f32 %v5781_v3  ;;  %vm6565_vm0 = vmor %vm6563_vm15, %vm6564_vm14  ;;  %v6584_v10 = vand.u32 2147483648, %v5781_v3  ;;  %v6582_v1 = vand.u32 2147483647, %v5781_v3  ;;  %vm6578_vm5 = vweird.f32 %v5781_v3 }
 0x81d   : > { %v6560_v41 = vsub.f32 1.0, %v6559_v37  ;;  %v3699_v17 = vsel %vm3573_vm4, %v3572_v40, 0.0  ;;  %8023 = vpow2.f32 %v7647_v48 }
 0x81e   : > { %v3700_v43 = vadd.f32 %v3699_v17, %v3698_v18  ;;  %v6585_v0 = vor.u32 1.1754944e-38, %v6584_v10  ;;  %vm6583_vm7 = vcmp.eq.f32.partialorder %v6582_v1, 8.507059e+37 }
 0x81f   : > { %v6561_v60 = vmul.f32 %v8020_v12, %v6560_v41 }
 0x820   : > { %3701 = vadd.xlane.f32.xlu1 %v3700_v43 }
 0x821   : > { %v6562_v56 = vadd.f32 %v8020_v12, %v6561_v60 }
 0x822   : > { %v8022_v19 = vpop.eup %8021 }
 0x823   : > { %v6566_v63 = vsel %vm6565_vm0, %v8020_v12, %v6562_v56  ;;  %v6574_v42 = vmul.f32 %v8022_v19, %v5781_v3  ;;  %vm6579_vm4 = vweird.f32 %v8022_v19  ;;  %v8024_v23 = vpop.eup %8023 }
 0x824   : > { %v6571_v34 = vsel %vm6568_vm3, %v6570_v15, %v6566_v63  ;;  %vm6580_vm6 = vmor %vm6578_vm5, %vm6579_vm4  ;;  %v12910_v47 = vadd.f32 1.0, %v8024_v23 }
 0x825   : > { %v6804_v44 = vsub.f32 %v8252_v59, %v6571_v34  ;;  %v6575_v26 = vsub.f32 1.0, %v6574_v42 }
 0x826   : > { %vm6593_vm8 = vweird.f32 %v12910_v47 }
 0x827   : > { %v6868_v33 = vmul.f32 %v6804_v44, %v6804_v44  ;;  %v6576_v5 = vmul.f32 %v8022_v19, %v6575_v26 }
 0x829   : > { %v6982_v54 = vsel %vm214_vm1, %v6868_v33, 0.0  ;;  %v6577_v6 = vadd.f32 %v8022_v19, %v6576_v5 }
 0x82a   : > { %v6983_v62 = vadd.f32 %v6982_v54, %v12875_v14  ;;  %v5507_v14 = vpop.f32.mrf.mxu0 }
 0x82b   : > { %v6581_v32 = vsel %vm6580_vm6, %v8022_v19, %v6577_v6  ;;  %v5508_v36 = vadd.f32 %v12885_v7, %v5507_v14 }
 0x82c   : > { %v6586_v50 = vsel %vm6583_vm7, %v6585_v0, %v6581_v32 }
 0x82d   : > { %v6805_v49 = vsub.f32 %v8253_v55, %v6586_v50  ;;  %v7648_v61 = vmul.f32 -1.442695, %v5508_v36 }
 0x82f   : > { %v6869_v39 = vmul.f32 %v6805_v49, %v6805_v49  ;;  %8025 = vpow2.f32 %v7648_v61 }
 0x831   : > { %v6984_v29 = vsel %vm214_vm1, %v6869_v39, 0.0 }
 0x832   : > { %v12902_v58 = vadd.f32 %v6984_v29, %v6983_v62  ;;  %v5510_v27 = vpop.f32.mrf.mxu0 }
 0x833   : > { %v5511_v16 = vadd.f32 %v12885_v7, %v5510_v27 }
 0x835   : > { %v7649_v35 = vmul.f32 -1.442695, %v5511_v16  ;;  %v8026_v12 = vpop.eup %8025 }
 0x836   : > { %v12914_v37 = vadd.f32 1.0, %v8026_v12 }
 0x837   : > { %8027 = vpow2.f32 %v7649_v35 }
 0x838   : > { %8029 = vrcp.f32 %v12910_v47  ;;  %vm6608_vm11 = vweird.f32 %v12914_v37  ;;  %v6612_v16 = vand.u32 2147483647, %v12914_v37 }
 0x83a   : > { %vm6613_vm14 = vcmp.eq.f32.partialorder %v6612_v16, 8.507059e+37 }
 0x83d   : > { %v8028_v41 = vpop.eup %8027 }
 0x83e   : > { %v12918_v9 = vpop.eup %8029  ;;  %v12921_v38 = vadd.f32 1.0, %v8028_v41 }
 0x83f   : > { %v6589_v56 = vmul.f32 %v12918_v9, %v12910_v47 }
 0x840   : > { %vm6623_vm3 = vweird.f32 %v12921_v38 }
 0x841   : > { %v6590_v10 = vsub.f32 1.0, %v6589_v56 }
 0x843   : > { %v6591_v0 = vmul.f32 %v12918_v9, %v6590_v10 }
 0x845   : > { %v6592_v29 = vadd.f32 %v12918_v9, %v6591_v0 }
 0x857   : > { %v5062_v28 = vpop.f32.mrf.mxu3 }
 0x858   : > { %v5063_v53 = vadd.f32 %v12823_v24, %v5062_v28 }
 0x85a   : > { %v5128_v25 = vmax.f32 %v5063_v53, 0.0 }
 0x85c   : > { %7593 = vmatmul.msk.f32.gmra.mxu0 %vm691_vm2, %v5128_v25  ;;  %vm6594_vm2 = vweird.f32 %v12918_v9 }
 0x85d   : > { %v5513_v13 = vpop.f32.mrf.mxu0  ;;  %vm12959_vm9 = vmor %vm6593_vm8, %vm6594_vm2 }
 0x85e   : > { %v5514_v52 = vadd.f32 %v12885_v7, %v5513_v13  ;;  %v6599_v13 = vand.u32 2147483648, %v12910_v47 }
 0x860   : > { %v7650_v45 = vmul.f32 -1.442695, %v5514_v52  ;;  %v6600_v48 = vor.u32 1.1754944e-38, %v6599_v13 }
 0x862   : > { %8031 = vpow2.f32 %v7650_v45 }
 0x865   : > { %v5516_v30 = vpop.f32.mrf.mxu0 }
 0x866   : > { %v5517_v18 = vadd.f32 %v12885_v7, %v5516_v30 }
 0x868   : > { %v7651_v3 = vmul.f32 -1.442695, %v5517_v18  ;;  %v8032_v60 = vpop.eup %8031 }
 0x869   : > { %v12928_v59 = vadd.f32 1.0, %v8032_v60 }
 0x86a   : > { %8033 = vpow2.f32 %v7651_v3 }
 0x86b   : > { %8035 = vrcp.f32 %v12914_v37  ;;  %vm6638_vm6 = vweird.f32 %v12928_v59 }
 0x86c   : > { %8037 = vrcp.f32 %v12921_v38 }
 0x86d   : > { %v5519_v2 = vpop.f32.mrf.mxu0 }
 0x86e   : > { %v5520_v17 = vadd.f32 %v12885_v7, %v5519_v2 }
 0x870   : > { %v7652_v19 = vmul.f32 -1.442695, %v5520_v17  ;;  %v8034_v15 = vpop.eup %8033 }
 0x871   : > { %v12926_v34 = vpop.eup %8035  ;;  %v12932_v33 = vadd.f32 1.0, %v8034_v15 }
 0x872   : > { %8039 = vpow2.f32 %v7652_v19  ;;  %v6604_v5 = vmul.f32 %v12926_v34, %v12914_v37  ;;  %v12939_v62 = vpop.eup %8037  ;;  %vm6609_vm10 = vweird.f32 %v12926_v34  ;;  %v6629_v19 = vand.u32 2147483648, %v12921_v38 }
 0x873   : > { %v6619_v8 = vmul.f32 %v12939_v62, %v12921_v38  ;;  %vm12977_vm13 = vmor %vm6608_vm11, %vm6609_vm10  ;;  %vm6624_vm15 = vweird.f32 %v12939_v62  ;;  %vm6653_vm8 = vweird.f32 %v12932_v33 }
 0x874   : > { %v6605_v32 = vsub.f32 1.0, %v6604_v5  ;;  %vm13017_vm4 = vmor %vm6623_vm3, %vm6624_vm15 }
 0x875   : > { %v6620_v31 = vsub.f32 1.0, %v6619_v8  ;;  %v6657_v8 = vand.u32 2147483647, %v12932_v33 }
 0x876   : > { %v5522_v51 = vpop.f32.mrf.mxu0  ;;  %v6606_v28 = vmul.f32 %v12926_v34, %v6605_v32 }
 0x877   : > { %v5523_v43 = vadd.f32 %v12885_v7, %v5522_v51  ;;  %v6621_v35 = vmul.f32 %v12939_v62, %v6620_v31  ;;  %vm6658_vm11 = vcmp.eq.f32.partialorder %v6657_v8, 8.507059e+37 }
 0x878   : > { %v8040_v55 = vpop.eup %8039 }
 0x879   : > { %v7653_v63 = vmul.f32 -1.442695, %v5523_v43  ;;  %v12947_v53 = vadd.f32 1.0, %v8040_v55  ;;  %v6622_v43 = vadd.f32 %v12939_v62, %v6621_v35  ;;  %v6630_v55 = vor.u32 1.1754944e-38, %v6629_v19 }
 0x87b   : > { %8041 = vpow2.f32 %v7653_v63  ;;  %v6672_v16 = vand.u32 2147483647, %v12947_v53 }
 0x87c   : > { %8043 = vrcp.f32 %v12928_v59 }
 0x87d   : > { %8045 = vrcp.f32 %v12932_v33 }
 0x87e   : > { %v5525_v21 = vpop.f32.mrf.mxu0 }
 0x87f   : > { %v5526_v42 = vadd.f32 %v12885_v7, %v5525_v21 }
 0x881   : > { %v7654_v1 = vmul.f32 -1.442695, %v5526_v42  ;;  %v8042_v49 = vpop.eup %8041 }
 0x882   : > { %v12942_v39 = vpop.eup %8043  ;;  %v12953_v14 = vadd.f32 1.0, %v8042_v49 }
 0x883   : > { %8047 = vpow2.f32 %v7654_v1  ;;  %v12949_v25 = vpop.eup %8045  ;;  %v6634_v30 = vmul.f32 %v12942_v39, %v12928_v59  ;;  %vm6639_vm0 = vweird.f32 %v12942_v39 }
 0x884   : > { %vm13032_vm7 = vmor %vm6638_vm6, %vm6639_vm0  ;;  %vm6654_vm2 = vweird.f32 %v12949_v25  ;;  %vm13084_vm0 = vcmp.eq.f32.partialorder %v6672_v16, 8.507059e+37  ;;  %vm6683_vm3 = vweird.f32 %v12953_v14 }
 0x885   : > { %v6635_v36 = vsub.f32 1.0, %v6634_v30  ;;  %vm13053_vm10 = vmor %vm6653_vm8, %vm6654_vm2  ;;  %v8259_v30 = vld [vmem:[%s8320_s25 + $0x1d0] sm:$0xff] }
 0x886   : > { %v5528_v40 = vpop.f32.mrf.mxu0 }
 0x887   : > { %v5529_v26 = vadd.f32 %v12885_v7, %v5528_v40  ;;  %v6636_v3 = vmul.f32 %v12942_v39, %v6635_v36  ;;  %v8254_v40 = vld [vmem:[%s8320_s25 + $0x1a8] sm:$0xff] }
 0x889   : > { %v7655_v6 = vmul.f32 -1.442695, %v5529_v26  ;;  %v8048_v27 = vpop.eup %8047  ;;  %v6637_v15 = vadd.f32 %v12942_v39, %v6636_v3  ;;  %v8255_v26 = vld [vmem:[%s8320_s25 + $0x1b0] sm:$0xff] }
 0x88a   : > { %v12973_v51 = vadd.f32 1.0, %v8048_v27  ;;  %v6659_v27 = vand.u32 2147483648, %v12932_v33 }
 0x88b   : > { %8049 = vpow2.f32 %v7655_v6 }
 0x88c   : > { %v6660_v61 = vor.u32 1.1754944e-38, %v6659_v27 }
 0x88e   : > { %v5531_v44 = vpop.f32.mrf.mxu0 }
 0x88f   : > { %v5532_v54 = vadd.f32 %v12885_v7, %v5531_v44  ;;  %v6644_v44 = vand.u32 2147483648, %v12928_v59 }
 0x891   : > { %v7656_v50 = vmul.f32 -1.442695, %v5532_v54  ;;  %v6642_v54 = vand.u32 2147483647, %v12928_v59  ;;  %v6641_v59 = vsel %vm13032_vm7, %v12942_v39, %v6637_v15  ;;  %vm6698_vm7 = vweird.f32 %v12973_v51 }
 0x893   : > { %v3702_v4 = vpop.xlane.xlu1 %3701  ;;  %8051 = vpow2.f32 %v7656_v50 }
 0x894   : > { %v3703_v11 = vrot.slane %v3702_v4, 4  ;;  %8053 = vrcp.f32 %v12947_v53 }
 0x895   : > { %8055 = vrcp.f32 %v12953_v14 }
 0x896   : > { %v3704_v22 = vadd.f32 %v3703_v11, %v3702_v4  ;;  %v6597_v4 = vand.u32 2147483647, %v12910_v47  ;;  %v8050_v11 = vpop.eup %8049  ;;  %8057 = vrcp.f32 %v12973_v51 }
 0x897   : > { %v12982_v21 = vadd.f32 1.0, %v8050_v11 }
 0x898   : > { %v3705_v20 = vrot.slane %v3704_v22, 2  ;;  %vm6598_vm12 = vcmp.eq.f32.partialorder %v6597_v4, 8.507059e+37 }
 0x899   : > { %8059 = vrcp.f32 %v12982_v21 }
 0x89a   : > { %v3706_v57 = vadd.f32 %v3705_v20, %v3704_v22  ;;  %v6596_v22 = vsel %vm12959_vm9, %v12918_v9, %v6592_v29  ;;  %v6607_v20 = vadd.f32 %v12926_v34, %v6606_v28  ;;  %v6627_v9 = vand.u32 2147483647, %v12921_v38 }
 0x89b   : > { %v6601_v23 = vsel %vm6598_vm12, %v6600_v48, %v6596_v22  ;;  %v6626_v38 = vsel %vm13017_vm4, %v12939_v62, %v6622_v43  ;;  %v6645_v62 = vor.u32 1.1754944e-38, %v6644_v44  ;;  %vm6643_vm9 = vcmp.eq.f32.partialorder %v6642_v54, 8.507059e+37 }
 0x89c   : > { %v3707_v46 = vrot.slane %v3706_v57, 1  ;;  %v6611_v52 = vsel %vm12977_vm13, %v12926_v34, %v6607_v20  ;;  %v6806_v41 = vsub.f32 %v8254_v40, %v6601_v23  ;;  %vm13021_vm5 = vcmp.eq.f32.partialorder %v6627_v9, 8.507059e+37  ;;  %v8257_v23 = vld [vmem:[%s8320_s25 + $0x1c0] sm:$0xff] }
 0x89d   : > { %v6631_v39 = vsel %vm13021_vm5, %v6630_v55, %v6626_v38  ;;  %v6646_v11 = vsel %vm6643_vm9, %v6645_v62, %v6641_v59  ;;  %v6687_v9 = vand.u32 2147483647, %v12953_v14  ;;  %v6689_v43 = vand.u32 2147483648, %v12953_v14 }
 0x89e   : > { %v3708_v24 = vadd.f32 %v3707_v46, %v3706_v57  ;;  %v6649_v57 = vmul.f32 %v12949_v25, %v12932_v33  ;;  %v8052_v46 = vpop.eup %8051  ;;  %v6870_v34 = vmul.f32 %v6806_v41, %v6806_v41  ;;  %v6702_v54 = vand.u32 2147483647, %v12973_v51 }
 0x89f   : > { %v12989_v18 = vadd.f32 1.0, %v8052_v46  ;;  %v12991_v12 = vpop.eup %8053  ;;  %vm6688_vm6 = vcmp.eq.f32.partialorder %v6687_v9, 8.507059e+37  ;;  %v6704_v38 = vand.u32 2147483648, %v12973_v51  ;;  %vm6713_vm9 = vweird.f32 %v12982_v21 }
 0x8a0   : > { %7660 = vpush %v3708_v24  ;;  %v6614_v24 = vand.u32 2147483648, %v12914_v37  ;;  %v6650_v47 = vsub.f32 1.0, %v6649_v57  ;;  %v12994_v37 = vpop.eup %8055  ;;  %v6664_v56 = vmul.f32 %v12991_v12, %v12947_v53  ;;  %v13049_v13 = vsel %vm214_vm1, %v6870_v34, 0.0 }
 0x8a1   : > { %8061 = vrcp.f32 %v12989_v18  ;;  %v6679_v63 = vmul.f32 %v12994_v37, %v12953_v14  ;;  %v13010_v42 = vpop.eup %8057  ;;  %vm6669_vm12 = vweird.f32 %v12991_v12  ;;  %vm6684_vm13 = vweird.f32 %v12994_v37 }
 0x8a2   : > { %v6615_v45 = vor.u32 1.1754944e-38, %v6614_v24  ;;  %v6651_v60 = vmul.f32 %v12949_v25, %v6650_v47  ;;  %v13027_v6 = vpop.eup %8059  ;;  %v6665_v50 = vsub.f32 1.0, %v6664_v56  ;;  %v6694_v29 = vmul.f32 %v13010_v42, %v12973_v51  ;;  %v8256_v24 = vld [vmem:[%s8320_s25 + $0x1b8] sm:$0xff]  ;;  %vm13095_vm4 = vmor %vm6683_vm3, %vm6684_vm13 }
 0x8a3   : > { %v6680_v49 = vsub.f32 1.0, %v6679_v63  ;;  %v6709_v2 = vmul.f32 %v13027_v6, %v12982_v21  ;;  %v6808_v36 = vsub.f32 %v8256_v24, %v6631_v39  ;;  %vm6699_vm5 = vweird.f32 %v13010_v42 }
 0x8a4   : > { %v6616_v17 = vsel %vm6613_vm14, %v6615_v45, %v6611_v52  ;;  %v6652_v32 = vadd.f32 %v12949_v25, %v6651_v60  ;;  %v6666_v22 = vmul.f32 %v12991_v12, %v6665_v50  ;;  %v6695_v57 = vsub.f32 1.0, %v6694_v29  ;;  %vm13113_vm8 = vmor %vm6698_vm7, %vm6699_vm5 }
 0x8a5   : > { %v6807_v10 = vsub.f32 %v8255_v26, %v6616_v17  ;;  %v6681_v31 = vmul.f32 %v12994_v37, %v6680_v49  ;;  %v6809_v52 = vsub.f32 %v8257_v23, %v6646_v11  ;;  %v6710_v35 = vsub.f32 1.0, %v6709_v2  ;;  %v8258_v26 = vld [vmem:[%s8320_s25 + $0x1c8] sm:$0xff] }
 0x8a6   : > { %v6656_v33 = vsel %vm13053_vm10, %v12949_v25, %v6652_v32  ;;  %v6674_v25 = vand.u32 2147483648, %v12947_v53  ;;  %v6667_v3 = vadd.f32 %v12991_v12, %v6666_v22  ;;  %v6696_v40 = vmul.f32 %v13010_v42, %v6695_v57 }
 0x8a7   : > { %v13043_v28 = vpop.eup %8061  ;;  %v6871_v4 = vmul.f32 %v6807_v10, %v6807_v10  ;;  %v6661_v45 = vsel %vm6658_vm11, %v6660_v61, %v6656_v33  ;;  %vm6668_vm14 = vweird.f32 %v12947_v53  ;;  %v6872_v60 = vmul.f32 %v6808_v36, %v6808_v36 }
 0x8a8   : > { %v6724_v46 = vmul.f32 %v13043_v28, %v12989_v18  ;;  %vm13080_vm15 = vmor %vm6668_vm14, %vm6669_vm12  ;;  %v6711_v15 = vmul.f32 %v13027_v6, %v6710_v35  ;;  %v6873_v63 = vmul.f32 %v6809_v52, %v6809_v52  ;;  %v6675_v34 = vor.u32 1.1754944e-38, %v6674_v25  ;;  %v8262_v35 = vld [vmem:[%s8320_s25 + $0x1e8] sm:$0xff] }
 0x8a9   : > { %v6988_v17 = vsel %vm214_vm1, %v6871_v4, 0.0  ;;  %v6671_v53 = vsel %vm13080_vm15, %v12991_v12, %v6667_v3  ;;  %v6810_v10 = vsub.f32 %v8258_v26, %v6661_v45  ;;  %v6697_v5 = vadd.f32 %v13010_v42, %v6696_v40  ;;  %v8263_v40 = vld [vmem:[%s8320_s25 + $0x1f0] sm:$0xff] }
 0x8aa   : > { %v6725_v41 = vsub.f32 1.0, %v6724_v46  ;;  %v6690_v12 = vor.u32 1.1754944e-38, %v6689_v43  ;;  %vm6714_vm2 = vweird.f32 %v13027_v6  ;;  %v6676_v32 = vsel %vm13084_vm0, %v6675_v34, %v6671_v53 }
 0x8ab   : > { %v6712_v50 = vadd.f32 %v13027_v6, %v6711_v15  ;;  %v6701_v51 = vsel %vm13113_vm8, %v13010_v42, %v6697_v5  ;;  %v6717_v29 = vand.u32 2147483647, %v12982_v21  ;;  %vm6729_vm10 = vweird.f32 %v13043_v28  ;;  %vm13127_vm12 = vmor %vm6713_vm9, %vm6714_vm2 }
 0x8ac   : > { %v6726_v14 = vmul.f32 %v13043_v28, %v6725_v41  ;;  %vm6703_vm11 = vcmp.eq.f32.partialorder %v6702_v54, 8.507059e+37  ;;  %v6705_v8 = vor.u32 1.1754944e-38, %v6704_v38  ;;  %v6734_v39 = vand.u32 2147483648, %v12989_v18  ;;  %v8264_v38 = vld [vmem:[%s8320_s25 + $0x1f8] sm:$0xff] }
 0x8ad   : > { %vm6728_vm13 = vweird.f32 %v12989_v18  ;;  %v6732_v42 = vand.u32 2147483647, %v12989_v18  ;;  %v6811_v2 = vsub.f32 %v8259_v30, %v6676_v32  ;;  %v6987_v4 = vadd.f32 %v13049_v13, %v12902_v58  ;;  %v8261_v13 = vld [vmem:[%s8320_s25 + $0x1e0] sm:$0xff] }
 0x8ae   : > { %v6727_v62 = vadd.f32 %v13043_v28, %v6726_v14  ;;  %v6706_v33 = vsel %vm6703_vm11, %v6705_v8, %v6701_v51  ;;  %vm13141_vm14 = vmor %vm6728_vm13, %vm6729_vm10  ;;  %vm6718_vm15 = vcmp.eq.f32.partialorder %v6717_v29, 8.507059e+37  ;;  %v6874_v18 = vmul.f32 %v6810_v10, %v6810_v10 }
 0x8af   : > { %v6990_v57 = vsel %vm214_vm1, %v6872_v60, 0.0  ;;  %v6989_v58 = vadd.f32 %v6988_v17, %v6987_v4  ;;  %vm6733_vm0 = vcmp.eq.f32.partialorder %v6732_v42, 8.507059e+37  ;;  %v6813_v24 = vsub.f32 %v8261_v13, %v6706_v33 }
 0x8b0   : > { %v6875_v36 = vmul.f32 %v6811_v2, %v6811_v2  ;;  %v6992_v61 = vsel %vm214_vm1, %v6873_v63, 0.0  ;;  %v6994_v45 = vsel %vm214_vm1, %v6874_v18, 0.0  ;;  %v7017_v42 = vlaneseq }
 0x8b1   : > { %v6991_v25 = vadd.f32 %v6990_v57, %v6989_v58  ;;  %v6877_v17 = vmul.f32 %v6813_v24, %v6813_v24 }
 0x8b2   : > { %v6996_v9 = vsel %vm214_vm1, %v6875_v36, 0.0  ;;  %v7018_v30 = vand.u32 127, %v7017_v42 }
 0x8b3   : > { %v6993_v3 = vadd.f32 %v6992_v61, %v6991_v25  ;;  %v7000_v26 = vsel %vm214_vm1, %v6877_v17, 0.0 }
 0x8b4   : > { %vm7020_vm7 = vcmp.eq.s32.totalorder %v7018_v30, 1 }
 0x8b5   : > { %v6995_v60 = vadd.f32 %v6994_v45, %v6993_v3 }
 0x8b7   : > { %v6997_v53 = vadd.f32 %v6996_v9, %v6995_v60 }
 0x8d9   : > { %v5534_v20 = vpop.f32.mrf.mxu0 }
 0x8da   : > { %v5535_v48 = vadd.f32 %v12885_v7, %v5534_v20  ;;  %v6682_v7 = vadd.f32 %v12994_v37, %v6681_v31  ;;  %v8260_v20 = vld [vmem:[%s8320_s25 + $0x1d8] sm:$0xff]  ;;  %s7661_s25 = spop %7660 }
 0x8db   : > { %s3710_s14 = smul.f32 0.5, %s7661_s25 }
 0x8dc   : > { %v7657_v47 = vmul.f32 -1.442695, %v5535_v48  ;;  %v6686_v1 = vsel %vm13095_vm4, %v12994_v37, %v6682_v7  ;;  %v6719_v37 = vand.u32 2147483648, %v12982_v21  ;;  %v6716_v21 = vsel %vm13127_vm12, %v13027_v6, %v6712_v50 }
 0x8dd   : > { %v6691_v49 = vsel %vm6688_vm6, %v6690_v12, %v6686_v1  ;;  %v6731_v6 = vsel %vm13141_vm14, %v13043_v28, %v6727_v62  ;;  %v6735_v48 = vor.u32 1.1754944e-38, %v6734_v39  ;;  %v7021_v2 = vstv %s3710_s14 }
 0x8de   : > { %8063 = vpow2.f32 %v7657_v47  ;;  %v6720_v11 = vor.u32 1.1754944e-38, %v6719_v37  ;;  %v6812_v31 = vsub.f32 %v8260_v20, %v6691_v49  ;;  %v7022_v4 = vsel %vm7020_vm7, %v7021_v2, 0.0 }
 0x8df   : > { %v6736_v23 = vsel %vm6733_vm0, %v6735_v48, %v6731_v6 }
 0x8e0   : > { %v6721_v46 = vsel %vm6718_vm15, %v6720_v11, %v6716_v21  ;;  %v6876_v52 = vmul.f32 %v6812_v31, %v6812_v31  ;;  %v6815_v41 = vsub.f32 %v8263_v40, %v6736_v23 }
 0x8e1   : > { %v6814_v47 = vsub.f32 %v8262_v35, %v6721_v46 }
 0x8e2   : > { %v6998_v56 = vsel %vm214_vm1, %v6876_v52, 0.0  ;;  %v6879_v44 = vmul.f32 %v6815_v41, %v6815_v41 }
 0x8e3   : > { %v6878_v63 = vmul.f32 %v6814_v47, %v6814_v47  ;;  %v6999_v5 = vadd.f32 %v6998_v56, %v6997_v53 }
 0x8e4   : > { %v8064_v0 = vpop.eup %8063  ;;  %v7004_v32 = vsel %vm214_vm1, %v6879_v44, 0.0 }
 0x8e5   : > { %v13119_v59 = vadd.f32 1.0, %v8064_v0  ;;  %v7002_v1 = vsel %vm214_vm1, %v6878_v63, 0.0  ;;  %v7001_v54 = vadd.f32 %v7000_v26, %v6999_v5 }
 0x8e7   : > { %8065 = vrcp.f32 %v13119_v59  ;;  %v6749_v43 = vand.u32 2147483648, %v13119_v59  ;;  %v6747_v15 = vand.u32 2147483647, %v13119_v59  ;;  %vm6743_vm4 = vweird.f32 %v13119_v59 }
 0x8e8   : > { %v7003_v50 = vadd.f32 %v7002_v1, %v7001_v54 }
 0x8e9   : > { %v6750_v10 = vor.u32 1.1754944e-38, %v6749_v43  ;;  %vm6748_vm6 = vcmp.eq.f32.partialorder %v6747_v15, 8.507059e+37 }
 0x8ea   : > { %v7005_v37 = vadd.f32 %v7004_v32, %v7003_v50 }
 0x8ed   : > { %v8066_v16 = vpop.eup %8065 }
 0x8ee   : > { %v6739_v28 = vmul.f32 %v8066_v16, %v13119_v59  ;;  %vm6744_vm3 = vweird.f32 %v8066_v16 }
 0x8ef   : > { %vm6745_vm5 = vmor %vm6743_vm4, %vm6744_vm3 }
 0x8f0   : > { %v6740_v7 = vsub.f32 1.0, %v6739_v28 }
 0x8f2   : > { %v6741_v19 = vmul.f32 %v8066_v16, %v6740_v7 }
 0x8f4   : > { %v6742_v34 = vadd.f32 %v8066_v16, %v6741_v19 }
 0x8f6   : > { %v6746_v14 = vsel %vm6745_vm5, %v8066_v16, %v6742_v34 }
 0x8f7   : > { %v6751_v12 = vsel %vm6748_vm6, %v6750_v10, %v6746_v14 }
 0x8f8   : > { %v6816_v0 = vsub.f32 %v8264_v38, %v6751_v12 }
 0x8fa   : > { %v6880_v55 = vmul.f32 %v6816_v0, %v6816_v0 }
 0x8fc   : > { %v7006_v59 = vsel %vm214_vm1, %v6880_v55, 0.0  ;;  %vm7019_vm1 = vcmp.eq.s32.totalorder %v7018_v30, 0 }
 0x8fd   : > { %v7007_v49 = vadd.f32 %v7006_v59, %v7005_v37 }
 0x8ff   : > { %7008 = vadd.xlane.f32.xlu2 %v7007_v49 }
 0x972   : > { %v7009_v51 = vpop.xlane.xlu2 %7008 }
 0x973   : > { %v7010_v29 = vrot.slane %v7009_v51, 4 }
 0x975   : > { %v7011_v62 = vadd.f32 %v7010_v29, %v7009_v51 }
 0x977   : > { %v7012_v8 = vrot.slane %v7011_v62, 2 }
 0x979   : > { %v7013_v27 = vadd.f32 %v7012_v8, %v7011_v62 }
 0x97b   : > { %v7014_v39 = vrot.slane %v7013_v27, 1 }
 0x97d   : > { %v7015_v21 = vadd.f32 %v7014_v39, %v7013_v27 }
 0x97f   : > { %7662 = vpush %v7015_v21 }
 0x9b0   : > { %s7663_s19 = spop %7662 }
 0x9b1   : > { %v7023_v11 = vstv %s7663_s19 }
 0x9b2   : > { %v7024_v33 = vsel %vm7019_vm1, %v7023_v11, %v7022_v4 }
 0x9b3   : > { %7025 = vst [vmem:[%s141_s17] sm:$0x1] %v7024_v33 }
 0x9b4 PF: > { %s12_s9 = sadd.s32 1, %s8271_s9  }
 0x9b5   : > { %p9_p5 = scmp.ge.s32.totalorder %s12_s9, 4  }
 0x9b7   :  { %11 = sbr.rel (!%p9_p5) target bundleno = 1 (0x1), region = 58 }

</bundles_post_ra>
